<compile_context>
chip_gen: v5e
topology: v5e:2x2
jax: 0.10.0
libtpu: 0.0.40
codegen_flags: <defaults>
</compile_context>

<pallas_src>
import jax
import jax.numpy as jnp
from jax.experimental import pallas as pl
from jax.experimental.pallas import tpu as pltpu


def _round_up(x, m):
    return ((x + m - 1) // m) * m


def tnet_kernel(x_ref,
                w1_ref, b1_ref, w2_ref, b2_ref, w3_ref, b3_ref,
                wf1_ref, bf1_ref, wf2_ref, bf2_ref, wf3_ref, bf3_ref,
                out_ref, pool_ref, acc_ref):
    """One (batch, point-tile) grid step.

    x_ref    : (1, k, TILE_N) bf16, channel-major (PyTorch NCW)
    w*_ref   : weights, bf16, PyTorch-native (out, in) layout
    b*_ref   : biases, f32, (out, 1) columns
    out_ref  : (1, k*k, 1) f32   -- written on the last point tile only
    pool_ref : (1, 1024, 1) f32  -- max-pooled feature (aux output, last tile only)
    acc_ref  : (1024, 128) f32 VMEM scratch -- running max folded to 128 lanes
    """
    t = pl.program_id(1)
    n_tiles = pl.num_programs(1)

    @pl.when(t == 0)
    def _init():
        acc_ref[...] = jnp.full(acc_ref.shape, -jnp.inf, dtype=acc_ref.dtype)

    # ---- conv1 (k -> 64, kernel_size=1): contraction dim is tiny (k=3), so do it
    # on the VPU as k outer-product FMAs instead of a lane-sparse MXU pass.
    x = x_ref[0].astype(jnp.float32)                     # (k, T)
    w1 = w1_ref[...].astype(jnp.float32)                 # (64, k)
    h = b1_ref[...]                                      # (64, 1) -> broadcasts
    for c in range(x.shape[0]):                          # k is static (3)
        h = h + w1[:, c:c + 1] * x[c:c + 1, :]
    h1 = jnp.maximum(h, 0.0).astype(jnp.bfloat16)        # (64, T)

    # ---- conv2 / conv3: bf16 MXU matmuls, f32 accumulation, bias + ReLU on VPU.
    h2 = jnp.dot(w2_ref[...], h1, preferred_element_type=jnp.float32) + b2_ref[...]
    h2 = jnp.maximum(h2, 0.0).astype(jnp.bfloat16)       # (128, T)
    h3 = jnp.dot(w3_ref[...], h2, preferred_element_type=jnp.float32) + b3_ref[...]
    h3 = jnp.maximum(h3, 0.0)                            # (1024, T) f32

    # ---- running max-pool over points: fold T lanes down to 128 with cheap VPU
    # maxima, then accumulate elementwise into the persistent scratch.
    T = h3.shape[1]
    m = h3[:, 0:128]
    for j in range(1, T // 128):
        m = jnp.maximum(m, h3[:, j * 128:(j + 1) * 128])
    acc_ref[...] = jnp.maximum(acc_ref[...], m)

    # ---- last tile of this batch element: finish the pool + FC head.
    @pl.when(t == n_tiles - 1)
    def _finalize():
        pooled = jnp.max(acc_ref[...], axis=1, keepdims=True)   # (1024, 1) f32
        pool_ref[0] = pooled
        p = pooled.astype(jnp.bfloat16)
        f1 = jnp.dot(wf1_ref[...], p, preferred_element_type=jnp.float32) + bf1_ref[...]
        f1 = jnp.maximum(f1, 0.0).astype(jnp.bfloat16)           # (512, 1)
        f2 = jnp.dot(wf2_ref[...], f1, preferred_element_type=jnp.float32) + bf2_ref[...]
        f2 = jnp.maximum(f2, 0.0).astype(jnp.bfloat16)           # (256, 1)
        f3 = jnp.dot(wf3_ref[...], f2, preferred_element_type=jnp.float32) + bf3_ref[...]
        out_ref[0] = f3                                          # (k*k, 1)


_PARAM_ORDER = ("w1", "b1", "w2", "b2", "w3", "b3",
                "wf1", "bf1", "wf2", "bf2", "wf3", "bf3")


def make_tnet_params(key, k=3):
    """Parameter init matching TNet.__init__: PyTorch-native (out, in) weights,
    (out, 1) biases; fc3 weight zeroed, fc3 bias = flattened identity."""
    def uniform(key, shape, fan_in):
        bound = 1.0 / jnp.sqrt(float(fan_in))
        return jax.random.uniform(key, shape, jnp.float32, -bound, bound)

    keys = jax.random.split(key, 10)
    return {
        "w1": uniform(keys[0], (64, k), k),         "b1": uniform(keys[1], (64, 1), k),
        "w2": uniform(keys[2], (128, 64), 64),      "b2": uniform(keys[3], (128, 1), 64),
        "w3": uniform(keys[4], (1024, 128), 128),   "b3": uniform(keys[5], (1024, 1), 128),
        "wf1": uniform(keys[6], (512, 1024), 1024), "bf1": uniform(keys[7], (512, 1), 1024),
        "wf2": uniform(keys[8], (256, 512), 512),   "bf2": uniform(keys[9], (256, 1), 512),
        "wf3": jnp.zeros((k * k, 256), jnp.float32),
        "bf3": jnp.eye(k, dtype=jnp.float32).reshape(k * k, 1),
    }


def tnet_forward(x_bkn, params, k=3, tile_n=512):
    """x_bkn: (B, k, N) float32 in PyTorch NCW layout.
    Returns (transform (B, k, k) f32, pooled (B, 1024) f32)."""
    B, K, N = x_bkn.shape
    assert K == k

    # Point-tile size: a multiple of 128 lanes, no bigger than needed.
    tile_n = max(128, (tile_n // 128) * 128)
    tile_n = min(tile_n, _round_up(N, 128))
    n_pad = _round_up(N, tile_n)

    x = x_bkn.astype(jnp.float32)
    if n_pad != N:
        # Replicate the last point; duplicates never change the max-pool.
        x = jnp.pad(x, ((0, 0), (0, 0), (0, n_pad - N)), mode="edge")
    x = x.astype(jnp.bfloat16)
    num_tiles = n_pad // tile_n

    # bf16 weights (MXU), f32 biases (added after f32 accumulation).
    ops = []
    in_specs = [pl.BlockSpec((1, k, tile_n), lambda b, t: (b, 0, t))]
    for name in _PARAM_ORDER:
        p = params[name].astype(jnp.float32 if name.startswith("b") else jnp.bfloat16)
        ops.append(p)
        # Constant block index -> DMA'd once, stays resident across point tiles.
        in_specs.append(pl.BlockSpec(p.shape, lambda b, t: (0, 0)))

    out_shape = (jax.ShapeDtypeStruct((B, k * k, 1), jnp.float32),
                 jax.ShapeDtypeStruct((B, 1024, 1), jnp.float32))
    out_specs = (pl.BlockSpec((1, k * k, 1), lambda b, t: (b, 0, 0)),
                 pl.BlockSpec((1, 1024, 1), lambda b, t: (b, 0, 0)))

    out, pooled = pl.pallas_call(
        tnet_kernel,
        grid=(B, num_tiles),
        in_specs=in_specs,
        out_specs=out_specs,
        out_shape=out_shape,
        scratch_shapes=[pltpu.VMEM((1024, 128), jnp.float32)],
        compiler_params=pltpu.CompilerParams(
            dimension_semantics=("parallel", "arbitrary"),
            vmem_limit_bytes=32 * 1024 * 1024),
    )(x, *ops)
    return out.reshape(B, k, k), pooled.reshape(B, 1024)


def tnet_reference(x_bkn, params, k=3):
    """Plain-JAX f32 reference of the same forward for validation."""
    x = x_bkn.astype(jnp.float32)                                           # (B, k, N)
    h = jax.nn.relu(jnp.einsum("oi,bin->bon", params["w1"], x) + params["b1"][None])
    h = jax.nn.relu(jnp.einsum("oi,bin->bon", params["w2"], h) + params["b2"][None])
    h = jax.nn.relu(jnp.einsum("oi,bin->bon", params["w3"], h) + params["b3"][None])
    pooled = jnp.max(h, axis=2)                                             # (B, 1024)
    f = jax.nn.relu(pooled @ params["wf1"].T + params["bf1"][:, 0])
    f = jax.nn.relu(f @ params["wf2"].T + params["bf2"][:, 0])
    out = f @ params["wf3"].T + params["bf3"][:, 0]
    return out.reshape(x.shape[0], k, k), pooled


if __name__ == "__main__":
    key = jax.random.PRNGKey(0)
    p_key, x_key, w_key, b_key = jax.random.split(key, 4)

    B, K, N = 2, 3, 600          # small NCW point cloud; N not a tile multiple
    params = make_tnet_params(p_key, k=K)
    x = jax.random.normal(x_key, (B, K, N), dtype=jnp.float32)

    # 1) Faithful init: fc3 weight is zero and its bias is the identity, so the
    #    forward must return the identity transform; also check the pooled feature.
    out, pooled = tnet_forward(x, params, k=K, tile_n=256)
    out = jax.block_until_ready(out)
    ref_out, ref_pooled = tnet_reference(x, params, k=K)
    assert out.shape == (B, K, K)
    ident = jnp.broadcast_to(jnp.eye(K, dtype=jnp.float32), (B, K, K))
    assert jnp.allclose(out, ident, atol=1e-5), "identity-init output mismatch"
    assert jnp.allclose(pooled, ref_pooled, atol=5e-3, rtol=3e-2), \
        "pooled feature mismatch vs reference"

    # 2) Randomize fc3 so the whole conv/pool/FC path is actually exercised
    #    (tolerances account for bf16 weights/activations with f32 accumulation).
    params2 = dict(params)
    params2["wf3"] = jax.random.uniform(w_key, (K * K, 256), jnp.float32, -0.5, 0.5)
    params2["bf3"] = jax.random.normal(b_key, (K * K, 1), jnp.float32) * 0.1
    out2, _ = tnet_forward(x, params2, k=K, tile_n=256)
    out2 = jax.block_until_ready(out2)
    ref2, _ = tnet_reference(x, params2, k=K)
    assert jnp.allclose(out2, ref2, atol=1e-2, rtol=3e-2), \
        "Pallas output mismatch vs reference"

    print("KERNEL_OK")
</pallas_src>

<mosaic_0001>
module attributes {stable_mosaic.version = 11 : i64} {
  func.func @tnet_kernel(%arg0: i32, %arg1: i32, %arg2: memref<1x3x256xbf16, #tpu.memory_space<vmem>>, %arg3: memref<64x3xbf16, #tpu.memory_space<vmem>>, %arg4: memref<64x1xf32, #tpu.memory_space<vmem>>, %arg5: memref<128x64xbf16, #tpu.memory_space<vmem>>, %arg6: memref<128x1xf32, #tpu.memory_space<vmem>>, %arg7: memref<1024x128xbf16, #tpu.memory_space<vmem>>, %arg8: memref<1024x1xf32, #tpu.memory_space<vmem>>, %arg9: memref<512x1024xbf16, #tpu.memory_space<vmem>>, %arg10: memref<512x1xf32, #tpu.memory_space<vmem>>, %arg11: memref<256x512xbf16, #tpu.memory_space<vmem>>, %arg12: memref<256x1xf32, #tpu.memory_space<vmem>>, %arg13: memref<9x256xbf16, #tpu.memory_space<vmem>>, %arg14: memref<9x1xf32, #tpu.memory_space<vmem>>, %arg15: memref<1x9x1xf32, #tpu.memory_space<vmem>>, %arg16: memref<1x1024x1xf32, #tpu.memory_space<vmem>>, %arg17: memref<1024x128xf32, #tpu.memory_space<vmem>>) attributes {dimension_semantics = [#tpu.dimension_semantics<parallel>, #tpu.dimension_semantics<arbitrary>], iteration_bounds = array<i64: 2, 3>, scalar_prefetch = 0 : i64, scratch_operands = 1 : i64, tpu.core_type = #tpu.core_type<tc>, window_params = [{transform_indices = @transform_0, window_bounds = array<i64: 1, 3, 256>}, {pipeline_mode = #tpu.pipeline_mode<synchronous>, transform_indices = @transform_1, window_bounds = array<i64: 64, 3>}, {pipeline_mode = #tpu.pipeline_mode<synchronous>, transform_indices = @transform_2, window_bounds = array<i64: 64, 1>}, {pipeline_mode = #tpu.pipeline_mode<synchronous>, transform_indices = @transform_3, window_bounds = array<i64: 128, 64>}, {pipeline_mode = #tpu.pipeline_mode<synchronous>, transform_indices = @transform_4, window_bounds = array<i64: 128, 1>}, {pipeline_mode = #tpu.pipeline_mode<synchronous>, transform_indices = @transform_5, window_bounds = array<i64: 1024, 128>}, {pipeline_mode = #tpu.pipeline_mode<synchronous>, transform_indices = @transform_6, window_bounds = array<i64: 1024, 1>}, {pipeline_mode = #tpu.pipeline_mode<synchronous>, transform_indices = @transform_7, window_bounds = array<i64: 512, 1024>}, {pipeline_mode = #tpu.pipeline_mode<synchronous>, transform_indices = @transform_8, window_bounds = array<i64: 512, 1>}, {pipeline_mode = #tpu.pipeline_mode<synchronous>, transform_indices = @transform_9, window_bounds = array<i64: 256, 512>}, {pipeline_mode = #tpu.pipeline_mode<synchronous>, transform_indices = @transform_10, window_bounds = array<i64: 256, 1>}, {pipeline_mode = #tpu.pipeline_mode<synchronous>, transform_indices = @transform_11, window_bounds = array<i64: 9, 256>}, {pipeline_mode = #tpu.pipeline_mode<synchronous>, transform_indices = @transform_12, window_bounds = array<i64: 9, 1>}, {transform_indices = @transform_13, window_bounds = array<i64: 1, 9, 1>}, {transform_indices = @transform_14, window_bounds = array<i64: 1, 1024, 1>}]} {
    %c0_i32 = arith.constant 0 : i32
    %0 = arith.cmpi eq, %arg1, %c0_i32 : i32
    %1 = arith.extui %0 : i1 to i32
    %c0_i32_0 = arith.constant 0 : i32
    %2 = arith.cmpi ne, %1, %c0_i32_0 : i32
    scf.if %2 {
      %cst_24 = arith.constant 0xFF800000 : f32
      %55 = vector.broadcast %cst_24 : f32 to vector<1024x128xf32>
      %c0_25 = arith.constant 0 : index
      %c0_26 = arith.constant 0 : index
      %56 = vector.load %arg17[%c0_25, %c0_26] : memref<1024x128xf32, #tpu.memory_space<vmem>>, vector<1024x128xf32>
      tpu.vector_store %arg17[%c0_25, %c0_26], %55 {strides = array<i32>} : memref<1024x128xf32, #tpu.memory_space<vmem>>, vector<1024x128xf32>,
    } else {
    }
    %c0 = arith.constant 0 : index
    %c0_1 = arith.constant 0 : index
    %c0_2 = arith.constant 0 : index
    %3 = vector.load %arg2[%c0, %c0_1, %c0_2] : memref<1x3x256xbf16, #tpu.memory_space<vmem>>, vector<1x3x256xbf16>
    %4 = vector.shape_cast %3 : vector<1x3x256xbf16> to vector<3x256xbf16>
    %5 = arith.extf %4 : vector<3x256xbf16> to vector<3x256xf32>
    %c0_3 = arith.constant 0 : index
    %c0_4 = arith.constant 0 : index
    %6 = vector.load %arg3[%c0_3, %c0_4] : memref<64x3xbf16, #tpu.memory_space<vmem>>, vector<64x3xbf16>
    %7 = arith.extf %6 : vector<64x3xbf16> to vector<64x3xf32>
    %c0_5 = arith.constant 0 : index
    %c0_6 = arith.constant 0 : index
    %8 = vector.load %arg4[%c0_5, %c0_6] : memref<64x1xf32, #tpu.memory_space<vmem>>, vector<64x1xf32>
    %9 = vector.extract_strided_slice %7 {offsets = [0, 0], sizes = [64, 1], strides = [1, 1]} : vector<64x3xf32> to vector<64x1xf32>
    %10 = vector.extract_strided_slice %5 {offsets = [0, 0], sizes = [1, 256], strides = [1, 1]} : vector<3x256xf32> to vector<1x256xf32>
    %11 = vector.broadcast %9 : vector<64x1xf32> to vector<64x256xf32>
    %12 = vector.broadcast %10 : vector<1x256xf32> to vector<64x256xf32>
    %13 = arith.mulf %11, %12 : vector<64x256xf32>
    %14 = vector.broadcast %8 : vector<64x1xf32> to vector<64x256xf32>
    %15 = arith.addf %14, %13 : vector<64x256xf32>
    %16 = vector.extract_strided_slice %7 {offsets = [0, 1], sizes = [64, 1], strides = [1, 1]} : vector<64x3xf32> to vector<64x1xf32>
    %17 = vector.extract_strided_slice %5 {offsets = [1, 0], sizes = [1, 256], strides = [1, 1]} : vector<3x256xf32> to vector<1x256xf32>
    %18 = vector.broadcast %16 : vector<64x1xf32> to vector<64x256xf32>
    %19 = vector.broadcast %17 : vector<1x256xf32> to vector<64x256xf32>
    %20 = arith.mulf %18, %19 : vector<64x256xf32>
    %21 = arith.addf %15, %20 : vector<64x256xf32>
    %22 = vector.extract_strided_slice %7 {offsets = [0, 2], sizes = [64, 1], strides = [1, 1]} : vector<64x3xf32> to vector<64x1xf32>
    %23 = vector.extract_strided_slice %5 {offsets = [2, 0], sizes = [1, 256], strides = [1, 1]} : vector<3x256xf32> to vector<1x256xf32>
    %24 = vector.broadcast %22 : vector<64x1xf32> to vector<64x256xf32>
    %25 = vector.broadcast %23 : vector<1x256xf32> to vector<64x256xf32>
    %26 = arith.mulf %24, %25 : vector<64x256xf32>
    %27 = arith.addf %21, %26 : vector<64x256xf32>
    %cst = arith.constant 0.000000e+00 : f32
    %28 = vector.broadcast %cst : f32 to vector<64x256xf32>
    %29 = arith.maximumf %27, %28 : vector<64x256xf32>
    %30 = arith.truncf %29 : vector<64x256xf32> to vector<64x256xbf16>
    %c0_7 = arith.constant 0 : index
    %c0_8 = arith.constant 0 : index
    %31 = vector.load %arg5[%c0_7, %c0_8] : memref<128x64xbf16, #tpu.memory_space<vmem>>, vector<128x64xbf16>
    %cst_9 = arith.constant dense<0.000000e+00> : vector<128x256xf32>
    %32 = tpu.matmul %31, %30, %cst_9 {dimension_numbers = #tpu.dot_dimension_numbers<[1], [0], [0], [1], [0, 0, 1, 1], [], []>} : vector<128x64xbf16>, vector<64x256xbf16>, vector<128x256xf32> -> vector<128x256xf32>
    %c0_10 = arith.constant 0 : index
    %c0_11 = arith.constant 0 : index
    %33 = vector.load %arg6[%c0_10, %c0_11] : memref<128x1xf32, #tpu.memory_space<vmem>>, vector<128x1xf32>
    %34 = vector.broadcast %33 : vector<128x1xf32> to vector<128x256xf32>
    %35 = arith.addf %32, %34 : vector<128x256xf32>
    %cst_12 = arith.constant 0.000000e+00 : f32
    %36 = vector.broadcast %cst_12 : f32 to vector<128x256xf32>
    %37 = arith.maximumf %35, %36 : vector<128x256xf32>
    %38 = arith.truncf %37 : vector<128x256xf32> to vector<128x256xbf16>
    %c0_13 = arith.constant 0 : index
    %c0_14 = arith.constant 0 : index
    %39 = vector.load %arg7[%c0_13, %c0_14] : memref<1024x128xbf16, #tpu.memory_space<vmem>>, vector<1024x128xbf16>
    %cst_15 = arith.constant dense<0.000000e+00> : vector<1024x256xf32>
    %40 = tpu.matmul %39, %38, %cst_15 {dimension_numbers = #tpu.dot_dimension_numbers<[1], [0], [0], [1], [0, 0, 1, 1], [], []>} : vector<1024x128xbf16>, vector<128x256xbf16>, vector<1024x256xf32> -> vector<1024x256xf32>
    %c0_16 = arith.constant 0 : index
    %c0_17 = arith.constant 0 : index
    %41 = vector.load %arg8[%c0_16, %c0_17] : memref<1024x1xf32, #tpu.memory_space<vmem>>, vector<1024x1xf32>
    %42 = vector.broadcast %41 : vector<1024x1xf32> to vector<1024x256xf32>
    %43 = arith.addf %40, %42 : vector<1024x256xf32>
    %cst_18 = arith.constant 0.000000e+00 : f32
    %44 = vector.broadcast %cst_18 : f32 to vector<1024x256xf32>
    %45 = arith.maximumf %43, %44 : vector<1024x256xf32>
    %46 = vector.extract_strided_slice %45 {offsets = [0, 0], sizes = [1024, 128], strides = [1, 1]} : vector<1024x256xf32> to vector<1024x128xf32>
    %47 = vector.extract_strided_slice %45 {offsets = [0, 128], sizes = [1024, 128], strides = [1, 1]} : vector<1024x256xf32> to vector<1024x128xf32>
    %48 = arith.maximumf %46, %47 : vector<1024x128xf32>
    %c0_19 = arith.constant 0 : index
    %c0_20 = arith.constant 0 : index
    %49 = vector.load %arg17[%c0_19, %c0_20] : memref<1024x128xf32, #tpu.memory_space<vmem>>, vector<1024x128xf32>
    %50 = arith.maximumf %49, %48 : vector<1024x128xf32>
    %c0_21 = arith.constant 0 : index
    %c0_22 = arith.constant 0 : index
    %51 = vector.load %arg17[%c0_21, %c0_22] : memref<1024x128xf32, #tpu.memory_space<vmem>>, vector<1024x128xf32>
    tpu.vector_store %arg17[%c0_21, %c0_22], %50 {strides = array<i32>} : memref<1024x128xf32, #tpu.memory_space<vmem>>, vector<1024x128xf32>,
    %c2_i32 = arith.constant 2 : i32
    %52 = arith.cmpi eq, %arg1, %c2_i32 : i32
    %53 = arith.extui %52 : i1 to i32
    %c0_i32_23 = arith.constant 0 : i32
    %54 = arith.cmpi ne, %53, %c0_i32_23 : i32
    scf.if %54 {
      %c0_24 = arith.constant 0 : index
      %c0_25 = arith.constant 0 : index
      %55 = vector.load %arg17[%c0_24, %c0_25] : memref<1024x128xf32, #tpu.memory_space<vmem>>, vector<1024x128xf32>
      %cst_26 = arith.constant dense<0xFF800000> : vector<1024xf32>
      %56 = vector.multi_reduction <maximumf>, %55, %cst_26 [1] : vector<1024x128xf32> to vector<1024xf32>
      %57 = vector.shape_cast %56 : vector<1024xf32> to vector<1024x1xf32>
      %c0_27 = arith.constant 0 : index
      %c0_28 = arith.constant 0 : index
      %c0_29 = arith.constant 0 : index
      %58 = vector.load %arg16[%c0_27, %c0_28, %c0_29] : memref<1x1024x1xf32, #tpu.memory_space<vmem>>, vector<1x1024x1xf32>
      %59 = vector.shape_cast %58 : vector<1x1024x1xf32> to vector<1024x1xf32>
      %60 = vector.shape_cast %57 : vector<1024x1xf32> to vector<1x1024x1xf32>
      tpu.vector_store %arg16[%c0_27, %c0_28, %c0_29], %60 {strides = array<i32>} : memref<1x1024x1xf32, #tpu.memory_space<vmem>>, vector<1x1024x1xf32>,
      %61 = arith.truncf %57 : vector<1024x1xf32> to vector<1024x1xbf16>
      %c0_30 = arith.constant 0 : index
      %c0_31 = arith.constant 0 : index
      %62 = vector.load %arg9[%c0_30, %c0_31] : memref<512x1024xbf16, #tpu.memory_space<vmem>>, vector<512x1024xbf16>
      %cst_32 = arith.constant dense<0.000000e+00> : vector<512x1xf32>
      %63 = tpu.matmul %62, %61, %cst_32 {dimension_numbers = #tpu.dot_dimension_numbers<[1], [0], [0], [1], [0, 0, 1, 1], [], []>} : vector<512x1024xbf16>, vector<1024x1xbf16>, vector<512x1xf32> -> vector<512x1xf32>
      %c0_33 = arith.constant 0 : index
      %c0_34 = arith.constant 0 : index
      %64 = vector.load %arg10[%c0_33, %c0_34] : memref<512x1xf32, #tpu.memory_space<vmem>>, vector<512x1xf32>
      %65 = arith.addf %63, %64 : vector<512x1xf32>
      %cst_35 = arith.constant 0.000000e+00 : f32
      %66 = vector.broadcast %cst_35 : f32 to vector<512x1xf32>
      %67 = arith.maximumf %65, %66 : vector<512x1xf32>
      %68 = arith.truncf %67 : vector<512x1xf32> to vector<512x1xbf16>
      %c0_36 = arith.constant 0 : index
      %c0_37 = arith.constant 0 : index
      %69 = vector.load %arg11[%c0_36, %c0_37] : memref<256x512xbf16, #tpu.memory_space<vmem>>, vector<256x512xbf16>
      %cst_38 = arith.constant dense<0.000000e+00> : vector<256x1xf32>
      %70 = tpu.matmul %69, %68, %cst_38 {dimension_numbers = #tpu.dot_dimension_numbers<[1], [0], [0], [1], [0, 0, 1, 1], [], []>} : vector<256x512xbf16>, vector<512x1xbf16>, vector<256x1xf32> -> vector<256x1xf32>
      %c0_39 = arith.constant 0 : index
      %c0_40 = arith.constant 0 : index
      %71 = vector.load %arg12[%c0_39, %c0_40] : memref<256x1xf32, #tpu.memory_space<vmem>>, vector<256x1xf32>
      %72 = arith.addf %70, %71 : vector<256x1xf32>
      %cst_41 = arith.constant 0.000000e+00 : f32
      %73 = vector.broadcast %cst_41 : f32 to vector<256x1xf32>
      %74 = arith.maximumf %72, %73 : vector<256x1xf32>
      %75 = arith.truncf %74 : vector<256x1xf32> to vector<256x1xbf16>
      %c0_42 = arith.constant 0 : index
      %c0_43 = arith.constant 0 : index
      %76 = vector.load %arg13[%c0_42, %c0_43] : memref<9x256xbf16, #tpu.memory_space<vmem>>, vector<9x256xbf16>
      %cst_44 = arith.constant dense<0.000000e+00> : vector<9x1xf32>
      %77 = tpu.matmul %76, %75, %cst_44 {dimension_numbers = #tpu.dot_dimension_numbers<[1], [0], [0], [1], [0, 0, 1, 1], [], []>} : vector<9x256xbf16>, vector<256x1xbf16>, vector<9x1xf32> -> vector<9x1xf32>
      %c0_45 = arith.constant 0 : index
      %c0_46 = arith.constant 0 : index
      %78 = vector.load %arg14[%c0_45, %c0_46] : memref<9x1xf32, #tpu.memory_space<vmem>>, vector<9x1xf32>
      %79 = arith.addf %77, %78 : vector<9x1xf32>
      %c0_47 = arith.constant 0 : index
      %c0_48 = arith.constant 0 : index
      %c0_49 = arith.constant 0 : index
      %80 = vector.load %arg15[%c0_47, %c0_48, %c0_49] : memref<1x9x1xf32, #tpu.memory_space<vmem>>, vector<1x9x1xf32>
      %81 = vector.shape_cast %80 : vector<1x9x1xf32> to vector<9x1xf32>
      %82 = vector.shape_cast %79 : vector<9x1xf32> to vector<1x9x1xf32>
      tpu.vector_store %arg15[%c0_47, %c0_48, %c0_49], %82 {strides = array<i32>} : memref<1x9x1xf32, #tpu.memory_space<vmem>>, vector<1x9x1xf32>,
    } else {
    }
    return
  }
  func.func @transform_0(%arg0: i32, %arg1: i32) -> (i32, i32, i32) {
    %c0_i32 = arith.constant 0 : i32
    %c0_i32_0 = arith.constant 0 : i32
    return %arg0, %c0_i32, %arg1 : i32, i32, i32
  }
  func.func @transform_1(%arg0: i32, %arg1: i32) -> (i32, i32) {
    %c0_i32 = arith.constant 0 : i32
    %c0_i32_0 = arith.constant 0 : i32
    %c0_i32_1 = arith.constant 0 : i32
    return %c0_i32, %c0_i32_0 : i32, i32
  }
  func.func @transform_2(%arg0: i32, %arg1: i32) -> (i32, i32) {
    %c0_i32 = arith.constant 0 : i32
    %c0_i32_0 = arith.constant 0 : i32
    %c0_i32_1 = arith.constant 0 : i32
    return %c0_i32, %c0_i32_0 : i32, i32
  }
  func.func @transform_3(%arg0: i32, %arg1: i32) -> (i32, i32) {
    %c0_i32 = arith.constant 0 : i32
    %c0_i32_0 = arith.constant 0 : i32
    %c0_i32_1 = arith.constant 0 : i32
    return %c0_i32, %c0_i32_0 : i32, i32
  }
  func.func @transform_4(%arg0: i32, %arg1: i32) -> (i32, i32) {
    %c0_i32 = arith.constant 0 : i32
    %c0_i32_0 = arith.constant 0 : i32
    %c0_i32_1 = arith.constant 0 : i32
    return %c0_i32, %c0_i32_0 : i32, i32
  }
  func.func @transform_5(%arg0: i32, %arg1: i32) -> (i32, i32) {
    %c0_i32 = arith.constant 0 : i32
    %c0_i32_0 = arith.constant 0 : i32
    %c0_i32_1 = arith.constant 0 : i32
    return %c0_i32, %c0_i32_0 : i32, i32
  }
  func.func @transform_6(%arg0: i32, %arg1: i32) -> (i32, i32) {
    %c0_i32 = arith.constant 0 : i32
    %c0_i32_0 = arith.constant 0 : i32
    %c0_i32_1 = arith.constant 0 : i32
    return %c0_i32, %c0_i32_0 : i32, i32
  }
  func.func @transform_7(%arg0: i32, %arg1: i32) -> (i32, i32) {
    %c0_i32 = arith.constant 0 : i32
    %c0_i32_0 = arith.constant 0 : i32
    %c0_i32_1 = arith.constant 0 : i32
    return %c0_i32, %c0_i32_0 : i32, i32
  }
  func.func @transform_8(%arg0: i32, %arg1: i32) -> (i32, i32) {
    %c0_i32 = arith.constant 0 : i32
    %c0_i32_0 = arith.constant 0 : i32
    %c0_i32_1 = arith.constant 0 : i32
    return %c0_i32, %c0_i32_0 : i32, i32
  }
  func.func @transform_9(%arg0: i32, %arg1: i32) -> (i32, i32) {
    %c0_i32 = arith.constant 0 : i32
    %c0_i32_0 = arith.constant 0 : i32
    %c0_i32_1 = arith.constant 0 : i32
    return %c0_i32, %c0_i32_0 : i32, i32
  }
  func.func @transform_10(%arg0: i32, %arg1: i32) -> (i32, i32) {
    %c0_i32 = arith.constant 0 : i32
    %c0_i32_0 = arith.constant 0 : i32
    %c0_i32_1 = arith.constant 0 : i32
    return %c0_i32, %c0_i32_0 : i32, i32
  }
  func.func @transform_11(%arg0: i32, %arg1: i32) -> (i32, i32) {
    %c0_i32 = arith.constant 0 : i32
    %c0_i32_0 = arith.constant 0 : i32
    %c0_i32_1 = arith.constant 0 : i32
    return %c0_i32, %c0_i32_0 : i32, i32
  }
  func.func @transform_12(%arg0: i32, %arg1: i32) -> (i32, i32) {
    %c0_i32 = arith.constant 0 : i32
    %c0_i32_0 = arith.constant 0 : i32
    %c0_i32_1 = arith.constant 0 : i32
    return %c0_i32, %c0_i32_0 : i32, i32
  }
  func.func @transform_13(%arg0: i32, %arg1: i32) -> (i32, i32, i32) {
    %c0_i32 = arith.constant 0 : i32
    %c0_i32_0 = arith.constant 0 : i32
    %c0_i32_1 = arith.constant 0 : i32
    return %arg0, %c0_i32, %c0_i32_0 : i32, i32, i32
  }
  func.func @transform_14(%arg0: i32, %arg1: i32) -> (i32, i32, i32) {
    %c0_i32 = arith.constant 0 : i32
    %c0_i32_0 = arith.constant 0 : i32
    %c0_i32_1 = arith.constant 0 : i32
    return %arg0, %c0_i32, %c0_i32_0 : i32, i32, i32
  }
}

</mosaic_0001>

<bundles_post_ra>
// kernel: tpu_custom_call.1
= control target key start
LH: loop header
LB: loop body
LE: loop exit
PB: predicated region body
PF: predicated region fallthrough
CT: control target
= control target key end

     0   :  { %s13612_s0 = inlined_call_operand.vmem [shape: bf16[2,3,768], index: 0, kind: input, shape index: {}]   ;;  %s13613_s1 = inlined_call_operand.vmem [shape: bf16[64,3], index: 1, kind: input, shape index: {}]   ;;  %s13614_s2 = inlined_call_operand.vmem [shape: f32[64,1], index: 2, kind: input, shape index: {}]   ;;  %s13615_s3 = inlined_call_operand.vmem [shape: bf16[128,64], index: 3, kind: input, shape index: {}]   ;;  %s13616_s4 = inlined_call_operand.vmem [shape: f32[128,1], index: 4, kind: input, shape index: {}]   ;;  %s13617_s5 = inlined_call_operand.vmem [shape: bf16[1024,128], index: 5, kind: input, shape index: {}]   ;;  %s13618_s6 = inlined_call_operand.vmem [shape: f32[1024,1], index: 6, kind: input, shape index: {}]   ;;  %s13619_s7 = inlined_call_operand.hbm [shape: bf16[512,1024], index: 7, kind: input, shape index: {}]   ;;  %s13620_s8 = inlined_call_operand.vmem [shape: f32[512,1], index: 8, kind: input, shape index: {}]   ;;  %s13621_s9 = inlined_call_operand.vmem [shape: bf16[256,512], index: 9, kind: input, shape index: {}]   ;;  %s13622_s10 = inlined_call_operand.vmem [shape: f32[256,1], index: 10, kind: input, shape index: {}]   ;;  %s13623_s11 = inlined_call_operand.vmem [shape: bf16[9,256], index: 11, kind: input, shape index: {}]   ;;  %s13624_s12 = inlined_call_operand.vmem [shape: f32[9,1], index: 12, kind: input, shape index: {}]   ;;  %s13625_s13 = inlined_call_operand.vmem [shape: f32[2,9,1], index: 13, kind: output, shape index: {0}]   ;;  %s13626_s14 = inlined_call_operand.vmem [shape: f32[2,1024,1], index: 14, kind: output, shape index: {1}]  }
   0x1   :  { %13641 = sst [smem:[#allocation47_spill]] %s13619_s7 }
   0x2   :  { %20 = vsyncpa [#allocation4], 0  ;;  %s10940_s29 = smov 0   ;;  %s10942_s30 = smov 0  }
   0x3   :  { %s10944_s15 = smov 0   ;;  %s10946_s16 = smov 0  }
   0x4   :  { %s10948_s17 = smov 0  }
   0x5 LB: > { %13642 = sst [smem:[#allocation6_spill]] %s10848_s15  ;;  %s8609_s18 = sadd.s32 4294967295, %s10856_s17   ;;  %s10856_s17 = sphi %s10948_s17, %s26_s17   ;;  %s10852_s16 = sphi %s10946_s16, %s13726_s16   ;;  %s10848_s15 = sphi %s10944_s15, %s13725_s15   ;;  %s10844_s30 = sphi %s10942_s30, %s13724_s30   ;;  %s10840_s29 = sphi %s10940_s29, %s13723_s29  }
   0x6   : > { %13643 = sst [smem:[#allocation7_spill]] %s10852_s16  ;;  %s35_s19 = sadd.s32 1, %s10848_s15 }
   0x7   : > { %13644 = sst [smem:[#allocation8_spill]] %s10856_s17  ;;  %p36_p0 = scmp.ge.s32.totalorder %s35_s19, 3 }
   0x8   : > { %s38_s20 = sadd.s32 1, %s10852_s16  ;;  %p8611_p1 = scmp.ge.s32.totalorder %s10856_s17, 1 }
   0x9   : > { %p375_p2 = scmp.lt.s32.totalorder %s10856_s17, 7  ;;  %s13728_s19 = smov (%p36_p0, %s35_s19), 0 }
   0xa   : > { %13645 = sst [smem:[#allocation9_spill]] %s13728_s19  ;;  %s13730_s20 = smov (!%p36_p0, %s38_s20), %s10852_s16 }
   0xb   : > { %p10973_p3 = pnand %p8611_p1, %p375_p2  ;;  %p40_p4 = scmp.ge.s32.totalorder %s13730_s20, 2 }
   0xc   : > { %p10977_p5 = scmp.eq.s32.totalorder %s8609_s18, 0  ;;  %s13648_s7 = sld [smem:[#allocation47_spill]] }
   0xd   : > { %p10654_p6 = pneg %p10973_p3  ;;  %s13732_s20 = smov (%p40_p4, %s13730_s20), 0 }
   0xe   : > { %13649 = sst [smem:[#allocation10_spill]] %s13732_s20  ;;  %s10858_s26 = smov [#allocation3]  }
   0xf   : > { %s406_s27 = sshll.u32 %s10858_s26, 4  ;;  %p10655_p7 = pnand %p10977_p5, %p10654_p6  ;;  %s407_s27 = int_to_ptr.vmem [resolvable:$true] %s406_s27 }
  0x10   : > { %s10859_s28 = smov 512   ;;  %s10860_s18 = smov 32  }
  0x11   : > { %450 = sbr.rel (%p10973_p3) target bundleno = 3371 (0xd2b), region = 72 }
  0x12   : > { %s404_s25 = sshll.u32 %s13648_s7, 4  ;;  %s405_s25 = int_to_ptr.hbm [resolvable:$true] %s404_s25 }
  0x13   : > { %10657 = dma.hbm_to_vmem [thread:$0]  (!%p10655_p7), %s405_s25, 32768, %s407_s27, [#allocation4], %s10859_s28, %s10859_s28, %s10860_s18  }
  0x16   : > { %10835 = dma.done.wait (%p10977_p5), [#allocation4], 32768  }
  0x17   : > { %10837 = vsyncadd (%p10977_p5), [#allocation4], 4294934528  ;;  %s8616_s23 = sshll.u32 %s10840_s29, 1  ;;  %p507_p8 = scmp.lt.s32.totalorder %s10844_s30, 1 }
  0x18   : > { %p509_p9 = scmp.lt.s32.totalorder %s8616_s23, 5  ;;  %p8622_p10 = scmp.ne.s32.totalorder %s10840_s29, 0 }
  0x19   : > { %s13734_s30 = smov (!%p507_p8, %s10844_s30), 1 }
  0x1a   : > { %s13736_s23 = smov (!%p509_p9, %s8616_s23), 5  ;;  %s10649_s24 = smul.u32 6, %s13734_s30 }
  0x1b   : > { %s10218_s26 = sshll.u32 %s13734_s30, 4  ;;  %s10219_s28 = sshll.u32 %s13734_s30, 10 }
  0x1c   : > { %s11002_s21 = scalar_lea.vmem %s13625_s13, %s10218_s26  ;;  %s512_s18 = sadd.s32 %s10649_s24, %s13736_s23 }
  0x1d   : > { %s11007_s20 = scalar_lea.vmem %s13626_s14, %s10219_s28  ;;  %s8617_s19 = sshll.u32 %s512_s18, 1 }
  0x1e   : > { %s11012_s17 = scalar_lea.vmem %s13612_s0, %s8617_s19  ;;  %530 = sbr.rel (%p8622_p10) target bundleno = 164 (0xa4), region = 80 }
  0x23   : > { %v10861_v0 = vmov -inf  }
  0x24   : > { %531 = vst [vmem:[#allocation2 + $0x2b0] sm:$0xff] %v10861_v0 }
  0x25   : > { %532 = vst [vmem:[#allocation2 + $0x3b0] sm:$0xff] %v10861_v0 }
  0x26   : > { %533 = vst [vmem:[#allocation2 + $0xd8] sm:$0xff] %v10861_v0 }
  0x27   : > { %534 = vst [vmem:[#allocation2 + $0x18] sm:$0xff] %v10861_v0 }
  0x28   : > { %535 = vst [vmem:[#allocation2 + $0x50] sm:$0xff] %v10861_v0 }
  0x29   : > { %536 = vst [vmem:[#allocation2 + $0x368] sm:$0xff] %v10861_v0 }
  0x2a   : > { %537 = vst [vmem:[#allocation2 + $0x330] sm:$0xff] %v10861_v0 }
  0x2b   : > { %538 = vst [vmem:[#allocation2 + $0x48] sm:$0xff] %v10861_v0 }
  0x2c   : > { %539 = vst [vmem:[#allocation2 + $0x380] sm:$0xff] %v10861_v0 }
  0x2d   : > { %540 = vst [vmem:[#allocation2 + $0x110] sm:$0xff] %v10861_v0 }
  0x2e   : > { %541 = vst [vmem:[#allocation2 + $0x118] sm:$0xff] %v10861_v0 }
  0x2f   : > { %542 = vst [vmem:[#allocation2 + $0x98] sm:$0xff] %v10861_v0 }
  0x30   : > { %543 = vst [vmem:[#allocation2 + $0x320] sm:$0xff] %v10861_v0 }
  0x31   : > { %544 = vst [vmem:[#allocation2 + $0x150] sm:$0xff] %v10861_v0 }
  0x32   : > { %545 = vst [vmem:[#allocation2 + $0x108] sm:$0xff] %v10861_v0 }
  0x33   : > { %546 = vst [vmem:[#allocation2 + $0x60] sm:$0xff] %v10861_v0 }
  0x34   : > { %547 = vst [vmem:[#allocation2 + $0x2e0] sm:$0xff] %v10861_v0 }
  0x35   : > { %548 = vst [vmem:[#allocation2 + $0x388] sm:$0xff] %v10861_v0 }
  0x36   : > { %549 = vst [vmem:[#allocation2 + $0x338] sm:$0xff] %v10861_v0 }
  0x37   : > { %550 = vst [vmem:[#allocation2 + $0x340] sm:$0xff] %v10861_v0 }
  0x38   : > { %551 = vst [vmem:[#allocation2 + $0x80] sm:$0xff] %v10861_v0 }
  0x39   : > { %552 = vst [vmem:[#allocation2 + $0x1a8] sm:$0xff] %v10861_v0 }
  0x3a   : > { %553 = vst [vmem:[#allocation2 + $0x1b8] sm:$0xff] %v10861_v0 }
  0x3b   : > { %554 = vst [vmem:[#allocation2 + $0x168] sm:$0xff] %v10861_v0 }
  0x3c   : > { %555 = vst [vmem:[#allocation2 + $0x3e8] sm:$0xff] %v10861_v0 }
  0x3d   : > { %556 = vst [vmem:[#allocation2 + $0x2f8] sm:$0xff] %v10861_v0 }
  0x3e   : > { %557 = vst [vmem:[#allocation2 + $0x290] sm:$0xff] %v10861_v0 }
  0x3f   : > { %558 = vst [vmem:[#allocation2 + $0x28] sm:$0xff] %v10861_v0 }
  0x40   : > { %559 = vst [vmem:[#allocation2 + $0x138] sm:$0xff] %v10861_v0 }
  0x41   : > { %560 = vst [vmem:[#allocation2 + $0xc0] sm:$0xff] %v10861_v0 }
  0x42   : > { %561 = vst [vmem:[#allocation2 + $0x1c0] sm:$0xff] %v10861_v0 }
  0x43   : > { %562 = vst [vmem:[#allocation2 + $0x280] sm:$0xff] %v10861_v0 }
  0x44   : > { %563 = vst [vmem:[#allocation2 + $0x100] sm:$0xff] %v10861_v0 }
  0x45   : > { %564 = vst [vmem:[#allocation2 + $0x3c0] sm:$0xff] %v10861_v0 }
  0x46   : > { %565 = vst [vmem:[#allocation2 + $0x158] sm:$0xff] %v10861_v0 }
  0x47   : > { %566 = vst [vmem:[#allocation2 + $0x3e0] sm:$0xff] %v10861_v0 }
  0x48   : > { %567 = vst [vmem:[#allocation2 + $0x218] sm:$0xff] %v10861_v0 }
  0x49   : > { %568 = vst [vmem:[#allocation2 + $0x3f8] sm:$0xff] %v10861_v0 }
  0x4a   : > { %569 = vst [vmem:[#allocation2 + $0x8] sm:$0xff] %v10861_v0 }
  0x4b   : > { %570 = vst [vmem:[#allocation2 + $0x128] sm:$0xff] %v10861_v0 }
  0x4c   : > { %571 = vst [vmem:[#allocation2 + $0x2a0] sm:$0xff] %v10861_v0 }
  0x4d   : > { %572 = vst [vmem:[#allocation2 + $0x3f0] sm:$0xff] %v10861_v0 }
  0x4e   : > { %573 = vst [vmem:[#allocation2 + $0xa0] sm:$0xff] %v10861_v0 }
  0x4f   : > { %574 = vst [vmem:[#allocation2 + $0x2c0] sm:$0xff] %v10861_v0 }
  0x50   : > { %575 = vst [vmem:[#allocation2 + $0xb0] sm:$0xff] %v10861_v0 }
  0x51   : > { %576 = vst [vmem:[#allocation2 + $0x1e0] sm:$0xff] %v10861_v0 }
  0x52   : > { %577 = vst [vmem:[#allocation2 + $0x1f0] sm:$0xff] %v10861_v0 }
  0x53   : > { %578 = vst [vmem:[#allocation2 + $0x10] sm:$0xff] %v10861_v0 }
  0x54   : > { %579 = vst [vmem:[#allocation2 + $0x230] sm:$0xff] %v10861_v0 }
  0x55   : > { %580 = vst [vmem:[#allocation2 + $0x240] sm:$0xff] %v10861_v0 }
  0x56   : > { %581 = vst [vmem:[#allocation2 + $0x90] sm:$0xff] %v10861_v0 }
  0x57   : > { %582 = vst [vmem:[#allocation2 + $0x3a0] sm:$0xff] %v10861_v0 }
  0x58   : > { %583 = vst [vmem:[#allocation2 + $0x208] sm:$0xff] %v10861_v0 }
  0x59   : > { %584 = vst [vmem:[#allocation2 + $0xd0] sm:$0xff] %v10861_v0 }
  0x5a   : > { %585 = vst [vmem:[#allocation2 + $0x88] sm:$0xff] %v10861_v0 }
  0x5b   : > { %586 = vst [vmem:[#allocation2 + $0x2f0] sm:$0xff] %v10861_v0 }
  0x5c   : > { %587 = vst [vmem:[#allocation2 + $0x358] sm:$0xff] %v10861_v0 }
  0x5d   : > { %588 = vst [vmem:[#allocation2 + $0x268] sm:$0xff] %v10861_v0 }
  0x5e   : > { %589 = vst [vmem:[#allocation2 + $0x350] sm:$0xff] %v10861_v0 }
  0x5f   : > { %590 = vst [vmem:[#allocation2 + $0x188] sm:$0xff] %v10861_v0 }
  0x60   : > { %591 = vst [vmem:[#allocation2 + $0x1d8] sm:$0xff] %v10861_v0 }
  0x61   : > { %592 = vst [vmem:[#allocation2 + $0x30] sm:$0xff] %v10861_v0 }
  0x62   : > { %593 = vst [vmem:[#allocation2 + $0x140] sm:$0xff] %v10861_v0 }
  0x63   : > { %594 = vst [vmem:[#allocation2 + $0x2a8] sm:$0xff] %v10861_v0 }
  0x64   : > { %595 = vst [vmem:[#allocation2 + $0x130] sm:$0xff] %v10861_v0 }
  0x65   : > { %596 = vst [vmem:[#allocation2 + $0x200] sm:$0xff] %v10861_v0 }
  0x66   : > { %597 = vst [vmem:[#allocation2 + $0x318] sm:$0xff] %v10861_v0 }
  0x67   : > { %598 = vst [vmem:[#allocation2 + $0x220] sm:$0xff] %v10861_v0 }
  0x68   : > { %599 = vst [vmem:[#allocation2 + $0x70] sm:$0xff] %v10861_v0 }
  0x69   : > { %600 = vst [vmem:[#allocation2 + $0x300] sm:$0xff] %v10861_v0 }
  0x6a   : > { %601 = vst [vmem:[#allocation2 + $0xe0] sm:$0xff] %v10861_v0 }
  0x6b   : > { %602 = vst [vmem:[#allocation2 + $0x178] sm:$0xff] %v10861_v0 }
  0x6c   : > { %603 = vst [vmem:[#allocation2 + $0x328] sm:$0xff] %v10861_v0 }
  0x6d   : > { %604 = vst [vmem:[#allocation2 + $0x260] sm:$0xff] %v10861_v0 }
  0x6e   : > { %605 = vst [vmem:[#allocation2 + $0x3b8] sm:$0xff] %v10861_v0 }
  0x6f   : > { %606 = vst [vmem:[#allocation2 + $0x2b8] sm:$0xff] %v10861_v0 }
  0x70   : > { %607 = vst [vmem:[#allocation2 + $0x248] sm:$0xff] %v10861_v0 }
  0x71   : > { %608 = vst [vmem:[#allocation2 + $0x40] sm:$0xff] %v10861_v0 }
  0x72   : > { %609 = vst [vmem:[#allocation2 + $0x20] sm:$0xff] %v10861_v0 }
  0x73   : > { %610 = vst [vmem:[#allocation2 + $0xe8] sm:$0xff] %v10861_v0 }
  0x74   : > { %611 = vst [vmem:[#allocation2 + $0x288] sm:$0xff] %v10861_v0 }
  0x75   : > { %612 = vst [vmem:[#allocation2 + $0x3a8] sm:$0xff] %v10861_v0 }
  0x76   : > { %613 = vst [vmem:[#allocation2 + $0x3c8] sm:$0xff] %v10861_v0 }
  0x77   : > { %614 = vst [vmem:[#allocation2 + $0x160] sm:$0xff] %v10861_v0 }
  0x78   : > { %615 = vst [vmem:[#allocation2 + $0x2c8] sm:$0xff] %v10861_v0 }
  0x79   : > { %616 = vst [vmem:[#allocation2 + $0x210] sm:$0xff] %v10861_v0 }
  0x7a   : > { %617 = vst [vmem:[#allocation2 + $0x3d8] sm:$0xff] %v10861_v0 }
  0x7b   : > { %618 = vst [vmem:[#allocation2 + $0x1e8] sm:$0xff] %v10861_v0 }
  0x7c   : > { %619 = vst [vmem:[#allocation2 + $0x1b0] sm:$0xff] %v10861_v0 }
  0x7d   : > { %620 = vst [vmem:[#allocation2 + $0x1c8] sm:$0xff] %v10861_v0 }
  0x7e   : > { %621 = vst [vmem:[#allocation2 + $0x2d0] sm:$0xff] %v10861_v0 }
  0x7f   : > { %622 = vst [vmem:[#allocation2 + $0x1d0] sm:$0xff] %v10861_v0 }
  0x80   : > { %623 = vst [vmem:[#allocation2 + $0x58] sm:$0xff] %v10861_v0 }
  0x81   : > { %624 = vst [vmem:[#allocation2 + $0x120] sm:$0xff] %v10861_v0 }
  0x82   : > { %625 = vst [vmem:[#allocation2 + $0x198] sm:$0xff] %v10861_v0 }
  0x83   : > { %626 = vst [vmem:[#allocation2 + $0x2e8] sm:$0xff] %v10861_v0 }
  0x84   : > { %627 = vst [vmem:[#allocation2 + $0x1f8] sm:$0xff] %v10861_v0 }
  0x85   : > { %628 = vst [vmem:[#allocation2 + $0x238] sm:$0xff] %v10861_v0 }
  0x86   : > { %629 = vst [vmem:[#allocation2 + $0x398] sm:$0xff] %v10861_v0 }
  0x87   : > { %630 = vst [vmem:[#allocation2 + $0x390] sm:$0xff] %v10861_v0 }
  0x88   : > { %631 = vst [vmem:[#allocation2 + $0x1a0] sm:$0xff] %v10861_v0 }
  0x89   : > { %632 = vst [vmem:[#allocation2 + $0xa8] sm:$0xff] %v10861_v0 }
  0x8a   : > { %633 = vst [vmem:[#allocation2 + $0x258] sm:$0xff] %v10861_v0 }
  0x8b   : > { %634 = vst [vmem:[#allocation2 + $0x2d8] sm:$0xff] %v10861_v0 }
  0x8c   : > { %635 = vst [vmem:[#allocation2 + $0xf0] sm:$0xff] %v10861_v0 }
  0x8d   : > { %636 = vst [vmem:[#allocation2 + $0x180] sm:$0xff] %v10861_v0 }
  0x8e   : > { %637 = vst [vmem:[#allocation2 + $0x170] sm:$0xff] %v10861_v0 }
  0x8f   : > { %638 = vst [vmem:[#allocation2 + $0x3d0] sm:$0xff] %v10861_v0 }
  0x90   : > { %639 = vst [vmem:[#allocation2 + $0x250] sm:$0xff] %v10861_v0 }
  0x91   : > { %640 = vst [vmem:[#allocation2 + $0x378] sm:$0xff] %v10861_v0 }
  0x92   : > { %641 = vst [vmem:[#allocation2 + $0xb8] sm:$0xff] %v10861_v0 }
  0x93   : > { %642 = vst [vmem:[#allocation2 + $0x38] sm:$0xff] %v10861_v0 }
  0x94   : > { %643 = vst [vmem:[#allocation2 + $0x78] sm:$0xff] %v10861_v0 }
  0x95   : > { %644 = vst [vmem:[#allocation2 + $0x308] sm:$0xff] %v10861_v0 }
  0x96   : > { %645 = vst [vmem:[#allocation2 + $0x370] sm:$0xff] %v10861_v0 }
  0x97   : > { %646 = vst [vmem:[#allocation2 + $0xc8] sm:$0xff] %v10861_v0 }
  0x98   : > { %647 = vst [vmem:[#allocation2 + $0x278] sm:$0xff] %v10861_v0 }
  0x99   : > { %648 = vst [vmem:[#allocation2 + $0x360] sm:$0xff] %v10861_v0 }
  0x9a   : > { %649 = vst [vmem:[#allocation2 + $0x228] sm:$0xff] %v10861_v0 }
  0x9b   : > { %650 = vst [vmem:[#allocation2 + $0x348] sm:$0xff] %v10861_v0 }
  0x9c   : > { %651 = vst [vmem:[#allocation2 + $0x148] sm:$0xff] %v10861_v0 }
  0x9d   : > { %652 = vst [vmem:[#allocation2 + $0xf8] sm:$0xff] %v10861_v0 }
  0x9e   : > { %653 = vst [vmem:[#allocation2 + $0x68] sm:$0xff] %v10861_v0 }
  0x9f   : > { %654 = vst [vmem:[#allocation2] sm:$0xff] %v10861_v0 }
  0xa0   : > { %655 = vst [vmem:[#allocation2 + $0x298] sm:$0xff] %v10861_v0 }
  0xa1   : > { %656 = vst [vmem:[#allocation2 + $0x270] sm:$0xff] %v10861_v0 }
  0xa2   : > { %657 = vst [vmem:[#allocation2 + $0x310] sm:$0xff] %v10861_v0 }
  0xa3   : > { %658 = vst [vmem:[#allocation2 + $0x190] sm:$0xff] %v10861_v0 }
  0xa4 PF: > { %v684_v1 = vld [vmem:[%s13614_s2 + $0x38] sm:$0xff]  ;;  %v10631_v3 = vld [vmem:[%s13613_s1 + $0x10] sm:$0xff]   ;;  %v10862_v4 = vmov 0   ;;  %v10863_v11 = vmov 1   ;;  %v10864_v13 = vmov 2   ;;  %v682_v14 = vld [vmem:[%s13614_s2 + $0x28] sm:$0xff] }
  0xa5   : > { %v10632_v2 = vld [vmem:[%s13613_s1 + $0x18] sm:$0xff]   ;;  %10713 = vset.pattern.permute.xlu1 %v10862_v4  ;;  %10720 = vset.pattern.permute.xlu2 %v10862_v4  ;;  %v10624_v7 = vunpack.c.l.bf16 %v10631_v3  ;;  %v10625_v8 = vunpack.c.h.bf16 %v10631_v3  ;;  %v683_v12 = vld [vmem:[%s13614_s2 + $0x30] sm:$0xff]  ;;  %v681_v15 = vld [vmem:[%s13614_s2 + $0x20] sm:$0xff]  ;;  %vm1120_vm0 = vcmask 523264   ;;  %p8927_p11 = scmp.ne.s32.totalorder %s10840_s29, 2 }
  0xa6   : > { %v10628_v5 = vunpack.c.l.bf16 %v10632_v2  ;;  %v10629_v6 = vunpack.c.h.bf16 %v10632_v2  ;;  %785 = vperm.xlu1 %10713, %v684_v1   ;;  %10707 = vset.pattern.permute.xlu0 %v10862_v4  ;;  %v10630_v16 = vld [vmem:[%s13613_s1 + $0x8] sm:$0xff]   ;;  %v679_v20 = vld [vmem:[%s13614_s2 + $0x10] sm:$0xff]  ;;  %v10615_v21 = vld [vmem:[%s13613_s1] sm:$0xff]  }
  0xa7   : > { %v10721_v10 = vpack.i.bf16 %v10625_v8, %v10624_v7  ;;  %v10620_v17 = vunpack.c.l.bf16 %v10630_v16  ;;  %v10621_v18 = vunpack.c.h.bf16 %v10630_v16  ;;  %v10616_v22 = vunpack.c.l.bf16 %v10615_v21  ;;  %v680_v24 = vld [vmem:[%s13614_s2 + $0x18] sm:$0xff]  ;;  %v677_v26 = vld [vmem:[%s13614_s2] sm:$0xff]  ;;  %v678_v27 = vld [vmem:[%s13614_s2 + $0x8] sm:$0xff] }
  0xa8   : > { %v10708_v9 = vpack.i.bf16 %v10629_v6, %v10628_v5  ;;  %v10617_v23 = vunpack.c.h.bf16 %v10615_v21  ;;  %v984_v28 = vld [vmem:[%s13616_s4] sm:$0xff]  ;;  %v989_v29 = vld [vmem:[%s13616_s4 + $0x28] sm:$0xff]  ;;  %v986_v31 = vld [vmem:[%s13616_s4 + $0x10] sm:$0xff] }
  0xa9   : > { %10722 = vperm.xlu2 %10720, %v10721_v10   ;;  %v10739_v19 = vpack.i.bf16 %v10621_v18, %v10620_v17  ;;  %v985_v30 = vld [vmem:[%s13616_s4 + $0x8] sm:$0xff]  ;;  %v992_v32 = vld [vmem:[%s13616_s4 + $0x40] sm:$0xff]  ;;  %v987_v33 = vld [vmem:[%s13616_s4 + $0x18] sm:$0xff] }
  0xaa   : > { %10709 = vperm.xlu0 %10707, %v10708_v9   ;;  %v10757_v25 = vpack.i.bf16 %v10617_v23, %v10616_v22  ;;  %v988_v34 = vld [vmem:[%s13616_s4 + $0x20] sm:$0xff]  ;;  %v995_v35 = vld [vmem:[%s13616_s4 + $0x58] sm:$0xff]  ;;  %v990_v36 = vld [vmem:[%s13616_s4 + $0x30] sm:$0xff] }
  0xab   : > { %v991_v37 = vld [vmem:[%s13616_s4 + $0x38] sm:$0xff]  ;;  %v998_v38 = vld [vmem:[%s13616_s4 + $0x70] sm:$0xff]  ;;  %v993_v39 = vld [vmem:[%s13616_s4 + $0x48] sm:$0xff] }
  0xac   : > { %v994_v40 = vld [vmem:[%s13616_s4 + $0x50] sm:$0xff]  ;;  %v1420_v41 = vld [vmem:[%s13618_s6 + $0x8] sm:$0xff]  ;;  %v996_v42 = vld [vmem:[%s13616_s4 + $0x60] sm:$0xff] }
  0xad   : > { %v997_v43 = vld [vmem:[%s13616_s4 + $0x68] sm:$0xff]  ;;  %v1423_v44 = vld [vmem:[%s13618_s6 + $0x20] sm:$0xff]  ;;  %v999_v45 = vld [vmem:[%s13616_s4 + $0x78] sm:$0xff] }
  0xae   : > { %10714 = vset.pattern.permute.xlu1 %v10863_v11  ;;  %v1419_v46 = vld [vmem:[%s13618_s6] sm:$0xff]  ;;  %v1426_v48 = vld [vmem:[%s13618_s6 + $0x38] sm:$0xff]  ;;  %v1421_v50 = vld [vmem:[%s13618_s6 + $0x10] sm:$0xff] }
  0xaf   : > { %10716 = vperm.xlu1 %10714, %v10708_v9   ;;  %v659_v49 = vld [vmem:[%s11012_s17] sm:$0xf]  ;;  %v1422_v51 = vld [vmem:[%s13618_s6 + $0x18] sm:$0xff]  ;;  %v1429_v57 = vld [vmem:[%s13618_s6 + $0x50] sm:$0xff] }
  0xb0   : > { %v660_v52 = vunpack.c.l.bf16 %v659_v49  ;;  %v1424_v58 = vld [vmem:[%s13618_s6 + $0x28] sm:$0xff]  ;;  %v1425_v63 = vld [vmem:[%s13618_s6 + $0x30] sm:$0xff] }
  0xb1   : > { %10726 = vset.pattern.permute.xlu2 %v10864_v13  ;;  %v1428_v22 = vld [vmem:[%s13618_s6 + $0x48] sm:$0xff] }
  0xb2   : > { %780 = vperm.xlu0 %10707, %v683_v12   ;;  %10728 = vperm.xlu2 %10726, %v10708_v9   ;;  %v726_v54 = vperm.slane %v660_v52, 0  ;;  %v727_v55 = vperm.slane %v660_v52, 4  ;;  %v906_v59 = vperm.slane %v660_v52, 2  ;;  %v907_v0 = vperm.slane %v660_v52, 6  ;;  %v1432_v12 = vld [vmem:[%s13618_s6 + $0x68] sm:$0xff] }
  0xb3   : > { %v836_v1 = vperm.slane %v660_v52, 1  ;;  %v837_v2 = vperm.slane %v660_v52, 5 }
  0xb4   : > { %v11263_v61 = vperm.slane %v726_v54, 0  ;;  %v11265_v62 = vperm.slane %v727_v55, 0  ;;  %v11270_v5 = vperm.slane %v906_v59, 2  ;;  %v11274_v9 = vperm.slane %v907_v0, 2 }
  0xb7   : > { %10732 = vset.pattern.permute.xlu1 %v10862_v4 }
  0xb8   : > { %775 = vperm.xlu1 %10732, %v682_v14  }
  0xba   : > { %770 = vperm.xlu0 %10707, %v681_v15   ;;  %10733 = vset.pattern.permute.xlu2 %v10863_v11 }
  0xbb   : > { %10735 = vperm.xlu2 %10733, %v10721_v10  }
  0xc0   : > { %10744 = vset.pattern.permute.xlu1 %v10864_v13 }
  0xc1   : > { %10746 = vperm.xlu1 %10744, %v10721_v10   ;;  %v11276_v10 = vperm.slane %v836_v1, 1  ;;  %v1438_v1 = vld [vmem:[%s13618_s6 + $0x98] sm:$0xff] }
  0xc2   : > { %10740 = vperm.xlu0 %10707, %v10739_v19  }
  0xc3   : > { %10750 = vset.pattern.permute.xlu2 %v10862_v4 }
  0xc4   : > { %760 = vperm.xlu2 %10750, %v679_v20   ;;  %v1427_v20 = vld [vmem:[%s13618_s6 + $0x40] sm:$0xff] }
  0xc9   : > { %10751 = vset.pattern.permute.xlu1 %v10863_v11 }
  0xca   : > { %765 = vperm.xlu0 %10707, %v680_v24   ;;  %10753 = vperm.xlu1 %10751, %v10739_v19  }
  0xcc   : > { %10758 = vperm.xlu2 %10750, %v10757_v25  }
  0xd2   : > { %10762 = vset.pattern.permute.xlu0 %v10864_v13  ;;  %10768 = vset.pattern.permute.xlu1 %v10862_v4 }
  0xd3   : > { %10764 = vperm.xlu0 %10762, %v10739_v19   ;;  %750 = vperm.xlu1 %10768, %v677_v26  }
  0xd4   : > { %755 = vperm.xlu2 %10750, %v678_v27  }
  0xdb   : > { %10781 = vset.pattern.permute.xlu0 %v10862_v4  ;;  %10769 = vset.pattern.permute.xlu1 %v10863_v11  ;;  %v11278_v11 = vperm.slane %v837_v2, 1 }
  0xdc   : > { %1002 = vperm.xlu0 %10781, %v984_v28   ;;  %10771 = vperm.xlu1 %10769, %v10757_v25  }
  0xdd   : > { %10775 = vset.pattern.permute.xlu2 %v10864_v13 }
  0xde   : > { %10777 = vperm.xlu2 %10775, %v10757_v25  }
  0xe4   : > { %1027 = vperm.xlu0 %10781, %v989_v29   ;;  %10782 = vset.pattern.permute.xlu1 %v10862_v4 }
  0xe5   : > { %1007 = vperm.xlu1 %10782, %v985_v30  }
  0xe6   : > { %10783 = vset.pattern.permute.xlu2 %v10862_v4 }
  0xe7   : > { %1012 = vperm.xlu2 %10783, %v986_v31  }
  0xec   : > { %1042 = vperm.xlu0 %10781, %v992_v32  }
  0xed   : > { %1017 = vperm.xlu1 %10782, %v987_v33  }
  0xef   : > { %1022 = vperm.xlu2 %10783, %v988_v34  }
  0xf4   : > { %1057 = vperm.xlu0 %10781, %v995_v35  }
  0xf5   : > { %1032 = vperm.xlu1 %10782, %v990_v36  }
  0xf7   : > { %1037 = vperm.xlu2 %10783, %v991_v37  }
  0xfc   : > { %1072 = vperm.xlu0 %10781, %v998_v38  }
  0xfd   : > { %1047 = vperm.xlu1 %10782, %v993_v39   ;;  %v1435_v39 = vld [vmem:[%s13618_s6 + $0x80] sm:$0xff] }
  0xff   : > { %1052 = vperm.xlu2 %10783, %v994_v40  }
 0x103   : > { %v11245_v47 = vpop.permute.xlu2 %10722 }
 0x104   : > { %1554 = vperm.xlu0 %10781, %v1420_v41   ;;  %v10725_v49 = vunpack.i.h.bf16 %v11245_v47 }
 0x105   : > { %1062 = vperm.xlu1 %10782, %v996_v42  }
 0x107   : > { %1067 = vperm.xlu2 %10783, %v997_v43  }
 0x10c   : > { %1569 = vperm.xlu0 %10781, %v1423_v44   ;;  %v10729_v53 = vpop.permute.xlu2 %10728 }
 0x10d   : > { %1077 = vperm.xlu1 %10782, %v999_v45   ;;  %v10731_v6 = vunpack.i.h.bf16 %v10729_v53  ;;  %v10730_v13 = vunpack.i.l.bf16 %v10729_v53  ;;  %v1430_v45 = vld [vmem:[%s13618_s6 + $0x58] sm:$0xff]  ;;  %v1431_v53 = vld [vmem:[%s13618_s6 + $0x60] sm:$0xff] }
 0x10f   : > { %1549 = vperm.xlu2 %10783, %v1419_v46   ;;  %v926_v24 = vmul.f32 %v10731_v6, %v11270_v5  ;;  %v927_v26 = vmul.f32 %v10731_v6, %v11274_v9  ;;  %v924_v33 = vmul.f32 %v10730_v13, %v11270_v5  ;;  %v925_v34 = vmul.f32 %v10730_v13, %v11274_v9 }
 0x114   : > { %1584 = vperm.xlu0 %10781, %v1426_v48  }
 0x115   : > { %1559 = vperm.xlu1 %10782, %v1421_v50   ;;  %v11283_v14 = vpop.permute.xlu2 %10735  ;;  %v10724_v50 = vunpack.i.l.bf16 %v11245_v47  ;;  %v742_v47 = vmul.f32 %v10725_v49, %v11263_v61 }
 0x117   : > { %1564 = vperm.xlu2 %10783, %v1422_v51   ;;  %v741_v0 = vmul.f32 %v10724_v50, %v11265_v62 }
 0x118   : > { %v786_v56 = vpop.permute.xlu1 %785 }
 0x11c   : > { %v10710_v60 = vpop.permute.xlu0 %10709  ;;  %1599 = vperm.xlu0 %10781, %v1429_v57   ;;  %v10737_v57 = vunpack.i.l.bf16 %v11283_v14 }
 0x11d   : > { %v10712_v3 = vunpack.i.h.bf16 %v10710_v60  ;;  %v10711_v4 = vunpack.i.l.bf16 %v10710_v60  ;;  %1574 = vperm.xlu1 %10782, %v1424_v58   ;;  %v740_v60 = vmul.f32 %v10724_v50, %v11263_v61 }
 0x11e   : > { %v11309_v51 = vpop.permute.xlu2 %760  ;;  %v850_v2 = vmul.f32 %v10737_v57, %v11276_v10 }
 0x11f   : > { %1579 = vperm.xlu2 %10783, %v1425_v63   ;;  %v746_v7 = vmul.f32 %v10712_v3, %v11263_v61  ;;  %v747_v8 = vmul.f32 %v10712_v3, %v11265_v62  ;;  %v744_v16 = vmul.f32 %v10711_v4, %v11263_v61  ;;  %v745_v17 = vmul.f32 %v10711_v4, %v11265_v62 }
 0x120   : > { %v743_v63 = vmul.f32 %v10725_v49, %v11265_v62 }
 0x121   : > { %v10717_v15 = vpop.permute.xlu1 %10716  ;;  %v802_v23 = vadd.f32 %v786_v56, %v746_v7  ;;  %v803_v25 = vadd.f32 %v786_v56, %v747_v8  ;;  %v10738_v56 = vunpack.i.h.bf16 %v11283_v14  ;;  %v1433_v7 = vld [vmem:[%s13618_s6 + $0x70] sm:$0xff]  ;;  %v851_v8 = vmul.f32 %v10737_v57, %v11278_v11 }
 0x122   : > { %v10719_v18 = vunpack.i.h.bf16 %v10717_v15  ;;  %v10718_v19 = vunpack.i.l.bf16 %v10717_v15 }
 0x123   : > { %v852_v3 = vmul.f32 %v10738_v56, %v11276_v10 }
 0x124   : > { %v781_v21 = vpop.permute.xlu0 %780  ;;  %1614 = vperm.xlu0 %10781, %v1432_v12   ;;  %v854_v27 = vmul.f32 %v10718_v19, %v11276_v10  ;;  %v855_v28 = vmul.f32 %v10718_v19, %v11278_v11  ;;  %v856_v29 = vmul.f32 %v10719_v18, %v11276_v10  ;;  %v857_v30 = vmul.f32 %v10719_v18, %v11278_v11 }
 0x125   : > { %v800_v31 = vadd.f32 %v781_v21, %v744_v16  ;;  %v801_v32 = vadd.f32 %v781_v21, %v745_v17  ;;  %1589 = vperm.xlu1 %10782, %v1427_v20   ;;  %v853_v12 = vmul.f32 %v10738_v56, %v11278_v11  ;;  %v1434_v17 = vld [vmem:[%s13618_s6 + $0x78] sm:$0xff] }
 0x126   : > { %v872_v35 = vadd.f32 %v856_v29, %v802_v23  ;;  %v873_v36 = vadd.f32 %v857_v30, %v803_v25  ;;  %v11333_v20 = vpop.permute.xlu2 %10758  ;;  %v1441_v29 = vld [vmem:[%s13618_s6 + $0xb0] sm:$0xff] }
 0x127   : > { %1594 = vperm.xlu2 %10783, %v1428_v22   ;;  %v870_v37 = vadd.f32 %v854_v27, %v800_v31  ;;  %v871_v38 = vadd.f32 %v855_v28, %v801_v32 }
 0x128   : > { %v942_v40 = vadd.f32 %v926_v24, %v872_v35  ;;  %v943_v41 = vadd.f32 %v927_v26, %v873_v36  ;;  %v1437_v36 = vld [vmem:[%s13618_s6 + $0x90] sm:$0xff] }
 0x129   : > { %v940_v42 = vadd.f32 %v924_v33, %v870_v37  ;;  %v941_v43 = vadd.f32 %v925_v34, %v871_v38  ;;  %v1436_v34 = vld [vmem:[%s13618_s6 + $0x88] sm:$0xff] }
 0x12a   : > { %v776_v44 = vpop.permute.xlu1 %775  ;;  %v958_v46 = vmax.f32 %v942_v40, 0.0  ;;  %v959_v48 = vmax.f32 %v943_v41, 0.0 }
 0x12b   : > { %v956_v54 = vmax.f32 %v940_v42, 0.0  ;;  %v957_v55 = vmax.f32 %v941_v43, 0.0  ;;  %v798_v4 = vadd.f32 %v776_v44, %v742_v47  ;;  %v799_v13 = vadd.f32 %v776_v44, %v743_v63  ;;  %v1439_v47 = vld [vmem:[%s13618_s6 + $0xa0] sm:$0xff] }
 0x12c   : > { %v771_v52 = vpop.permute.xlu0 %770  ;;  %1629 = vperm.xlu0 %10781, %v1435_v39  }
 0x12d   : > { %1604 = vperm.xlu1 %10782, %v1430_v45   ;;  %v966_v58 = vpack.c.bf16 %v958_v46, %v956_v54  ;;  %v967_v59 = vpack.c.bf16 %v959_v48, %v957_v55  ;;  %v796_v6 = vadd.f32 %v771_v52, %v740_v60  ;;  %v797_v14 = vadd.f32 %v771_v52, %v741_v0  ;;  %v1440_v60 = vld [vmem:[%s13618_s6 + $0xa8] sm:$0xff] }
 0x12e   : > { %v868_v21 = vadd.f32 %v852_v3, %v798_v4  ;;  %v869_v27 = vadd.f32 %v853_v12, %v799_v13  ;;  %v756_v49 = vpop.permute.xlu2 %755  ;;  %v10761_v4 = vunpack.i.h.bf16 %v11333_v20 }
 0x12f   : > { %1609 = vperm.xlu2 %10783, %v1431_v53   ;;  %1149 = vmatpush.bf16.msra.mxu0 %v966_v58  ;;  %v866_v22 = vadd.f32 %v850_v2, %v796_v6  ;;  %v867_v28 = vadd.f32 %v851_v8, %v797_v14  ;;  %v1444_v53 = vld [vmem:[%s13618_s6 + $0xc8] sm:$0xff] }
 0x130   : > { %1198 = vmatpush.bf16.msra.mxu1 %v967_v59 }
 0x133   : > { %v10747_v15 = vpop.permute.xlu1 %10746 }
 0x134   : > { %1644 = vperm.xlu0 %10781, %v1438_v1   ;;  %v10741_v16 = vpop.permute.xlu0 %10740  ;;  %v10749_v18 = vunpack.i.h.bf16 %v10747_v15  ;;  %v10748_v19 = vunpack.i.l.bf16 %v10747_v15 }
 0x135   : > { %1619 = vperm.xlu1 %10782, %v1433_v7   ;;  %v10742_v41 = vunpack.i.l.bf16 %v10741_v16  ;;  %v10743_v43 = vunpack.i.h.bf16 %v10741_v16 }
 0x136   : > { %v920_v23 = vmul.f32 %v10748_v19, %v11270_v5  ;;  %v921_v24 = vmul.f32 %v10748_v19, %v11274_v9  ;;  %v922_v25 = vmul.f32 %v10749_v18, %v11270_v5  ;;  %v923_v26 = vmul.f32 %v10749_v18, %v11274_v9  ;;  %v1447_v19 = vld [vmem:[%s13618_s6 + $0xe0] sm:$0xff] }
 0x137   : > { %1624 = vperm.xlu2 %10783, %v1434_v17   ;;  %v736_v50 = vmul.f32 %v10742_v41, %v11263_v61  ;;  %v737_v52 = vmul.f32 %v10742_v41, %v11265_v62  ;;  %v738_v54 = vmul.f32 %v10743_v43, %v11263_v61  ;;  %v739_v55 = vmul.f32 %v10743_v43, %v11265_v62 }
 0x138   : > { %v936_v30 = vadd.f32 %v920_v23, %v866_v22  ;;  %v938_v31 = vadd.f32 %v922_v25, %v868_v21  ;;  %v937_v32 = vadd.f32 %v921_v24, %v867_v28  ;;  %v939_v33 = vadd.f32 %v923_v26, %v869_v27  ;;  %v10778_v21 = vpop.permute.xlu2 %10777 }
 0x139   : > { %v792_v63 = vadd.f32 %v11309_v51, %v736_v50  ;;  %v793_v0 = vadd.f32 %v11309_v51, %v737_v52  ;;  %v10760_v26 = vunpack.i.l.bf16 %v11333_v20  ;;  %v734_v27 = vmul.f32 %v10761_v4, %v11263_v61 }
 0x13a   : > { %v952_v37 = vmax.f32 %v936_v30, 0.0  ;;  %v954_v38 = vmax.f32 %v938_v31, 0.0  ;;  %v953_v39 = vmax.f32 %v937_v32, 0.0  ;;  %v955_v40 = vmax.f32 %v939_v33, 0.0  ;;  %v1442_v30 = vld [vmem:[%s13618_s6 + $0xb8] sm:$0xff]  ;;  %v1443_v31 = vld [vmem:[%s13618_s6 + $0xc0] sm:$0xff] }
 0x13b   : > { %v735_v28 = vmul.f32 %v10761_v4, %v11265_v62  ;;  %v733_v41 = vmul.f32 %v10760_v26, %v11265_v62 }
 0x13c   : > { %1659 = vperm.xlu0 %10781, %v1441_v29   ;;  %v766_v35 = vpop.permute.xlu0 %765  ;;  %v10754_v42 = vpop.permute.xlu1 %10753  ;;  %v964_v44 = vpack.c.bf16 %v954_v38, %v952_v37  ;;  %v965_v45 = vpack.c.bf16 %v955_v40, %v953_v39  ;;  %v10779_v29 = vunpack.i.l.bf16 %v10778_v21  ;;  %v790_v38 = vadd.f32 %v756_v49, %v734_v27  ;;  %v1468_v27 = vld [vmem:[%s13618_s6 + $0x188] sm:$0xff] }
 0x13d   : > { %1634 = vperm.xlu1 %10782, %v1436_v34   ;;  %v10756_v46 = vunpack.i.h.bf16 %v10754_v42  ;;  %v10755_v48 = vunpack.i.l.bf16 %v10754_v42  ;;  %v794_v1 = vadd.f32 %v766_v35, %v738_v54  ;;  %v795_v2 = vadd.f32 %v766_v35, %v739_v55 }
 0x13e   : > { %1150 = vmatpush.bf16.msra.mxu0 %v964_v44  ;;  %1199 = vmatpush.bf16.msra.mxu1 %v965_v45  ;;  %v791_v39 = vadd.f32 %v756_v49, %v735_v28  ;;  %v732_v40 = vmul.f32 %v10760_v26, %v11263_v61  ;;  %v912_v43 = vmul.f32 %v10779_v29, %v11270_v5  ;;  %v1450_v61 = vld [vmem:[%s13618_s6 + $0xf8] sm:$0xff]  ;;  %v1461_v26 = vld [vmem:[%s13618_s6 + $0x150] sm:$0xff]  ;;  %v1463_v28 = vld [vmem:[%s13618_s6 + $0x160] sm:$0xff] }
 0x13f   : > { %1639 = vperm.xlu2 %10783, %v1437_v36   ;;  %v846_v56 = vmul.f32 %v10755_v48, %v11276_v10  ;;  %v847_v57 = vmul.f32 %v10755_v48, %v11278_v11  ;;  %v848_v58 = vmul.f32 %v10756_v46, %v11276_v10  ;;  %v849_v59 = vmul.f32 %v10756_v46, %v11278_v11 }
 0x140   : > { %v10780_v36 = vunpack.i.h.bf16 %v10778_v21  ;;  %v913_v44 = vmul.f32 %v10779_v29, %v11274_v9  ;;  %v1457_v21 = vld [vmem:[%s13618_s6 + $0x130] sm:$0xff]  ;;  %v1464_v29 = vld [vmem:[%s13618_s6 + $0x168] sm:$0xff] }
 0x141   : > { %v862_v12 = vadd.f32 %v846_v56, %v792_v63  ;;  %v864_v13 = vadd.f32 %v848_v58, %v794_v1  ;;  %v863_v14 = vadd.f32 %v847_v57, %v793_v0  ;;  %v865_v15 = vadd.f32 %v849_v59, %v795_v2  ;;  %v1446_v59 = vld [vmem:[%s13618_s6 + $0xd8] sm:$0xff] }
 0x142   : > { %v914_v48 = vmul.f32 %v10780_v36, %v11270_v5  ;;  %v915_v50 = vmul.f32 %v10780_v36, %v11274_v9  ;;  %v1470_v36 = vld [vmem:[%s13618_s6 + $0x198] sm:$0xff] }
 0x144   : > { %1674 = vperm.xlu0 %10781, %v1444_v53  }
 0x145   : > { %v10765_v3 = vpop.permute.xlu0 %10764  ;;  %v751_v8 = vpop.permute.xlu1 %750  ;;  %1649 = vperm.xlu1 %10782, %v1439_v47  }
 0x146   : > { %v10767_v6 = vunpack.i.h.bf16 %v10765_v3  ;;  %v10766_v7 = vunpack.i.l.bf16 %v10765_v3  ;;  %v788_v52 = vadd.f32 %v751_v8, %v732_v40  ;;  %v789_v49 = vadd.f32 %v751_v8, %v733_v41  ;;  %v1453_v3 = vld [vmem:[%s13618_s6 + $0x110] sm:$0xff]  ;;  %v10220_v8 = vld [vmem:[%s13615_s3] sm:$0xff]  ;;  %v1480_v40 = vld [vmem:[%s13618_s6 + $0x1e8] sm:$0xff] }
 0x147   : > { %1654 = vperm.xlu2 %10783, %v1440_v60   ;;  %v1475_v41 = vld [vmem:[%s13618_s6 + $0x1c0] sm:$0xff] }
 0x148   : > { %v916_v16 = vmul.f32 %v10766_v7, %v11270_v5  ;;  %v917_v17 = vmul.f32 %v10766_v7, %v11274_v9  ;;  %v918_v51 = vmul.f32 %v10767_v6, %v11270_v5  ;;  %v919_v18 = vmul.f32 %v10767_v6, %v11274_v9  ;;  %v1445_v5 = vld [vmem:[%s13618_s6 + $0xd0] sm:$0xff]  ;;  %v1448_v7 = vld [vmem:[%s13618_s6 + $0xe8] sm:$0xff] }
 0x14a   : > { %v932_v22 = vadd.f32 %v916_v16, %v862_v12  ;;  %v934_v23 = vadd.f32 %v918_v51, %v864_v13  ;;  %v933_v24 = vadd.f32 %v917_v17, %v863_v14  ;;  %v935_v25 = vadd.f32 %v919_v18, %v865_v15  ;;  %v1449_v12 = vld [vmem:[%s13618_s6 + $0xf0] sm:$0xff]  ;;  %v1456_v13 = vld [vmem:[%s13618_s6 + $0x128] sm:$0xff]  ;;  %v1451_v14 = vld [vmem:[%s13618_s6 + $0x100] sm:$0xff] }
 0x14b   : > { %v1452_v15 = vld [vmem:[%s13618_s6 + $0x108] sm:$0xff]  ;;  %v1459_v16 = vld [vmem:[%s13618_s6 + $0x140] sm:$0xff]  ;;  %v1454_v17 = vld [vmem:[%s13618_s6 + $0x118] sm:$0xff] }
 0x14c   : > { %1689 = vperm.xlu0 %10781, %v1447_v19   ;;  %v948_v32 = vmax.f32 %v932_v22, 0.0  ;;  %v950_v33 = vmax.f32 %v934_v23, 0.0  ;;  %v949_v34 = vmax.f32 %v933_v24, 0.0  ;;  %v951_v35 = vmax.f32 %v935_v25, 0.0  ;;  %v10221_v51 = vld [vmem:[%s13615_s3 + $0x8] sm:$0xff]  ;;  %v1455_v18 = vld [vmem:[%s13618_s6 + $0x120] sm:$0xff] }
 0x14d   : > { %1664 = vperm.xlu1 %10782, %v1442_v30   ;;  %v1462_v19 = vld [vmem:[%s13618_s6 + $0x158] sm:$0xff]  ;;  %v1465_v23 = vld [vmem:[%s13618_s6 + $0x170] sm:$0xff]  ;;  %v1460_v24 = vld [vmem:[%s13618_s6 + $0x148] sm:$0xff] }
 0x14e   : > { %v962_v20 = vpack.c.bf16 %v950_v33, %v948_v32  ;;  %v963_v37 = vpack.c.bf16 %v951_v35, %v949_v34  ;;  %v10772_v42 = vpop.permute.xlu1 %10771  ;;  %v1458_v22 = vld [vmem:[%s13618_s6 + $0x138] sm:$0xff]  ;;  %v10222_v25 = vld [vmem:[%s13615_s3 + $0x10] sm:$0xff]  ;;  %v1471_v30 = vld [vmem:[%s13618_s6 + $0x1a0] sm:$0xff] }
 0x14f   : > { %1669 = vperm.xlu2 %10783, %v1443_v31   ;;  %v10774_v45 = vunpack.i.h.bf16 %v10772_v42  ;;  %v10773_v46 = vunpack.i.l.bf16 %v10772_v42  ;;  %v1466_v31 = vld [vmem:[%s13618_s6 + $0x178] sm:$0xff]  ;;  %v1467_v33 = vld [vmem:[%s13618_s6 + $0x180] sm:$0xff]  ;;  %v1469_v35 = vld [vmem:[%s13618_s6 + $0x190] sm:$0xff] }
 0x150   : > { %1151 = vmatpush.bf16.msra.mxu0 %v962_v20  ;;  %1200 = vmatpush.bf16.msra.mxu1 %v963_v37  ;;  %v10223_v32 = vld [vmem:[%s13615_s3 + $0x18] sm:$0xff]  ;;  %v1477_v20 = vld [vmem:[%s13618_s6 + $0x1d0] sm:$0xff]  ;;  %v1472_v37 = vld [vmem:[%s13618_s6 + $0x1a8] sm:$0xff] }
 0x151   : > { %v842_v62 = vmul.f32 %v10773_v46, %v11276_v10  ;;  %v843_v53 = vmul.f32 %v10773_v46, %v11278_v11  ;;  %v844_v54 = vmul.f32 %v10774_v45, %v11276_v10  ;;  %v845_v55 = vmul.f32 %v10774_v45, %v11278_v11  ;;  %v1474_v34 = vld [vmem:[%s13618_s6 + $0x1b8] sm:$0xff]  ;;  %v1476_v42 = vld [vmem:[%s13618_s6 + $0x1c8] sm:$0xff]  ;;  %v1479_v46 = vld [vmem:[%s13618_s6 + $0x1e0] sm:$0xff] }
 0x152   : > { %v10225_v45 = vld [vmem:[%s13615_s3 + $0x28] sm:$0xff] }
 0x153   : > { %v858_v56 = vadd.f32 %v842_v62, %v788_v52  ;;  %v859_v9 = vadd.f32 %v843_v53, %v789_v49  ;;  %v860_v57 = vadd.f32 %v844_v54, %v790_v38  ;;  %v861_v58 = vadd.f32 %v845_v55, %v791_v39  ;;  %v10224_v38 = vld [vmem:[%s13615_s3 + $0x20] sm:$0xff]  ;;  %v1473_v39 = vld [vmem:[%s13618_s6 + $0x1b0] sm:$0xff]  ;;  %v1482_v52 = vld [vmem:[%s13618_s6 + $0x1f8] sm:$0xff] }
 0x154   : > { %1704 = vperm.xlu0 %10781, %v1450_v61   ;;  %v1489_v49 = vld [vmem:[%s13618_s6 + $0x230] sm:$0xff]  ;;  %v1484_v61 = vld [vmem:[%s13618_s6 + $0x208] sm:$0xff]  ;;  %v1487_v55 = vld [vmem:[%s13618_s6 + $0x220] sm:$0xff] }
 0x155   : > { %1679 = vperm.xlu1 %10782, %v1445_v5   ;;  %v928_v47 = vadd.f32 %v912_v43, %v858_v56  ;;  %v930_v60 = vadd.f32 %v914_v48, %v860_v57  ;;  %v929_v63 = vadd.f32 %v913_v44, %v859_v9  ;;  %v931_v10 = vadd.f32 %v915_v50, %v861_v58  ;;  %v1483_v43 = vld [vmem:[%s13618_s6 + $0x200] sm:$0xff]  ;;  %v1478_v44 = vld [vmem:[%s13618_s6 + $0x1d8] sm:$0xff]  ;;  %v1481_v50 = vld [vmem:[%s13618_s6 + $0x1f0] sm:$0xff] }
 0x156   : > { %v1486_v48 = vld [vmem:[%s13618_s6 + $0x218] sm:$0xff]  ;;  %v10226_v62 = vld [vmem:[%s13615_s3 + $0x30] sm:$0xff]  ;;  %v1492_v54 = vld [vmem:[%s13618_s6 + $0x248] sm:$0xff] }
 0x157   : > { %1684 = vperm.xlu2 %10783, %v1446_v59   ;;  %v944_v11 = vmax.f32 %v928_v47, 0.0  ;;  %v946_v0 = vmax.f32 %v930_v60, 0.0  ;;  %v945_v1 = vmax.f32 %v929_v63, 0.0  ;;  %v947_v2 = vmax.f32 %v931_v10, 0.0  ;;  %v1485_v53 = vld [vmem:[%s13618_s6 + $0x210] sm:$0xff]  ;;  %v1488_v5 = vld [vmem:[%s13618_s6 + $0x228] sm:$0xff] }
 0x158   : > { %v1495_v56 = vld [vmem:[%s13618_s6 + $0x260] sm:$0xff]  ;;  %v1490_v9 = vld [vmem:[%s13618_s6 + $0x238] sm:$0xff]  ;;  %v1493_v47 = vld [vmem:[%s13618_s6 + $0x250] sm:$0xff] }
 0x159   : > { %v960_v4 = vpack.c.bf16 %v946_v0, %v944_v11  ;;  %v961_v6 = vpack.c.bf16 %v947_v2, %v945_v1  ;;  %v10227_v57 = vld [vmem:[%s13615_s3 + $0x38] sm:$0xff]  ;;  %v1491_v58 = vld [vmem:[%s13618_s6 + $0x240] sm:$0xff]  ;;  %v1501_v63 = vld [vmem:[%s13618_s6 + $0x290] sm:$0xff] }
 0x15a   : > { %v1498_v59 = vld [vmem:[%s13618_s6 + $0x278] sm:$0xff]  ;;  %v1496_v10 = vld [vmem:[%s13618_s6 + $0x268] sm:$0xff]  ;;  %v1497_v0 = vld [vmem:[%s13618_s6 + $0x270] sm:$0xff] }
 0x15b   : > { %1152 = vmatpush.bf16.msra.mxu0 %v960_v4  ;;  %1201 = vmatpush.bf16.msra.mxu1 %v961_v6  ;;  %v1494_v60 = vld [vmem:[%s13618_s6 + $0x258] sm:$0xff]  ;;  %v1504_v2 = vld [vmem:[%s13618_s6 + $0x2a8] sm:$0xff]  ;;  %v1499_v6 = vld [vmem:[%s13618_s6 + $0x280] sm:$0xff] }
 0x15c   : > { %1719 = vperm.xlu0 %10781, %v1453_v3   ;;  %v1003_v3 = vpop.permute.xlu0 %1002 }
 0x15d   : > { %1694 = vperm.xlu1 %10782, %v1448_v7   ;;  %v1008_v7 = vpop.permute.xlu1 %1007 }
 0x15e   : > { %8655 = vmatmul.msk.bf16.vlgmr.msra.gmra.mxu0 %vm1120_vm0, %v10220_v8  ;;  %8663 = vmatmul.msk.bf16.vlgmr.msra.gmra.mxu1 %vm1120_vm0, %v10220_v8 }
 0x15f   : > { %1699 = vperm.xlu2 %10783, %v1449_v12  }
 0x164   : > { %1734 = vperm.xlu0 %10781, %v1456_v13   ;;  %v1500_v13 = vld [vmem:[%s13618_s6 + $0x288] sm:$0xff] }
 0x165   : > { %1709 = vperm.xlu1 %10782, %v1451_v14  }
 0x167   : > { %1714 = vperm.xlu2 %10783, %v1452_v15  }
 0x16c   : > { %1749 = vperm.xlu0 %10781, %v1459_v16  }
 0x16d   : > { %1724 = vperm.xlu1 %10782, %v1454_v17  }
 0x16e   : > { %8656 = vmatmul.msk.bf16.gmra.mxu0 %vm1120_vm0, %v10221_v51  ;;  %8664 = vmatmul.msk.bf16.gmra.mxu1 %vm1120_vm0, %v10221_v51 }
 0x16f   : > { %1729 = vperm.xlu2 %10783, %v1455_v18  }
 0x174   : > { %1764 = vperm.xlu0 %10781, %v1462_v19  }
 0x175   : > { %1739 = vperm.xlu1 %10782, %v1457_v21   ;;  %v1507_v21 = vld [vmem:[%s13618_s6 + $0x2c0] sm:$0xff] }
 0x177   : > { %1744 = vperm.xlu2 %10783, %v1458_v22  }
 0x17c   : > { %1779 = vperm.xlu0 %10781, %v1465_v23  }
 0x17d   : > { %1754 = vperm.xlu1 %10782, %v1460_v24   ;;  %v1502_v24 = vld [vmem:[%s13618_s6 + $0x298] sm:$0xff] }
 0x17e   : > { %8657 = vmatmul.msk.bf16.gmra.mxu0 %vm1120_vm0, %v10222_v25  ;;  %8665 = vmatmul.msk.bf16.gmra.mxu1 %vm1120_vm0, %v10222_v25 }
 0x17f   : > { %1759 = vperm.xlu2 %10783, %v1461_v26   ;;  %v1503_v26 = vld [vmem:[%s13618_s6 + $0x2a0] sm:$0xff] }
 0x184   : > { %1794 = vperm.xlu0 %10781, %v1468_v27  }
 0x185   : > { %1769 = vperm.xlu1 %10782, %v1463_v28   ;;  %v1510_v28 = vld [vmem:[%s13618_s6 + $0x2d8] sm:$0xff] }
 0x187   : > { %1774 = vperm.xlu2 %10783, %v1464_v29   ;;  %v1505_v29 = vld [vmem:[%s13618_s6 + $0x2b0] sm:$0xff] }
 0x18c   : > { %1809 = vperm.xlu0 %10781, %v1471_v30  }
 0x18d   : > { %1784 = vperm.xlu1 %10782, %v1466_v31   ;;  %v1506_v31 = vld [vmem:[%s13618_s6 + $0x2b8] sm:$0xff] }
 0x18e   : > { %8658 = vmatmul.msk.bf16.gmra.mxu0 %vm1120_vm0, %v10223_v32  ;;  %8666 = vmatmul.msk.bf16.gmra.mxu1 %vm1120_vm0, %v10223_v32 }
 0x18f   : > { %1789 = vperm.xlu2 %10783, %v1467_v33   ;;  %v1513_v33 = vld [vmem:[%s13618_s6 + $0x2f0] sm:$0xff] }
 0x194   : > { %1824 = vperm.xlu0 %10781, %v1474_v34   ;;  %v1508_v34 = vld [vmem:[%s13618_s6 + $0x2c8] sm:$0xff] }
 0x195   : > { %1799 = vperm.xlu1 %10782, %v1469_v35  }
 0x197   : > { %1804 = vperm.xlu2 %10783, %v1470_v36   ;;  %v1509_v36 = vld [vmem:[%s13618_s6 + $0x2d0] sm:$0xff] }
 0x19c   : > { %1839 = vperm.xlu0 %10781, %v1477_v20  }
 0x19d   : > { %1814 = vperm.xlu1 %10782, %v1472_v37   ;;  %v1516_v37 = vld [vmem:[%s13618_s6 + $0x308] sm:$0xff] }
 0x19e   : > { %8659 = vmatmul.msk.bf16.gmra.mxu0 %vm1120_vm0, %v10224_v38  ;;  %8667 = vmatmul.msk.bf16.gmra.mxu1 %vm1120_vm0, %v10224_v38  ;;  %v1511_v38 = vld [vmem:[%s13618_s6 + $0x2e0] sm:$0xff] }
 0x19f   : > { %1819 = vperm.xlu2 %10783, %v1473_v39  }
 0x1a4   : > { %1854 = vperm.xlu0 %10781, %v1480_v40   ;;  %v1512_v40 = vld [vmem:[%s13618_s6 + $0x2e8] sm:$0xff] }
 0x1a5   : > { %1829 = vperm.xlu1 %10782, %v1475_v41  }
 0x1a7   : > { %1834 = vperm.xlu2 %10783, %v1476_v42   ;;  %v1519_v42 = vld [vmem:[%s13618_s6 + $0x320] sm:$0xff] }
 0x1ac   : > { %1869 = vperm.xlu0 %10781, %v1483_v43   ;;  %v1514_v43 = vld [vmem:[%s13618_s6 + $0x2f8] sm:$0xff] }
 0x1ad   : > { %1844 = vperm.xlu1 %10782, %v1478_v44  }
 0x1ae   : > { %8660 = vmatmul.msk.bf16.gmra.mxu0 %vm1120_vm0, %v10225_v45  ;;  %8668 = vmatmul.msk.bf16.gmra.mxu1 %vm1120_vm0, %v10225_v45  ;;  %v1515_v45 = vld [vmem:[%s13618_s6 + $0x300] sm:$0xff] }
 0x1af   : > { %1849 = vperm.xlu2 %10783, %v1479_v46  }
 0x1b4   : > { %1884 = vperm.xlu0 %10781, %v1486_v48   ;;  %v1522_v48 = vld [vmem:[%s13618_s6 + $0x338] sm:$0xff] }
 0x1b5   : > { %1859 = vperm.xlu1 %10782, %v1481_v50   ;;  %v1517_v50 = vld [vmem:[%s13618_s6 + $0x310] sm:$0xff] }
 0x1b7   : > { %1864 = vperm.xlu2 %10783, %v1482_v52  }
 0x1bc   : > { %1899 = vperm.xlu0 %10781, %v1489_v49   ;;  %v1518_v49 = vld [vmem:[%s13618_s6 + $0x318] sm:$0xff] }
 0x1bd   : > { %1874 = vperm.xlu1 %10782, %v1484_v61  }
 0x1be   : > { %8661 = vmatmul.msk.bf16.gmra.mxu0 %vm1120_vm0, %v10226_v62  ;;  %8669 = vmatmul.msk.bf16.gmra.mxu1 %vm1120_vm0, %v10226_v62  ;;  %v11687_v62 = vpop.permute.xlu2 %1012 }
 0x1bf   : > { %1879 = vperm.xlu2 %10783, %v1485_v53   ;;  %v11689_v53 = vpop.permute.xlu1 %1017 }
 0x1c4   : > { %1914 = vperm.xlu0 %10781, %v1492_v54   ;;  %v1525_v54 = vld [vmem:[%s13618_s6 + $0x350] sm:$0xff] }
 0x1c5   : > { %1889 = vperm.xlu1 %10782, %v1487_v55   ;;  %v1520_v55 = vld [vmem:[%s13618_s6 + $0x328] sm:$0xff] }
 0x1c7   : > { %1894 = vperm.xlu2 %10783, %v1488_v5  }
 0x1cc   : > { %1929 = vperm.xlu0 %10781, %v1495_v56   ;;  %v1521_v56 = vld [vmem:[%s13618_s6 + $0x330] sm:$0xff] }
 0x1cd   : > { %1904 = vperm.xlu1 %10782, %v1490_v9  }
 0x1ce   : > { %8662 = vmatmul.msk.bf16.gmra.mxu0 %vm1120_vm0, %v10227_v57  ;;  %8670 = vmatmul.msk.bf16.gmra.mxu1 %vm1120_vm0, %v10227_v57  ;;  %v11704_v57 = vpop.permute.xlu2 %1022 }
 0x1cf   : > { %1909 = vperm.xlu2 %10783, %v1491_v58   ;;  %v1528_v58 = vld [vmem:[%s13618_s6 + $0x368] sm:$0xff] }
 0x1d4   : > { %1944 = vperm.xlu0 %10781, %v1498_v59   ;;  %v11709_v59 = vpop.permute.xlu1 %1032 }
 0x1d5   : > { %1919 = vperm.xlu1 %10782, %v1493_v47   ;;  %v1523_v47 = vld [vmem:[%s13618_s6 + $0x340] sm:$0xff] }
 0x1d7   : > { %1924 = vperm.xlu2 %10783, %v1494_v60  }
 0x1db   : > { %v1154_v11 = vpop.f32.mrf.mxu0  ;;  %v1203_v1 = vpop.f32.mrf.mxu1 }
 0x1dc   : > { %1959 = vperm.xlu0 %10781, %v1501_v63   ;;  %v1155_v4 = vadd.f32 %v1154_v11, %v1003_v3  ;;  %v1204_v8 = vadd.f32 %v1203_v1, %v1003_v3  ;;  %v1524_v63 = vld [vmem:[%s13618_s6 + $0x348] sm:$0xff]  ;;  %v11721_v11 = vpop.permute.xlu0 %1027  ;;  %v11726_v1 = vpop.permute.xlu2 %1037 }
 0x1dd   : > { %1934 = vperm.xlu1 %10782, %v1496_v10   ;;  %v11731_v3 = vpop.permute.xlu1 %1047 }
 0x1de   : > { %v1243_v17 = vmax.f32 %v1155_v4, 0.0  ;;  %v1244_v18 = vmax.f32 %v1204_v8, 0.0  ;;  %v1534_v8 = vld [vmem:[%s13618_s6 + $0x398] sm:$0xff] }
 0x1df   : > { %1939 = vperm.xlu2 %10783, %v1497_v0   ;;  %v1531_v0 = vld [vmem:[%s13618_s6 + $0x380] sm:$0xff] }
 0x1e3   : > { %v1156_v12 = vpop.f32.mrf.mxu0  ;;  %v1205_v15 = vpop.f32.mrf.mxu1 }
 0x1e4   : > { %1974 = vperm.xlu0 %10781, %v1504_v2   ;;  %v1157_v14 = vadd.f32 %v1156_v12, %v1008_v7  ;;  %v1206_v16 = vadd.f32 %v1205_v15, %v1008_v7  ;;  %v1526_v2 = vld [vmem:[%s13618_s6 + $0x358] sm:$0xff]  ;;  %v11743_v12 = vpop.permute.xlu0 %1042 }
 0x1e5   : > { %1949 = vperm.xlu1 %10782, %v1499_v6   ;;  %v1527_v6 = vld [vmem:[%s13618_s6 + $0x360] sm:$0xff] }
 0x1e6   : > { %v1245_v51 = vmax.f32 %v1157_v14, 0.0  ;;  %v1246_v19 = vmax.f32 %v1206_v16, 0.0  ;;  %v11748_v14 = vpop.permute.xlu2 %1052  ;;  %v1530_v16 = vld [vmem:[%s13618_s6 + $0x378] sm:$0xff] }
 0x1e7   : > { %1954 = vperm.xlu2 %10783, %v1500_v13   ;;  %v1529_v13 = vld [vmem:[%s13618_s6 + $0x370] sm:$0xff] }
 0x1e8   : > { %v11608_v22 = vpack.c.bf16 %v1245_v51, %v1243_v17  ;;  %v11610_v23 = vpack.c.bf16 %v1246_v19, %v1244_v18  ;;  %v1063_v51 = vpop.permute.xlu1 %1062  ;;  %v1537_v18 = vld [vmem:[%s13618_s6 + $0x3b0] sm:$0xff]  ;;  %v1532_v19 = vld [vmem:[%s13618_s6 + $0x388] sm:$0xff] }
 0x1eb   : > { %v11615_v25 = vpop.f32.mrf.mxu0  ;;  %v11620_v27 = vpop.f32.mrf.mxu1 }
 0x1ec   : > { %1989 = vperm.xlu0 %10781, %v1507_v21   ;;  %v1058_v21 = vpop.permute.xlu0 %1057 }
 0x1ed   : > { %1964 = vperm.xlu1 %10782, %v1502_v24  }
 0x1ef   : > { %1969 = vperm.xlu2 %10783, %v1503_v26   ;;  %v1533_v26 = vld [vmem:[%s13618_s6 + $0x390] sm:$0xff] }
 0x1f3   : > { %v11628_v30 = vpop.f32.mrf.mxu0  ;;  %v11633_v32 = vpop.f32.mrf.mxu1 }
 0x1f4   : > { %2004 = vperm.xlu0 %10781, %v1510_v28  }
 0x1f5   : > { %1979 = vperm.xlu1 %10782, %v1505_v29   ;;  %v1068_v29 = vpop.permute.xlu2 %1067 }
 0x1f7   : > { %1984 = vperm.xlu2 %10783, %v1506_v31   ;;  %v1078_v31 = vpop.permute.xlu1 %1077 }
 0x1fb   : > { %v11641_v35 = vpop.f32.mrf.mxu0  ;;  %v11646_v20 = vpop.f32.mrf.mxu1 }
 0x1fc   : > { %2019 = vperm.xlu0 %10781, %v1513_v33   ;;  %v1540_v33 = vld [vmem:[%s13618_s6 + $0x3c8] sm:$0xff] }
 0x1fd   : > { %1994 = vperm.xlu1 %10782, %v1508_v34   ;;  %v1535_v34 = vld [vmem:[%s13618_s6 + $0x3a0] sm:$0xff] }
 0x1ff   : > { %1999 = vperm.xlu2 %10783, %v1509_v36  }
 0x203   : > { %v11654_v39 = vpop.f32.mrf.mxu0  ;;  %v11659_v41 = vpop.f32.mrf.mxu1 }
 0x204   : > { %2034 = vperm.xlu0 %10781, %v1516_v37   ;;  %v1536_v37 = vld [vmem:[%s13618_s6 + $0x3a8] sm:$0xff] }
 0x205   : > { %2009 = vperm.xlu1 %10782, %v1511_v38  }
 0x207   : > { %2014 = vperm.xlu2 %10783, %v1512_v40   ;;  %v1073_v40 = vpop.permute.xlu0 %1072 }
 0x20b   : > { %v11667_v44 = vpop.f32.mrf.mxu0  ;;  %v11672_v46 = vpop.f32.mrf.mxu1 }
 0x20c   : > { %2049 = vperm.xlu0 %10781, %v1519_v42   ;;  %v11771_v42 = vpop.permute.xlu2 %1549 }
 0x20d   : > { %2024 = vperm.xlu1 %10782, %v1514_v43   ;;  %v1543_v43 = vld [vmem:[%s13618_s6 + $0x3e0] sm:$0xff] }
 0x20f   : > { %2029 = vperm.xlu2 %10783, %v1515_v45   ;;  %v11776_v45 = vpop.permute.xlu1 %1559 }
 0x213   : > { %v11680_v52 = vpop.f32.mrf.mxu0  ;;  %v11685_v61 = vpop.f32.mrf.mxu1 }
 0x214   : > { %2064 = vperm.xlu0 %10781, %v1522_v48   ;;  %v1538_v48 = vld [vmem:[%s13618_s6 + $0x3b8] sm:$0xff] }
 0x215   : > { %2039 = vperm.xlu1 %10782, %v1517_v50  }
 0x217   : > { %2044 = vperm.xlu2 %10783, %v1518_v49   ;;  %v1539_v49 = vld [vmem:[%s13618_s6 + $0x3c0] sm:$0xff] }
 0x21b   : > { %v11697_v5 = vpop.f32.mrf.mxu0  ;;  %v11702_v9 = vpop.f32.mrf.mxu1 }
 0x21c   : > { %2079 = vperm.xlu0 %10781, %v1525_v54  }
 0x21d   : > { %2054 = vperm.xlu1 %10782, %v1520_v55   ;;  %v11784_v55 = vpop.permute.xlu0 %1554 }
 0x21f   : > { %2059 = vperm.xlu2 %10783, %v1521_v56   ;;  %v1546_v56 = vld [vmem:[%s13618_s6 + $0x3f8] sm:$0xff] }
 0x223   : > { %v11714_v60 = vpop.f32.mrf.mxu0  ;;  %v11719_v10 = vpop.f32.mrf.mxu1 }
 0x224   : > { %2094 = vperm.xlu0 %10781, %v1528_v58   ;;  %v11789_v58 = vpop.permute.xlu2 %1564 }
 0x225   : > { %2069 = vperm.xlu1 %10782, %v1523_v47   ;;  %13650 = vst [vmem:[#allocation11_spill] sm:$0xff] %v11789_v58 }
 0x227   : > { %2074 = vperm.xlu2 %10783, %v1524_v63   ;;  %v1541_v63 = vld [vmem:[%s13618_s6 + $0x3d0] sm:$0xff] }
 0x22b   : > { %v11733_v4 = vpop.f32.mrf.mxu0  ;;  %v11738_v7 = vpop.f32.mrf.mxu1 }
 0x22c   : > { %2109 = vperm.xlu0 %10781, %v1531_v0   ;;  %v11794_v0 = vpop.permute.xlu1 %1574 }
 0x22d   : > { %2084 = vperm.xlu1 %10782, %v1526_v2   ;;  %13651 = vst [vmem:[#allocation12_spill] sm:$0xff] %v11794_v0 }
 0x22f   : > { %2089 = vperm.xlu2 %10783, %v1527_v6  }
 0x233   : > { %v1181_v15 = vpop.f32.mrf.mxu0  ;;  %v1230_v17 = vpop.f32.mrf.mxu1 }
 0x234   : > { %2124 = vperm.xlu0 %10781, %v1534_v8   ;;  %v1542_v8 = vld [vmem:[%s13618_s6 + $0x3d8] sm:$0xff]  ;;  %v1231_v0 = vadd.f32 %v1230_v17, %v1058_v21  ;;  %v1545_v17 = vld [vmem:[%s13618_s6 + $0x3f0] sm:$0xff] }
 0x235   : > { %2099 = vperm.xlu1 %10782, %v1529_v13  }
 0x237   : > { %2104 = vperm.xlu2 %10783, %v1530_v16  }
 0x23b   : > { %v1184_v24 = vpop.f32.mrf.mxu0  ;;  %v1233_v28 = vpop.f32.mrf.mxu1 }
 0x23c   : > { %2139 = vperm.xlu0 %10781, %v1537_v18  }
 0x23d   : > { %2114 = vperm.xlu1 %10782, %v1532_v19  }
 0x23f   : > { %2119 = vperm.xlu2 %10783, %v1533_v26  }
 0x243   : > { %v1186_v36 = vpop.f32.mrf.mxu0  ;;  %v1235_v38 = vpop.f32.mrf.mxu1 }
 0x244   : > { %2154 = vperm.xlu0 %10781, %v1540_v33   ;;  %v1187_v13 = vadd.f32 %v1186_v36, %v1068_v29  ;;  %v1236_v19 = vadd.f32 %v1235_v38, %v1068_v29  ;;  %v1185_v33 = vadd.f32 %v1184_v24, %v1063_v51  ;;  %v1180_v29 = vadd.f32 %v11733_v4, %v11748_v14  ;;  %v11806_v24 = vpop.permute.xlu2 %1579 }
 0x245   : > { %2129 = vperm.xlu1 %10782, %v1535_v34   ;;  %v1177_v4 = vadd.f32 %v11714_v60, %v11731_v3 }
 0x246   : > { %v1270_v58 = vmax.f32 %v1236_v19, 0.0 }
 0x247   : > { %2134 = vperm.xlu2 %10783, %v1536_v37  }
 0x24b   : > { %v1189_v50 = vpop.f32.mrf.mxu0  ;;  %v1238_v54 = vpop.f32.mrf.mxu1 }
 0x24c   : > { %2169 = vperm.xlu0 %10781, %v1543_v43   ;;  %v1190_v47 = vadd.f32 %v1189_v50, %v1073_v40  ;;  %v1239_v2 = vadd.f32 %v1238_v54, %v1073_v40  ;;  %v1234_v43 = vadd.f32 %v1233_v28, %v1063_v51  ;;  %v1182_v40 = vadd.f32 %v1181_v15, %v1058_v21  ;;  %v1544_v51 = vld [vmem:[%s13618_s6 + $0x3e8] sm:$0xff] }
 0x24d   : > { %2144 = vperm.xlu1 %10782, %v1538_v48   ;;  %v1229_v15 = vadd.f32 %v11738_v7, %v11748_v14  ;;  %v1175_v14 = vadd.f32 %v11697_v5, %v11743_v12 }
 0x24e   : > { %v1271_v34 = vmax.f32 %v1190_v47, 0.0  ;;  %v1272_v48 = vmax.f32 %v1239_v2, 0.0  ;;  %v1268_v28 = vmax.f32 %v1234_v43, 0.0  ;;  %v1265_v21 = vmax.f32 %v1182_v40, 0.0  ;;  %v11815_v47 = vpop.permute.xlu1 %1589 }
 0x24f   : > { %2149 = vperm.xlu2 %10783, %v1539_v49   ;;  %v1269_v49 = vmax.f32 %v1187_v13, 0.0  ;;  %v1266_v2 = vmax.f32 %v1231_v0, 0.0  ;;  %v1264_v60 = vmax.f32 %v1229_v15, 0.0  ;;  %v1172_v13 = vadd.f32 %v11680_v52, %v11726_v1 }
 0x250   : > { %v1288_v7 = vpack.c.bf16 %v1270_v58, %v1268_v28  ;;  %v1170_v0 = vadd.f32 %v11667_v44, %v11709_v59  ;;  %v1167_v52 = vadd.f32 %v11654_v39, %v11721_v11  ;;  %v1216_v44 = vadd.f32 %v11659_v41, %v11721_v11  ;;  %v10228_v28 = vld [vmem:[%s13617_s5] sm:$0xff] }
 0x251   : > { %v1286_v5 = vpack.c.bf16 %v1266_v2, %v1264_v60  ;;  %v1214_v39 = vadd.f32 %v11646_v20, %v11704_v57  ;;  %v1211_v11 = vadd.f32 %v11633_v32, %v11689_v53  ;;  %v1209_v20 = vadd.f32 %v11620_v27, %v11687_v62 }
 0x253   : > { %v1191_v6 = vpop.f32.mrf.mxu0  ;;  %v1240_v18 = vpop.f32.mrf.mxu1 }
 0x254   : > { %2184 = vperm.xlu0 %10781, %v1546_v56   ;;  %v1192_v16 = vadd.f32 %v1191_v6, %v1078_v31  ;;  %v1241_v26 = vadd.f32 %v1240_v18, %v1078_v31  ;;  %v11799_v56 = vpop.permute.xlu0 %1569  ;;  %v1267_v31 = vmax.f32 %v1185_v33, 0.0  ;;  %v1263_v6 = vmax.f32 %v1180_v29, 0.0 }
 0x255   : > { %2159 = vperm.xlu1 %10782, %v1541_v63   ;;  %v1226_v63 = vadd.f32 %v11719_v10, %v11731_v3  ;;  %v1221_v3 = vadd.f32 %v11685_v61, %v11726_v1  ;;  %v1259_v18 = vmax.f32 %v1175_v14, 0.0  ;;  %v11835_v1 = vpop.permute.xlu2 %1594 }
 0x256   : > { %v1273_v37 = vmax.f32 %v1192_v16, 0.0  ;;  %v1274_v50 = vmax.f32 %v1241_v26, 0.0  ;;  %v1287_v38 = vpack.c.bf16 %v1269_v49, %v1267_v31  ;;  %v1261_v16 = vmax.f32 %v1177_v4, 0.0 }
 0x257   : > { %2164 = vperm.xlu2 %10783, %v1542_v8   ;;  %v1224_v8 = vadd.f32 %v11702_v9, %v11743_v12  ;;  %v1285_v10 = vpack.c.bf16 %v1265_v21, %v1263_v6  ;;  %v1262_v58 = vmax.f32 %v1226_v63, 0.0  ;;  %v1219_v12 = vadd.f32 %v11672_v46, %v11709_v59  ;;  %v11841_v59 = vpop.permute.xlu1 %1604 }
 0x258   : > { %v1289_v54 = vpack.c.bf16 %v1273_v37, %v1271_v34  ;;  %v1290_v36 = vpack.c.bf16 %v1274_v50, %v1272_v48  ;;  %v1257_v26 = vmax.f32 %v1172_v13, 0.0  ;;  %v1283_v61 = vpack.c.bf16 %v1261_v16, %v1259_v18  ;;  %v10230_v13 = vld [vmem:[%s13617_s5 + $0x10] sm:$0xff]  ;;  %v10231_v18 = vld [vmem:[%s13617_s5 + $0x18] sm:$0xff] }
 0x259   : > { %v1260_v19 = vmax.f32 %v1224_v8, 0.0  ;;  %v1258_v33 = vmax.f32 %v1221_v3, 0.0  ;;  %v1165_v37 = vadd.f32 %v11641_v35, %v11704_v57  ;;  %v1255_v46 = vmax.f32 %v1170_v0, 0.0  ;;  %v10258_v16 = vld [vmem:[%s13617_s5 + $0xf0] sm:$0xff] }
 0x25a   : > { %2571 = vmatpush.bf16.msrb.mxu0 %v1289_v54  ;;  %10633 = vmatpush.bf16.msra.mxu2 %v1289_v54  ;;  %v1256_v43 = vmax.f32 %v1219_v12, 0.0  ;;  %v1162_v48 = vadd.f32 %v11628_v30, %v11689_v53  ;;  %v1253_v50 = vmax.f32 %v1167_v52, 0.0  ;;  %v1254_v35 = vmax.f32 %v1216_v44, 0.0  ;;  %v10259_v12 = vld [vmem:[%s13617_s5 + $0xf8] sm:$0xff] }
 0x25b   : > { %2900 = vmatpush.bf16.msrb.mxu1 %v1290_v36  ;;  %10641 = vmatpush.bf16.msra.mxu3 %v1290_v36  ;;  %v1284_v34 = vpack.c.bf16 %v1262_v58, %v1260_v19  ;;  %v1281_v41 = vpack.c.bf16 %v1257_v26, %v1255_v46  ;;  %v1160_v49 = vadd.f32 %v11615_v25, %v11687_v62  ;;  %v1251_v54 = vmax.f32 %v1165_v37, 0.0 }
 0x25c   : > { %v11829_v9 = vpop.permute.xlu0 %1584  ;;  %v1282_v40 = vpack.c.bf16 %v1258_v33, %v1256_v43  ;;  %v1252_v57 = vmax.f32 %v1214_v39, 0.0  ;;  %v1249_v30 = vmax.f32 %v1162_v48, 0.0  ;;  %v1250_v31 = vmax.f32 %v1211_v11, 0.0  ;;  %v10232_v33 = vld [vmem:[%s13617_s5 + $0x20] sm:$0xff]  ;;  %v10233_v48 = vld [vmem:[%s13617_s5 + $0x28] sm:$0xff] }
 0x25d   : > { %2174 = vperm.xlu1 %10782, %v1544_v51   ;;  %v1279_v36 = vpack.c.bf16 %v1253_v50, %v1251_v54  ;;  %v1247_v53 = vmax.f32 %v1160_v49, 0.0  ;;  %v11855_v51 = vpop.permute.xlu2 %1609  ;;  %v1248_v25 = vmax.f32 %v1209_v20, 0.0  ;;  %v10261_v50 = vld [vmem:[%s13617_s5 + $0x108] sm:$0xff]  ;;  %v10234_v20 = vld [vmem:[%s13617_s5 + $0x30] sm:$0xff] }
 0x25e   : > { %2572 = vmatpush.bf16.msrb.mxu0 %v1287_v38  ;;  %10634 = vmatpush.bf16.msra.mxu2 %v1287_v38  ;;  %v1280_v32 = vpack.c.bf16 %v1254_v35, %v1252_v57  ;;  %v10262_v57 = vld [vmem:[%s13617_s5 + $0x110] sm:$0xff] }
 0x25f   : > { %2179 = vperm.xlu2 %10783, %v1545_v17   ;;  %2901 = vmatpush.bf16.msrb.mxu1 %v1288_v7  ;;  %v1277_v15 = vpack.c.bf16 %v1249_v30, %v1247_v53  ;;  %v11857_v27 = vpop.permute.xlu1 %1619  ;;  %v1278_v62 = vpack.c.bf16 %v1250_v31, %v1248_v25  ;;  %v10256_v17 = vld [vmem:[%s13617_s5 + $0xe0] sm:$0xff]  ;;  %v10235_v53 = vld [vmem:[%s13617_s5 + $0x38] sm:$0xff] }
 0x260   : > { %10642 = vmatpush.bf16.msra.mxu3 %v1288_v7  ;;  %v10263_v25 = vld [vmem:[%s13617_s5 + $0x118] sm:$0xff] }
 0x262   : > { %2573 = vmatpush.bf16.msrb.mxu0 %v1285_v10  ;;  %10635 = vmatpush.bf16.msra.mxu2 %v1285_v10 }
 0x263   : > { %2902 = vmatpush.bf16.msrb.mxu1 %v1286_v5 }
 0x264   : > { %10643 = vmatpush.bf16.msra.mxu3 %v1286_v5  ;;  %v11853_v29 = vpop.permute.xlu0 %1599 }
 0x265   : > { %v11871_v21 = vpop.permute.xlu2 %1624 }
 0x266   : > { %2574 = vmatpush.bf16.msrb.mxu0 %v1283_v61  ;;  %10636 = vmatpush.bf16.msra.mxu2 %v1283_v61 }
 0x267   : > { %2903 = vmatpush.bf16.msrb.mxu1 %v1284_v34  ;;  %v11873_v38 = vpop.permute.xlu1 %1634 }
 0x268   : > { %10644 = vmatpush.bf16.msra.mxu3 %v1284_v34  ;;  %v10260_v34 = vld [vmem:[%s13617_s5 + $0x100] sm:$0xff] }
 0x26a   : > { %2575 = vmatpush.bf16.msrb.mxu0 %v1281_v41  ;;  %10637 = vmatpush.bf16.msra.mxu2 %v1281_v41 }
 0x26b   : > { %2904 = vmatpush.bf16.msrb.mxu1 %v1282_v40 }
 0x26c   : > { %10645 = vmatpush.bf16.msra.mxu3 %v1282_v40  ;;  %v11866_v4 = vpop.permute.xlu0 %1614 }
 0x26d   : > { %v11877_v2 = vpop.permute.xlu2 %1639 }
 0x26e   : > { %2576 = vmatpush.bf16.msrb.mxu0 %v1279_v36  ;;  %10638 = vmatpush.bf16.msra.mxu2 %v1279_v36 }
 0x26f   : > { %2905 = vmatpush.bf16.msrb.mxu1 %v1280_v32  ;;  %v11879_v7 = vpop.permute.xlu1 %1649 }
 0x270   : > { %10646 = vmatpush.bf16.msra.mxu3 %v1280_v32 }
 0x272   : > { %2577 = vmatpush.bf16.msrb.mxu0 %v1277_v15  ;;  %10639 = vmatpush.bf16.msra.mxu2 %v1277_v15 }
 0x273   : > { %2906 = vmatpush.bf16.msrb.mxu1 %v1278_v62 }
 0x274   : > { %10647 = vmatpush.bf16.msra.mxu3 %v1278_v62  ;;  %v11875_v63 = vpop.permute.xlu0 %1629 }
 0x275   : > { %v11889_v6 = vpop.permute.xlu2 %1654 }
 0x276   : > { %2578 = vmatpush.bf16.msrb.mxu0 %v11608_v22  ;;  %10640 = vmatpush.bf16.msra.mxu2 %v11608_v22  ;;  %v10229_v22 = vld [vmem:[%s13617_s5 + $0x8] sm:$0xff] }
 0x277   : > { %2907 = vmatpush.bf16.msrb.mxu1 %v11610_v23  ;;  %v11891_v8 = vpop.permute.xlu1 %1664 }
 0x278   : > { %10648 = vmatpush.bf16.msra.mxu3 %v11610_v23  ;;  %v10257_v23 = vld [vmem:[%s13617_s5 + $0xe8] sm:$0xff] }
 0x279   : > { %2579 = vmatmul.bf16.vlgmr.msrb.gmra.mxu0 %v10228_v28  ;;  %2719 = vmatmul.bf16.vlgmr.msra.gmra.mxu2 %v10256_v17 }
 0x27a   : > { %2908 = vmatmul.bf16.vlgmr.msrb.gmra.mxu1 %v10228_v28 }
 0x27b   : > { %3048 = vmatmul.bf16.vlgmr.msra.gmra.mxu3 %v10256_v17 }
 0x27c   : > { %v11887_v14 = vpop.permute.xlu0 %1644 }
 0x27d   : > { %v11901_v10 = vpop.permute.xlu2 %1669 }
 0x27f   : > { %v11903_v3 = vpop.permute.xlu1 %1679 }
 0x284   : > { %v11893_v60 = vpop.permute.xlu0 %1659 }
 0x285   : > { %v11907_v5 = vpop.permute.xlu2 %1684 }
 0x287   : > { %v11909_v0 = vpop.permute.xlu1 %1694 }
 0x289   : > { %2584 = vmatmul.bf16.gmra.mxu0 %v10229_v22  ;;  %2724 = vmatmul.bf16.gmra.mxu2 %v10257_v23 }
 0x28a   : > { %2913 = vmatmul.bf16.gmra.mxu1 %v10229_v22 }
 0x28b   : > { %3053 = vmatmul.bf16.gmra.mxu3 %v10257_v23  ;;  %v10236_v23 = vld [vmem:[%s13617_s5 + $0x40] sm:$0xff] }
 0x28c   : > { %v11905_v58 = vpop.permute.xlu0 %1674 }
 0x28d   : > { %v11919_v52 = vpop.permute.xlu2 %1699 }
 0x28f   : > { %v11921_v26 = vpop.permute.xlu1 %1709 }
 0x294   : > { %v11917_v19 = vpop.permute.xlu0 %1689 }
 0x295   : > { %v11925_v44 = vpop.permute.xlu2 %1714 }
 0x297   : > { %v11933_v37 = vpop.permute.xlu1 %1724 }
 0x299   : > { %2589 = vmatmul.bf16.gmra.mxu0 %v10230_v13  ;;  %2729 = vmatmul.bf16.gmra.mxu2 %v10258_v16 }
 0x29a   : > { %2918 = vmatmul.bf16.gmra.mxu1 %v10230_v13 }
 0x29b   : > { %3058 = vmatmul.bf16.gmra.mxu3 %v10258_v16  ;;  %v10264_v16 = vld [vmem:[%s13617_s5 + $0x120] sm:$0xff] }
 0x29c   : > { %v11923_v61 = vpop.permute.xlu0 %1704 }
 0x29d   : > { %v11937_v39 = vpop.permute.xlu2 %1729 }
 0x29f   : > { %v11939_v43 = vpop.permute.xlu1 %1739 }
 0x2a4   : > { %v11935_v46 = vpop.permute.xlu0 %1719 }
 0x2a5   : > { %v11949_v11 = vpop.permute.xlu2 %1744 }
 0x2a7   : > { %v11951_v35 = vpop.permute.xlu1 %1754 }
 0x2a9   : > { %2594 = vmatmul.bf16.gmra.mxu0 %v10231_v18  ;;  %2734 = vmatmul.bf16.gmra.mxu2 %v10259_v12 }
 0x2aa   : > { %2923 = vmatmul.bf16.gmra.mxu1 %v10231_v18 }
 0x2ab   : > { %3063 = vmatmul.bf16.gmra.mxu3 %v10259_v12 }
 0x2ac   : > { %v11947_v41 = vpop.permute.xlu0 %1734 }
 0x2ad   : > { %v11955_v49 = vpop.permute.xlu2 %1759 }
 0x2af   : > { %v11957_v54 = vpop.permute.xlu1 %1769 }
 0x2b4   : > { %v11953_v40 = vpop.permute.xlu0 %1749 }
 0x2b5   : > { %v11967_v36 = vpop.permute.xlu2 %1774 }
 0x2b7   : > { %v11969_v31 = vpop.permute.xlu1 %1784 }
 0x2b8   : > { %13652 = vst [vmem:[#allocation13_spill] sm:$0xff] %v11969_v31 }
 0x2b9   : > { %2599 = vmatmul.bf16.gmra.mxu0 %v10232_v33  ;;  %2739 = vmatmul.bf16.gmra.mxu2 %v10260_v34 }
 0x2ba   : > { %2928 = vmatmul.bf16.gmra.mxu1 %v10232_v33 }
 0x2bb   : > { %3068 = vmatmul.bf16.gmra.mxu3 %v10260_v34 }
 0x2bc   : > { %v11965_v30 = vpop.permute.xlu0 %1764 }
 0x2bd   : > { %v11979_v15 = vpop.permute.xlu2 %1789 }
 0x2be   : > { %13654 = vst [vmem:[#allocation15_spill] sm:$0xff] %v11979_v15 }
 0x2bf   : > { %v11981_v62 = vpop.permute.xlu1 %1799 }
 0x2c0   : > { %13655 = vst [vmem:[#allocation16_spill] sm:$0xff] %v11981_v62 }
 0x2c4   : > { %v11971_v32 = vpop.permute.xlu0 %1779 }
 0x2c5   : > { %13653 = vst [vmem:[#allocation14_spill] sm:$0xff] %v11971_v32  ;;  %v11985_v17 = vpop.permute.xlu2 %1804 }
 0x2c6   : > { %13657 = vst [vmem:[#allocation18_spill] sm:$0xff] %v11985_v17 }
 0x2c7   : > { %v11987_v22 = vpop.permute.xlu1 %1814 }
 0x2c8   : > { %13658 = vst [vmem:[#allocation19_spill] sm:$0xff] %v11987_v22 }
 0x2c9   : > { %2604 = vmatmul.bf16.gmra.mxu0 %v10233_v48  ;;  %2744 = vmatmul.bf16.gmra.mxu2 %v10261_v50 }
 0x2ca   : > { %2933 = vmatmul.bf16.gmra.mxu1 %v10233_v48 }
 0x2cb   : > { %3073 = vmatmul.bf16.gmra.mxu3 %v10261_v50 }
 0x2cc   : > { %v11983_v28 = vpop.permute.xlu0 %1794 }
 0x2cd   : > { %13656 = vst [vmem:[#allocation17_spill] sm:$0xff] %v11983_v28 }
 0x2d4   : > { %v11997_v34 = vpop.permute.xlu0 %1809 }
 0x2d5   : > { %13659 = vst [vmem:[#allocation20_spill] sm:$0xff] %v11997_v34 }
 0x2d9   : > { %2609 = vmatmul.bf16.gmra.mxu0 %v10234_v20  ;;  %2749 = vmatmul.bf16.gmra.mxu2 %v10262_v57 }
 0x2da   : > { %2938 = vmatmul.bf16.gmra.mxu1 %v10234_v20  ;;  %v11999_v20 = vpop.permute.xlu2 %1819 }
 0x2db   : > { %3078 = vmatmul.bf16.gmra.mxu3 %v10262_v57  ;;  %13660 = vst [vmem:[#allocation21_spill] sm:$0xff] %v11999_v20  ;;  %v3613_v57 = vld [vmem:[#allocation2 + $0x2b0] sm:$0xff]  ;;  %v3669_v20 = vld [vmem:[#allocation2 + $0x358] sm:$0xff] }
 0x2e9   : > { %2614 = vmatmul.bf16.gmra.mxu0 %v10235_v53  ;;  %2754 = vmatmul.bf16.gmra.mxu2 %v10263_v25 }
 0x2ea   : > { %2943 = vmatmul.bf16.gmra.mxu1 %v10235_v53 }
 0x2eb   : > { %3083 = vmatmul.bf16.gmra.mxu3 %v10263_v25  ;;  %v1830_v25 = vpop.permute.xlu1 %1829 }
 0x2f6   : > { %v2580_v13 = vpop.f32.mrf.mxu0 }
 0x2f7   : > { %v2581_v18 = vadd.f32 %v2580_v13, %v11771_v42  ;;  %v2909_v12 = vpop.f32.mrf.mxu1 }
 0x2f8   : > { %v2910_v33 = vadd.f32 %v2909_v12, %v11771_v42 }
 0x2f9   : > { %v3229_v48 = vmax.f32 %v2581_v18, 0.0  ;;  %2619 = vmatmul.bf16.gmra.mxu0 %v10236_v23  ;;  %2759 = vmatmul.bf16.gmra.mxu2 %v10264_v16 }
 0x2fa   : > { %v3230_v50 = vmax.f32 %v2910_v33, 0.0  ;;  %2948 = vmatmul.bf16.gmra.mxu1 %v10236_v23 }
 0x2fb   : > { %3088 = vmatmul.bf16.gmra.mxu3 %v10264_v16  ;;  %v12003_v16 = vpop.permute.xlu0 %1824 }
 0x2fc   : > { %v3485_v53 = vmax.f32 %v3229_v48, %v3230_v50  ;;  %v2720_v22 = vpop.f32.mrf.mxu2  ;;  %v3614_v50 = vld [vmem:[#allocation2 + $0x3b0] sm:$0xff] }
 0x2fd   : > { %v2721_v62 = vadd.f32 %v2720_v22, %v1830_v25  ;;  %v1835_v22 = vpop.permute.xlu2 %1834 }
 0x2fe   : > { %v3741_v17 = vmax.f32 %v3613_v57, %v3485_v53  ;;  %v3049_v13 = vpop.f32.mrf.mxu3  ;;  %v2582_v28 = vpop.f32.mrf.mxu0 }
 0x2ff   : > { %v3050_v15 = vadd.f32 %v3049_v13, %v1830_v25  ;;  %v2583_v42 = vadd.f32 %v2582_v28, %v11784_v55  ;;  %v2911_v12 = vpop.f32.mrf.mxu1  ;;  %v3341_v18 = vmax.f32 %v2721_v62, 0.0  ;;  %v10237_v28 = vld [vmem:[%s13617_s5 + $0x48] sm:$0xff] }
 0x300   : > { %3869 = vst [vmem:[#allocation2 + $0x2b0] sm:$0xff] %v3741_v17  ;;  %v2912_v33 = vadd.f32 %v2911_v12, %v11784_v55 }
 0x301   : > { %v3342_v23 = vmax.f32 %v3050_v15, 0.0  ;;  %v3231_v34 = vmax.f32 %v2583_v42, 0.0  ;;  %v10265_v15 = vld [vmem:[%s13617_s5 + $0x128] sm:$0xff] }
 0x302   : > { %v3232_v31 = vmax.f32 %v2912_v33, 0.0  ;;  %v3670_v33 = vld [vmem:[#allocation2 + $0x268] sm:$0xff] }
 0x303   : > { %v3541_v48 = vmax.f32 %v3341_v18, %v3342_v23 }
 0x304   : > { %v3486_v57 = vmax.f32 %v3231_v34, %v3232_v31  ;;  %v2722_v32 = vpop.f32.mrf.mxu2 }
 0x305   : > { %v3797_v53 = vmax.f32 %v3669_v20, %v3541_v48  ;;  %v2723_v62 = vadd.f32 %v2722_v32, %v1835_v22  ;;  %v3615_v48 = vld [vmem:[#allocation2 + $0xd8] sm:$0xff] }
 0x306   : > { %v3742_v17 = vmax.f32 %v3614_v50, %v3486_v57  ;;  %v3051_v25 = vpop.f32.mrf.mxu3  ;;  %v2585_v55 = vpop.f32.mrf.mxu0 }
 0x307   : > { %3925 = vst [vmem:[#allocation2 + $0x358] sm:$0xff] %v3797_v53  ;;  %v3052_v13 = vadd.f32 %v3051_v25, %v1835_v22  ;;  %v2586_v42 = vadd.f32 %v2585_v55, %v11776_v45  ;;  %v2914_v31 = vpop.f32.mrf.mxu1  ;;  %v3343_v34 = vmax.f32 %v2723_v62, 0.0  ;;  %v1840_v57 = vpop.permute.xlu0 %1839 }
 0x308   : > { %3870 = vst [vmem:[#allocation2 + $0x3b0] sm:$0xff] %v3742_v17  ;;  %v2915_v20 = vadd.f32 %v2914_v31, %v11776_v45 }
 0x309   : > { %v3344_v12 = vmax.f32 %v3052_v13, 0.0  ;;  %v3233_v18 = vmax.f32 %v2586_v42, 0.0  ;;  %2624 = vmatmul.bf16.gmra.mxu0 %v10237_v28  ;;  %2764 = vmatmul.bf16.gmra.mxu2 %v10265_v15  ;;  %v13661_v13 = vld [vmem:[#allocation11_spill] sm:$0xff] }
 0x30a   : > { %v3234_v32 = vmax.f32 %v2915_v20, 0.0  ;;  %2953 = vmatmul.bf16.gmra.mxu1 %v10237_v28 }
 0x30b   : > { %v3542_v23 = vmax.f32 %v3343_v34, %v3344_v12  ;;  %3093 = vmatmul.bf16.gmra.mxu3 %v10265_v15  ;;  %v3671_v15 = vld [vmem:[#allocation2 + $0x350] sm:$0xff] }
 0x30c   : > { %v3487_v50 = vmax.f32 %v3233_v18, %v3234_v32  ;;  %v2725_v53 = vpop.f32.mrf.mxu2 }
 0x30d   : > { %v3798_v22 = vmax.f32 %v3670_v33, %v3542_v23  ;;  %v2726_v55 = vadd.f32 %v2725_v53, %v1840_v57  ;;  %v3616_v33 = vld [vmem:[#allocation2 + $0x18] sm:$0xff] }
 0x30e   : > { %v3743_v25 = vmax.f32 %v3615_v48, %v3487_v50  ;;  %v3054_v17 = vpop.f32.mrf.mxu3  ;;  %v2587_v62 = vpop.f32.mrf.mxu0 }
 0x30f   : > { %3926 = vst [vmem:[#allocation2 + $0x268] sm:$0xff] %v3798_v22  ;;  %v3055_v45 = vadd.f32 %v3054_v17, %v1840_v57  ;;  %v2588_v42 = vadd.f32 %v2587_v62, %v13661_v13  ;;  %v2916_v31 = vpop.f32.mrf.mxu1  ;;  %v3345_v20 = vmax.f32 %v2726_v55, 0.0  ;;  %v1845_v48 = vpop.permute.xlu1 %1844  ;;  %v10238_v57 = vld [vmem:[%s13617_s5 + $0x50] sm:$0xff] }
 0x310   : > { %3871 = vst [vmem:[#allocation2 + $0xd8] sm:$0xff] %v3743_v25  ;;  %v2917_v28 = vadd.f32 %v2916_v31, %v13661_v13  ;;  %v10266_v62 = vld [vmem:[%s13617_s5 + $0x130] sm:$0xff] }
 0x311   : > { %v3346_v34 = vmax.f32 %v3055_v45, 0.0  ;;  %v3235_v12 = vmax.f32 %v2588_v42, 0.0 }
 0x312   : > { %v3236_v18 = vmax.f32 %v2917_v28, 0.0 }
 0x313   : > { %v3543_v32 = vmax.f32 %v3345_v20, %v3346_v34 }
 0x314   : > { %v3488_v23 = vmax.f32 %v3235_v12, %v3236_v18  ;;  %v2727_v53 = vpop.f32.mrf.mxu2  ;;  %v3672_v12 = vld [vmem:[#allocation2 + $0x188] sm:$0xff] }
 0x315   : > { %v3799_v50 = vmax.f32 %v3671_v15, %v3543_v32  ;;  %v2728_v17 = vadd.f32 %v2727_v53, %v1845_v48  ;;  %v3617_v32 = vld [vmem:[#allocation2 + $0x50] sm:$0xff] }
 0x316   : > { %v3744_v22 = vmax.f32 %v3616_v33, %v3488_v23  ;;  %v3056_v25 = vpop.f32.mrf.mxu3  ;;  %v2590_v55 = vpop.f32.mrf.mxu0 }
 0x317   : > { %3927 = vst [vmem:[#allocation2 + $0x350] sm:$0xff] %v3799_v50  ;;  %v3057_v45 = vadd.f32 %v3056_v25, %v1845_v48  ;;  %v2591_v13 = vadd.f32 %v2590_v55, %v11799_v56  ;;  %v2919_v42 = vpop.f32.mrf.mxu1  ;;  %v3347_v31 = vmax.f32 %v2728_v17, 0.0  ;;  %v1850_v23 = vpop.permute.xlu2 %1849  ;;  %v13662_v55 = vld [vmem:[#allocation12_spill] sm:$0xff] }
 0x318   : > { %3872 = vst [vmem:[#allocation2 + $0x18] sm:$0xff] %v3744_v22  ;;  %v2920_v20 = vadd.f32 %v2919_v42, %v11799_v56 }
 0x319   : > { %v3348_v28 = vmax.f32 %v3057_v45, 0.0  ;;  %v3237_v34 = vmax.f32 %v2591_v13, 0.0  ;;  %2629 = vmatmul.bf16.gmra.mxu0 %v10238_v57  ;;  %2769 = vmatmul.bf16.gmra.mxu2 %v10266_v62 }
 0x31a   : > { %v3238_v15 = vmax.f32 %v2920_v20, 0.0  ;;  %2958 = vmatmul.bf16.gmra.mxu1 %v10238_v57 }
 0x31b   : > { %v3544_v18 = vmax.f32 %v3347_v31, %v3348_v28  ;;  %3098 = vmatmul.bf16.gmra.mxu3 %v10266_v62  ;;  %v3673_v62 = vld [vmem:[#allocation2 + $0x1d8] sm:$0xff] }
 0x31c   : > { %v3489_v33 = vmax.f32 %v3237_v34, %v3238_v15  ;;  %v2730_v50 = vpop.f32.mrf.mxu2 }
 0x31d   : > { %v3800_v48 = vmax.f32 %v3672_v12, %v3544_v18  ;;  %v2731_v25 = vadd.f32 %v2730_v50, %v1850_v23  ;;  %v3618_v12 = vld [vmem:[#allocation2 + $0x368] sm:$0xff]  ;;  %v1855_v18 = vpop.permute.xlu0 %1854 }
 0x31e   : > { %v3745_v53 = vmax.f32 %v3617_v32, %v3489_v33  ;;  %v3059_v22 = vpop.f32.mrf.mxu3  ;;  %v2592_v17 = vpop.f32.mrf.mxu0 }
 0x31f   : > { %3928 = vst [vmem:[#allocation2 + $0x188] sm:$0xff] %v3800_v48  ;;  %v3060_v56 = vadd.f32 %v3059_v22, %v1850_v23  ;;  %v2593_v45 = vadd.f32 %v2592_v17, %v13662_v55  ;;  %v2921_v13 = vpop.f32.mrf.mxu1  ;;  %v3349_v42 = vmax.f32 %v2731_v25, 0.0  ;;  %v10239_v23 = vld [vmem:[%s13617_s5 + $0x58] sm:$0xff] }
 0x320   : > { %3873 = vst [vmem:[#allocation2 + $0x50] sm:$0xff] %v3745_v53  ;;  %v2922_v57 = vadd.f32 %v2921_v13, %v13662_v55  ;;  %v10267_v22 = vld [vmem:[%s13617_s5 + $0x138] sm:$0xff] }
 0x321   : > { %v3350_v31 = vmax.f32 %v3060_v56, 0.0  ;;  %v3239_v20 = vmax.f32 %v2593_v45, 0.0 }
 0x322   : > { %v3240_v28 = vmax.f32 %v2922_v57, 0.0 }
 0x323   : > { %v3545_v34 = vmax.f32 %v3349_v42, %v3350_v31  ;;  %v3674_v31 = vld [vmem:[#allocation2 + $0x30] sm:$0xff] }
 0x324   : > { %v3490_v15 = vmax.f32 %v3239_v20, %v3240_v28  ;;  %v2732_v33 = vpop.f32.mrf.mxu2  ;;  %v3619_v28 = vld [vmem:[#allocation2 + $0x330] sm:$0xff] }
 0x325   : > { %v3801_v32 = vmax.f32 %v3673_v62, %v3545_v34  ;;  %v2733_v50 = vadd.f32 %v2732_v33, %v1855_v18 }
 0x326   : > { %v3746_v48 = vmax.f32 %v3618_v12, %v3490_v15  ;;  %v3061_v53 = vpop.f32.mrf.mxu3  ;;  %v2595_v25 = vpop.f32.mrf.mxu0 }
 0x327   : > { %3929 = vst [vmem:[#allocation2 + $0x1d8] sm:$0xff] %v3801_v32  ;;  %v3062_v17 = vadd.f32 %v3061_v53, %v1855_v18  ;;  %v2596_v56 = vadd.f32 %v2595_v25, %v11806_v24  ;;  %v2924_v55 = vpop.f32.mrf.mxu1  ;;  %v3351_v45 = vmax.f32 %v2733_v50, 0.0  ;;  %v1860_v12 = vpop.permute.xlu1 %1859 }
 0x328   : > { %3874 = vst [vmem:[#allocation2 + $0x368] sm:$0xff] %v3746_v48  ;;  %v2925_v13 = vadd.f32 %v2924_v55, %v11806_v24 }
 0x329   : > { %v3352_v42 = vmax.f32 %v3062_v17, 0.0  ;;  %v3241_v57 = vmax.f32 %v2596_v56, 0.0  ;;  %2634 = vmatmul.bf16.gmra.mxu0 %v10239_v23  ;;  %2774 = vmatmul.bf16.gmra.mxu2 %v10267_v22 }
 0x32a   : > { %v3242_v20 = vmax.f32 %v2925_v13, 0.0  ;;  %2963 = vmatmul.bf16.gmra.mxu1 %v10239_v23 }
 0x32b   : > { %v3546_v62 = vmax.f32 %v3351_v45, %v3352_v42  ;;  %3103 = vmatmul.bf16.gmra.mxu3 %v10267_v22  ;;  %v3675_v22 = vld [vmem:[#allocation2 + $0x140] sm:$0xff]  ;;  %v3620_v42 = vld [vmem:[#allocation2 + $0x48] sm:$0xff] }
 0x32c   : > { %v3491_v34 = vmax.f32 %v3241_v57, %v3242_v20  ;;  %v2735_v18 = vpop.f32.mrf.mxu2 }
 0x32d   : > { %v3802_v15 = vmax.f32 %v3674_v31, %v3546_v62  ;;  %v2736_v33 = vadd.f32 %v2735_v18, %v1860_v12  ;;  %v1865_v31 = vpop.permute.xlu2 %1864 }
 0x32e   : > { %v3747_v32 = vmax.f32 %v3619_v28, %v3491_v34  ;;  %v3064_v48 = vpop.f32.mrf.mxu3  ;;  %v2597_v50 = vpop.f32.mrf.mxu0  ;;  %v10240_v28 = vld [vmem:[%s13617_s5 + $0x60] sm:$0xff] }
 0x32f   : > { %3930 = vst [vmem:[#allocation2 + $0x30] sm:$0xff] %v3802_v15  ;;  %v3065_v24 = vadd.f32 %v3064_v48, %v1860_v12  ;;  %v2598_v53 = vadd.f32 %v2597_v50, %v11829_v9  ;;  %v2926_v25 = vpop.f32.mrf.mxu1  ;;  %v3353_v17 = vmax.f32 %v2736_v33, 0.0 }
 0x330   : > { %3875 = vst [vmem:[#allocation2 + $0x330] sm:$0xff] %v3747_v32  ;;  %v2927_v23 = vadd.f32 %v2926_v25, %v11829_v9  ;;  %v10268_v9 = vld [vmem:[%s13617_s5 + $0x140] sm:$0xff] }
 0x331   : > { %v3354_v56 = vmax.f32 %v3065_v24, 0.0  ;;  %v3243_v55 = vmax.f32 %v2598_v53, 0.0 }
 0x332   : > { %v3244_v45 = vmax.f32 %v2927_v23, 0.0 }
 0x333   : > { %v3547_v13 = vmax.f32 %v3353_v17, %v3354_v56  ;;  %v3676_v17 = vld [vmem:[#allocation2 + $0x2a8] sm:$0xff] }
 0x334   : > { %v3492_v57 = vmax.f32 %v3243_v55, %v3244_v45  ;;  %v2737_v62 = vpop.f32.mrf.mxu2  ;;  %v3621_v55 = vld [vmem:[#allocation2 + $0x380] sm:$0xff]  ;;  %v1870_v45 = vpop.permute.xlu0 %1869 }
 0x335   : > { %v3803_v20 = vmax.f32 %v3675_v22, %v3547_v13  ;;  %v2738_v12 = vadd.f32 %v2737_v62, %v1865_v31 }
 0x336   : > { %v3748_v34 = vmax.f32 %v3620_v42, %v3492_v57  ;;  %v3066_v15 = vpop.f32.mrf.mxu3  ;;  %v2600_v18 = vpop.f32.mrf.mxu0 }
 0x337   : > { %3931 = vst [vmem:[#allocation2 + $0x140] sm:$0xff] %v3803_v20  ;;  %v3067_v32 = vadd.f32 %v3066_v15, %v1865_v31  ;;  %v2601_v33 = vadd.f32 %v2600_v18, %v11815_v47  ;;  %v2929_v48 = vpop.f32.mrf.mxu1  ;;  %v3355_v50 = vmax.f32 %v2738_v12, 0.0 }
 0x338   : > { %3876 = vst [vmem:[#allocation2 + $0x48] sm:$0xff] %v3748_v34  ;;  %v2930_v24 = vadd.f32 %v2929_v48, %v11815_v47 }
 0x339   : > { %v3356_v53 = vmax.f32 %v3067_v32, 0.0  ;;  %v3245_v25 = vmax.f32 %v2601_v33, 0.0  ;;  %2639 = vmatmul.bf16.gmra.mxu0 %v10240_v28  ;;  %2779 = vmatmul.bf16.gmra.mxu2 %v10268_v9 }
 0x33a   : > { %v3246_v23 = vmax.f32 %v2930_v24, 0.0  ;;  %2968 = vmatmul.bf16.gmra.mxu1 %v10240_v28 }
 0x33b   : > { %v3548_v56 = vmax.f32 %v3355_v50, %v3356_v53  ;;  %3108 = vmatmul.bf16.gmra.mxu3 %v10268_v9  ;;  %v3677_v9 = vld [vmem:[#allocation2 + $0x130] sm:$0xff]  ;;  %v1875_v53 = vpop.permute.xlu1 %1874 }
 0x33c   : > { %v3493_v22 = vmax.f32 %v3245_v25, %v3246_v23  ;;  %v2740_v42 = vpop.f32.mrf.mxu2  ;;  %v3622_v50 = vld [vmem:[#allocation2 + $0x110] sm:$0xff]  ;;  %v10241_v23 = vld [vmem:[%s13617_s5 + $0x68] sm:$0xff] }
 0x33d   : > { %v3804_v13 = vmax.f32 %v3676_v17, %v3548_v56  ;;  %v2741_v31 = vadd.f32 %v2740_v42, %v1870_v45 }
 0x33e   : > { %v3749_v57 = vmax.f32 %v3621_v55, %v3493_v22  ;;  %v3069_v20 = vpop.f32.mrf.mxu3  ;;  %v2602_v62 = vpop.f32.mrf.mxu0 }
 0x33f   : > { %3932 = vst [vmem:[#allocation2 + $0x2a8] sm:$0xff] %v3804_v13  ;;  %v3070_v47 = vadd.f32 %v3069_v20, %v1870_v45  ;;  %v2603_v34 = vadd.f32 %v2602_v62, %v11835_v1  ;;  %v2931_v12 = vpop.f32.mrf.mxu1  ;;  %v3357_v15 = vmax.f32 %v2741_v31, 0.0 }
 0x340   : > { %3877 = vst [vmem:[#allocation2 + $0x380] sm:$0xff] %v3749_v57  ;;  %v2932_v28 = vadd.f32 %v2931_v12, %v11835_v1  ;;  %v10269_v1 = vld [vmem:[%s13617_s5 + $0x148] sm:$0xff] }
 0x341   : > { %v3358_v18 = vmax.f32 %v3070_v47, 0.0  ;;  %v3247_v32 = vmax.f32 %v2603_v34, 0.0  ;;  %v3678_v34 = vld [vmem:[#allocation2 + $0x200] sm:$0xff] }
 0x342   : > { %v3248_v33 = vmax.f32 %v2932_v28, 0.0  ;;  %v3623_v28 = vld [vmem:[#allocation2 + $0x118] sm:$0xff] }
 0x343   : > { %v3549_v48 = vmax.f32 %v3357_v15, %v3358_v18 }
 0x344   : > { %v3494_v24 = vmax.f32 %v3247_v32, %v3248_v33  ;;  %v2742_v17 = vpop.f32.mrf.mxu2  ;;  %v1880_v32 = vpop.permute.xlu2 %1879 }
 0x345   : > { %v3805_v25 = vmax.f32 %v3677_v9, %v3549_v48  ;;  %v2743_v55 = vadd.f32 %v2742_v17, %v1875_v53 }
 0x346   : > { %v3750_v56 = vmax.f32 %v3622_v50, %v3494_v24  ;;  %v3071_v22 = vpop.f32.mrf.mxu3  ;;  %v2605_v45 = vpop.f32.mrf.mxu0 }
 0x347   : > { %3933 = vst [vmem:[#allocation2 + $0x130] sm:$0xff] %v3805_v25  ;;  %v3072_v13 = vadd.f32 %v3071_v22, %v1875_v53  ;;  %v2606_v42 = vadd.f32 %v2605_v45, %v11853_v29  ;;  %v2934_v57 = vpop.f32.mrf.mxu1  ;;  %v3359_v31 = vmax.f32 %v2743_v55, 0.0  ;;  %v3679_v45 = vld [vmem:[#allocation2 + $0x318] sm:$0xff] }
 0x348   : > { %3878 = vst [vmem:[#allocation2 + $0x110] sm:$0xff] %v3750_v56  ;;  %v2935_v20 = vadd.f32 %v2934_v57, %v11853_v29 }
 0x349   : > { %v3360_v62 = vmax.f32 %v3072_v13, 0.0  ;;  %v3249_v47 = vmax.f32 %v2606_v42, 0.0  ;;  %2644 = vmatmul.bf16.gmra.mxu0 %v10241_v23  ;;  %2784 = vmatmul.bf16.gmra.mxu2 %v10269_v1  ;;  %v3624_v42 = vld [vmem:[#allocation2 + $0x98] sm:$0xff] }
 0x34a   : > { %v3250_v12 = vmax.f32 %v2935_v20, 0.0  ;;  %2973 = vmatmul.bf16.gmra.mxu1 %v10241_v23 }
 0x34b   : > { %v3550_v15 = vmax.f32 %v3359_v31, %v3360_v62  ;;  %3113 = vmatmul.bf16.gmra.mxu3 %v10269_v1  ;;  %v1885_v31 = vpop.permute.xlu0 %1884 }
 0x34c   : > { %v3495_v18 = vmax.f32 %v3249_v47, %v3250_v12  ;;  %v2745_v33 = vpop.f32.mrf.mxu2  ;;  %v10242_v47 = vld [vmem:[%s13617_s5 + $0x70] sm:$0xff] }
 0x34d   : > { %v3806_v9 = vmax.f32 %v3678_v34, %v3550_v15  ;;  %v2746_v50 = vadd.f32 %v2745_v33, %v1880_v32 }
 0x34e   : > { %v3751_v48 = vmax.f32 %v3623_v28, %v3495_v18  ;;  %v3074_v24 = vpop.f32.mrf.mxu3  ;;  %v2607_v53 = vpop.f32.mrf.mxu0 }
 0x34f   : > { %3934 = vst [vmem:[#allocation2 + $0x200] sm:$0xff] %v3806_v9  ;;  %v3075_v29 = vadd.f32 %v3074_v24, %v1880_v32  ;;  %v2608_v25 = vadd.f32 %v2607_v53, %v11841_v59  ;;  %v2936_v17 = vpop.f32.mrf.mxu1  ;;  %v3361_v56 = vmax.f32 %v2746_v50, 0.0  ;;  %v3680_v53 = vld [vmem:[#allocation2 + $0x220] sm:$0xff] }
 0x350   : > { %3879 = vst [vmem:[#allocation2 + $0x118] sm:$0xff] %v3751_v48  ;;  %v2937_v23 = vadd.f32 %v2936_v17, %v11841_v59  ;;  %v10270_v59 = vld [vmem:[%s13617_s5 + $0x150] sm:$0xff]  ;;  %v3625_v17 = vld [vmem:[#allocation2 + $0x320] sm:$0xff] }
 0x351   : > { %v3362_v55 = vmax.f32 %v3075_v29, 0.0  ;;  %v3251_v22 = vmax.f32 %v2608_v25, 0.0 }
 0x352   : > { %v3252_v1 = vmax.f32 %v2937_v23, 0.0  ;;  %v1890_v23 = vpop.permute.xlu1 %1889 }
 0x353   : > { %v3551_v13 = vmax.f32 %v3361_v56, %v3362_v55 }
 0x354   : > { %v3496_v57 = vmax.f32 %v3251_v22, %v3252_v1  ;;  %v2747_v62 = vpop.f32.mrf.mxu2 }
 0x355   : > { %v3807_v20 = vmax.f32 %v3679_v45, %v3551_v13  ;;  %v2748_v12 = vadd.f32 %v2747_v62, %v1885_v31 }
 0x356   : > { %v3752_v34 = vmax.f32 %v3624_v42, %v3496_v57  ;;  %v3076_v15 = vpop.f32.mrf.mxu3  ;;  %v2610_v28 = vpop.f32.mrf.mxu0 }
 0x357   : > { %3935 = vst [vmem:[#allocation2 + $0x318] sm:$0xff] %v3807_v20  ;;  %v3077_v18 = vadd.f32 %v3076_v15, %v1885_v31  ;;  %v2611_v32 = vadd.f32 %v2610_v28, %v11855_v51  ;;  %v2939_v9 = vpop.f32.mrf.mxu1  ;;  %v3363_v33 = vmax.f32 %v2748_v12, 0.0  ;;  %v3681_v12 = vld [vmem:[#allocation2 + $0x70] sm:$0xff] }
 0x358   : > { %3880 = vst [vmem:[#allocation2 + $0x98] sm:$0xff] %v3752_v34  ;;  %v2940_v48 = vadd.f32 %v2939_v9, %v11855_v51 }
 0x359   : > { %v3364_v50 = vmax.f32 %v3077_v18, 0.0  ;;  %v3253_v24 = vmax.f32 %v2611_v32, 0.0  ;;  %2649 = vmatmul.bf16.gmra.mxu0 %v10242_v47  ;;  %2789 = vmatmul.bf16.gmra.mxu2 %v10270_v59  ;;  %v1895_v32 = vpop.permute.xlu2 %1894 }
 0x35a   : > { %v3254_v29 = vmax.f32 %v2940_v48, 0.0  ;;  %2978 = vmatmul.bf16.gmra.mxu1 %v10242_v47  ;;  %v10243_v48 = vld [vmem:[%s13617_s5 + $0x78] sm:$0xff] }
 0x35b   : > { %v3552_v25 = vmax.f32 %v3363_v33, %v3364_v50  ;;  %3118 = vmatmul.bf16.gmra.mxu3 %v10270_v59  ;;  %v3626_v59 = vld [vmem:[#allocation2 + $0x150] sm:$0xff] }
 0x35c   : > { %v3497_v56 = vmax.f32 %v3253_v24, %v3254_v29  ;;  %v2750_v22 = vpop.f32.mrf.mxu2 }
 0x35d   : > { %v3808_v55 = vmax.f32 %v3680_v53, %v3552_v25  ;;  %v2751_v1 = vadd.f32 %v2750_v22, %v1890_v23 }
 0x35e   : > { %v3753_v45 = vmax.f32 %v3625_v17, %v3497_v56  ;;  %v3079_v13 = vpop.f32.mrf.mxu3  ;;  %v2612_v42 = vpop.f32.mrf.mxu0 }
 0x35f   : > { %3936 = vst [vmem:[#allocation2 + $0x220] sm:$0xff] %v3808_v55  ;;  %v3080_v51 = vadd.f32 %v3079_v13, %v1890_v23  ;;  %v2613_v57 = vadd.f32 %v2612_v42, %v11866_v4  ;;  %v2941_v31 = vpop.f32.mrf.mxu1  ;;  %v3365_v20 = vmax.f32 %v2751_v1, 0.0  ;;  %v3682_v1 = vld [vmem:[#allocation2 + $0x300] sm:$0xff] }
 0x360   : > { %3881 = vst [vmem:[#allocation2 + $0x320] sm:$0xff] %v3753_v45  ;;  %v2942_v62 = vadd.f32 %v2941_v31, %v11866_v4  ;;  %v10271_v4 = vld [vmem:[%s13617_s5 + $0x158] sm:$0xff]  ;;  %v1900_v31 = vpop.permute.xlu0 %1899 }
 0x361   : > { %v3366_v47 = vmax.f32 %v3080_v51, 0.0  ;;  %v3255_v34 = vmax.f32 %v2613_v57, 0.0  ;;  %v3627_v51 = vld [vmem:[#allocation2 + $0x108] sm:$0xff] }
 0x362   : > { %v3256_v15 = vmax.f32 %v2942_v62, 0.0 }
 0x363   : > { %v3553_v28 = vmax.f32 %v3365_v20, %v3366_v47 }
 0x364   : > { %v3498_v18 = vmax.f32 %v3255_v34, %v3256_v15  ;;  %v2752_v33 = vpop.f32.mrf.mxu2 }
 0x365   : > { %v3809_v9 = vmax.f32 %v3681_v12, %v3553_v28  ;;  %v2753_v24 = vadd.f32 %v2752_v33, %v1895_v32 }
 0x366   : > { %v3754_v50 = vmax.f32 %v3626_v59, %v3498_v18  ;;  %v3081_v53 = vpop.f32.mrf.mxu3  ;;  %v2615_v29 = vpop.f32.mrf.mxu0 }
 0x367   : > { %3937 = vst [vmem:[#allocation2 + $0x70] sm:$0xff] %v3809_v9  ;;  %v3082_v25 = vadd.f32 %v3081_v53, %v1895_v32  ;;  %v2616_v17 = vadd.f32 %v2615_v29, %v11857_v27  ;;  %v2944_v56 = vpop.f32.mrf.mxu1  ;;  %v3367_v23 = vmax.f32 %v2753_v24, 0.0  ;;  %v3628_v53 = vld [vmem:[#allocation2 + $0x60] sm:$0xff] }
 0x368   : > { %3882 = vst [vmem:[#allocation2 + $0x150] sm:$0xff] %v3754_v50  ;;  %v2945_v55 = vadd.f32 %v2944_v56, %v11857_v27  ;;  %v10244_v56 = vld [vmem:[%s13617_s5 + $0x80] sm:$0xff] }
 0x369   : > { %v3368_v22 = vmax.f32 %v3082_v25, 0.0  ;;  %v3257_v45 = vmax.f32 %v2616_v17, 0.0  ;;  %2654 = vmatmul.bf16.gmra.mxu0 %v10243_v48  ;;  %2794 = vmatmul.bf16.gmra.mxu2 %v10271_v4 }
 0x36a   : > { %v3258_v13 = vmax.f32 %v2945_v55, 0.0  ;;  %2983 = vmatmul.bf16.gmra.mxu1 %v10243_v48  ;;  %v3683_v48 = vld [vmem:[#allocation2 + $0xe0] sm:$0xff] }
 0x36b   : > { %v3554_v42 = vmax.f32 %v3367_v23, %v3368_v22  ;;  %3123 = vmatmul.bf16.gmra.mxu3 %v10271_v4  ;;  %v1905_v4 = vpop.permute.xlu1 %1904 }
 0x36c   : > { %v3499_v57 = vmax.f32 %v3257_v45, %v3258_v13  ;;  %v2755_v62 = vpop.f32.mrf.mxu2 }
 0x36d   : > { %v3810_v20 = vmax.f32 %v3682_v1, %v3554_v42  ;;  %v2756_v34 = vadd.f32 %v2755_v62, %v1900_v31  ;;  %v3684_v62 = vld [vmem:[#allocation2 + $0x178] sm:$0xff] }
 0x36e   : > { %v3755_v47 = vmax.f32 %v3627_v51, %v3499_v57  ;;  %v3084_v12 = vpop.f32.mrf.mxu3  ;;  %v2617_v15 = vpop.f32.mrf.mxu0 }
 0x36f   : > { %3938 = vst [vmem:[#allocation2 + $0x300] sm:$0xff] %v3810_v20  ;;  %v3085_v27 = vadd.f32 %v3084_v12, %v1900_v31  ;;  %v2618_v28 = vadd.f32 %v2617_v15, %v11871_v21  ;;  %v2946_v59 = vpop.f32.mrf.mxu1  ;;  %v3369_v18 = vmax.f32 %v2756_v34, 0.0  ;;  %v3629_v12 = vld [vmem:[#allocation2 + $0x2e0] sm:$0xff] }
 0x370   : > { %3883 = vst [vmem:[#allocation2 + $0x108] sm:$0xff] %v3755_v47  ;;  %v2947_v32 = vadd.f32 %v2946_v59, %v11871_v21  ;;  %v10272_v21 = vld [vmem:[%s13617_s5 + $0x160] sm:$0xff] }
 0x371   : > { %v3370_v9 = vmax.f32 %v3085_v27, 0.0  ;;  %v3259_v33 = vmax.f32 %v2618_v28, 0.0  ;;  %v1910_v27 = vpop.permute.xlu2 %1909 }
 0x372   : > { %v3260_v50 = vmax.f32 %v2947_v32, 0.0 }
 0x373   : > { %v3555_v24 = vmax.f32 %v3369_v18, %v3370_v9 }
 0x374   : > { %v3500_v29 = vmax.f32 %v3259_v33, %v3260_v50  ;;  %v2757_v17 = vpop.f32.mrf.mxu2 }
 0x375   : > { %v3811_v25 = vmax.f32 %v3683_v48, %v3555_v24  ;;  %v2758_v55 = vadd.f32 %v2757_v17, %v1905_v4 }
 0x376   : > { %v3756_v23 = vmax.f32 %v3628_v53, %v3500_v29  ;;  %v3086_v22 = vpop.f32.mrf.mxu3  ;;  %v2620_v45 = vpop.f32.mrf.mxu0 }
 0x377   : > { %3939 = vst [vmem:[#allocation2 + $0xe0] sm:$0xff] %v3811_v25  ;;  %v3087_v1 = vadd.f32 %v3086_v22, %v1905_v4  ;;  %v2621_v13 = vadd.f32 %v2620_v45, %v11875_v63  ;;  %v2949_v42 = vpop.f32.mrf.mxu1  ;;  %v3371_v51 = vmax.f32 %v2758_v55, 0.0  ;;  %v3685_v25 = vld [vmem:[#allocation2 + $0x328] sm:$0xff]  ;;  %v1915_v22 = vpop.permute.xlu0 %1914 }
 0x378   : > { %3884 = vst [vmem:[#allocation2 + $0x60] sm:$0xff] %v3756_v23  ;;  %v2950_v57 = vadd.f32 %v2949_v42, %v11875_v63  ;;  %v3630_v23 = vld [vmem:[#allocation2 + $0x388] sm:$0xff] }
 0x379   : > { %v3372_v31 = vmax.f32 %v3087_v1, 0.0  ;;  %v3261_v20 = vmax.f32 %v2621_v13, 0.0  ;;  %2659 = vmatmul.bf16.gmra.mxu0 %v10244_v56  ;;  %2799 = vmatmul.bf16.gmra.mxu2 %v10272_v21  ;;  %v10245_v1 = vld [vmem:[%s13617_s5 + $0x88] sm:$0xff] }
 0x37a   : > { %v3262_v47 = vmax.f32 %v2950_v57, 0.0  ;;  %2988 = vmatmul.bf16.gmra.mxu1 %v10244_v56 }
 0x37b   : > { %v3556_v34 = vmax.f32 %v3371_v51, %v3372_v31  ;;  %3128 = vmatmul.bf16.gmra.mxu3 %v10272_v21 }
 0x37c   : > { %v3501_v15 = vmax.f32 %v3261_v20, %v3262_v47  ;;  %v2760_v59 = vpop.f32.mrf.mxu2 }
 0x37d   : > { %v3812_v28 = vmax.f32 %v3684_v62, %v3556_v34  ;;  %v2761_v32 = vadd.f32 %v2760_v59, %v1910_v27 }
 0x37e   : > { %v3757_v18 = vmax.f32 %v3629_v12, %v3501_v15  ;;  %v3089_v9 = vpop.f32.mrf.mxu3  ;;  %v2622_v33 = vpop.f32.mrf.mxu0 }
 0x37f   : > { %3940 = vst [vmem:[#allocation2 + $0x178] sm:$0xff] %v3812_v28  ;;  %v3090_v63 = vadd.f32 %v3089_v9, %v1910_v27  ;;  %v2623_v48 = vadd.f32 %v2622_v33, %v11873_v38  ;;  %v2951_v50 = vpop.f32.mrf.mxu1  ;;  %v3373_v24 = vmax.f32 %v2761_v32, 0.0  ;;  %v3686_v27 = vld [vmem:[#allocation2 + $0x260] sm:$0xff]  ;;  %v1920_v9 = vpop.permute.xlu1 %1919 }
 0x380   : > { %3885 = vst [vmem:[#allocation2 + $0x2e0] sm:$0xff] %v3757_v18  ;;  %v2952_v53 = vadd.f32 %v2951_v50, %v11873_v38  ;;  %v10273_v38 = vld [vmem:[%s13617_s5 + $0x168] sm:$0xff]  ;;  %v3631_v18 = vld [vmem:[#allocation2 + $0x338] sm:$0xff] }
 0x381   : > { %v3374_v29 = vmax.f32 %v3090_v63, 0.0  ;;  %v3263_v4 = vmax.f32 %v2623_v48, 0.0 }
 0x382   : > { %v3264_v17 = vmax.f32 %v2952_v53, 0.0 }
 0x383   : > { %v3557_v56 = vmax.f32 %v3373_v24, %v3374_v29 }
 0x384   : > { %v3502_v55 = vmax.f32 %v3263_v4, %v3264_v17  ;;  %v2762_v21 = vpop.f32.mrf.mxu2 }
 0x385   : > { %v3813_v45 = vmax.f32 %v3685_v25, %v3557_v56  ;;  %v2763_v42 = vadd.f32 %v2762_v21, %v1915_v22  ;;  %v3632_v21 = vld [vmem:[#allocation2 + $0x340] sm:$0xff] }
 0x386   : > { %v3758_v13 = vmax.f32 %v3630_v23, %v3502_v55  ;;  %v3091_v51 = vpop.f32.mrf.mxu3  ;;  %v2625_v57 = vpop.f32.mrf.mxu0  ;;  %v3687_v55 = vld [vmem:[#allocation2 + $0x3b8] sm:$0xff] }
 0x387   : > { %3941 = vst [vmem:[#allocation2 + $0x328] sm:$0xff] %v3813_v45  ;;  %v3092_v31 = vadd.f32 %v3091_v51, %v1915_v22  ;;  %v2626_v20 = vadd.f32 %v2625_v57, %v11877_v2  ;;  %v2954_v62 = vpop.f32.mrf.mxu1  ;;  %v3375_v47 = vmax.f32 %v2763_v42, 0.0  ;;  %v10246_v57 = vld [vmem:[%s13617_s5 + $0x90] sm:$0xff] }
 0x388   : > { %3886 = vst [vmem:[#allocation2 + $0x388] sm:$0xff] %v3758_v13  ;;  %v2955_v34 = vadd.f32 %v2954_v62, %v11877_v2  ;;  %v1925_v13 = vpop.permute.xlu2 %1924 }
 0x389   : > { %v3376_v12 = vmax.f32 %v3092_v31, 0.0  ;;  %v3265_v15 = vmax.f32 %v2626_v20, 0.0  ;;  %2664 = vmatmul.bf16.gmra.mxu0 %v10245_v1  ;;  %2804 = vmatmul.bf16.gmra.mxu2 %v10273_v38 }
 0x38a   : > { %v3266_v28 = vmax.f32 %v2955_v34, 0.0  ;;  %2993 = vmatmul.bf16.gmra.mxu1 %v10245_v1 }
 0x38b   : > { %v3558_v59 = vmax.f32 %v3375_v47, %v3376_v12  ;;  %3133 = vmatmul.bf16.gmra.mxu3 %v10273_v38 }
 0x38c   : > { %v3503_v32 = vmax.f32 %v3265_v15, %v3266_v28  ;;  %v2765_v63 = vpop.f32.mrf.mxu2 }
 0x38d   : > { %v3814_v33 = vmax.f32 %v3686_v27, %v3558_v59  ;;  %v2766_v50 = vadd.f32 %v2765_v63, %v1920_v9 }
 0x38e   : > { %v3759_v48 = vmax.f32 %v3631_v18, %v3503_v32  ;;  %v3094_v24 = vpop.f32.mrf.mxu3  ;;  %v2627_v53 = vpop.f32.mrf.mxu0  ;;  %v3688_v18 = vld [vmem:[#allocation2 + $0x2b8] sm:$0xff] }
 0x38f   : > { %3942 = vst [vmem:[#allocation2 + $0x260] sm:$0xff] %v3814_v33  ;;  %v3095_v2 = vadd.f32 %v3094_v24, %v1920_v9  ;;  %v2628_v29 = vadd.f32 %v2627_v53, %v11887_v14  ;;  %v2956_v4 = vpop.f32.mrf.mxu1  ;;  %v3377_v25 = vmax.f32 %v2766_v50, 0.0  ;;  %v3633_v33 = vld [vmem:[#allocation2 + $0x80] sm:$0xff] }
 0x390   : > { %3887 = vst [vmem:[#allocation2 + $0x338] sm:$0xff] %v3759_v48  ;;  %v2957_v17 = vadd.f32 %v2956_v4, %v11887_v14  ;;  %v10274_v14 = vld [vmem:[%s13617_s5 + $0x170] sm:$0xff]  ;;  %v1930_v48 = vpop.permute.xlu0 %1929 }
 0x391   : > { %v3378_v56 = vmax.f32 %v3095_v2, 0.0  ;;  %v3267_v23 = vmax.f32 %v2628_v29, 0.0 }
 0x392   : > { %v3268_v22 = vmax.f32 %v2957_v17, 0.0 }
 0x393   : > { %v3559_v45 = vmax.f32 %v3377_v25, %v3378_v56 }
 0x394   : > { %v3504_v1 = vmax.f32 %v3267_v23, %v3268_v22  ;;  %v2767_v51 = vpop.f32.mrf.mxu2 }
 0x395   : > { %v3815_v42 = vmax.f32 %v3687_v55, %v3559_v45  ;;  %v2768_v31 = vadd.f32 %v2767_v51, %v1925_v13  ;;  %v3689_v45 = vld [vmem:[#allocation2 + $0x248] sm:$0xff]  ;;  %v1935_v51 = vpop.permute.xlu1 %1934 }
 0x396   : > { %v3760_v38 = vmax.f32 %v3632_v21, %v3504_v1  ;;  %v3096_v20 = vpop.f32.mrf.mxu3  ;;  %v2630_v62 = vpop.f32.mrf.mxu0 }
 0x397   : > { %3943 = vst [vmem:[#allocation2 + $0x3b8] sm:$0xff] %v3815_v42  ;;  %v3097_v47 = vadd.f32 %v3096_v20, %v1925_v13  ;;  %v2631_v34 = vadd.f32 %v2630_v62, %v11879_v7  ;;  %v2959_v12 = vpop.f32.mrf.mxu1  ;;  %v3379_v15 = vmax.f32 %v2768_v31, 0.0  ;;  %v3634_v13 = vld [vmem:[#allocation2 + $0x1a8] sm:$0xff]  ;;  %v10247_v31 = vld [vmem:[%s13617_s5 + $0x98] sm:$0xff] }
 0x398   : > { %3888 = vst [vmem:[#allocation2 + $0x340] sm:$0xff] %v3760_v38  ;;  %v2960_v27 = vadd.f32 %v2959_v12, %v11879_v7 }
 0x399   : > { %v3380_v28 = vmax.f32 %v3097_v47, 0.0  ;;  %v3269_v59 = vmax.f32 %v2631_v34, 0.0  ;;  %2669 = vmatmul.bf16.gmra.mxu0 %v10246_v57  ;;  %2809 = vmatmul.bf16.gmra.mxu2 %v10274_v14 }
 0x39a   : > { %v3270_v32 = vmax.f32 %v2960_v27, 0.0  ;;  %2998 = vmatmul.bf16.gmra.mxu1 %v10246_v57 }
 0x39b   : > { %v3560_v9 = vmax.f32 %v3379_v15, %v3380_v28  ;;  %3138 = vmatmul.bf16.gmra.mxu3 %v10274_v14 }
 0x39c   : > { %v3505_v63 = vmax.f32 %v3269_v59, %v3270_v32  ;;  %v2770_v24 = vpop.f32.mrf.mxu2  ;;  %v3690_v32 = vld [vmem:[#allocation2 + $0x40] sm:$0xff] }
 0x39d   : > { %v3816_v50 = vmax.f32 %v3688_v18, %v3560_v9  ;;  %v2771_v2 = vadd.f32 %v2770_v24, %v1930_v48 }
 0x39e   : > { %v3761_v53 = vmax.f32 %v3633_v33, %v3505_v63  ;;  %v3099_v29 = vpop.f32.mrf.mxu3  ;;  %v2632_v4 = vpop.f32.mrf.mxu0  ;;  %v3635_v63 = vld [vmem:[#allocation2 + $0x1b8] sm:$0xff] }
 0x39f   : > { %3944 = vst [vmem:[#allocation2 + $0x2b8] sm:$0xff] %v3816_v50  ;;  %v3100_v7 = vadd.f32 %v3099_v29, %v1930_v48  ;;  %v2633_v25 = vadd.f32 %v2632_v4, %v11889_v6  ;;  %v2961_v17 = vpop.f32.mrf.mxu1  ;;  %v3381_v56 = vmax.f32 %v2771_v2, 0.0  ;;  %v1940_v50 = vpop.permute.xlu2 %1939 }
 0x3a0   : > { %3889 = vst [vmem:[#allocation2 + $0x80] sm:$0xff] %v3761_v53  ;;  %v2962_v23 = vadd.f32 %v2961_v17, %v11889_v6  ;;  %v10275_v6 = vld [vmem:[%s13617_s5 + $0x178] sm:$0xff] }
 0x3a1   : > { %v3382_v55 = vmax.f32 %v3100_v7, 0.0  ;;  %v3271_v22 = vmax.f32 %v2633_v25, 0.0 }
 0x3a2   : > { %v3272_v21 = vmax.f32 %v2962_v23, 0.0 }
 0x3a3   : > { %v3561_v1 = vmax.f32 %v3381_v56, %v3382_v55 }
 0x3a4   : > { %v3506_v42 = vmax.f32 %v3271_v22, %v3272_v21  ;;  %v2772_v38 = vpop.f32.mrf.mxu2 }
 0x3a5   : > { %v3817_v57 = vmax.f32 %v3689_v45, %v3561_v1  ;;  %v2773_v62 = vadd.f32 %v2772_v38, %v1935_v51  ;;  %v3691_v45 = vld [vmem:[#allocation2 + $0x20] sm:$0xff] }
 0x3a6   : > { %v3762_v20 = vmax.f32 %v3634_v13, %v3506_v42  ;;  %v3101_v14 = vpop.f32.mrf.mxu3  ;;  %v2635_v47 = vpop.f32.mrf.mxu0  ;;  %v3636_v13 = vld [vmem:[#allocation2 + $0x168] sm:$0xff] }
 0x3a7   : > { %3945 = vst [vmem:[#allocation2 + $0x248] sm:$0xff] %v3817_v57  ;;  %v3102_v34 = vadd.f32 %v3101_v14, %v1935_v51  ;;  %v2636_v12 = vadd.f32 %v2635_v47, %v11893_v60  ;;  %v2964_v15 = vpop.f32.mrf.mxu1  ;;  %v3383_v27 = vmax.f32 %v2773_v62, 0.0  ;;  %v1945_v51 = vpop.permute.xlu0 %1944 }
 0x3a8   : > { %3890 = vst [vmem:[#allocation2 + $0x1a8] sm:$0xff] %v3762_v20  ;;  %v2965_v28 = vadd.f32 %v2964_v15, %v11893_v60 }
 0x3a9   : > { %v3384_v59 = vmax.f32 %v3102_v34, 0.0  ;;  %v3273_v18 = vmax.f32 %v2636_v12, 0.0  ;;  %2674 = vmatmul.bf16.gmra.mxu0 %v10247_v31  ;;  %2814 = vmatmul.bf16.gmra.mxu2 %v10275_v6 }
 0x3aa   : > { %v3274_v9 = vmax.f32 %v2965_v28, 0.0  ;;  %3003 = vmatmul.bf16.gmra.mxu1 %v10247_v31  ;;  %v10248_v31 = vld [vmem:[%s13617_s5 + $0xa0] sm:$0xff] }
 0x3ab   : > { %v3562_v33 = vmax.f32 %v3383_v27, %v3384_v59  ;;  %3143 = vmatmul.bf16.gmra.mxu3 %v10275_v6 }
 0x3ac   : > { %v3507_v48 = vmax.f32 %v3273_v18, %v3274_v9  ;;  %v2775_v53 = vpop.f32.mrf.mxu2  ;;  %v3692_v18 = vld [vmem:[#allocation2 + $0xe8] sm:$0xff] }
 0x3ad   : > { %v3818_v24 = vmax.f32 %v3690_v32, %v3562_v33  ;;  %v2776_v29 = vadd.f32 %v2775_v53, %v1940_v50  ;;  %v3637_v33 = vld [vmem:[#allocation2 + $0x3e8] sm:$0xff] }
 0x3ae   : > { %v3763_v2 = vmax.f32 %v3635_v63, %v3507_v48  ;;  %v3104_v4 = vpop.f32.mrf.mxu3  ;;  %v2637_v7 = vpop.f32.mrf.mxu0 }
 0x3af   : > { %3946 = vst [vmem:[#allocation2 + $0x40] sm:$0xff] %v3818_v24  ;;  %v3105_v60 = vadd.f32 %v3104_v4, %v1940_v50  ;;  %v2638_v25 = vadd.f32 %v2637_v7, %v11891_v8  ;;  %v2966_v17 = vpop.f32.mrf.mxu1  ;;  %v3385_v56 = vmax.f32 %v2776_v29, 0.0  ;;  %v1950_v48 = vpop.permute.xlu1 %1949 }
 0x3b0   : > { %3891 = vst [vmem:[#allocation2 + $0x1b8] sm:$0xff] %v3763_v2  ;;  %v2967_v23 = vadd.f32 %v2966_v17, %v11891_v8  ;;  %v10276_v8 = vld [vmem:[%s13617_s5 + $0x180] sm:$0xff] }
 0x3b1   : > { %v3386_v55 = vmax.f32 %v3105_v60, 0.0  ;;  %v3275_v22 = vmax.f32 %v2638_v25, 0.0 }
 0x3b2   : > { %v3276_v21 = vmax.f32 %v2967_v23, 0.0 }
 0x3b3   : > { %v3563_v1 = vmax.f32 %v3385_v56, %v3386_v55  ;;  %v3693_v55 = vld [vmem:[#allocation2 + $0x288] sm:$0xff] }
 0x3b4   : > { %v3508_v42 = vmax.f32 %v3275_v22, %v3276_v21  ;;  %v2777_v38 = vpop.f32.mrf.mxu2  ;;  %v3638_v21 = vld [vmem:[#allocation2 + $0x2f8] sm:$0xff] }
 0x3b5   : > { %v3819_v57 = vmax.f32 %v3691_v45, %v3563_v1  ;;  %v2778_v62 = vadd.f32 %v2777_v38, %v1945_v51 }
 0x3b6   : > { %v3764_v20 = vmax.f32 %v3636_v13, %v3508_v42  ;;  %v3106_v14 = vpop.f32.mrf.mxu3  ;;  %v2640_v47 = vpop.f32.mrf.mxu0 }
 0x3b7   : > { %3947 = vst [vmem:[#allocation2 + $0x20] sm:$0xff] %v3819_v57  ;;  %v3107_v6 = vadd.f32 %v3106_v14, %v1945_v51  ;;  %v2641_v34 = vadd.f32 %v2640_v47, %v11901_v10  ;;  %v2969_v12 = vpop.f32.mrf.mxu1  ;;  %v3387_v15 = vmax.f32 %v2778_v62, 0.0  ;;  %v1955_v13 = vpop.permute.xlu2 %1954  ;;  %v10249_v57 = vld [vmem:[%s13617_s5 + $0xa8] sm:$0xff] }
 0x3b8   : > { %3892 = vst [vmem:[#allocation2 + $0x168] sm:$0xff] %v3764_v20  ;;  %v2970_v27 = vadd.f32 %v2969_v12, %v11901_v10 }
 0x3b9   : > { %v3388_v28 = vmax.f32 %v3107_v6, 0.0  ;;  %v3277_v59 = vmax.f32 %v2641_v34, 0.0  ;;  %2679 = vmatmul.bf16.gmra.mxu0 %v10248_v31  ;;  %2819 = vmatmul.bf16.gmra.mxu2 %v10276_v8 }
 0x3ba   : > { %v3278_v32 = vmax.f32 %v2970_v27, 0.0  ;;  %3008 = vmatmul.bf16.gmra.mxu1 %v10248_v31  ;;  %v3694_v27 = vld [vmem:[#allocation2 + $0x3a8] sm:$0xff] }
 0x3bb   : > { %v3564_v9 = vmax.f32 %v3387_v15, %v3388_v28  ;;  %3148 = vmatmul.bf16.gmra.mxu3 %v10276_v8 }
 0x3bc   : > { %v3509_v63 = vmax.f32 %v3277_v59, %v3278_v32  ;;  %v2780_v24 = vpop.f32.mrf.mxu2 }
 0x3bd   : > { %v3820_v50 = vmax.f32 %v3692_v18, %v3564_v9  ;;  %v2781_v2 = vadd.f32 %v2780_v24, %v1950_v48  ;;  %v3639_v18 = vld [vmem:[#allocation2 + $0x290] sm:$0xff]  ;;  %v1960_v9 = vpop.permute.xlu0 %1959 }
 0x3be   : > { %v3765_v53 = vmax.f32 %v3637_v33, %v3509_v63  ;;  %v3109_v29 = vpop.f32.mrf.mxu3  ;;  %v2642_v4 = vpop.f32.mrf.mxu0 }
 0x3bf   : > { %3948 = vst [vmem:[#allocation2 + $0xe8] sm:$0xff] %v3820_v50  ;;  %v3110_v10 = vadd.f32 %v3109_v29, %v1950_v48  ;;  %v2643_v7 = vadd.f32 %v2642_v4, %v11905_v58  ;;  %v2971_v60 = vpop.f32.mrf.mxu1  ;;  %v3389_v25 = vmax.f32 %v2781_v2, 0.0 }
 0x3c0   : > { %3893 = vst [vmem:[#allocation2 + $0x3e8] sm:$0xff] %v3765_v53  ;;  %v2972_v17 = vadd.f32 %v2971_v60, %v11905_v58  ;;  %v10277_v58 = vld [vmem:[%s13617_s5 + $0x188] sm:$0xff] }
 0x3c1   : > { %v3390_v56 = vmax.f32 %v3110_v10, 0.0  ;;  %v3279_v23 = vmax.f32 %v2643_v7, 0.0 }
 0x3c2   : > { %v3280_v22 = vmax.f32 %v2972_v17, 0.0 }
 0x3c3   : > { %v3565_v45 = vmax.f32 %v3389_v25, %v3390_v56  ;;  %v3695_v25 = vld [vmem:[#allocation2 + $0x3c8] sm:$0xff] }
 0x3c4   : > { %v3510_v1 = vmax.f32 %v3279_v23, %v3280_v22  ;;  %v2782_v51 = vpop.f32.mrf.mxu2  ;;  %v3640_v23 = vld [vmem:[#allocation2 + $0x28] sm:$0xff]  ;;  %v1965_v22 = vpop.permute.xlu1 %1964 }
 0x3c5   : > { %v3821_v42 = vmax.f32 %v3693_v55, %v3565_v45  ;;  %v2783_v31 = vadd.f32 %v2782_v51, %v1955_v13 }
 0x3c6   : > { %v3766_v38 = vmax.f32 %v3638_v21, %v3510_v1  ;;  %v3111_v20 = vpop.f32.mrf.mxu3  ;;  %v2645_v62 = vpop.f32.mrf.mxu0  ;;  %v10250_v1 = vld [vmem:[%s13617_s5 + $0xb0] sm:$0xff] }
 0x3c7   : > { %3949 = vst [vmem:[#allocation2 + $0x288] sm:$0xff] %v3821_v42  ;;  %v3112_v14 = vadd.f32 %v3111_v20, %v1955_v13  ;;  %v2646_v47 = vadd.f32 %v2645_v62, %v11903_v3  ;;  %v2974_v8 = vpop.f32.mrf.mxu1  ;;  %v3391_v6 = vmax.f32 %v2783_v31, 0.0 }
 0x3c8   : > { %3894 = vst [vmem:[#allocation2 + $0x2f8] sm:$0xff] %v3766_v38  ;;  %v2975_v34 = vadd.f32 %v2974_v8, %v11903_v3  ;;  %v3696_v8 = vld [vmem:[#allocation2 + $0x160] sm:$0xff] }
 0x3c9   : > { %v3392_v12 = vmax.f32 %v3112_v14, 0.0  ;;  %v3281_v15 = vmax.f32 %v2646_v47, 0.0  ;;  %2684 = vmatmul.bf16.gmra.mxu0 %v10249_v57  ;;  %2824 = vmatmul.bf16.gmra.mxu2 %v10277_v58 }
 0x3ca   : > { %v3282_v28 = vmax.f32 %v2975_v34, 0.0  ;;  %3013 = vmatmul.bf16.gmra.mxu1 %v10249_v57 }
 0x3cb   : > { %v3566_v59 = vmax.f32 %v3391_v6, %v3392_v12  ;;  %3153 = vmatmul.bf16.gmra.mxu3 %v10277_v58  ;;  %v3641_v12 = vld [vmem:[#allocation2 + $0x138] sm:$0xff] }
 0x3cc   : > { %v3511_v32 = vmax.f32 %v3281_v15, %v3282_v28  ;;  %v2785_v63 = vpop.f32.mrf.mxu2 }
 0x3cd   : > { %v3822_v33 = vmax.f32 %v3694_v27, %v3566_v59  ;;  %v2786_v50 = vadd.f32 %v2785_v63, %v1960_v9  ;;  %v1970_v27 = vpop.permute.xlu2 %1969 }
 0x3ce   : > { %v3767_v48 = vmax.f32 %v3639_v18, %v3511_v32  ;;  %v3114_v24 = vpop.f32.mrf.mxu3  ;;  %v2647_v53 = vpop.f32.mrf.mxu0 }
 0x3cf   : > { %3950 = vst [vmem:[#allocation2 + $0x3a8] sm:$0xff] %v3822_v33  ;;  %v3115_v3 = vadd.f32 %v3114_v24, %v1960_v9  ;;  %v2648_v2 = vadd.f32 %v2647_v53, %v11907_v5  ;;  %v2976_v29 = vpop.f32.mrf.mxu1  ;;  %v3393_v4 = vmax.f32 %v2786_v50, 0.0 }
 0x3d0   : > { %3895 = vst [vmem:[#allocation2 + $0x290] sm:$0xff] %v3767_v48  ;;  %v2977_v10 = vadd.f32 %v2976_v29, %v11907_v5  ;;  %v10278_v5 = vld [vmem:[%s13617_s5 + $0x190] sm:$0xff] }
 0x3d1   : > { %v3394_v7 = vmax.f32 %v3115_v3, 0.0  ;;  %v3283_v60 = vmax.f32 %v2648_v2, 0.0  ;;  %v3697_v2 = vld [vmem:[#allocation2 + $0x2c8] sm:$0xff] }
 0x3d2   : > { %v3284_v17 = vmax.f32 %v2977_v10, 0.0  ;;  %v3642_v10 = vld [vmem:[#allocation2 + $0xc0] sm:$0xff] }
 0x3d3   : > { %v3567_v56 = vmax.f32 %v3393_v4, %v3394_v7 }
 0x3d4   : > { %v3512_v55 = vmax.f32 %v3283_v60, %v3284_v17  ;;  %v2787_v21 = vpop.f32.mrf.mxu2  ;;  %v1975_v60 = vpop.permute.xlu0 %1974 }
 0x3d5   : > { %v3823_v45 = vmax.f32 %v3695_v25, %v3567_v56  ;;  %v2788_v42 = vadd.f32 %v2787_v21, %v1965_v22  ;;  %v10251_v56 = vld [vmem:[%s13617_s5 + $0xb8] sm:$0xff] }
 0x3d6   : > { %v3768_v13 = vmax.f32 %v3640_v23, %v3512_v55  ;;  %v3116_v51 = vpop.f32.mrf.mxu3  ;;  %v2650_v57 = vpop.f32.mrf.mxu0 }
 0x3d7   : > { %3951 = vst [vmem:[#allocation2 + $0x3c8] sm:$0xff] %v3823_v45  ;;  %v3117_v38 = vadd.f32 %v3116_v51, %v1965_v22  ;;  %v2651_v31 = vadd.f32 %v2650_v57, %v11917_v19  ;;  %v2979_v20 = vpop.f32.mrf.mxu1  ;;  %v3395_v62 = vmax.f32 %v2788_v42, 0.0 }
 0x3d8   : > { %3896 = vst [vmem:[#allocation2 + $0x28] sm:$0xff] %v3768_v13  ;;  %v2980_v58 = vadd.f32 %v2979_v20, %v11917_v19 }
 0x3d9   : > { %v3396_v14 = vmax.f32 %v3117_v38, 0.0  ;;  %v3285_v47 = vmax.f32 %v2651_v31, 0.0  ;;  %2689 = vmatmul.bf16.gmra.mxu0 %v10250_v1  ;;  %2829 = vmatmul.bf16.gmra.mxu2 %v10278_v5  ;;  %v3698_v38 = vld [vmem:[#allocation2 + $0x210] sm:$0xff] }
 0x3da   : > { %v3286_v6 = vmax.f32 %v2980_v58, 0.0  ;;  %3018 = vmatmul.bf16.gmra.mxu1 %v10250_v1 }
 0x3db   : > { %v3568_v34 = vmax.f32 %v3395_v62, %v3396_v14  ;;  %3158 = vmatmul.bf16.gmra.mxu3 %v10278_v5  ;;  %v3643_v62 = vld [vmem:[#allocation2 + $0x1c0] sm:$0xff]  ;;  %v1980_v14 = vpop.permute.xlu1 %1979 }
 0x3dc   : > { %v3513_v15 = vmax.f32 %v3285_v47, %v3286_v6  ;;  %v2790_v59 = vpop.f32.mrf.mxu2 }
 0x3dd   : > { %v3824_v28 = vmax.f32 %v3696_v8, %v3568_v34  ;;  %v2791_v32 = vadd.f32 %v2790_v59, %v1970_v27 }
 0x3de   : > { %v3769_v18 = vmax.f32 %v3641_v12, %v3513_v15  ;;  %v3119_v9 = vpop.f32.mrf.mxu3  ;;  %v2652_v33 = vpop.f32.mrf.mxu0 }
 0x3df   : > { %3952 = vst [vmem:[#allocation2 + $0x160] sm:$0xff] %v3824_v28  ;;  %v3120_v19 = vadd.f32 %v3119_v9, %v1970_v27  ;;  %v2653_v63 = vadd.f32 %v2652_v33, %v11909_v0  ;;  %v2981_v48 = vpop.f32.mrf.mxu1  ;;  %v3397_v50 = vmax.f32 %v2791_v32, 0.0  ;;  %v3699_v33 = vld [vmem:[#allocation2 + $0x3d8] sm:$0xff] }
 0x3e0   : > { %3897 = vst [vmem:[#allocation2 + $0x138] sm:$0xff] %v3769_v18  ;;  %v2982_v24 = vadd.f32 %v2981_v48, %v11909_v0  ;;  %v10279_v0 = vld [vmem:[%s13617_s5 + $0x198] sm:$0xff]  ;;  %v3644_v48 = vld [vmem:[#allocation2 + $0x280] sm:$0xff] }
 0x3e1   : > { %v3398_v53 = vmax.f32 %v3120_v19, 0.0  ;;  %v3287_v3 = vmax.f32 %v2653_v63, 0.0 }
 0x3e2   : > { %v3288_v29 = vmax.f32 %v2982_v24, 0.0  ;;  %v1985_v24 = vpop.permute.xlu2 %1984 }
 0x3e3   : > { %v3569_v4 = vmax.f32 %v3397_v50, %v3398_v53 }
 0x3e4   : > { %v3514_v7 = vmax.f32 %v3287_v3, %v3288_v29  ;;  %v2792_v17 = vpop.f32.mrf.mxu2 }
 0x3e5   : > { %v3825_v25 = vmax.f32 %v3697_v2, %v3569_v4  ;;  %v2793_v55 = vadd.f32 %v2792_v17, %v1975_v60  ;;  %v10252_v2 = vld [vmem:[%s13617_s5 + $0xc0] sm:$0xff] }
 0x3e6   : > { %v3770_v23 = vmax.f32 %v3642_v10, %v3514_v7  ;;  %v3121_v22 = vpop.f32.mrf.mxu3  ;;  %v2655_v45 = vpop.f32.mrf.mxu0 }
 0x3e7   : > { %3953 = vst [vmem:[#allocation2 + $0x2c8] sm:$0xff] %v3825_v25  ;;  %v3122_v21 = vadd.f32 %v3121_v22, %v1975_v60  ;;  %v2656_v1 = vadd.f32 %v2655_v45, %v11919_v52  ;;  %v2984_v13 = vpop.f32.mrf.mxu1  ;;  %v3399_v42 = vmax.f32 %v2793_v55, 0.0  ;;  %v3700_v45 = vld [vmem:[#allocation2 + $0x1e8] sm:$0xff] }
 0x3e8   : > { %3898 = vst [vmem:[#allocation2 + $0xc0] sm:$0xff] %v3770_v23  ;;  %v2985_v51 = vadd.f32 %v2984_v13, %v11919_v52 }
 0x3e9   : > { %v3400_v57 = vmax.f32 %v3122_v21, 0.0  ;;  %v3289_v5 = vmax.f32 %v2656_v1, 0.0  ;;  %2694 = vmatmul.bf16.gmra.mxu0 %v10251_v56  ;;  %2834 = vmatmul.bf16.gmra.mxu2 %v10279_v0  ;;  %v3645_v1 = vld [vmem:[#allocation2 + $0x100] sm:$0xff] }
 0x3ea   : > { %v3290_v31 = vmax.f32 %v2985_v51, 0.0  ;;  %3023 = vmatmul.bf16.gmra.mxu1 %v10251_v56 }
 0x3eb   : > { %v3570_v20 = vmax.f32 %v3399_v42, %v3400_v57  ;;  %3163 = vmatmul.bf16.gmra.mxu3 %v10279_v0  ;;  %v1990_v42 = vpop.permute.xlu0 %1989 }
 0x3ec   : > { %v3515_v58 = vmax.f32 %v3289_v5, %v3290_v31  ;;  %v2795_v8 = vpop.f32.mrf.mxu2 }
 0x3ed   : > { %v3826_v47 = vmax.f32 %v3698_v38, %v3570_v20  ;;  %v2796_v34 = vadd.f32 %v2795_v8, %v1980_v14 }
 0x3ee   : > { %v3771_v6 = vmax.f32 %v3643_v62, %v3515_v58  ;;  %v3124_v12 = vpop.f32.mrf.mxu3  ;;  %v2657_v15 = vpop.f32.mrf.mxu0 }
 0x3ef   : > { %3954 = vst [vmem:[#allocation2 + $0x210] sm:$0xff] %v3826_v47  ;;  %v3125_v52 = vadd.f32 %v3124_v12, %v1980_v14  ;;  %v2658_v27 = vadd.f32 %v2657_v15, %v11923_v61  ;;  %v2986_v28 = vpop.f32.mrf.mxu1  ;;  %v3401_v59 = vmax.f32 %v2796_v34, 0.0  ;;  %v3701_v34 = vld [vmem:[#allocation2 + $0x1b0] sm:$0xff] }
 0x3f0   : > { %3899 = vst [vmem:[#allocation2 + $0x1c0] sm:$0xff] %v3771_v6  ;;  %v2987_v18 = vadd.f32 %v2986_v28, %v11923_v61  ;;  %v10280_v61 = vld [vmem:[%s13617_s5 + $0x1a0] sm:$0xff]  ;;  %v1995_v28 = vpop.permute.xlu1 %1994 }
 0x3f1   : > { %v3402_v32 = vmax.f32 %v3125_v52, 0.0  ;;  %v3291_v9 = vmax.f32 %v2658_v27, 0.0  ;;  %v3646_v52 = vld [vmem:[#allocation2 + $0x3c0] sm:$0xff] }
 0x3f2   : > { %v3292_v19 = vmax.f32 %v2987_v18, 0.0 }
 0x3f3   : > { %v3571_v63 = vmax.f32 %v3401_v59, %v3402_v32  ;;  %v10253_v32 = vld [vmem:[%s13617_s5 + $0xc8] sm:$0xff] }
 0x3f4   : > { %v3516_v50 = vmax.f32 %v3291_v9, %v3292_v19  ;;  %v2797_v3 = vpop.f32.mrf.mxu2 }
 0x3f5   : > { %v3827_v53 = vmax.f32 %v3699_v33, %v3571_v63  ;;  %v2798_v4 = vadd.f32 %v2797_v3, %v1985_v24 }
 0x3f6   : > { %v3772_v29 = vmax.f32 %v3644_v48, %v3516_v50  ;;  %v3126_v10 = vpop.f32.mrf.mxu3  ;;  %v2660_v7 = vpop.f32.mrf.mxu0 }
 0x3f7   : > { %3955 = vst [vmem:[#allocation2 + $0x3d8] sm:$0xff] %v3827_v53  ;;  %v3127_v60 = vadd.f32 %v3126_v10, %v1985_v24  ;;  %v2661_v25 = vadd.f32 %v2660_v7, %v11921_v26  ;;  %v2989_v17 = vpop.f32.mrf.mxu1  ;;  %v3403_v56 = vmax.f32 %v2798_v4, 0.0  ;;  %v3702_v4 = vld [vmem:[#allocation2 + $0x1c8] sm:$0xff] }
 0x3f8   : > { %3900 = vst [vmem:[#allocation2 + $0x280] sm:$0xff] %v3772_v29  ;;  %v2990_v23 = vadd.f32 %v2989_v17, %v11921_v26 }
 0x3f9   : > { %v3404_v55 = vmax.f32 %v3127_v60, 0.0  ;;  %v3293_v22 = vmax.f32 %v2661_v25, 0.0  ;;  %2699 = vmatmul.bf16.gmra.mxu0 %v10252_v2  ;;  %2839 = vmatmul.bf16.gmra.mxu2 %v10280_v61  ;;  %v2000_v25 = vpop.permute.xlu2 %1999 }
 0x3fa   : > { %v3294_v0 = vmax.f32 %v2990_v23, 0.0  ;;  %3028 = vmatmul.bf16.gmra.mxu1 %v10252_v2 }
 0x3fb   : > { %v3572_v21 = vmax.f32 %v3403_v56, %v3404_v55  ;;  %3168 = vmatmul.bf16.gmra.mxu3 %v10280_v61  ;;  %v3647_v61 = vld [vmem:[#allocation2 + $0x158] sm:$0xff] }
 0x3fc   : > { %v3517_v13 = vmax.f32 %v3293_v22, %v3294_v0  ;;  %v2800_v57 = vpop.f32.mrf.mxu2 }
 0x3fd   : > { %v3828_v51 = vmax.f32 %v3700_v45, %v3572_v21  ;;  %v2801_v38 = vadd.f32 %v2800_v57, %v1990_v42  ;;  %v3703_v57 = vld [vmem:[#allocation2 + $0x2d0] sm:$0xff] }
 0x3fe   : > { %v3773_v5 = vmax.f32 %v3645_v1, %v3517_v13  ;;  %v3129_v31 = vpop.f32.mrf.mxu3  ;;  %v2662_v20 = vpop.f32.mrf.mxu0 }
 0x3ff   : > { %3956 = vst [vmem:[#allocation2 + $0x1e8] sm:$0xff] %v3828_v51  ;;  %v3130_v26 = vadd.f32 %v3129_v31, %v1990_v42  ;;  %v2663_v62 = vadd.f32 %v2662_v20, %v11925_v44  ;;  %v2991_v58 = vpop.f32.mrf.mxu1  ;;  %v3405_v14 = vmax.f32 %v2801_v38, 0.0  ;;  %v3648_v31 = vld [vmem:[#allocation2 + $0x3e0] sm:$0xff] }
 0x400   : > { %3901 = vst [vmem:[#allocation2 + $0x100] sm:$0xff] %v3773_v5  ;;  %v2992_v47 = vadd.f32 %v2991_v58, %v11925_v44  ;;  %v10281_v44 = vld [vmem:[%s13617_s5 + $0x1a8] sm:$0xff] }
 0x401   : > { %v3406_v8 = vmax.f32 %v3130_v26, 0.0  ;;  %v3295_v6 = vmax.f32 %v2663_v62, 0.0  ;;  %v2005_v26 = vpop.permute.xlu0 %2004 }
 0x402   : > { %v3296_v12 = vmax.f32 %v2992_v47, 0.0 }
 0x403   : > { %v3573_v15 = vmax.f32 %v3405_v14, %v3406_v8  ;;  %v10254_v14 = vld [vmem:[%s13617_s5 + $0xd0] sm:$0xff] }
 0x404   : > { %v3518_v27 = vmax.f32 %v3295_v6, %v3296_v12  ;;  %v2802_v18 = vpop.f32.mrf.mxu2 }
 0x405   : > { %v3829_v59 = vmax.f32 %v3701_v34, %v3573_v15  ;;  %v2803_v33 = vadd.f32 %v2802_v18, %v1995_v28 }
 0x406   : > { %v3774_v9 = vmax.f32 %v3646_v52, %v3518_v27  ;;  %v3131_v19 = vpop.f32.mrf.mxu3  ;;  %v2665_v63 = vpop.f32.mrf.mxu0 }
 0x407   : > { %3957 = vst [vmem:[#allocation2 + $0x1b0] sm:$0xff] %v3829_v59  ;;  %v3132_v48 = vadd.f32 %v3131_v19, %v1995_v28  ;;  %v2666_v50 = vadd.f32 %v2665_v63, %v11935_v46  ;;  %v2994_v24 = vpop.f32.mrf.mxu1  ;;  %v3407_v53 = vmax.f32 %v2803_v33, 0.0  ;;  %v3649_v19 = vld [vmem:[#allocation2 + $0x218] sm:$0xff] }
 0x408   : > { %3902 = vst [vmem:[#allocation2 + $0x3c0] sm:$0xff] %v3774_v9  ;;  %v2995_v3 = vadd.f32 %v2994_v24, %v11935_v46 }
 0x409   : > { %v3408_v2 = vmax.f32 %v3132_v48, 0.0  ;;  %v3297_v29 = vmax.f32 %v2666_v50, 0.0  ;;  %2704 = vmatmul.bf16.gmra.mxu0 %v10253_v32  ;;  %2844 = vmatmul.bf16.gmra.mxu2 %v10281_v44 }
 0x40a   : > { %v3298_v10 = vmax.f32 %v2995_v3, 0.0  ;;  %3033 = vmatmul.bf16.gmra.mxu1 %v10253_v32  ;;  %v3704_v32 = vld [vmem:[#allocation2 + $0x1d0] sm:$0xff] }
 0x40b   : > { %v3574_v7 = vmax.f32 %v3407_v53, %v3408_v2  ;;  %3173 = vmatmul.bf16.gmra.mxu3 %v10281_v44  ;;  %v2010_v44 = vpop.permute.xlu1 %2009 }
 0x40c   : > { %v3519_v60 = vmax.f32 %v3297_v29, %v3298_v10  ;;  %v2805_v56 = vpop.f32.mrf.mxu2 }
 0x40d   : > { %v3830_v17 = vmax.f32 %v3702_v4, %v3574_v7  ;;  %v2806_v55 = vadd.f32 %v2805_v56, %v2000_v25 }
 0x40e   : > { %v3775_v23 = vmax.f32 %v3647_v61, %v3519_v60  ;;  %v3134_v22 = vpop.f32.mrf.mxu3  ;;  %v2667_v45 = vpop.f32.mrf.mxu0 }
 0x40f   : > { %3958 = vst [vmem:[#allocation2 + $0x1c8] sm:$0xff] %v3830_v17  ;;  %v3135_v46 = vadd.f32 %v3134_v22, %v2000_v25  ;;  %v2668_v0 = vadd.f32 %v2667_v45, %v11933_v37  ;;  %v2996_v21 = vpop.f32.mrf.mxu1  ;;  %v3409_v1 = vmax.f32 %v2806_v55, 0.0  ;;  %v3705_v25 = vld [vmem:[#allocation2 + $0x58] sm:$0xff]  ;;  %v2015_v22 = vpop.permute.xlu2 %2014 }
 0x410   : > { %3903 = vst [vmem:[#allocation2 + $0x158] sm:$0xff] %v3775_v23  ;;  %v2997_v13 = vadd.f32 %v2996_v21, %v11933_v37  ;;  %v10282_v37 = vld [vmem:[%s13617_s5 + $0x1b0] sm:$0xff]  ;;  %v3650_v23 = vld [vmem:[#allocation2 + $0x3f8] sm:$0xff] }
 0x411   : > { %v3410_v42 = vmax.f32 %v3135_v46, 0.0  ;;  %v3299_v51 = vmax.f32 %v2668_v0, 0.0  ;;  %v10255_v0 = vld [vmem:[%s13617_s5 + $0xd8] sm:$0xff] }
 0x412   : > { %v3300_v5 = vmax.f32 %v2997_v13, 0.0 }
 0x413   : > { %v3575_v38 = vmax.f32 %v3409_v1, %v3410_v42 }
 0x414   : > { %v3520_v20 = vmax.f32 %v3299_v51, %v3300_v5  ;;  %v2807_v58 = vpop.f32.mrf.mxu2 }
 0x415   : > { %v3831_v62 = vmax.f32 %v3703_v57, %v3575_v38  ;;  %v2808_v8 = vadd.f32 %v2807_v58, %v2005_v26 }
 0x416   : > { %v3776_v47 = vmax.f32 %v3648_v31, %v3520_v20  ;;  %v3136_v6 = vpop.f32.mrf.mxu3  ;;  %v2670_v34 = vpop.f32.mrf.mxu0 }
 0x417   : > { %3959 = vst [vmem:[#allocation2 + $0x2d0] sm:$0xff] %v3831_v62  ;;  %v3137_v12 = vadd.f32 %v3136_v6, %v2005_v26  ;;  %v2671_v15 = vadd.f32 %v2670_v34, %v11937_v39  ;;  %v2999_v52 = vpop.f32.mrf.mxu1  ;;  %v3411_v27 = vmax.f32 %v2808_v8, 0.0  ;;  %v3706_v62 = vld [vmem:[#allocation2 + $0x120] sm:$0xff]  ;;  %v2020_v6 = vpop.permute.xlu0 %2019 }
 0x418   : > { %3904 = vst [vmem:[#allocation2 + $0x3e0] sm:$0xff] %v3776_v47  ;;  %v3000_v28 = vadd.f32 %v2999_v52, %v11937_v39  ;;  %v3651_v47 = vld [vmem:[#allocation2 + $0x8] sm:$0xff] }
 0x419   : > { %v3412_v59 = vmax.f32 %v3137_v12, 0.0  ;;  %v3301_v18 = vmax.f32 %v2671_v15, 0.0  ;;  %2709 = vmatmul.bf16.gmra.mxu0 %v10254_v14  ;;  %2849 = vmatmul.bf16.gmra.mxu2 %v10282_v37 }
 0x41a   : > { %v3302_v9 = vmax.f32 %v3000_v28, 0.0  ;;  %3038 = vmatmul.bf16.gmra.mxu1 %v10254_v14 }
 0x41b   : > { %v3576_v33 = vmax.f32 %v3411_v27, %v3412_v59  ;;  %3178 = vmatmul.bf16.gmra.mxu3 %v10282_v37 }
 0x41c   : > { %v3521_v63 = vmax.f32 %v3301_v18, %v3302_v9  ;;  %v2810_v50 = vpop.f32.mrf.mxu2 }
 0x41d   : > { %v3832_v48 = vmax.f32 %v3704_v32, %v3576_v33  ;;  %v2811_v53 = vadd.f32 %v2810_v50, %v2010_v44 }
 0x41e   : > { %v3777_v24 = vmax.f32 %v3649_v19, %v3521_v63  ;;  %v3139_v3 = vpop.f32.mrf.mxu3  ;;  %v2672_v2 = vpop.f32.mrf.mxu0  ;;  %v3707_v19 = vld [vmem:[#allocation2 + $0x198] sm:$0xff] }
 0x41f   : > { %3960 = vst [vmem:[#allocation2 + $0x1d0] sm:$0xff] %v3832_v48  ;;  %v3140_v39 = vadd.f32 %v3139_v3, %v2010_v44  ;;  %v2673_v29 = vadd.f32 %v2672_v2, %v11947_v41  ;;  %v3001_v4 = vpop.f32.mrf.mxu1  ;;  %v3413_v10 = vmax.f32 %v2811_v53, 0.0  ;;  %v3652_v48 = vld [vmem:[#allocation2 + $0x128] sm:$0xff] }
 0x420   : > { %3905 = vst [vmem:[#allocation2 + $0x218] sm:$0xff] %v3777_v24  ;;  %v3002_v7 = vadd.f32 %v3001_v4, %v11947_v41  ;;  %v10283_v41 = vld [vmem:[%s13617_s5 + $0x1b8] sm:$0xff]  ;;  %v2025_v24 = vpop.permute.xlu1 %2024 }
 0x421   : > { %v3414_v61 = vmax.f32 %v3140_v39, 0.0  ;;  %v3303_v60 = vmax.f32 %v2673_v29, 0.0 }
 0x422   : > { %v3304_v17 = vmax.f32 %v3002_v7, 0.0 }
 0x423   : > { %v3577_v56 = vmax.f32 %v3413_v10, %v3414_v61  ;;  %v10284_v10 = vld [vmem:[%s13617_s5 + $0x1c0] sm:$0xff] }
 0x424   : > { %v3522_v55 = vmax.f32 %v3303_v60, %v3304_v17  ;;  %v2812_v46 = vpop.f32.mrf.mxu2 }
 0x425   : > { %v3833_v45 = vmax.f32 %v3705_v25, %v3577_v56  ;;  %v2813_v1 = vadd.f32 %v2812_v46, %v2015_v22 }
 0x426   : > { %v3778_v21 = vmax.f32 %v3650_v23, %v3522_v55  ;;  %v3141_v13 = vpop.f32.mrf.mxu3  ;;  %v2675_v42 = vpop.f32.mrf.mxu0  ;;  %v3708_v23 = vld [vmem:[#allocation2 + $0x2e8] sm:$0xff] }
 0x427   : > { %3961 = vst [vmem:[#allocation2 + $0x58] sm:$0xff] %v3833_v45  ;;  %v3142_v51 = vadd.f32 %v3141_v13, %v2015_v22  ;;  %v2676_v57 = vadd.f32 %v2675_v42, %v11939_v43  ;;  %v3004_v5 = vpop.f32.mrf.mxu1  ;;  %v3415_v38 = vmax.f32 %v2813_v1, 0.0  ;;  %v3653_v45 = vld [vmem:[#allocation2 + $0x2a0] sm:$0xff] }
 0x428   : > { %3906 = vst [vmem:[#allocation2 + $0x3f8] sm:$0xff] %v3778_v21  ;;  %v3005_v31 = vadd.f32 %v3004_v5, %v11939_v43 }
 0x429   : > { %v3416_v20 = vmax.f32 %v3142_v51, 0.0  ;;  %v3305_v26 = vmax.f32 %v2676_v57, 0.0  ;;  %2714 = vmatmul.bf16.gmra.mxu0 %v10255_v0  ;;  %2854 = vmatmul.bf16.gmra.mxu2 %v10283_v41 }
 0x42a   : > { %v3306_v58 = vmax.f32 %v3005_v31, 0.0  ;;  %3043 = vmatmul.bf16.gmra.mxu1 %v10255_v0  ;;  %v2030_v0 = vpop.permute.xlu2 %2029 }
 0x42b   : > { %v3578_v14 = vmax.f32 %v3415_v38, %v3416_v20  ;;  %3183 = vmatmul.bf16.gmra.mxu3 %v10283_v41 }
 0x42c   : > { %v3523_v8 = vmax.f32 %v3305_v26, %v3306_v58  ;;  %v2815_v37 = vpop.f32.mrf.mxu2 }
 0x42d   : > { %v3834_v34 = vmax.f32 %v3706_v62, %v3578_v14  ;;  %v2816_v15 = vadd.f32 %v2815_v37, %v2020_v6  ;;  %v3709_v62 = vld [vmem:[#allocation2 + $0x1f8] sm:$0xff] }
 0x42e   : > { %v3779_v12 = vmax.f32 %v3651_v47, %v3523_v8  ;;  %v3144_v52 = vpop.f32.mrf.mxu3  ;;  %v2677_v27 = vpop.f32.mrf.mxu0  ;;  %v3654_v47 = vld [vmem:[#allocation2 + $0x3f0] sm:$0xff] }
 0x42f   : > { %3962 = vst [vmem:[#allocation2 + $0x120] sm:$0xff] %v3834_v34  ;;  %v3145_v43 = vadd.f32 %v3144_v52, %v2020_v6  ;;  %v2678_v28 = vadd.f32 %v2677_v27, %v11949_v11  ;;  %v3006_v59 = vpop.f32.mrf.mxu1  ;;  %v3417_v18 = vmax.f32 %v2816_v15, 0.0  ;;  %v2035_v6 = vpop.permute.xlu0 %2034 }
 0x430   : > { %3907 = vst [vmem:[#allocation2 + $0x8] sm:$0xff] %v3779_v12  ;;  %v3007_v32 = vadd.f32 %v3006_v59, %v11949_v11 }
 0x431   : > { %v3418_v9 = vmax.f32 %v3145_v43, 0.0  ;;  %v3307_v33 = vmax.f32 %v2678_v28, 0.0  ;;  %v10285_v43 = vld [vmem:[%s13617_s5 + $0x1c8] sm:$0xff] }
 0x432   : > { %v3308_v63 = vmax.f32 %v3007_v32, 0.0 }
 0x433   : > { %v3579_v44 = vmax.f32 %v3417_v18, %v3418_v9 }
 0x434   : > { %v3524_v50 = vmax.f32 %v3307_v33, %v3308_v63  ;;  %v2817_v3 = vpop.f32.mrf.mxu2 }
 0x435   : > { %v3835_v53 = vmax.f32 %v3707_v19, %v3579_v44  ;;  %v2818_v39 = vadd.f32 %v2817_v3, %v2025_v24  ;;  %v3710_v19 = vld [vmem:[#allocation2 + $0x238] sm:$0xff] }
 0x436   : > { %v3780_v2 = vmax.f32 %v3652_v48, %v3524_v50  ;;  %v3146_v29 = vpop.f32.mrf.mxu3  ;;  %v2680_v4 = vpop.f32.mrf.mxu0  ;;  %v3655_v48 = vld [vmem:[#allocation2 + $0xa0] sm:$0xff] }
 0x437   : > { %3963 = vst [vmem:[#allocation2 + $0x198] sm:$0xff] %v3835_v53  ;;  %v3147_v11 = vadd.f32 %v3146_v29, %v2025_v24  ;;  %v2681_v7 = vadd.f32 %v2680_v4, %v11953_v40  ;;  %v3009_v61 = vpop.f32.mrf.mxu1  ;;  %v3419_v60 = vmax.f32 %v2818_v39, 0.0  ;;  %v2040_v24 = vpop.permute.xlu1 %2039 }
 0x438   : > { %3908 = vst [vmem:[#allocation2 + $0x128] sm:$0xff] %v3780_v2  ;;  %v3010_v25 = vadd.f32 %v3009_v61, %v11953_v40 }
 0x439   : > { %v3420_v17 = vmax.f32 %v3147_v11, 0.0  ;;  %v3309_v56 = vmax.f32 %v2681_v7, 0.0  ;;  %2859 = vmatmul.bf16.gmra.mxu2 %v10284_v10 }
 0x43a   : > { %v3310_v55 = vmax.f32 %v3010_v25, 0.0 }
 0x43b   : > { %v3580_v22 = vmax.f32 %v3419_v60, %v3420_v17  ;;  %3188 = vmatmul.bf16.gmra.mxu3 %v10284_v10  ;;  %v3711_v17 = vld [vmem:[#allocation2 + $0x398] sm:$0xff] }
 0x43c   : > { %v3525_v46 = vmax.f32 %v3309_v56, %v3310_v55  ;;  %v2820_v1 = vpop.f32.mrf.mxu2  ;;  %v3656_v55 = vld [vmem:[#allocation2 + $0x2c0] sm:$0xff] }
 0x43d   : > { %v3836_v21 = vmax.f32 %v3708_v23, %v3580_v22  ;;  %v2821_v42 = vadd.f32 %v2820_v1, %v2030_v0 }
 0x43e   : > { %v3781_v13 = vmax.f32 %v3653_v45, %v3525_v46  ;;  %v3149_v41 = vpop.f32.mrf.mxu3  ;;  %v2682_v51 = vpop.f32.mrf.mxu0 }
 0x43f   : > { %3964 = vst [vmem:[#allocation2 + $0x2e8] sm:$0xff] %v3836_v21  ;;  %v3150_v57 = vadd.f32 %v3149_v41, %v2030_v0  ;;  %v2683_v40 = vadd.f32 %v2682_v51, %v11951_v35  ;;  %v3011_v5 = vpop.f32.mrf.mxu1  ;;  %v3421_v38 = vmax.f32 %v2821_v42, 0.0  ;;  %v2045_v45 = vpop.permute.xlu2 %2044  ;;  %v10286_v41 = vld [vmem:[%s13617_s5 + $0x1d0] sm:$0xff] }
 0x440   : > { %3909 = vst [vmem:[#allocation2 + $0x2a0] sm:$0xff] %v3781_v13  ;;  %v3012_v31 = vadd.f32 %v3011_v5, %v11951_v35 }
 0x441   : > { %v3422_v20 = vmax.f32 %v3150_v57, 0.0  ;;  %v3311_v26 = vmax.f32 %v2683_v40, 0.0 }
 0x442   : > { %v3312_v58 = vmax.f32 %v3012_v31, 0.0 }
 0x443   : > { %v3581_v14 = vmax.f32 %v3421_v38, %v3422_v20  ;;  %v3712_v20 = vld [vmem:[#allocation2 + $0x390] sm:$0xff] }
 0x444   : > { %v3526_v8 = vmax.f32 %v3311_v26, %v3312_v58  ;;  %v2822_v37 = vpop.f32.mrf.mxu2  ;;  %v3657_v58 = vld [vmem:[#allocation2 + $0xb0] sm:$0xff] }
 0x445   : > { %v3837_v34 = vmax.f32 %v3709_v62, %v3581_v14  ;;  %v2823_v15 = vadd.f32 %v2822_v37, %v2035_v6 }
 0x446   : > { %v3782_v12 = vmax.f32 %v3654_v47, %v3526_v8  ;;  %v3151_v52 = vpop.f32.mrf.mxu3  ;;  %v2685_v27 = vpop.f32.mrf.mxu0 }
 0x447   : > { %3965 = vst [vmem:[#allocation2 + $0x1f8] sm:$0xff] %v3837_v34  ;;  %v3152_v35 = vadd.f32 %v3151_v52, %v2035_v6  ;;  %v2686_v28 = vadd.f32 %v2685_v27, %v11955_v49  ;;  %v3014_v59 = vpop.f32.mrf.mxu1  ;;  %v3423_v18 = vmax.f32 %v2823_v15, 0.0  ;;  %v2050_v47 = vpop.permute.xlu0 %2049 }
 0x448   : > { %3910 = vst [vmem:[#allocation2 + $0x3f0] sm:$0xff] %v3782_v12  ;;  %v3015_v32 = vadd.f32 %v3014_v59, %v11955_v49 }
 0x449   : > { %v3424_v9 = vmax.f32 %v3152_v35, 0.0  ;;  %v3313_v33 = vmax.f32 %v2686_v28, 0.0  ;;  %2864 = vmatmul.bf16.gmra.mxu2 %v10285_v43 }
 0x44a   : > { %v3314_v63 = vmax.f32 %v3015_v32, 0.0 }
 0x44b   : > { %v3582_v44 = vmax.f32 %v3423_v18, %v3424_v9  ;;  %3193 = vmatmul.bf16.gmra.mxu3 %v10285_v43  ;;  %v3713_v18 = vld [vmem:[#allocation2 + $0x1a0] sm:$0xff] }
 0x44c   : > { %v3527_v50 = vmax.f32 %v3313_v33, %v3314_v63  ;;  %v2825_v3 = vpop.f32.mrf.mxu2  ;;  %v3658_v33 = vld [vmem:[#allocation2 + $0x1e0] sm:$0xff]  ;;  %v2055_v63 = vpop.permute.xlu1 %2054 }
 0x44d   : > { %v3838_v53 = vmax.f32 %v3710_v19, %v3582_v44  ;;  %v2826_v39 = vadd.f32 %v2825_v3, %v2040_v24 }
 0x44e   : > { %v3783_v2 = vmax.f32 %v3655_v48, %v3527_v50  ;;  %v3154_v29 = vpop.f32.mrf.mxu3  ;;  %v2687_v4 = vpop.f32.mrf.mxu0 }
 0x44f   : > { %3966 = vst [vmem:[#allocation2 + $0x238] sm:$0xff] %v3838_v53  ;;  %v3155_v10 = vadd.f32 %v3154_v29, %v2040_v24  ;;  %v2688_v49 = vadd.f32 %v2687_v4, %v11965_v30  ;;  %v3016_v11 = vpop.f32.mrf.mxu1  ;;  %v3425_v7 = vmax.f32 %v2826_v39, 0.0  ;;  %v13663_v39 = vld [vmem:[#allocation14_spill] sm:$0xff] }
 0x450   : > { %3911 = vst [vmem:[#allocation2 + $0xa0] sm:$0xff] %v3783_v2  ;;  %v3017_v61 = vadd.f32 %v3016_v11, %v11965_v30  ;;  %v10287_v2 = vld [vmem:[%s13617_s5 + $0x1d8] sm:$0xff] }
 0x451   : > { %v3426_v60 = vmax.f32 %v3155_v10, 0.0  ;;  %v3315_v25 = vmax.f32 %v2688_v49, 0.0 }
 0x452   : > { %v3316_v56 = vmax.f32 %v3017_v61, 0.0  ;;  %v3714_v61 = vld [vmem:[#allocation2 + $0xa8] sm:$0xff] }
 0x453   : > { %v3583_v23 = vmax.f32 %v3425_v7, %v3426_v60 }
 0x454   : > { %v3528_v22 = vmax.f32 %v3315_v25, %v3316_v56  ;;  %v2827_v0 = vpop.f32.mrf.mxu2 }
 0x455   : > { %v3839_v46 = vmax.f32 %v3711_v17, %v3583_v23  ;;  %v2828_v1 = vadd.f32 %v2827_v0, %v2045_v45  ;;  %v3659_v17 = vld [vmem:[#allocation2 + $0x1f0] sm:$0xff]  ;;  %v2060_v23 = vpop.permute.xlu2 %2059 }
 0x456   : > { %v3784_v21 = vmax.f32 %v3656_v55, %v3528_v22  ;;  %v3156_v13 = vpop.f32.mrf.mxu3  ;;  %v2690_v42 = vpop.f32.mrf.mxu0 }
 0x457   : > { %3967 = vst [vmem:[#allocation2 + $0x398] sm:$0xff] %v3839_v46  ;;  %v3157_v30 = vadd.f32 %v3156_v13, %v2045_v45  ;;  %v2691_v51 = vadd.f32 %v2690_v42, %v11957_v54  ;;  %v3019_v57 = vpop.f32.mrf.mxu1  ;;  %v3427_v40 = vmax.f32 %v2828_v1, 0.0  ;;  %v13664_v13 = vld [vmem:[#allocation13_spill] sm:$0xff] }
 0x458   : > { %3912 = vst [vmem:[#allocation2 + $0x2c0] sm:$0xff] %v3784_v21  ;;  %v3020_v5 = vadd.f32 %v3019_v57, %v11957_v54 }
 0x459   : > { %v3428_v38 = vmax.f32 %v3157_v30, 0.0  ;;  %v3317_v31 = vmax.f32 %v2691_v51, 0.0  ;;  %2869 = vmatmul.bf16.gmra.mxu2 %v10286_v41 }
 0x45a   : > { %v3318_v26 = vmax.f32 %v3020_v5, 0.0  ;;  %v3715_v5 = vld [vmem:[#allocation2 + $0x258] sm:$0xff] }
 0x45b   : > { %v3584_v62 = vmax.f32 %v3427_v40, %v3428_v38  ;;  %3198 = vmatmul.bf16.gmra.mxu3 %v10286_v41 }
 0x45c   : > { %v3529_v14 = vmax.f32 %v3317_v31, %v3318_v26  ;;  %v2830_v6 = vpop.f32.mrf.mxu2 }
 0x45d   : > { %v3840_v8 = vmax.f32 %v3712_v20, %v3584_v62  ;;  %v2831_v37 = vadd.f32 %v2830_v6, %v2050_v47  ;;  %v3660_v20 = vld [vmem:[#allocation2 + $0x10] sm:$0xff]  ;;  %v2065_v62 = vpop.permute.xlu0 %2064 }
 0x45e   : > { %v3785_v34 = vmax.f32 %v3657_v58, %v3529_v14  ;;  %v3159_v12 = vpop.f32.mrf.mxu3  ;;  %v2692_v15 = vpop.f32.mrf.mxu0 }
 0x45f   : > { %3968 = vst [vmem:[#allocation2 + $0x390] sm:$0xff] %v3840_v8  ;;  %v3160_v52 = vadd.f32 %v3159_v12, %v2050_v47  ;;  %v2693_v54 = vadd.f32 %v2692_v15, %v11967_v36  ;;  %v3021_v27 = vpop.f32.mrf.mxu1  ;;  %v3429_v43 = vmax.f32 %v2831_v37, 0.0  ;;  %v10288_v37 = vld [vmem:[%s13617_s5 + $0x1e0] sm:$0xff] }
 0x460   : > { %3913 = vst [vmem:[#allocation2 + $0xb0] sm:$0xff] %v3785_v34  ;;  %v3022_v35 = vadd.f32 %v3021_v27, %v11967_v36  ;;  %v13665_v15 = vld [vmem:[#allocation15_spill] sm:$0xff] }
 0x461   : > { %v3430_v28 = vmax.f32 %v3160_v52, 0.0  ;;  %v3319_v59 = vmax.f32 %v2693_v54, 0.0 }
 0x462   : > { %v3320_v32 = vmax.f32 %v3022_v35, 0.0 }
 0x463   : > { %v3585_v9 = vmax.f32 %v3429_v43, %v3430_v28 }
 0x464   : > { %v3530_v19 = vmax.f32 %v3319_v59, %v3320_v32  ;;  %v2832_v48 = vpop.f32.mrf.mxu2  ;;  %v3716_v59 = vld [vmem:[#allocation2 + $0x2d8] sm:$0xff] }
 0x465   : > { %v3841_v44 = vmax.f32 %v3713_v18, %v3585_v9  ;;  %v2833_v24 = vadd.f32 %v2832_v48, %v2055_v63  ;;  %v3661_v9 = vld [vmem:[#allocation2 + $0x230] sm:$0xff] }
 0x466   : > { %v3786_v50 = vmax.f32 %v3658_v33, %v3530_v19  ;;  %v3161_v53 = vpop.f32.mrf.mxu3  ;;  %v2695_v3 = vpop.f32.mrf.mxu0 }
 0x467   : > { %3969 = vst [vmem:[#allocation2 + $0x1a0] sm:$0xff] %v3841_v44  ;;  %v3162_v36 = vadd.f32 %v3161_v53, %v2055_v63  ;;  %v2696_v29 = vadd.f32 %v2695_v3, %v13663_v39  ;;  %v3024_v4 = vpop.f32.mrf.mxu1  ;;  %v3431_v10 = vmax.f32 %v2833_v24, 0.0  ;;  %v2070_v19 = vpop.permute.xlu1 %2069 }
 0x468   : > { %3914 = vst [vmem:[#allocation2 + $0x1e0] sm:$0xff] %v3786_v50  ;;  %v3025_v49 = vadd.f32 %v3024_v4, %v13663_v39 }
 0x469   : > { %v3432_v11 = vmax.f32 %v3162_v36, 0.0  ;;  %v3321_v7 = vmax.f32 %v2696_v29, 0.0  ;;  %2874 = vmatmul.bf16.gmra.mxu2 %v10287_v2 }
 0x46a   : > { %v3322_v60 = vmax.f32 %v3025_v49, 0.0 }
 0x46b   : > { %v3586_v25 = vmax.f32 %v3431_v10, %v3432_v11  ;;  %3203 = vmatmul.bf16.gmra.mxu3 %v10287_v2  ;;  %v13666_v2 = vld [vmem:[#allocation17_spill] sm:$0xff] }
 0x46c   : > { %v3531_v56 = vmax.f32 %v3321_v7, %v3322_v60  ;;  %v2835_v22 = vpop.f32.mrf.mxu2  ;;  %v3717_v11 = vld [vmem:[#allocation2 + $0xf0] sm:$0xff]  ;;  %v3662_v60 = vld [vmem:[#allocation2 + $0x240] sm:$0xff] }
 0x46d   : > { %v3842_v55 = vmax.f32 %v3714_v61, %v3586_v25  ;;  %v2836_v46 = vadd.f32 %v2835_v22, %v2060_v23 }
 0x46e   : > { %v3787_v45 = vmax.f32 %v3659_v17, %v3531_v56  ;;  %v3164_v0 = vpop.f32.mrf.mxu3  ;;  %v2697_v21 = vpop.f32.mrf.mxu0 }
 0x46f   : > { %3970 = vst [vmem:[#allocation2 + $0xa8] sm:$0xff] %v3842_v55  ;;  %v3165_v1 = vadd.f32 %v3164_v0, %v2060_v23  ;;  %v2698_v42 = vadd.f32 %v2697_v21, %v13664_v13  ;;  %v3026_v41 = vpop.f32.mrf.mxu1  ;;  %v3433_v30 = vmax.f32 %v2836_v46, 0.0  ;;  %v2075_v17 = vpop.permute.xlu2 %2074  ;;  %v10289_v0 = vld [vmem:[%s13617_s5 + $0x1e8] sm:$0xff] }
 0x470   : > { %3915 = vst [vmem:[#allocation2 + $0x1f0] sm:$0xff] %v3787_v45  ;;  %v3027_v51 = vadd.f32 %v3026_v41, %v13664_v13 }
 0x471   : > { %v3434_v57 = vmax.f32 %v3165_v1, 0.0  ;;  %v3323_v40 = vmax.f32 %v2698_v42, 0.0  ;;  %v13667_v1 = vld [vmem:[#allocation16_spill] sm:$0xff] }
 0x472   : > { %v3324_v38 = vmax.f32 %v3027_v51, 0.0 }
 0x473   : > { %v3587_v31 = vmax.f32 %v3433_v30, %v3434_v57 }
 0x474   : > { %v3532_v26 = vmax.f32 %v3323_v40, %v3324_v38  ;;  %v2837_v14 = vpop.f32.mrf.mxu2  ;;  %v3718_v40 = vld [vmem:[#allocation2 + $0x180] sm:$0xff] }
 0x475   : > { %v3843_v58 = vmax.f32 %v3715_v5, %v3587_v31  ;;  %v2838_v8 = vadd.f32 %v2837_v14, %v2065_v62  ;;  %v3663_v31 = vld [vmem:[#allocation2 + $0x90] sm:$0xff] }
 0x476   : > { %v3788_v47 = vmax.f32 %v3660_v20, %v3532_v26  ;;  %v3166_v6 = vpop.f32.mrf.mxu3  ;;  %v2700_v34 = vpop.f32.mrf.mxu0 }
 0x477   : > { %3971 = vst [vmem:[#allocation2 + $0x258] sm:$0xff] %v3843_v58  ;;  %v3167_v12 = vadd.f32 %v3166_v6, %v2065_v62  ;;  %v2701_v52 = vadd.f32 %v2700_v34, %v13665_v15  ;;  %v3029_v54 = vpop.f32.mrf.mxu1  ;;  %v3435_v27 = vmax.f32 %v2838_v8, 0.0  ;;  %v2080_v26 = vpop.permute.xlu0 %2079 }
 0x478   : > { %3916 = vst [vmem:[#allocation2 + $0x10] sm:$0xff] %v3788_v47  ;;  %v3030_v43 = vadd.f32 %v3029_v54, %v13665_v15 }
 0x479   : > { %v3436_v35 = vmax.f32 %v3167_v12, 0.0  ;;  %v3325_v28 = vmax.f32 %v2701_v52, 0.0  ;;  %2879 = vmatmul.bf16.gmra.mxu2 %v10288_v37 }
 0x47a   : > { %v3326_v18 = vmax.f32 %v3030_v43, 0.0 }
 0x47b   : > { %v3588_v32 = vmax.f32 %v3435_v27, %v3436_v35  ;;  %3208 = vmatmul.bf16.gmra.mxu3 %v10288_v37  ;;  %v13668_v37 = vld [vmem:[#allocation18_spill] sm:$0xff]  ;;  %v3719_v35 = vld [vmem:[#allocation2 + $0x170] sm:$0xff] }
 0x47c   : > { %v3533_v33 = vmax.f32 %v3325_v28, %v3326_v18  ;;  %v2840_v44 = vpop.f32.mrf.mxu2  ;;  %v3664_v18 = vld [vmem:[#allocation2 + $0x3a0] sm:$0xff] }
 0x47d   : > { %v3844_v63 = vmax.f32 %v3716_v59, %v3588_v32  ;;  %v2841_v50 = vadd.f32 %v2840_v44, %v2070_v19 }
 0x47e   : > { %v3789_v48 = vmax.f32 %v3661_v9, %v3533_v33  ;;  %v3169_v24 = vpop.f32.mrf.mxu3  ;;  %v2702_v53 = vpop.f32.mrf.mxu0 }
 0x47f   : > { %3972 = vst [vmem:[#allocation2 + $0x2d8] sm:$0xff] %v3844_v63  ;;  %v3170_v3 = vadd.f32 %v3169_v24, %v2070_v19  ;;  %v2703_v36 = vadd.f32 %v2702_v53, %v13666_v2  ;;  %v3031_v39 = vpop.f32.mrf.mxu1  ;;  %v3437_v29 = vmax.f32 %v2841_v50, 0.0  ;;  %v2085_v9 = vpop.permute.xlu1 %2084  ;;  %v10290_v24 = vld [vmem:[%s13617_s5 + $0x1f0] sm:$0xff] }
 0x480   : > { %3917 = vst [vmem:[#allocation2 + $0x230] sm:$0xff] %v3789_v48  ;;  %v3032_v4 = vadd.f32 %v3031_v39, %v13666_v2 }
 0x481   : > { %v3438_v10 = vmax.f32 %v3170_v3, 0.0  ;;  %v3327_v49 = vmax.f32 %v2703_v36, 0.0  ;;  %v13669_v3 = vld [vmem:[#allocation20_spill] sm:$0xff] }
 0x482   : > { %v3328_v7 = vmax.f32 %v3032_v4, 0.0 }
 0x483   : > { %v3589_v61 = vmax.f32 %v3437_v29, %v3438_v10 }
 0x484   : > { %v3534_v25 = vmax.f32 %v3327_v49, %v3328_v7  ;;  %v2842_v23 = vpop.f32.mrf.mxu2  ;;  %v3720_v49 = vld [vmem:[#allocation2 + $0x3d0] sm:$0xff] }
 0x485   : > { %v3845_v56 = vmax.f32 %v3717_v11, %v3589_v61  ;;  %v2843_v22 = vadd.f32 %v2842_v23, %v2075_v17  ;;  %v3665_v61 = vld [vmem:[#allocation2 + $0x208] sm:$0xff] }
 0x486   : > { %v3790_v55 = vmax.f32 %v3662_v60, %v3534_v25  ;;  %v3171_v45 = vpop.f32.mrf.mxu3  ;;  %v2705_v46 = vpop.f32.mrf.mxu0 }
 0x487   : > { %3973 = vst [vmem:[#allocation2 + $0xf0] sm:$0xff] %v3845_v56  ;;  %v3172_v21 = vadd.f32 %v3171_v45, %v2075_v17  ;;  %v2706_v13 = vadd.f32 %v2705_v46, %v13667_v1  ;;  %v3034_v42 = vpop.f32.mrf.mxu1  ;;  %v3439_v41 = vmax.f32 %v2843_v22, 0.0  ;;  %v2090_v25 = vpop.permute.xlu2 %2089 }
 0x488   : > { %3918 = vst [vmem:[#allocation2 + $0x240] sm:$0xff] %v3790_v55  ;;  %v3035_v30 = vadd.f32 %v3034_v42, %v13667_v1 }
 0x489   : > { %v3440_v51 = vmax.f32 %v3172_v21, 0.0  ;;  %v3329_v57 = vmax.f32 %v2706_v13, 0.0  ;;  %2884 = vmatmul.bf16.gmra.mxu2 %v10289_v0 }
 0x48a   : > { %v3330_v5 = vmax.f32 %v3035_v30, 0.0 }
 0x48b   : > { %v3590_v38 = vmax.f32 %v3439_v41, %v3440_v51  ;;  %3213 = vmatmul.bf16.gmra.mxu3 %v10289_v0  ;;  %v13670_v0 = vld [vmem:[#allocation19_spill] sm:$0xff]  ;;  %v3721_v51 = vld [vmem:[#allocation2 + $0x250] sm:$0xff] }
 0x48c   : > { %v3535_v20 = vmax.f32 %v3329_v57, %v3330_v5  ;;  %v2845_v58 = vpop.f32.mrf.mxu2  ;;  %v3666_v5 = vld [vmem:[#allocation2 + $0xd0] sm:$0xff] }
 0x48d   : > { %v3846_v62 = vmax.f32 %v3718_v40, %v3590_v38  ;;  %v2846_v47 = vadd.f32 %v2845_v58, %v2080_v26 }
 0x48e   : > { %v3791_v14 = vmax.f32 %v3663_v31, %v3535_v20  ;;  %v3174_v8 = vpop.f32.mrf.mxu3  ;;  %v2707_v6 = vpop.f32.mrf.mxu0 }
 0x48f   : > { %3974 = vst [vmem:[#allocation2 + $0x180] sm:$0xff] %v3846_v62  ;;  %v3175_v34 = vadd.f32 %v3174_v8, %v2080_v26  ;;  %v2708_v12 = vadd.f32 %v2707_v6, %v13668_v37  ;;  %v3036_v15 = vpop.f32.mrf.mxu1  ;;  %v3441_v52 = vmax.f32 %v2846_v47, 0.0  ;;  %v2095_v31 = vpop.permute.xlu0 %2094  ;;  %v10291_v8 = vld [vmem:[%s13617_s5 + $0x1f8] sm:$0xff] }
 0x490   : > { %3919 = vst [vmem:[#allocation2 + $0x90] sm:$0xff] %v3791_v14  ;;  %v3037_v54 = vadd.f32 %v3036_v15, %v13668_v37 }
 0x491   : > { %v3442_v27 = vmax.f32 %v3175_v34, 0.0  ;;  %v3331_v43 = vmax.f32 %v2708_v12, 0.0  ;;  %v13671_v34 = vld [vmem:[#allocation21_spill] sm:$0xff] }
 0x492   : > { %v3332_v28 = vmax.f32 %v3037_v54, 0.0 }
 0x493   : > { %v3591_v59 = vmax.f32 %v3441_v52, %v3442_v27 }
 0x494   : > { %v3536_v32 = vmax.f32 %v3331_v43, %v3332_v28  ;;  %v2847_v19 = vpop.f32.mrf.mxu2  ;;  %v3722_v43 = vld [vmem:[#allocation2 + $0x378] sm:$0xff] }
 0x495   : > { %v3847_v33 = vmax.f32 %v3719_v35, %v3591_v59  ;;  %v2848_v44 = vadd.f32 %v2847_v19, %v2085_v9  ;;  %v3667_v59 = vld [vmem:[#allocation2 + $0x88] sm:$0xff] }
 0x496   : > { %v3792_v63 = vmax.f32 %v3664_v18, %v3536_v32  ;;  %v3176_v48 = vpop.f32.mrf.mxu3  ;;  %v2710_v50 = vpop.f32.mrf.mxu0 }
 0x497   : > { %3975 = vst [vmem:[#allocation2 + $0x170] sm:$0xff] %v3847_v33  ;;  %v3177_v53 = vadd.f32 %v3176_v48, %v2085_v9  ;;  %v2711_v2 = vadd.f32 %v2710_v50, %v13669_v3  ;;  %v3039_v36 = vpop.f32.mrf.mxu1  ;;  %v3443_v39 = vmax.f32 %v2848_v44, 0.0  ;;  %v2100_v32 = vpop.permute.xlu1 %2099 }
 0x498   : > { %3920 = vst [vmem:[#allocation2 + $0x3a0] sm:$0xff] %v3792_v63  ;;  %v3040_v29 = vadd.f32 %v3039_v36, %v13669_v3 }
 0x499   : > { %v3444_v4 = vmax.f32 %v3177_v53, 0.0  ;;  %v3333_v10 = vmax.f32 %v2711_v2, 0.0  ;;  %2889 = vmatmul.bf16.gmra.mxu2 %v10290_v24 }
 0x49a   : > { %v3334_v11 = vmax.f32 %v3040_v29, 0.0  ;;  %v3723_v29 = vld [vmem:[#allocation2 + $0xb8] sm:$0xff] }
 0x49b   : > { %v3592_v7 = vmax.f32 %v3443_v39, %v3444_v4  ;;  %3218 = vmatmul.bf16.gmra.mxu3 %v10290_v24 }
 0x49c   : > { %v3537_v60 = vmax.f32 %v3333_v10, %v3334_v11  ;;  %v2850_v56 = vpop.f32.mrf.mxu2 }
 0x49d   : > { %v3848_v17 = vmax.f32 %v3720_v49, %v3592_v7  ;;  %v2851_v55 = vadd.f32 %v2850_v56, %v2090_v25  ;;  %v3668_v49 = vld [vmem:[#allocation2 + $0x2f0] sm:$0xff]  ;;  %v2105_v7 = vpop.permute.xlu2 %2104 }
 0x49e   : > { %v3793_v23 = vmax.f32 %v3665_v61, %v3537_v60  ;;  %v3179_v22 = vpop.f32.mrf.mxu3  ;;  %v2712_v45 = vpop.f32.mrf.mxu0 }
 0x49f   : > { %3976 = vst [vmem:[#allocation2 + $0x3d0] sm:$0xff] %v3848_v17  ;;  %v3180_v46 = vadd.f32 %v3179_v22, %v2090_v25  ;;  %v2713_v21 = vadd.f32 %v2712_v45, %v13670_v0  ;;  %v3041_v1 = vpop.f32.mrf.mxu1  ;;  %v3445_v13 = vmax.f32 %v2851_v55, 0.0  ;;  %v3724_v45 = vld [vmem:[#allocation2 + $0x38] sm:$0xff] }
 0x4a0   : > { %3921 = vst [vmem:[#allocation2 + $0x208] sm:$0xff] %v3793_v23  ;;  %v3042_v42 = vadd.f32 %v3041_v1, %v13670_v0 }
 0x4a1   : > { %v3446_v41 = vmax.f32 %v3180_v46, 0.0  ;;  %v3335_v30 = vmax.f32 %v2713_v21, 0.0  ;;  %v2110_v46 = vpop.permute.xlu0 %2109 }
 0x4a2   : > { %v3336_v57 = vmax.f32 %v3042_v42, 0.0 }
 0x4a3   : > { %v3593_v40 = vmax.f32 %v3445_v13, %v3446_v41 }
 0x4a4   : > { %v3538_v38 = vmax.f32 %v3335_v30, %v3336_v57  ;;  %v2852_v26 = vpop.f32.mrf.mxu2 }
 0x4a5   : > { %v3849_v20 = vmax.f32 %v3721_v51, %v3593_v40  ;;  %v2853_v58 = vadd.f32 %v2852_v26, %v2095_v31  ;;  %v3725_v51 = vld [vmem:[#allocation2 + $0x78] sm:$0xff]  ;;  %v2115_v40 = vpop.permute.xlu1 %2114 }
 0x4a6   : > { %v3794_v62 = vmax.f32 %v3666_v5, %v3538_v38  ;;  %v3181_v14 = vpop.f32.mrf.mxu3  ;;  %v2715_v47 = vpop.f32.mrf.mxu0 }
 0x4a7   : > { %3977 = vst [vmem:[#allocation2 + $0x250] sm:$0xff] %v3849_v20  ;;  %v3182_v6 = vadd.f32 %v3181_v14, %v2095_v31  ;;  %v2716_v37 = vadd.f32 %v2715_v47, %v13671_v34  ;;  %v3044_v12 = vpop.f32.mrf.mxu1  ;;  %v3447_v15 = vmax.f32 %v2853_v58, 0.0  ;;  %v3726_v14 = vld [vmem:[#allocation2 + $0x308] sm:$0xff] }
 0x4a8   : > { %3922 = vst [vmem:[#allocation2 + $0xd0] sm:$0xff] %v3794_v62  ;;  %v3045_v52 = vadd.f32 %v3044_v12, %v13671_v34 }
 0x4a9   : > { %v3448_v54 = vmax.f32 %v3182_v6, 0.0  ;;  %v3337_v27 = vmax.f32 %v2716_v37, 0.0  ;;  %2894 = vmatmul.bf16.gmra.mxu2 %v10291_v8 }
 0x4aa   : > { %v3338_v35 = vmax.f32 %v3045_v52, 0.0 }
 0x4ab   : > { %v3594_v28 = vmax.f32 %v3447_v15, %v3448_v54  ;;  %3223 = vmatmul.bf16.gmra.mxu3 %v10291_v8  ;;  %v2120_v8 = vpop.permute.xlu2 %2119 }
 0x4ac   : > { %v3539_v18 = vmax.f32 %v3337_v27, %v3338_v35  ;;  %v2855_v33 = vpop.f32.mrf.mxu2  ;;  %v3727_v27 = vld [vmem:[#allocation2 + $0x370] sm:$0xff]  ;;  %v2125_v35 = vpop.permute.xlu0 %2124 }
 0x4ad   : > { %v3850_v9 = vmax.f32 %v3722_v43, %v3594_v28  ;;  %v2856_v63 = vadd.f32 %v2855_v33, %v2100_v32 }
 0x4ae   : > { %v3795_v19 = vmax.f32 %v3667_v59, %v3539_v18  ;;  %v3184_v44 = vpop.f32.mrf.mxu3  ;;  %v2717_v48 = vpop.f32.mrf.mxu0 }
 0x4af   : > { %3978 = vst [vmem:[#allocation2 + $0x378] sm:$0xff] %v3850_v9  ;;  %v3185_v50 = vadd.f32 %v3184_v44, %v2100_v32  ;;  %v2718_v24 = vadd.f32 %v2717_v48, %v12003_v16  ;;  %v3046_v53 = vpop.f32.mrf.mxu1  ;;  %v3449_v3 = vmax.f32 %v2856_v63, 0.0  ;;  %v3728_v63 = vld [vmem:[#allocation2 + $0xc8] sm:$0xff]  ;;  %v2130_v48 = vpop.permute.xlu1 %2129 }
 0x4b0   : > { %3923 = vst [vmem:[#allocation2 + $0x88] sm:$0xff] %v3795_v19  ;;  %v3047_v2 = vadd.f32 %v3046_v53, %v12003_v16 }
 0x4b1   : > { %v3450_v36 = vmax.f32 %v3185_v50, 0.0  ;;  %v3339_v39 = vmax.f32 %v2718_v24, 0.0 }
 0x4b2   : > { %v3340_v4 = vmax.f32 %v3047_v2, 0.0 }
 0x4b3   : > { %v3595_v10 = vmax.f32 %v3449_v3, %v3450_v36 }
 0x4b4   : > { %v3540_v11 = vmax.f32 %v3339_v39, %v3340_v4  ;;  %v2857_v60 = vpop.f32.mrf.mxu2 }
 0x4b5   : > { %v3851_v61 = vmax.f32 %v3723_v29, %v3595_v10  ;;  %v2858_v17 = vadd.f32 %v2857_v60, %v2105_v7  ;;  %v3729_v29 = vld [vmem:[#allocation2 + $0x278] sm:$0xff]  ;;  %v2135_v10 = vpop.permute.xlu2 %2134 }
 0x4b6   : > { %v3796_v25 = vmax.f32 %v3668_v49, %v3540_v11  ;;  %v3186_v56 = vpop.f32.mrf.mxu3 }
 0x4b7   : > { %3979 = vst [vmem:[#allocation2 + $0xb8] sm:$0xff] %v3851_v61  ;;  %v3187_v23 = vadd.f32 %v3186_v56, %v2105_v7  ;;  %v3451_v55 = vmax.f32 %v2858_v17, 0.0  ;;  %v3730_v56 = vld [vmem:[#allocation2 + $0x360] sm:$0xff] }
 0x4b8   : > { %3924 = vst [vmem:[#allocation2 + $0x2f0] sm:$0xff] %v3796_v25 }
 0x4b9   : > { %v3452_v22 = vmax.f32 %v3187_v23, 0.0 }
 0x4bb   : > { %v3596_v16 = vmax.f32 %v3451_v55, %v3452_v22  ;;  %v2140_v55 = vpop.permute.xlu0 %2139 }
 0x4bc   : > { %v2860_v21 = vpop.f32.mrf.mxu2 }
 0x4bd   : > { %v3852_v0 = vmax.f32 %v3724_v45, %v3596_v16  ;;  %v2861_v1 = vadd.f32 %v2860_v21, %v2110_v46 }
 0x4be   : > { %v3189_v13 = vpop.f32.mrf.mxu3 }
 0x4bf   : > { %3980 = vst [vmem:[#allocation2 + $0x38] sm:$0xff] %v3852_v0  ;;  %v3190_v42 = vadd.f32 %v3189_v13, %v2110_v46  ;;  %v3453_v41 = vmax.f32 %v2861_v1, 0.0  ;;  %v3731_v13 = vld [vmem:[#allocation2 + $0x228] sm:$0xff] }
 0x4c1   : > { %v3454_v30 = vmax.f32 %v3190_v42, 0.0 }
 0x4c3   : > { %v3597_v57 = vmax.f32 %v3453_v41, %v3454_v30  ;;  %v2145_v41 = vpop.permute.xlu1 %2144 }
 0x4c4   : > { %v2862_v38 = vpop.f32.mrf.mxu2 }
 0x4c5   : > { %v3853_v5 = vmax.f32 %v3725_v51, %v3597_v57  ;;  %v2863_v31 = vadd.f32 %v2862_v38, %v2115_v40 }
 0x4c6   : > { %v3191_v20 = vpop.f32.mrf.mxu3 }
 0x4c7   : > { %3981 = vst [vmem:[#allocation2 + $0x78] sm:$0xff] %v3853_v5  ;;  %v3192_v26 = vadd.f32 %v3191_v20, %v2115_v40  ;;  %v3455_v62 = vmax.f32 %v2863_v31, 0.0  ;;  %v3732_v20 = vld [vmem:[#allocation2 + $0x348] sm:$0xff] }
 0x4c9   : > { %v3456_v58 = vmax.f32 %v3192_v26, 0.0 }
 0x4cb   : > { %v3598_v47 = vmax.f32 %v3455_v62, %v3456_v58  ;;  %v2150_v62 = vpop.permute.xlu2 %2149 }
 0x4cc   : > { %v2865_v34 = vpop.f32.mrf.mxu2 }
 0x4cd   : > { %v3854_v6 = vmax.f32 %v3726_v14, %v3598_v47  ;;  %v2866_v37 = vadd.f32 %v2865_v34, %v2120_v8 }
 0x4ce   : > { %v3194_v12 = vpop.f32.mrf.mxu3 }
 0x4cf   : > { %3982 = vst [vmem:[#allocation2 + $0x308] sm:$0xff] %v3854_v6  ;;  %v3195_v15 = vadd.f32 %v3194_v12, %v2120_v8  ;;  %v3457_v52 = vmax.f32 %v2866_v37, 0.0  ;;  %v3733_v12 = vld [vmem:[#allocation2 + $0x148] sm:$0xff] }
 0x4d1   : > { %v3458_v54 = vmax.f32 %v3195_v15, 0.0 }
 0x4d3   : > { %v3599_v43 = vmax.f32 %v3457_v52, %v3458_v54  ;;  %v2155_v52 = vpop.permute.xlu0 %2154 }
 0x4d4   : > { %v2867_v59 = vpop.f32.mrf.mxu2 }
 0x4d5   : > { %v3855_v28 = vmax.f32 %v3727_v27, %v3599_v43  ;;  %v2868_v18 = vadd.f32 %v2867_v59, %v2125_v35 }
 0x4d6   : > { %v3196_v32 = vpop.f32.mrf.mxu3 }
 0x4d7   : > { %3983 = vst [vmem:[#allocation2 + $0x370] sm:$0xff] %v3855_v28  ;;  %v3197_v9 = vadd.f32 %v3196_v32, %v2125_v35  ;;  %v3459_v33 = vmax.f32 %v2868_v18, 0.0  ;;  %v3734_v32 = vld [vmem:[#allocation2 + $0xf8] sm:$0xff] }
 0x4d9   : > { %v3460_v19 = vmax.f32 %v3197_v9, 0.0 }
 0x4db   : > { %v3600_v44 = vmax.f32 %v3459_v33, %v3460_v19  ;;  %v2160_v33 = vpop.permute.xlu1 %2159 }
 0x4dc   : > { %v2870_v24 = vpop.f32.mrf.mxu2 }
 0x4dd   : > { %v3856_v50 = vmax.f32 %v3728_v63, %v3600_v44  ;;  %v2871_v53 = vadd.f32 %v2870_v24, %v2130_v48 }
 0x4de   : > { %v3199_v3 = vpop.f32.mrf.mxu3 }
 0x4df   : > { %3984 = vst [vmem:[#allocation2 + $0xc8] sm:$0xff] %v3856_v50  ;;  %v3200_v2 = vadd.f32 %v3199_v3, %v2130_v48  ;;  %v3461_v36 = vmax.f32 %v2871_v53, 0.0  ;;  %v3735_v3 = vld [vmem:[#allocation2 + $0x68] sm:$0xff] }
 0x4e1   : > { %v3462_v39 = vmax.f32 %v3200_v2, 0.0 }
 0x4e3   : > { %v3601_v4 = vmax.f32 %v3461_v36, %v3462_v39  ;;  %v2165_v36 = vpop.permute.xlu2 %2164 }
 0x4e4   : > { %v2872_v11 = vpop.f32.mrf.mxu2 }
 0x4e5   : > { %v3857_v49 = vmax.f32 %v3729_v29, %v3601_v4  ;;  %v2873_v7 = vadd.f32 %v2872_v11, %v2135_v10 }
 0x4e6   : > { %v3201_v61 = vpop.f32.mrf.mxu3 }
 0x4e7   : > { %3985 = vst [vmem:[#allocation2 + $0x278] sm:$0xff] %v3857_v49  ;;  %v3202_v60 = vadd.f32 %v3201_v61, %v2135_v10  ;;  %v3463_v25 = vmax.f32 %v2873_v7, 0.0  ;;  %v3736_v61 = vld [vmem:[#allocation2] sm:$0xff] }
 0x4e9   : > { %v3464_v17 = vmax.f32 %v3202_v60, 0.0 }
 0x4eb   : > { %v3602_v23 = vmax.f32 %v3463_v25, %v3464_v17  ;;  %v2170_v25 = vpop.permute.xlu0 %2169 }
 0x4ec   : > { %v2875_v45 = vpop.f32.mrf.mxu2 }
 0x4ed   : > { %v3858_v22 = vmax.f32 %v3730_v56, %v3602_v23  ;;  %v2876_v16 = vadd.f32 %v2875_v45, %v2140_v55 }
 0x4ee   : > { %v3204_v46 = vpop.f32.mrf.mxu3 }
 0x4ef   : > { %3986 = vst [vmem:[#allocation2 + $0x360] sm:$0xff] %v3858_v22  ;;  %v3205_v0 = vadd.f32 %v3204_v46, %v2140_v55  ;;  %v3465_v21 = vmax.f32 %v2876_v16, 0.0  ;;  %v3737_v46 = vld [vmem:[#allocation2 + $0x298] sm:$0xff] }
 0x4f1   : > { %v3466_v1 = vmax.f32 %v3205_v0, 0.0 }
 0x4f3   : > { %v3603_v42 = vmax.f32 %v3465_v21, %v3466_v1  ;;  %v2175_v21 = vpop.permute.xlu1 %2174 }
 0x4f4   : > { %v2877_v51 = vpop.f32.mrf.mxu2 }
 0x4f5   : > { %v3859_v30 = vmax.f32 %v3731_v13, %v3603_v42  ;;  %v2878_v57 = vadd.f32 %v2877_v51, %v2145_v41 }
 0x4f6   : > { %v3206_v40 = vpop.f32.mrf.mxu3 }
 0x4f7   : > { %3987 = vst [vmem:[#allocation2 + $0x228] sm:$0xff] %v3859_v30  ;;  %v3207_v5 = vadd.f32 %v3206_v40, %v2145_v41  ;;  %v3467_v38 = vmax.f32 %v2878_v57, 0.0  ;;  %v3738_v40 = vld [vmem:[#allocation2 + $0x270] sm:$0xff] }
 0x4f9   : > { %v3468_v31 = vmax.f32 %v3207_v5, 0.0 }
 0x4fb   : > { %v3604_v26 = vmax.f32 %v3467_v38, %v3468_v31  ;;  %v2180_v38 = vpop.permute.xlu2 %2179 }
 0x4fc   : > { %v2880_v14 = vpop.f32.mrf.mxu2 }
 0x4fd   : > { %v3860_v58 = vmax.f32 %v3732_v20, %v3604_v26  ;;  %v2881_v47 = vadd.f32 %v2880_v14, %v2150_v62 }
 0x4fe   : > { %v3209_v8 = vpop.f32.mrf.mxu3 }
 0x4ff   : > { %3988 = vst [vmem:[#allocation2 + $0x348] sm:$0xff] %v3860_v58  ;;  %v3210_v6 = vadd.f32 %v3209_v8, %v2150_v62  ;;  %v3469_v34 = vmax.f32 %v2881_v47, 0.0  ;;  %v3739_v8 = vld [vmem:[#allocation2 + $0x310] sm:$0xff] }
 0x501   : > { %v3470_v37 = vmax.f32 %v3210_v6, 0.0 }
 0x503   : > { %v3605_v15 = vmax.f32 %v3469_v34, %v3470_v37  ;;  %v2185_v34 = vpop.permute.xlu0 %2184 }
 0x504   : > { %v2882_v27 = vpop.f32.mrf.mxu2 }
 0x505   : > { %v3861_v54 = vmax.f32 %v3733_v12, %v3605_v15  ;;  %v2883_v43 = vadd.f32 %v2882_v27, %v2155_v52 }
 0x506   : > { %v3211_v35 = vpop.f32.mrf.mxu3 }
 0x507   : > { %3989 = vst [vmem:[#allocation2 + $0x148] sm:$0xff] %v3861_v54  ;;  %v3212_v28 = vadd.f32 %v3211_v35, %v2155_v52  ;;  %v3471_v59 = vmax.f32 %v2883_v43, 0.0  ;;  %v3740_v35 = vld [vmem:[#allocation2 + $0x190] sm:$0xff] }
 0x509   : > { %v3472_v18 = vmax.f32 %v3212_v28, 0.0 }
 0x50b   : > { %v3606_v9 = vmax.f32 %v3471_v59, %v3472_v18 }
 0x50c   : > { %v2885_v63 = vpop.f32.mrf.mxu2 }
 0x50d   : > { %v3862_v19 = vmax.f32 %v3734_v32, %v3606_v9  ;;  %v2886_v44 = vadd.f32 %v2885_v63, %v2160_v33 }
 0x50e   : > { %v3214_v48 = vpop.f32.mrf.mxu3 }
 0x50f   : > { %3990 = vst [vmem:[#allocation2 + $0xf8] sm:$0xff] %v3862_v19  ;;  %v3215_v50 = vadd.f32 %v3214_v48, %v2160_v33  ;;  %v3473_v24 = vmax.f32 %v2886_v44, 0.0 }
 0x511   : > { %v3474_v53 = vmax.f32 %v3215_v50, 0.0 }
 0x513   : > { %v3607_v2 = vmax.f32 %v3473_v24, %v3474_v53 }
 0x514   : > { %v2887_v29 = vpop.f32.mrf.mxu2 }
 0x515   : > { %v3863_v39 = vmax.f32 %v3735_v3, %v3607_v2  ;;  %v2888_v4 = vadd.f32 %v2887_v29, %v2165_v36 }
 0x516   : > { %v3216_v10 = vpop.f32.mrf.mxu3 }
 0x517   : > { %3991 = vst [vmem:[#allocation2 + $0x68] sm:$0xff] %v3863_v39  ;;  %v3217_v49 = vadd.f32 %v3216_v10, %v2165_v36  ;;  %v3475_v11 = vmax.f32 %v2888_v4, 0.0 }
 0x519   : > { %v3476_v7 = vmax.f32 %v3217_v49, 0.0 }
 0x51b   : > { %v3608_v60 = vmax.f32 %v3475_v11, %v3476_v7 }
 0x51c   : > { %v2890_v56 = vpop.f32.mrf.mxu2 }
 0x51d   : > { %v3864_v17 = vmax.f32 %v3736_v61, %v3608_v60  ;;  %v2891_v23 = vadd.f32 %v2890_v56, %v2170_v25 }
 0x51e   : > { %v3219_v55 = vpop.f32.mrf.mxu3 }
 0x51f   : > { %3992 = vst [vmem:[#allocation2] sm:$0xff] %v3864_v17  ;;  %v3220_v22 = vadd.f32 %v3219_v55, %v2170_v25  ;;  %v3477_v45 = vmax.f32 %v2891_v23, 0.0 }
 0x521   : > { %v3478_v16 = vmax.f32 %v3220_v22, 0.0 }
 0x523   : > { %v3609_v0 = vmax.f32 %v3477_v45, %v3478_v16 }
 0x524   : > { %v2892_v13 = vpop.f32.mrf.mxu2 }
 0x525   : > { %v3865_v1 = vmax.f32 %v3737_v46, %v3609_v0  ;;  %v2893_v42 = vadd.f32 %v2892_v13, %v2175_v21 }
 0x526   : > { %v3221_v41 = vpop.f32.mrf.mxu3 }
 0x527   : > { %3993 = vst [vmem:[#allocation2 + $0x298] sm:$0xff] %v3865_v1  ;;  %v3222_v30 = vadd.f32 %v3221_v41, %v2175_v21  ;;  %v3479_v51 = vmax.f32 %v2893_v42, 0.0 }
 0x529   : > { %v3480_v57 = vmax.f32 %v3222_v30, 0.0 }
 0x52b   : > { %v3610_v5 = vmax.f32 %v3479_v51, %v3480_v57 }
 0x52c   : > { %v2895_v20 = vpop.f32.mrf.mxu2 }
 0x52d   : > { %v3866_v31 = vmax.f32 %v3738_v40, %v3610_v5  ;;  %v2896_v26 = vadd.f32 %v2895_v20, %v2180_v38 }
 0x52e   : > { %v3224_v62 = vpop.f32.mrf.mxu3 }
 0x52f   : > { %3994 = vst [vmem:[#allocation2 + $0x270] sm:$0xff] %v3866_v31  ;;  %v3225_v58 = vadd.f32 %v3224_v62, %v2180_v38  ;;  %v3481_v14 = vmax.f32 %v2896_v26, 0.0 }
 0x531   : > { %v3482_v47 = vmax.f32 %v3225_v58, 0.0 }
 0x533   : > { %v3611_v6 = vmax.f32 %v3481_v14, %v3482_v47 }
 0x534   : > { %v2897_v12 = vpop.f32.mrf.mxu2 }
 0x535   : > { %v3867_v37 = vmax.f32 %v3739_v8, %v3611_v6  ;;  %v2898_v15 = vadd.f32 %v2897_v12, %v2185_v34 }
 0x536   : > { %v3226_v52 = vpop.f32.mrf.mxu3 }
 0x537   : > { %3995 = vst [vmem:[#allocation2 + $0x310] sm:$0xff] %v3867_v37  ;;  %v3227_v54 = vadd.f32 %v3226_v52, %v2185_v34  ;;  %v3483_v27 = vmax.f32 %v2898_v15, 0.0 }
 0x539   : > { %v3484_v43 = vmax.f32 %v3227_v54, 0.0 }
 0x53b   : > { %v3612_v28 = vmax.f32 %v3483_v27, %v3484_v43  ;;  %4000 = sbr.rel (%p8927_p11) target bundleno = 3371 (0xd2b), region = 84 }
 0x53d   : > { %v3868_v59 = vmax.f32 %v3740_v35, %v3612_v28 }
 0x53f   : > { %3996 = vst [vmem:[#allocation2 + $0x190] sm:$0xff] %v3868_v59 }
 0x540   : > { %v4063_v18 = vld [vmem:[#allocation2 + $0x140] sm:$0xff]  ;;  %v4047_v32 = vld [vmem:[#allocation2 + $0x1f0] sm:$0xff]  ;;  %v4015_v9 = vld [vmem:[#allocation2 + $0x108] sm:$0xff]  ;;  %vm4385_vm1 = vcmask 7168   ;;  %vm8489_vm2 = vcmask 0  }
 0x541   : > { %4253 = vmax.xlane.f32.xlu2 %v4063_v18  ;;  %4221 = vmax.xlane.f32.xlu0 %v4047_v32  ;;  %v4064_v33 = vld [vmem:[#allocation2 + $0x2a8] sm:$0xff]  ;;  %v4048_v19 = vld [vmem:[#allocation2 + $0x10] sm:$0xff]  ;;  %v4016_v63 = vld [vmem:[#allocation2 + $0x60] sm:$0xff] }
 0x542   : > { %4157 = vmax.xlane.f32.xlu1 %v4015_v9  ;;  %v4045_v44 = vld [vmem:[#allocation2 + $0xb0] sm:$0xff]  ;;  %v4031_v48 = vld [vmem:[#allocation2 + $0x1c0] sm:$0xff]  ;;  %v4061_v2 = vld [vmem:[#allocation2 + $0x1d8] sm:$0xff] }
 0x543   : > { %v4032_v50 = vld [vmem:[#allocation2 + $0x280] sm:$0xff]  ;;  %v4014_v53 = vld [vmem:[#allocation2 + $0x150] sm:$0xff]  ;;  %v4029_v36 = vld [vmem:[#allocation2 + $0x138] sm:$0xff] }
 0x544   : > { %v4046_v24 = vld [vmem:[#allocation2 + $0x1e0] sm:$0xff]  ;;  %v4062_v39 = vld [vmem:[#allocation2 + $0x30] sm:$0xff]  ;;  %v4011_v11 = vld [vmem:[#allocation2 + $0x118] sm:$0xff] }
 0x545   : > { %v4013_v3 = vld [vmem:[#allocation2 + $0x320] sm:$0xff]  ;;  %v4059_v49 = vld [vmem:[#allocation2 + $0x350] sm:$0xff]  ;;  %v4012_v7 = vld [vmem:[#allocation2 + $0x98] sm:$0xff] }
 0x546   : > { %v4030_v29 = vld [vmem:[#allocation2 + $0xc0] sm:$0xff]  ;;  %v4028_v61 = vld [vmem:[#allocation2 + $0x28] sm:$0xff]  ;;  %v4027_v25 = vld [vmem:[#allocation2 + $0x290] sm:$0xff] }
 0x547   : > { %v4044_v4 = vld [vmem:[#allocation2 + $0x2c0] sm:$0xff]  ;;  %v4060_v60 = vld [vmem:[#allocation2 + $0x188] sm:$0xff]  ;;  %v4042_v23 = vld [vmem:[#allocation2 + $0x3f0] sm:$0xff] }
 0x548   : > { %v4043_v10 = vld [vmem:[#allocation2 + $0xa0] sm:$0xff]  ;;  %v4010_v55 = vld [vmem:[#allocation2 + $0x110] sm:$0xff]  ;;  %v4058_v22 = vld [vmem:[#allocation2 + $0x268] sm:$0xff] }
 0x549   : > { %4255 = vmax.xlane.f32.xlu2 %v4064_v33  ;;  %4223 = vmax.xlane.f32.xlu0 %v4048_v19  ;;  %v4041_v17 = vld [vmem:[#allocation2 + $0x2a0] sm:$0xff]  ;;  %v4057_v45 = vld [vmem:[#allocation2 + $0x358] sm:$0xff]  ;;  %v4025_v16 = vld [vmem:[#allocation2 + $0x3e8] sm:$0xff] }
 0x54a   : > { %4159 = vmax.xlane.f32.xlu1 %v4016_v63  ;;  %v4009_v56 = vld [vmem:[#allocation2 + $0x380] sm:$0xff]  ;;  %v4039_v46 = vld [vmem:[#allocation2 + $0x8] sm:$0xff]  ;;  %v4026_v0 = vld [vmem:[#allocation2 + $0x2f8] sm:$0xff] }
 0x54b   : > { %v4040_v21 = vld [vmem:[#allocation2 + $0x128] sm:$0xff]  ;;  %v4007_v13 = vld [vmem:[#allocation2 + $0x330] sm:$0xff]  ;;  %v4023_v41 = vld [vmem:[#allocation2 + $0x1b8] sm:$0xff] }
 0x54c   : > { %v4008_v1 = vld [vmem:[#allocation2 + $0x48] sm:$0xff]  ;;  %v4056_v30 = vld [vmem:[#allocation2 + $0x2f0] sm:$0xff]  ;;  %v4038_v57 = vld [vmem:[#allocation2 + $0x3f8] sm:$0xff] }
 0x54d   : > { %v4055_v42 = vld [vmem:[#allocation2 + $0x88] sm:$0xff]  ;;  %v4037_v40 = vld [vmem:[#allocation2 + $0x218] sm:$0xff]  ;;  %v4005_v38 = vld [vmem:[#allocation2 + $0x50] sm:$0xff] }
 0x54e   : > { %v4024_v51 = vld [vmem:[#allocation2 + $0x168] sm:$0xff]  ;;  %v4054_v14 = vld [vmem:[#allocation2 + $0xd0] sm:$0xff]  ;;  %v4021_v47 = vld [vmem:[#allocation2 + $0x80] sm:$0xff] }
 0x54f   : > { %v4053_v5 = vld [vmem:[#allocation2 + $0x208] sm:$0xff]  ;;  %v4035_v52 = vld [vmem:[#allocation2 + $0x158] sm:$0xff]  ;;  %v4036_v27 = vld [vmem:[#allocation2 + $0x3e0] sm:$0xff] }
 0x550   : > { %v4006_v31 = vld [vmem:[#allocation2 + $0x368] sm:$0xff]  ;;  %v4003_v54 = vld [vmem:[#allocation2 + $0xd8] sm:$0xff]  ;;  %v4052_v32 = vld [vmem:[#allocation2 + $0x3a0] sm:$0xff] }
 0x551   : > { %4217 = vmax.xlane.f32.xlu2 %v4045_v44  ;;  %4189 = vmax.xlane.f32.xlu0 %v4031_v48  ;;  %v4022_v58 = vld [vmem:[#allocation2 + $0x1a8] sm:$0xff]  ;;  %v4004_v18 = vld [vmem:[#allocation2 + $0x18] sm:$0xff]  ;;  %v4051_v9 = vld [vmem:[#allocation2 + $0x90] sm:$0xff] }
 0x552   : > { %4191 = vmax.xlane.f32.xlu1 %v4032_v50  ;;  %v4019_v48 = vld [vmem:[#allocation2 + $0x338] sm:$0xff]  ;;  %v4033_v50 = vld [vmem:[#allocation2 + $0x100] sm:$0xff] }
 0x559   : > { %4219 = vmax.xlane.f32.xlu0 %v4046_v24  ;;  %4155 = vmax.xlane.f32.xlu2 %v4014_v53  ;;  %v4020_v53 = vld [vmem:[#allocation2 + $0x340] sm:$0xff] }
 0x55a   : > { %4153 = vmax.xlane.f32.xlu1 %v4013_v3 }
 0x561   : > { %4249 = vmax.xlane.f32.xlu0 %v4061_v2  ;;  %4185 = vmax.xlane.f32.xlu2 %v4029_v36 }
 0x562   : > { %4251 = vmax.xlane.f32.xlu1 %v4062_v39 }
 0x569   : > { %4187 = vmax.xlane.f32.xlu0 %v4030_v29  ;;  %4215 = vmax.xlane.f32.xlu2 %v4044_v4  ;;  %v4034_v29 = vld [vmem:[#allocation2 + $0x3c0] sm:$0xff]  ;;  %v4002_v4 = vld [vmem:[#allocation2 + $0x3b0] sm:$0xff] }
 0x56a   : > { %4213 = vmax.xlane.f32.xlu1 %v4043_v10  ;;  %v4001_v10 = vld [vmem:[#allocation2 + $0x2b0] sm:$0xff] }
 0x571   : > { %4245 = vmax.xlane.f32.xlu2 %v4059_v49  ;;  %4149 = vmax.xlane.f32.xlu0 %v4011_v11 }
 0x572   : > { %4151 = vmax.xlane.f32.xlu1 %v4012_v7 }
 0x579   : > { %4183 = vmax.xlane.f32.xlu2 %v4028_v61  ;;  %4247 = vmax.xlane.f32.xlu0 %v4060_v60  ;;  %v4049_v60 = vld [vmem:[#allocation2 + $0x230] sm:$0xff] }
 0x57a   : > { %4181 = vmax.xlane.f32.xlu1 %v4027_v25 }
 0x581   : > { %4209 = vmax.xlane.f32.xlu0 %v4041_v17  ;;  %4145 = vmax.xlane.f32.xlu2 %v4009_v56  ;;  %v4017_v17 = vld [vmem:[#allocation2 + $0x2e0] sm:$0xff] }
 0x582   : > { %4211 = vmax.xlane.f32.xlu1 %v4042_v23  ;;  %v4050_v56 = vld [vmem:[#allocation2 + $0x240] sm:$0xff] }
 0x589   : > { %4147 = vmax.xlane.f32.xlu0 %v4010_v55  ;;  %4243 = vmax.xlane.f32.xlu2 %v4058_v22 }
 0x58a   : > { %4241 = vmax.xlane.f32.xlu1 %v4057_v45 }
 0x591   : > { %4177 = vmax.xlane.f32.xlu0 %v4025_v16  ;;  %4205 = vmax.xlane.f32.xlu2 %v4039_v46  ;;  %v4018_v16 = vld [vmem:[#allocation2 + $0x388] sm:$0xff] }
 0x592   : > { %4179 = vmax.xlane.f32.xlu1 %v4026_v0 }
 0x599   : > { %4207 = vmax.xlane.f32.xlu0 %v4040_v21  ;;  %4143 = vmax.xlane.f32.xlu2 %v4008_v1 }
 0x59a   : > { %4141 = vmax.xlane.f32.xlu1 %v4007_v13 }
 0x5a1   : > { %4237 = vmax.xlane.f32.xlu0 %v4055_v42  ;;  %4173 = vmax.xlane.f32.xlu2 %v4023_v41 }
 0x5a2   : > { %4239 = vmax.xlane.f32.xlu1 %v4056_v30 }
 0x5a9   : > { %4175 = vmax.xlane.f32.xlu0 %v4024_v51  ;;  %4203 = vmax.xlane.f32.xlu2 %v4038_v57 }
 0x5aa   : > { %4201 = vmax.xlane.f32.xlu1 %v4037_v40 }
 0x5b1   : > { %4233 = vmax.xlane.f32.xlu2 %v4053_v5  ;;  %4137 = vmax.xlane.f32.xlu0 %v4005_v38 }
 0x5b2   : > { %4139 = vmax.xlane.f32.xlu1 %v4006_v31 }
 0x5b4   : > { %v4254_v20 = vpop.xlane.xlu2 %4253  ;;  %v4222_v26 = vpop.xlane.xlu0 %4221 }
 0x5b5   : > { %4448 = vst.msk [vmem:[%s11007_s20 + $0x1f0] sm:$0xff] %vm4385_vm1, %v4254_v20  ;;  %v4158_v62 = vpop.xlane.xlu1 %4157 }
 0x5b6   : > { %4432 = vst.msk [vmem:[%s11007_s20 + $0x170] sm:$0xff] %vm4385_vm1, %v4222_v26 }
 0x5b7   : > { %4400 = vst.msk [vmem:[%s11007_s20 + $0x70] sm:$0xff] %vm4385_vm1, %v4158_v62 }
 0x5b9   : > { %4171 = vmax.xlane.f32.xlu2 %v4022_v58  ;;  %4235 = vmax.xlane.f32.xlu0 %v4054_v14 }
 0x5ba   : > { %4169 = vmax.xlane.f32.xlu1 %v4021_v47 }
 0x5bc   : > { %v4256_v8 = vpop.xlane.xlu2 %4255  ;;  %v4224_v6 = vpop.xlane.xlu0 %4223 }
 0x5bd   : > { %4449 = vst.msk [vmem:[%s11007_s20 + $0x1f8] sm:$0xff] %vm4385_vm1, %v4256_v8  ;;  %v4160_v34 = vpop.xlane.xlu1 %4159  ;;  %v4537_v37 = vpack.c.bf16 %v4224_v6, %v4222_v26  ;;  %v4545_v12 = vpack.c.bf16 %v4256_v8, %v4254_v20 }
 0x5be   : > { %4433 = vst.msk [vmem:[%s11007_s20 + $0x178] sm:$0xff] %vm4385_vm1, %v4224_v6  ;;  %v4521_v15 = vpack.c.bf16 %v4160_v34, %v4158_v62 }
 0x5bf   : > { %4401 = vst.msk [vmem:[%s11007_s20 + $0x78] sm:$0xff] %vm4385_vm1, %v4160_v34  ;;  %6516 = vmatpush.bf16.msra.mxu2 %v4537_v37  ;;  %6685 = vmatpush.bf16.msra.mxu3 %v4545_v12 }
 0x5c0   : > { %6178 = vmatpush.bf16.msra.mxu0 %v4521_v15 }
 0x5c1   : > { %4197 = vmax.xlane.f32.xlu0 %v4035_v52  ;;  %4133 = vmax.xlane.f32.xlu2 %v4003_v54 }
 0x5c2   : > { %4199 = vmax.xlane.f32.xlu1 %v4036_v27 }
 0x5c4   : > { %v4218_v43 = vpop.xlane.xlu2 %4217  ;;  %v4190_v35 = vpop.xlane.xlu0 %4189 }
 0x5c5   : > { %4430 = vst.msk [vmem:[%s11007_s20 + $0x160] sm:$0xff] %vm4385_vm1, %v4218_v43  ;;  %v4192_v28 = vpop.xlane.xlu1 %4191 }
 0x5c6   : > { %4416 = vst.msk [vmem:[%s11007_s20 + $0xf0] sm:$0xff] %vm4385_vm1, %v4190_v35  ;;  %v4529_v59 = vpack.c.bf16 %v4192_v28, %v4190_v35 }
 0x5c7   : > { %4417 = vst.msk [vmem:[%s11007_s20 + $0xf8] sm:$0xff] %vm4385_vm1, %v4192_v28 }
 0x5c8   : > { %6347 = vmatpush.bf16.msra.mxu1 %v4529_v59 }
 0x5c9   : > { %4135 = vmax.xlane.f32.xlu0 %v4004_v18  ;;  %4231 = vmax.xlane.f32.xlu2 %v4052_v32 }
 0x5ca   : > { %4229 = vmax.xlane.f32.xlu1 %v4051_v9 }
 0x5cc   : > { %v4220_v33 = vpop.xlane.xlu0 %4219  ;;  %v4156_v19 = vpop.xlane.xlu2 %4155 }
 0x5cd   : > { %4431 = vst.msk [vmem:[%s11007_s20 + $0x168] sm:$0xff] %vm4385_vm1, %v4220_v33  ;;  %v4154_v63 = vpop.xlane.xlu1 %4153  ;;  %v4536_v44 = vpack.c.bf16 %v4220_v33, %v4218_v43 }
 0x5ce   : > { %4399 = vst.msk [vmem:[%s11007_s20 + $0x68] sm:$0xff] %vm4385_vm1, %v4156_v19  ;;  %v4520_v24 = vpack.c.bf16 %v4156_v19, %v4154_v63 }
 0x5cf   : > { %4398 = vst.msk [vmem:[%s11007_s20 + $0x60] sm:$0xff] %vm4385_vm1, %v4154_v63  ;;  %6517 = vmatpush.bf16.msra.mxu2 %v4536_v44 }
 0x5d0   : > { %6179 = vmatpush.bf16.msra.mxu0 %v4520_v24 }
 0x5d1   : > { %4165 = vmax.xlane.f32.xlu0 %v4019_v48  ;;  %4193 = vmax.xlane.f32.xlu2 %v4033_v50 }
 0x5d2   : > { %4167 = vmax.xlane.f32.xlu1 %v4020_v53 }
 0x5d4   : > { %v4250_v3 = vpop.xlane.xlu0 %4249  ;;  %v4186_v2 = vpop.xlane.xlu2 %4185 }
 0x5d5   : > { %4446 = vst.msk [vmem:[%s11007_s20 + $0x1e0] sm:$0xff] %vm4385_vm1, %v4250_v3  ;;  %v4252_v36 = vpop.xlane.xlu1 %4251 }
 0x5d6   : > { %4414 = vst.msk [vmem:[%s11007_s20 + $0xe0] sm:$0xff] %vm4385_vm1, %v4186_v2  ;;  %v4544_v39 = vpack.c.bf16 %v4252_v36, %v4250_v3 }
 0x5d7   : > { %4447 = vst.msk [vmem:[%s11007_s20 + $0x1e8] sm:$0xff] %vm4385_vm1, %v4252_v36 }
 0x5d8   : > { %6686 = vmatpush.bf16.msra.mxu3 %v4544_v39 }
 0x5d9   : > { %4195 = vmax.xlane.f32.xlu0 %v4034_v29  ;;  %4131 = vmax.xlane.f32.xlu2 %v4002_v4 }
 0x5da   : > { %4129 = vmax.xlane.f32.xlu1 %v4001_v10 }
 0x5dc   : > { %v4188_v49 = vpop.xlane.xlu0 %4187  ;;  %v4216_v11 = vpop.xlane.xlu2 %4215 }
 0x5dd   : > { %4415 = vst.msk [vmem:[%s11007_s20 + $0xe8] sm:$0xff] %vm4385_vm1, %v4188_v49  ;;  %v4214_v7 = vpop.xlane.xlu1 %4213  ;;  %v4528_v61 = vpack.c.bf16 %v4188_v49, %v4186_v2 }
 0x5de   : > { %4429 = vst.msk [vmem:[%s11007_s20 + $0x158] sm:$0xff] %vm4385_vm1, %v4216_v11  ;;  %v4535_v25 = vpack.c.bf16 %v4216_v11, %v4214_v7 }
 0x5df   : > { %4428 = vst.msk [vmem:[%s11007_s20 + $0x150] sm:$0xff] %vm4385_vm1, %v4214_v7  ;;  %6348 = vmatpush.bf16.msra.mxu1 %v4528_v61  ;;  %v8938_v61 = vld [vmem:[#allocation3 + $0x8] sm:$0xf] }
 0x5e0   : > { %6518 = vmatpush.bf16.msra.mxu2 %v4535_v25 }
 0x5e1   : > { %4225 = vmax.xlane.f32.xlu0 %v4049_v60  ;;  %4161 = vmax.xlane.f32.xlu2 %v4017_v17  ;;  %v10297_v60 = vld [vmem:[#allocation3 + $0x24] sm:$0xf0] }
 0x5e2   : > { %4227 = vmax.xlane.f32.xlu1 %v4050_v56  ;;  %v8930_v56 = vld [vmem:[#allocation3] sm:$0xf] }
 0x5e4   : > { %v4246_v23 = vpop.xlane.xlu2 %4245  ;;  %v4150_v55 = vpop.xlane.xlu0 %4149 }
 0x5e5   : > { %4444 = vst.msk [vmem:[%s11007_s20 + $0x1d0] sm:$0xff] %vm4385_vm1, %v4246_v23  ;;  %v4152_v22 = vpop.xlane.xlu1 %4151 }
 0x5e6   : > { %4397 = vst.msk [vmem:[%s11007_s20 + $0x58] sm:$0xff] %vm4385_vm1, %v4152_v22  ;;  %v4519_v45 = vpack.c.bf16 %v4152_v22, %v4150_v55 }
 0x5e7   : > { %4396 = vst.msk [vmem:[%s11007_s20 + $0x50] sm:$0xff] %vm4385_vm1, %v4150_v55 }
 0x5e8   : > { %6180 = vmatpush.bf16.msra.mxu0 %v4519_v45 }
 0x5e9   : > { %4163 = vmax.xlane.f32.xlu0 %v4018_v16  ;;  %v8939_v16 = vor.u32 %v10297_v60, %v8938_v61  ;;  %v10325_v60 = vld [vmem:[#allocation3 + $0x10c] sm:$0xf] }
 0x5ec   : > { %v4184_v46 = vpop.xlane.xlu2 %4183  ;;  %v4248_v0 = vpop.xlane.xlu0 %4247 }
 0x5ed   : > { %4413 = vst.msk [vmem:[%s11007_s20 + $0xd8] sm:$0xff] %vm4385_vm1, %v4184_v46  ;;  %v4182_v21 = vpop.xlane.xlu1 %4181  ;;  %v4543_v1 = vpack.c.bf16 %v4248_v0, %v4246_v23  ;;  %v10296_v23 = vld [vmem:[#allocation3 + $0x1c] sm:$0xf0] }
 0x5ee   : > { %4412 = vst.msk [vmem:[%s11007_s20 + $0xd0] sm:$0xff] %vm4385_vm1, %v4182_v21  ;;  %v4527_v13 = vpack.c.bf16 %v4184_v46, %v4182_v21  ;;  %v8931_v46 = vor.u32 %v10296_v23, %v8930_v56  ;;  %v10293_v21 = vld [vmem:[#allocation3 + $0xc] sm:$0xf]  ;;  %v10324_v56 = vld [vmem:[#allocation3 + $0x104] sm:$0xf] }
 0x5ef   : > { %4445 = vst.msk [vmem:[%s11007_s20 + $0x1d8] sm:$0xff] %vm4385_vm1, %v4248_v0  ;;  %6687 = vmatpush.bf16.msra.mxu3 %v4543_v1  ;;  %v8940_v1 = vld [vmem:[#allocation3 + $0x28] sm:$0xf0]  ;;  %v9060_v23 = vld [vmem:[#allocation3 + $0x120] sm:$0xf0] }
 0x5f0   : > { %6349 = vmatpush.bf16.msra.mxu1 %v4527_v13 }
 0x5f4   : > { %v4210_v42 = vpop.xlane.xlu0 %4209  ;;  %v4146_v41 = vpop.xlane.xlu2 %4145 }
 0x5f5   : > { %v4212_v30 = vpop.xlane.xlu1 %4211  ;;  %4426 = vst.msk [vmem:[%s11007_s20 + $0x140] sm:$0xff] %vm4385_vm1, %v4210_v42 }
 0x5f6   : > { %4427 = vst.msk [vmem:[%s11007_s20 + $0x148] sm:$0xff] %vm4385_vm1, %v4212_v30  ;;  %v4534_v51 = vpack.c.bf16 %v4212_v30, %v4210_v42  ;;  %v8943_v30 = vor.u32 %v10293_v21, %v8940_v1  ;;  %v10333_v1 = vld [vmem:[#allocation3 + $0x14c] sm:$0xf] }
 0x5f7   : > { %4394 = vst.msk [vmem:[%s11007_s20 + $0x40] sm:$0xff] %vm4385_vm1, %v4146_v41 }
 0x5f8   : > { %6519 = vmatpush.bf16.msra.mxu2 %v4534_v51  ;;  %v10292_v51 = vld [vmem:[#allocation3 + $0x4] sm:$0xf] }
 0x5fc   : > { %v4148_v57 = vpop.xlane.xlu0 %4147  ;;  %v4244_v40 = vpop.xlane.xlu2 %4243 }
 0x5fd   : > { %v4242_v5 = vpop.xlane.xlu1 %4241  ;;  %4395 = vst.msk [vmem:[%s11007_s20 + $0x48] sm:$0xff] %vm4385_vm1, %v4148_v57  ;;  %v4518_v38 = vpack.c.bf16 %v4148_v57, %v4146_v41  ;;  %v8932_v57 = vld [vmem:[#allocation3 + $0x20] sm:$0xf0] }
 0x5fe   : > { %4442 = vst.msk [vmem:[%s11007_s20 + $0x1c0] sm:$0xff] %vm4385_vm1, %v4242_v5  ;;  %v4542_v31 = vpack.c.bf16 %v4244_v40, %v4242_v5  ;;  %v10305_v5 = vld [vmem:[#allocation3 + $0x64] sm:$0xf0] }
 0x5ff   : > { %4443 = vst.msk [vmem:[%s11007_s20 + $0x1c8] sm:$0xff] %vm4385_vm1, %v4244_v40  ;;  %6181 = vmatpush.bf16.msra.mxu0 %v4518_v38  ;;  %v8970_v40 = vld [vmem:[#allocation3 + $0x48] sm:$0xf] }
 0x600   : > { %6688 = vmatpush.bf16.msra.mxu3 %v4542_v31  ;;  %v8962_v31 = vld [vmem:[#allocation3 + $0x40] sm:$0xf] }
 0x604   : > { %v4178_v20 = vpop.xlane.xlu0 %4177  ;;  %v4206_v26 = vpop.xlane.xlu2 %4205 }
 0x605   : > { %v4180_v62 = vpop.xlane.xlu1 %4179  ;;  %4410 = vst.msk [vmem:[%s11007_s20 + $0xc0] sm:$0xff] %vm4385_vm1, %v4178_v20 }
 0x606   : > { %4411 = vst.msk [vmem:[%s11007_s20 + $0xc8] sm:$0xff] %vm4385_vm1, %v4180_v62  ;;  %v4526_v58 = vpack.c.bf16 %v4180_v62, %v4178_v20  ;;  %v10304_v20 = vld [vmem:[#allocation3 + $0x5c] sm:$0xf0]  ;;  %v8935_v62 = vor.u32 %v10292_v51, %v8932_v57  ;;  %v9130_v51 = vld [vmem:[#allocation3 + $0x188] sm:$0xf] }
 0x607   : > { %4424 = vst.msk [vmem:[%s11007_s20 + $0x130] sm:$0xff] %vm4385_vm1, %v4206_v26  ;;  %v10345_v57 = vld [vmem:[#allocation3 + $0x1a4] sm:$0xf0] }
 0x608   : > { %6350 = vmatpush.bf16.msra.mxu1 %v4526_v58  ;;  %v8971_v58 = vor.u32 %v10305_v5, %v8970_v40  ;;  %v9122_v40 = vld [vmem:[#allocation3 + $0x180] sm:$0xf] }
 0x609   : > { %v10344_v5 = vld [vmem:[#allocation3 + $0x19c] sm:$0xf0] }
 0x60c   : > { %v4208_v14 = vpop.xlane.xlu0 %4207  ;;  %v4144_v47 = vpop.xlane.xlu2 %4143 }
 0x60d   : > { %4425 = vst.msk [vmem:[%s11007_s20 + $0x138] sm:$0xff] %vm4385_vm1, %v4208_v14  ;;  %v4142_v8 = vpop.xlane.xlu1 %4141  ;;  %v4533_v6 = vpack.c.bf16 %v4208_v14, %v4206_v26  ;;  %v8963_v14 = vor.u32 %v10304_v20, %v8962_v31  ;;  %v9131_v31 = vor.u32 %v10345_v57, %v9130_v51  ;;  %v9123_v20 = vor.u32 %v10344_v5, %v9122_v40  ;;  %v4836_v57 = vld [vmem:[%s13620_s8 + $0x10] sm:$0xff]  ;;  %v10364_v5 = vld [vmem:[#allocation3 + $0x244] sm:$0xf] }
 0x60e   : > { %4393 = vst.msk [vmem:[%s11007_s20 + $0x38] sm:$0xff] %vm4385_vm1, %v4144_v47  ;;  %v4517_v34 = vpack.c.bf16 %v4144_v47, %v4142_v8  ;;  %v10301_v47 = vld [vmem:[#allocation3 + $0x4c] sm:$0xf] }
 0x60f   : > { %4392 = vst.msk [vmem:[%s11007_s20 + $0x30] sm:$0xff] %vm4385_vm1, %v4142_v8  ;;  %6520 = vmatpush.bf16.msra.mxu2 %v4533_v6  ;;  %v8972_v8 = vld [vmem:[#allocation3 + $0x68] sm:$0xf0] }
 0x610   : > { %6182 = vmatpush.bf16.msra.mxu0 %v4517_v34  ;;  %v8975_v6 = vor.u32 %v10301_v47, %v8972_v8  ;;  %v10300_v34 = vld [vmem:[#allocation3 + $0x44] sm:$0xf]  ;;  %v9162_v8 = vld [vmem:[#allocation3 + $0x1c8] sm:$0xf] }
 0x611   : > { %v9124_v47 = vld [vmem:[#allocation3 + $0x1a0] sm:$0xf0] }
 0x614   : > { %v4238_v37 = vpop.xlane.xlu0 %4237  ;;  %v4174_v12 = vpop.xlane.xlu2 %4173 }
 0x615   : > { %4440 = vst.msk [vmem:[%s11007_s20 + $0x1b0] sm:$0xff] %vm4385_vm1, %v4238_v37  ;;  %v4240_v15 = vpop.xlane.xlu1 %4239 }
 0x616   : > { %4408 = vst.msk [vmem:[%s11007_s20 + $0xb0] sm:$0xff] %vm4385_vm1, %v4174_v12  ;;  %v4541_v52 = vpack.c.bf16 %v4240_v15, %v4238_v37  ;;  %v8964_v37 = vld [vmem:[#allocation3 + $0x60] sm:$0xf0] }
 0x617   : > { %4441 = vst.msk [vmem:[%s11007_s20 + $0x1b8] sm:$0xff] %vm4385_vm1, %v4240_v15  ;;  %v10313_v15 = vld [vmem:[#allocation3 + $0xa4] sm:$0xf0] }
 0x618   : > { %6689 = vmatpush.bf16.msra.mxu3 %v4541_v52  ;;  %v8994_v52 = vld [vmem:[#allocation3 + $0x80] sm:$0xf] }
 0x61c   : > { %v4176_v54 = vpop.xlane.xlu0 %4175  ;;  %v4204_v27 = vpop.xlane.xlu2 %4203 }
 0x61d   : > { %4409 = vst.msk [vmem:[%s11007_s20 + $0xb8] sm:$0xff] %vm4385_vm1, %v4176_v54  ;;  %v4202_v43 = vpop.xlane.xlu1 %4201  ;;  %v4525_v35 = vpack.c.bf16 %v4176_v54, %v4174_v12  ;;  %v9002_v12 = vld [vmem:[#allocation3 + $0x88] sm:$0xf]  ;;  %v10312_v54 = vld [vmem:[#allocation3 + $0x9c] sm:$0xf0] }
 0x61e   : > { %4423 = vst.msk [vmem:[%s11007_s20 + $0x128] sm:$0xff] %vm4385_vm1, %v4204_v27  ;;  %v4532_v28 = vpack.c.bf16 %v4204_v27, %v4202_v43  ;;  %v8967_v27 = vor.u32 %v10300_v34, %v8964_v37  ;;  %v9154_v34 = vld [vmem:[#allocation3 + $0x1c0] sm:$0xf] }
 0x61f   : > { %4422 = vst.msk [vmem:[%s11007_s20 + $0x120] sm:$0xff] %vm4385_vm1, %v4202_v43  ;;  %6351 = vmatpush.bf16.msra.mxu1 %v4525_v35  ;;  %v9003_v43 = vor.u32 %v10313_v15, %v9002_v12  ;;  %v8995_v35 = vor.u32 %v10312_v54, %v8994_v52  ;;  %v10352_v37 = vld [vmem:[#allocation3 + $0x1dc] sm:$0xf0]  ;;  %v10349_v54 = vld [vmem:[#allocation3 + $0x1cc] sm:$0xf] }
 0x620   : > { %6521 = vmatpush.bf16.msra.mxu2 %v4532_v28  ;;  %v10309_v28 = vld [vmem:[#allocation3 + $0x8c] sm:$0xf]  ;;  %v9155_v52 = vor.u32 %v10352_v37, %v9154_v34 }
 0x624   : > { %v4234_v59 = vpop.xlane.xlu2 %4233  ;;  %v4138_v18 = vpop.xlane.xlu0 %4137 }
 0x625   : > { %4438 = vst.msk [vmem:[%s11007_s20 + $0x1a0] sm:$0xff] %vm4385_vm1, %v4234_v59  ;;  %v4140_v32 = vpop.xlane.xlu1 %4139 }
 0x626   : > { %4391 = vst.msk [vmem:[%s11007_s20 + $0x28] sm:$0xff] %vm4385_vm1, %v4140_v32  ;;  %v4516_v9 = vpack.c.bf16 %v4140_v32, %v4138_v18  ;;  %v10308_v32 = vld [vmem:[#allocation3 + $0x84] sm:$0xf] }
 0x627   : > { %4390 = vst.msk [vmem:[%s11007_s20 + $0x20] sm:$0xff] %vm4385_vm1, %v4138_v18 }
 0x628   : > { %6183 = vmatpush.bf16.msra.mxu0 %v4516_v9  ;;  %v8996_v9 = vld [vmem:[#allocation3 + $0xa0] sm:$0xf0] }
 0x62c   : > { %v4172_v33 = vpop.xlane.xlu2 %4171  ;;  %v4236_v19 = vpop.xlane.xlu0 %4235 }
 0x62d   : > { %4407 = vst.msk [vmem:[%s11007_s20 + $0xa8] sm:$0xff] %vm4385_vm1, %v4172_v33  ;;  %v4170_v63 = vpop.xlane.xlu1 %4169  ;;  %v4540_v44 = vpack.c.bf16 %v4236_v19, %v4234_v59  ;;  %v9004_v59 = vld [vmem:[#allocation3 + $0xa8] sm:$0xf0] }
 0x62e   : > { %4406 = vst.msk [vmem:[%s11007_s20 + $0xa0] sm:$0xff] %vm4385_vm1, %v4170_v63  ;;  %v4524_v48 = vpack.c.bf16 %v4172_v33, %v4170_v63  ;;  %v9007_v18 = vor.u32 %v10309_v28, %v9004_v59  ;;  %v9034_v33 = vld [vmem:[#allocation3 + $0xc8] sm:$0xf]  ;;  %v9026_v63 = vld [vmem:[#allocation3 + $0xc0] sm:$0xf] }
 0x62f   : > { %4439 = vst.msk [vmem:[%s11007_s20 + $0x1a8] sm:$0xff] %vm4385_vm1, %v4236_v19  ;;  %6690 = vmatpush.bf16.msra.mxu3 %v4540_v44  ;;  %v10321_v19 = vld [vmem:[#allocation3 + $0xe4] sm:$0xf0]  ;;  %v10320_v44 = vld [vmem:[#allocation3 + $0xdc] sm:$0xf0] }
 0x630   : > { %6352 = vmatpush.bf16.msra.mxu1 %v4524_v48  ;;  %v8999_v48 = vor.u32 %v10308_v32, %v8996_v9  ;;  %v9156_v28 = vld [vmem:[#allocation3 + $0x1e0] sm:$0xf0]  ;;  %v9194_v59 = vld [vmem:[#allocation3 + $0x208] sm:$0xf]  ;;  %v9186_v32 = vld [vmem:[#allocation3 + $0x200] sm:$0xf] }
 0x631   : > { %v10360_v9 = vld [vmem:[#allocation3 + $0x21c] sm:$0xf0] }
 0x634   : > { %v4198_v50 = vpop.xlane.xlu0 %4197  ;;  %v4134_v24 = vpop.xlane.xlu2 %4133 }
 0x635   : > { %v4200_v53 = vpop.xlane.xlu1 %4199  ;;  %4420 = vst.msk [vmem:[%s11007_s20 + $0x110] sm:$0xff] %vm4385_vm1, %v4198_v50 }
 0x636   : > { %4421 = vst.msk [vmem:[%s11007_s20 + $0x118] sm:$0xff] %vm4385_vm1, %v4200_v53  ;;  %v4531_v3 = vpack.c.bf16 %v4200_v53, %v4198_v50  ;;  %v9035_v50 = vor.u32 %v10321_v19, %v9034_v33  ;;  %v10317_v53 = vld [vmem:[#allocation3 + $0xcc] sm:$0xf] }
 0x637   : > { %4388 = vst.msk [vmem:[%s11007_s20 + $0x10] sm:$0xff] %vm4385_vm1, %v4134_v24 }
 0x638   : > { %6522 = vmatpush.bf16.msra.mxu2 %v4531_v3  ;;  %v9036_v3 = vld [vmem:[#allocation3 + $0xe8] sm:$0xf0] }
 0x63c   : > { %v4136_v2 = vpop.xlane.xlu0 %4135  ;;  %v4232_v36 = vpop.xlane.xlu2 %4231 }
 0x63d   : > { %v4230_v39 = vpop.xlane.xlu1 %4229  ;;  %4389 = vst.msk [vmem:[%s11007_s20 + $0x18] sm:$0xff] %vm4385_vm1, %v4136_v2  ;;  %v4515_v29 = vpack.c.bf16 %v4136_v2, %v4134_v24  ;;  %v9027_v24 = vor.u32 %v10320_v44, %v9026_v63  ;;  %v9039_v2 = vor.u32 %v10317_v53, %v9036_v3  ;;  %v9187_v63 = vor.u32 %v10360_v9, %v9186_v32 }
 0x63e   : > { %4436 = vst.msk [vmem:[%s11007_s20 + $0x190] sm:$0xff] %vm4385_vm1, %v4230_v39  ;;  %v4539_v4 = vpack.c.bf16 %v4232_v36, %v4230_v39  ;;  %v9028_v39 = vld [vmem:[#allocation3 + $0xe0] sm:$0xf0] }
 0x63f   : > { %4437 = vst.msk [vmem:[%s11007_s20 + $0x198] sm:$0xff] %vm4385_vm1, %v4232_v36  ;;  %6184 = vmatpush.bf16.msra.mxu0 %v4515_v29  ;;  %v10316_v36 = vld [vmem:[#allocation3 + $0xc4] sm:$0xf]  ;;  %v9066_v29 = vld [vmem:[#allocation3 + $0x108] sm:$0xf] }
 0x640   : > { %6691 = vmatpush.bf16.msra.mxu3 %v4539_v4  ;;  %v10329_v4 = vld [vmem:[#allocation3 + $0x124] sm:$0xf0] }
 0x644   : > { %v4166_v10 = vpop.xlane.xlu0 %4165  ;;  %v4194_v49 = vpop.xlane.xlu2 %4193 }
 0x645   : > { %v4168_v11 = vpop.xlane.xlu1 %4167  ;;  %4404 = vst.msk [vmem:[%s11007_s20 + $0x90] sm:$0xff] %vm4385_vm1, %v4166_v10 }
 0x646   : > { %4405 = vst.msk [vmem:[%s11007_s20 + $0x98] sm:$0xff] %vm4385_vm1, %v4168_v11  ;;  %v4523_v7 = vpack.c.bf16 %v4168_v11, %v4166_v10  ;;  %v9058_v10 = vld [vmem:[#allocation3 + $0x100] sm:$0xf]  ;;  %v9031_v11 = vor.u32 %v10316_v36, %v9028_v39  ;;  %v10356_v36 = vld [vmem:[#allocation3 + $0x204] sm:$0xf] }
 0x647   : > { %4418 = vst.msk [vmem:[%s11007_s20 + $0x100] sm:$0xff] %vm4385_vm1, %v4194_v49  ;;  %v9188_v39 = vld [vmem:[#allocation3 + $0x220] sm:$0xf0] }
 0x648   : > { %6353 = vmatpush.bf16.msra.mxu1 %v4523_v7  ;;  %v9067_v7 = vor.u32 %v10329_v4, %v9066_v29  ;;  %v9226_v29 = vld [vmem:[#allocation3 + $0x248] sm:$0xf] }
 0x649   : > { %v10369_v4 = vld [vmem:[#allocation3 + $0x264] sm:$0xf0] }
 0x64c   : > { %v4196_v25 = vpop.xlane.xlu0 %4195  ;;  %v4132_v17 = vpop.xlane.xlu2 %4131 }
 0x64d   : > { %4419 = vst.msk [vmem:[%s11007_s20 + $0x108] sm:$0xff] %vm4385_vm1, %v4196_v25  ;;  %v4130_v55 = vpop.xlane.xlu1 %4129  ;;  %v4530_v22 = vpack.c.bf16 %v4196_v25, %v4194_v49  ;;  %v10328_v49 = vld [vmem:[#allocation3 + $0x11c] sm:$0xf0]  ;;  %v9068_v25 = vld [vmem:[#allocation3 + $0x128] sm:$0xf0] }
 0x64e   : > { %4387 = vst.msk [vmem:[%s11007_s20 + $0x8] sm:$0xff] %vm4385_vm1, %v4132_v17  ;;  %v4514_v45 = vpack.c.bf16 %v4132_v17, %v4130_v55  ;;  %v9059_v61 = vor.u32 %v10328_v49, %v9058_v10  ;;  %v9071_v17 = vor.u32 %v10325_v60, %v9068_v25  ;;  %v9218_v49 = vld [vmem:[#allocation3 + $0x240] sm:$0xf]  ;;  %v9191_v60 = vor.u32 %v10356_v36, %v9188_v39 }
 0x64f   : > { %4386 = vst.msk [vmem:[%s11007_s20] sm:$0xff] %vm4385_vm1, %v4130_v55  ;;  %6523 = vmatpush.bf16.msra.mxu2 %v4530_v22  ;;  %v9098_v55 = vld [vmem:[#allocation3 + $0x148] sm:$0xf]  ;;  %v9227_v25 = vor.u32 %v10369_v4, %v9226_v29  ;;  %v9282_v36 = vld [vmem:[#allocation3 + $0x2c0] sm:$0xf] }
 0x650   : > { %6185 = vmatpush.bf16.msra.mxu0 %v4514_v45  ;;  %v10337_v22 = vld [vmem:[#allocation3 + $0x164] sm:$0xf0]  ;;  %v9090_v45 = vld [vmem:[#allocation3 + $0x140] sm:$0xf] }
 0x651   : > { %v10384_v39 = vld [vmem:[#allocation3 + $0x2dc] sm:$0xf0] }
 0x652   : > { %6524 = vmatmul.bf16.vlgmr.msra.gmra.mxu2 %v8939_v16  ;;  %v10336_v16 = vld [vmem:[#allocation3 + $0x15c] sm:$0xf0] }
 0x653   : > { %6186 = vmatmul.bf16.vlgmr.msra.gmra.mxu0 %v8931_v46  ;;  %v9063_v46 = vor.u32 %v10324_v56, %v9060_v23  ;;  %v9091_v21 = vor.u32 %v10336_v16, %v9090_v45  ;;  %v4835_v45 = vld [vmem:[%s13620_s8 + $0x8] sm:$0xff] }
 0x654   : > { %v4226_v0 = vpop.xlane.xlu0 %4225  ;;  %v4162_v13 = vpop.xlane.xlu2 %4161  ;;  %v10365_v16 = vld [vmem:[#allocation3 + $0x24c] sm:$0xf] }
 0x655   : > { %4434 = vst.msk [vmem:[%s11007_s20 + $0x180] sm:$0xff] %vm4385_vm1, %v4226_v0  ;;  %v4228_v42 = vpop.xlane.xlu1 %4227 }
 0x656   : > { %4435 = vst.msk [vmem:[%s11007_s20 + $0x188] sm:$0xff] %vm4385_vm1, %v4228_v42  ;;  %v4538_v41 = vpack.c.bf16 %v4228_v42, %v4226_v0  ;;  %v9099_v0 = vor.u32 %v10337_v22, %v9098_v55 }
 0x657   : > { %4402 = vst.msk [vmem:[%s11007_s20 + $0x80] sm:$0xff] %vm4385_vm1, %v4162_v13 }
 0x658   : > { %6692 = vmatpush.bf16.msra.mxu3 %v4538_v41  ;;  %v10332_v41 = vld [vmem:[#allocation3 + $0x144] sm:$0xf] }
 0x65b   : > { %6693 = vmatmul.bf16.vlgmr.msra.gmra.mxu3 %v8943_v30  ;;  %v9092_v30 = vld [vmem:[#allocation3 + $0x160] sm:$0xf0] }
 0x65c   : > { %v4164_v38 = vpop.xlane.xlu0 %4163 }
 0x65d   : > { %4403 = vst.msk [vmem:[%s11007_s20 + $0x88] sm:$0xff] %vm4385_vm1, %v4164_v38  ;;  %v4522_v26 = vpack.c.bf16 %v4164_v38, %v4162_v13  ;;  %v9100_v13 = vld [vmem:[#allocation3 + $0x168] sm:$0xf0]  ;;  %v9095_v38 = vor.u32 %v10332_v41, %v9092_v30 }
 0x65e   : > { %v9103_v42 = vor.u32 %v10333_v1, %v9100_v13 }
 0x65f   : > { %6354 = vmatpush.bf16.msra.mxu1 %v4522_v26  ;;  %v10341_v26 = vld [vmem:[#allocation3 + $0x18c] sm:$0xf] }
 0x662   : > { %6355 = vmatmul.bf16.vlgmr.msra.gmra.mxu1 %v8935_v62  ;;  %6529 = vmatmul.bf16.gmra.mxu2 %v8971_v58  ;;  %v9132_v62 = vld [vmem:[#allocation3 + $0x1a8] sm:$0xf0] }
 0x663   : > { %6191 = vmatmul.bf16.gmra.mxu0 %v8963_v14  ;;  %v9135_v58 = vor.u32 %v10341_v26, %v9132_v62  ;;  %v10340_v14 = vld [vmem:[#allocation3 + $0x184] sm:$0xf]  ;;  %v9250_v62 = vld [vmem:[#allocation3 + $0x280] sm:$0xf] }
 0x664   : > { %v9127_v12 = vor.u32 %v10340_v14, %v9124_v47 }
 0x66b   : > { %6698 = vmatmul.bf16.gmra.mxu3 %v8975_v6  ;;  %v10353_v6 = vld [vmem:[#allocation3 + $0x1e4] sm:$0xf0] }
 0x66c   : > { %v9163_v15 = vor.u32 %v10353_v6, %v9162_v8 }
 0x672   : > { %6360 = vmatmul.bf16.gmra.mxu1 %v8967_v27  ;;  %6534 = vmatmul.bf16.gmra.mxu2 %v9003_v43  ;;  %v9164_v27 = vld [vmem:[#allocation3 + $0x1e8] sm:$0xf0] }
 0x673   : > { %6196 = vmatmul.bf16.gmra.mxu0 %v8995_v35  ;;  %v9167_v43 = vor.u32 %v10349_v54, %v9164_v27  ;;  %v10348_v35 = vld [vmem:[#allocation3 + $0x1c4] sm:$0xf]  ;;  %v4837_v27 = vld [vmem:[%s13620_s8 + $0x18] sm:$0xff] }
 0x674   : > { %v9159_v33 = vor.u32 %v10348_v35, %v9156_v28  ;;  %v9260_v35 = vld [vmem:[#allocation3 + $0x2a8] sm:$0xf0] }
 0x67b   : > { %6703 = vmatmul.bf16.gmra.mxu3 %v9007_v18  ;;  %v10361_v18 = vld [vmem:[#allocation3 + $0x224] sm:$0xf0] }
 0x67c   : > { %v9195_v19 = vor.u32 %v10361_v18, %v9194_v59 }
 0x682   : > { %6365 = vmatmul.bf16.gmra.mxu1 %v8999_v48  ;;  %6539 = vmatmul.bf16.gmra.mxu2 %v9035_v50  ;;  %v10357_v48 = vld [vmem:[#allocation3 + $0x20c] sm:$0xf] }
 0x683   : > { %6201 = vmatmul.bf16.gmra.mxu0 %v9027_v24  ;;  %v9196_v50 = vld [vmem:[#allocation3 + $0x228] sm:$0xf0] }
 0x684   : > { %v9199_v53 = vor.u32 %v10357_v48, %v9196_v50  ;;  %v10372_v50 = vld [vmem:[#allocation3 + $0x284] sm:$0xf] }
 0x68b   : > { %6708 = vmatmul.bf16.gmra.mxu3 %v9039_v2  ;;  %v4834_v2 = vld [vmem:[%s13620_s8] sm:$0xff] }
 0x692   : > { %6370 = vmatmul.bf16.gmra.mxu1 %v9031_v11  ;;  %6544 = vmatmul.bf16.gmra.mxu2 %v9067_v7  ;;  %v10368_v11 = vld [vmem:[#allocation3 + $0x25c] sm:$0xf0] }
 0x693   : > { %6206 = vmatmul.bf16.gmra.mxu0 %v9059_v61  ;;  %v9219_v56 = vor.u32 %v10368_v11, %v9218_v49 }
 0x69b   : > { %6713 = vmatmul.bf16.gmra.mxu3 %v9071_v17 }
 0x6a2   : > { %6375 = vmatmul.bf16.gmra.mxu1 %v9063_v46  ;;  %6549 = vmatmul.bf16.gmra.mxu2 %v9099_v0  ;;  %v9228_v46 = vld [vmem:[#allocation3 + $0x268] sm:$0xf0] }
 0x6a3   : > { %6211 = vmatmul.bf16.gmra.mxu0 %v9091_v21  ;;  %v9231_v41 = vor.u32 %v10365_v16, %v9228_v46 }
 0x6ab   : > { %6718 = vmatmul.bf16.gmra.mxu3 %v9103_v42 }
 0x6b2   : > { %6380 = vmatmul.bf16.gmra.mxu1 %v9095_v38  ;;  %6554 = vmatmul.bf16.gmra.mxu2 %v9131_v31  ;;  %v9220_v38 = vld [vmem:[#allocation3 + $0x260] sm:$0xf0]  ;;  %v9258_v31 = vld [vmem:[#allocation3 + $0x288] sm:$0xf] }
 0x6b3   : > { %6216 = vmatmul.bf16.gmra.mxu0 %v9123_v20  ;;  %v10377_v20 = vld [vmem:[#allocation3 + $0x2a4] sm:$0xf0]  ;;  %v9223_v6 = vor.u32 %v10364_v5, %v9220_v38 }
 0x6b4   : > { %v9259_v34 = vor.u32 %v10377_v20, %v9258_v31  ;;  %v10393_v5 = vld [vmem:[#allocation3 + $0x324] sm:$0xf0]  ;;  %v9314_v31 = vld [vmem:[#allocation3 + $0x300] sm:$0xf] }
 0x6b5   : > { %v10392_v20 = vld [vmem:[#allocation3 + $0x31c] sm:$0xf0] }
 0x6bb   : > { %6723 = vmatmul.bf16.gmra.mxu3 %v9135_v58  ;;  %v10376_v58 = vld [vmem:[#allocation3 + $0x29c] sm:$0xf0] }
 0x6c2   : > { %6385 = vmatmul.bf16.gmra.mxu1 %v9127_v12  ;;  %6559 = vmatmul.bf16.gmra.mxu2 %v9163_v15  ;;  %v9251_v12 = vor.u32 %v10376_v58, %v9250_v62 }
 0x6c3   : > { %6221 = vmatmul.bf16.gmra.mxu0 %v9155_v52 }
 0x6cb   : > { %6728 = vmatmul.bf16.gmra.mxu3 %v9167_v43  ;;  %v10373_v43 = vld [vmem:[#allocation3 + $0x28c] sm:$0xf] }
 0x6d0   : > { %v6187_v44 = vpop.f32.mrf.mxu0 }
 0x6d1   : > { %v6188_v10 = vadd.f32 %v6187_v44, %v4834_v2  ;;  %v4838_v44 = vld [vmem:[%s13620_s8 + $0x20] sm:$0xff] }
 0x6d2   : > { %6390 = vmatmul.bf16.gmra.mxu1 %v9159_v33  ;;  %6564 = vmatmul.bf16.gmra.mxu2 %v9195_v19  ;;  %v9263_v33 = vor.u32 %v10373_v43, %v9260_v35 }
 0x6d3   : > { %6226 = vmatmul.bf16.gmra.mxu0 %v9187_v63 }
 0x6d5   : > { %v6525_v24 = vpop.f32.mrf.mxu2 }
 0x6d8   : > { %v6189_v3 = vpop.f32.mrf.mxu0 }
 0x6d9   : > { %v6190_v1 = vadd.f32 %v6189_v3, %v4835_v45  ;;  %v10385_v3 = vld [vmem:[#allocation3 + $0x2e4] sm:$0xf0] }
 0x6db   : > { %6733 = vmatmul.bf16.gmra.mxu3 %v9199_v53  ;;  %v9290_v53 = vld [vmem:[#allocation3 + $0x2c8] sm:$0xf] }
 0x6dc   : > { %v9291_v11 = vor.u32 %v10385_v3, %v9290_v53  ;;  %v10401_v53 = vld [vmem:[#allocation3 + $0x364] sm:$0xf0] }
 0x6dd   : > { %v6527_v7 = vpop.f32.mrf.mxu2 }
 0x6de   : > { %v6694_v61 = vpop.f32.mrf.mxu3 }
 0x6df   : > { %v6356_v17 = vpop.f32.mrf.mxu1 }
 0x6e0   : > { %v6192_v23 = vpop.f32.mrf.mxu0  ;;  %v6357_v55 = vadd.f32 %v6356_v17, %v6188_v10 }
 0x6e1   : > { %v6193_v26 = vadd.f32 %v6192_v23, %v4836_v57  ;;  %v10381_v23 = vld [vmem:[#allocation3 + $0x2cc] sm:$0xf]  ;;  %v9284_v57 = vld [vmem:[#allocation3 + $0x2e0] sm:$0xf0] }
 0x6e2   : > { %v6526_v22 = vadd.f32 %v6525_v24, %v6357_v55  ;;  %6395 = vmatmul.bf16.gmra.mxu1 %v9191_v60  ;;  %6569 = vmatmul.bf16.gmra.mxu2 %v9227_v25  ;;  %v9252_v24 = vld [vmem:[#allocation3 + $0x2a0] sm:$0xf0]  ;;  %v9292_v55 = vld [vmem:[#allocation3 + $0x2e8] sm:$0xf0] }
 0x6e3   : > { %6231 = vmatmul.bf16.gmra.mxu0 %v9219_v56  ;;  %v9255_v49 = vor.u32 %v10372_v50, %v9252_v24  ;;  %v4839_v56 = vld [vmem:[%s13620_s8 + $0x28] sm:$0xff]  ;;  %v9316_v50 = vld [vmem:[#allocation3 + $0x320] sm:$0xf0] }
 0x6e4   : > { %v12386_v0 = vadd.f32 %v6694_v61, %v6526_v22  ;;  %v9283_v61 = vor.u32 %v10384_v39, %v9282_v36  ;;  %v9354_v24 = vld [vmem:[#allocation3 + $0x348] sm:$0xf]  ;;  %v10400_v36 = vld [vmem:[#allocation3 + $0x35c] sm:$0xf0] }
 0x6e5   : > { %v6530_v21 = vpop.f32.mrf.mxu2 }
 0x6e6   : > { %v6696_v13 = vpop.f32.mrf.mxu3 }
 0x6e7   : > { %v6358_v42 = vpop.f32.mrf.mxu1 }
 0x6e8   : > { %v6194_v30 = vpop.f32.mrf.mxu0  ;;  %v6359_v51 = vadd.f32 %v6358_v42, %v6190_v1  ;;  %v9295_v1 = vor.u32 %v10381_v23, %v9292_v55  ;;  %v4112_v23 = vld [vmem:[#allocation2 + $0x38] sm:$0xff] }
 0x6e9   : > { %v6195_v18 = vadd.f32 %v6194_v30, %v4837_v27  ;;  %v9324_v27 = vld [vmem:[#allocation3 + $0x328] sm:$0xf0]  ;;  %v4111_v55 = vld [vmem:[#allocation2 + $0xb8] sm:$0xff]  ;;  %4351 = vmax.xlane.f32.xlu2 %v4112_v23  ;;  %v9418_v23 = vld [vmem:[#allocation3 + $0x3c8] sm:$0xf] }
 0x6ea   : > { %v6528_v40 = vadd.f32 %v6527_v7, %v6359_v51  ;;  %v10380_v51 = vld [vmem:[#allocation3 + $0x2c4] sm:$0xf]  ;;  %4349 = vmax.xlane.f32.xlu1 %v4111_v55  ;;  %v10417_v55 = vld [vmem:[#allocation3 + $0x3e4] sm:$0xf0] }
 0x6eb   : > { %6738 = vmatmul.bf16.gmra.mxu3 %v9231_v41  ;;  %v4840_v41 = vld [vmem:[%s13620_s8 + $0x30] sm:$0xff] }
 0x6ec   : > { %v12391_v14 = vadd.f32 %v6696_v13, %v6528_v40  ;;  %v9322_v40 = vld [vmem:[#allocation3 + $0x308] sm:$0xf] }
 0x6ed   : > { %v6532_v47 = vpop.f32.mrf.mxu2 }
 0x6ee   : > { %v6699_v8 = vpop.f32.mrf.mxu3 }
 0x6ef   : > { %v6361_v37 = vpop.f32.mrf.mxu1 }
 0x6f0   : > { %v6197_v15 = vpop.f32.mrf.mxu0  ;;  %v6362_v52 = vadd.f32 %v6361_v37, %v6193_v26 }
 0x6f1   : > { %v6198_v2 = vadd.f32 %v6197_v15, %v4838_v44 }
 0x6f2   : > { %v6531_v54 = vadd.f32 %v6530_v21, %v6362_v52  ;;  %6400 = vmatmul.bf16.gmra.mxu1 %v9223_v6  ;;  %6574 = vmatmul.bf16.gmra.mxu2 %v9259_v34  ;;  %v9315_v34 = vor.u32 %v10392_v20, %v9314_v31  ;;  %v4841_v52 = vld [vmem:[%s13620_s8 + $0x38] sm:$0xff]  ;;  %v4128_v31 = vld [vmem:[#allocation2 + $0x190] sm:$0xff] }
 0x6f3   : > { %6236 = vmatmul.bf16.gmra.mxu0 %v9251_v12  ;;  %v4127_v20 = vld [vmem:[#allocation2 + $0x310] sm:$0xff] }
 0x6f4   : > { %v12396_v28 = vadd.f32 %v6699_v8, %v6531_v54  ;;  %v9323_v8 = vor.u32 %v10393_v5, %v9322_v40  ;;  %v10389_v54 = vld [vmem:[#allocation3 + $0x30c] sm:$0xf]  ;;  %v4844_v40 = vld [vmem:[%s13620_s8 + $0x50] sm:$0xff]  ;;  %v10396_v5 = vld [vmem:[#allocation3 + $0x344] sm:$0xf]  ;;  %4381 = vmax.xlane.f32.xlu2 %v4127_v20 }
 0x6f5   : > { %v6535_v59 = vpop.f32.mrf.mxu2  ;;  %v4126_v20 = vld [vmem:[#allocation2 + $0x270] sm:$0xff] }
 0x6f6   : > { %v6701_v32 = vpop.f32.mrf.mxu3 }
 0x6f7   : > { %v6363_v9 = vpop.f32.mrf.mxu1 }
 0x6f8   : > { %v6199_v19 = vpop.f32.mrf.mxu0  ;;  %v6364_v63 = vadd.f32 %v6363_v9, %v6195_v18  ;;  %v9327_v9 = vor.u32 %v10389_v54, %v9324_v27 }
 0x6f9   : > { %v6200_v16 = vadd.f32 %v6199_v19, %v4839_v56  ;;  %v4079_v56 = vld [vmem:[#allocation2 + $0x20] sm:$0xff] }
 0x6fa   : > { %v6533_v48 = vadd.f32 %v6532_v47, %v6364_v63  ;;  %v9287_v47 = vor.u32 %v10380_v51, %v9284_v57  ;;  %v4842_v63 = vld [vmem:[%s13620_s8 + $0x40] sm:$0xff]  ;;  %4285 = vmax.xlane.f32.xlu0 %v4079_v56 }
 0x6fb   : > { %6743 = vmatmul.bf16.gmra.mxu3 %v9263_v33  ;;  %v9380_v56 = vld [vmem:[#allocation3 + $0x3a0] sm:$0xf0] }
 0x6fc   : > { %v12401_v29 = vadd.f32 %v6701_v32, %v6533_v48  ;;  %v10388_v48 = vld [vmem:[#allocation3 + $0x304] sm:$0xf] }
 0x6fd   : > { %v6537_v4 = vpop.f32.mrf.mxu2 }
 0x6fe   : > { %v6704_v10 = vpop.f32.mrf.mxu3 }
 0x6ff   : > { %v6366_v7 = vpop.f32.mrf.mxu1 }
 0x700   : > { %v6202_v60 = vpop.f32.mrf.mxu0  ;;  %v6367_v25 = vadd.f32 %v6366_v7, %v6198_v2  ;;  %v9346_v2 = vld [vmem:[#allocation3 + $0x340] sm:$0xf] }
 0x701   : > { %v6203_v38 = vadd.f32 %v6202_v60, %v4840_v41 }
 0x702   : > { %v6536_v17 = vadd.f32 %v6535_v59, %v6367_v25  ;;  %6405 = vmatmul.bf16.gmra.mxu1 %v9255_v49  ;;  %6579 = vmatmul.bf16.gmra.mxu2 %v9291_v11  ;;  %v9319_v49 = vor.u32 %v10388_v48, %v9316_v50  ;;  %v9355_v11 = vor.u32 %v10401_v53, %v9354_v24  ;;  %v10405_v48 = vld [vmem:[#allocation3 + $0x38c] sm:$0xf] }
 0x703   : > { %6241 = vmatmul.bf16.gmra.mxu0 %v9283_v61  ;;  %v9347_v61 = vor.u32 %v10400_v36, %v9346_v2  ;;  %4383 = vmax.xlane.f32.xlu0 %v4128_v31  ;;  %v9388_v50 = vld [vmem:[#allocation3 + $0x3a8] sm:$0xf0]  ;;  %v4093_v31 = vld [vmem:[#allocation2 + $0x58] sm:$0xff] }
 0x704   : > { %v12406_v22 = vadd.f32 %v6704_v10, %v6536_v17 }
 0x705   : > { %v6540_v45 = vpop.f32.mrf.mxu2 }
 0x706   : > { %v6706_v46 = vpop.f32.mrf.mxu3 }
 0x707   : > { %v6368_v21 = vpop.f32.mrf.mxu1 }
 0x708   : > { %v6204_v13 = vpop.f32.mrf.mxu0  ;;  %v6369_v42 = vadd.f32 %v6368_v21, %v6200_v16  ;;  %v10397_v16 = vld [vmem:[#allocation3 + $0x34c] sm:$0xf] }
 0x709   : > { %v6205_v59 = vadd.f32 %v6204_v13, %v4841_v52 }
 0x70a   : > { %v6538_v30 = vadd.f32 %v6537_v4, %v6369_v42 }
 0x70b   : > { %6748 = vmatmul.bf16.gmra.mxu3 %v9295_v1 }
 0x70c   : > { %v12411_v26 = vadd.f32 %v6706_v46, %v6538_v30  ;;  %v9356_v46 = vld [vmem:[#allocation3 + $0x368] sm:$0xf0] }
 0x70d   : > { %v6542_v62 = vpop.f32.mrf.mxu2  ;;  %v9359_v30 = vor.u32 %v10397_v16, %v9356_v46  ;;  %v9410_v16 = vld [vmem:[#allocation3 + $0x3c0] sm:$0xf] }
 0x70e   : > { %v6709_v58 = vpop.f32.mrf.mxu3  ;;  %v10416_v46 = vld [vmem:[#allocation3 + $0x3dc] sm:$0xf0] }
 0x70f   : > { %v6371_v6 = vpop.f32.mrf.mxu1 }
 0x710   : > { %v6207_v37 = vpop.f32.mrf.mxu0  ;;  %v6372_v12 = vadd.f32 %v6371_v6, %v6203_v38 }
 0x711   : > { %v6208_v3 = vadd.f32 %v6207_v37, %v4842_v63  ;;  %v10408_v37 = vld [vmem:[#allocation3 + $0x39c] sm:$0xf0]  ;;  %v4095_v63 = vld [vmem:[#allocation2 + $0x198] sm:$0xff] }
 0x712   : > { %v6541_v15 = vadd.f32 %v6540_v45, %v6372_v12  ;;  %6410 = vmatmul.bf16.gmra.mxu1 %v9287_v47  ;;  %6584 = vmatmul.bf16.gmra.mxu2 %v9323_v8  ;;  %v4843_v45 = vld [vmem:[%s13620_s8 + $0x48] sm:$0xff] }
 0x713   : > { %6246 = vmatmul.bf16.gmra.mxu0 %v9315_v34  ;;  %v9386_v47 = vld [vmem:[#allocation3 + $0x388] sm:$0xf]  ;;  %v9378_v34 = vld [vmem:[#allocation3 + $0x380] sm:$0xf] }
 0x714   : > { %v12416_v43 = vadd.f32 %v6709_v58, %v6541_v15  ;;  %v9348_v58 = vld [vmem:[#allocation3 + $0x360] sm:$0xf0]  ;;  %v10409_v8 = vld [vmem:[#allocation3 + $0x3a4] sm:$0xf0] }
 0x715   : > { %v6545_v35 = vpop.f32.mrf.mxu2  ;;  %v9351_v54 = vor.u32 %v10396_v5, %v9348_v58  ;;  %v9387_v27 = vor.u32 %v10409_v8, %v9386_v47  ;;  %v4847_v58 = vld [vmem:[%s13620_s8 + $0x68] sm:$0xff] }
 0x716   : > { %v6711_v18 = vpop.f32.mrf.mxu3  ;;  %v10413_v47 = vld [vmem:[#allocation3 + $0x3cc] sm:$0xf] }
 0x717   : > { %v6373_v32 = vpop.f32.mrf.mxu1  ;;  %v9420_v8 = vld [vmem:[#allocation3 + $0x3e8] sm:$0xf0] }
 0x718   : > { %v6209_v33 = vpop.f32.mrf.mxu0  ;;  %v6374_v19 = vadd.f32 %v6373_v32, %v6205_v59  ;;  %v9379_v59 = vor.u32 %v10408_v37, %v9378_v34 }
 0x719   : > { %v6210_v13 = vadd.f32 %v6209_v33, %v4843_v45  ;;  %v4109_v33 = vld [vmem:[#allocation2 + $0x250] sm:$0xff] }
 0x71a   : > { %v6543_v44 = vadd.f32 %v6542_v62, %v6374_v19  ;;  %v4080_v62 = vld [vmem:[#allocation2 + $0xe8] sm:$0xff]  ;;  %4345 = vmax.xlane.f32.xlu0 %v4109_v33  ;;  %v4107_v33 = vld [vmem:[#allocation2 + $0x170] sm:$0xff] }
 0x71b   : > { %6753 = vmatmul.bf16.gmra.mxu3 %v9327_v9  ;;  %4287 = vmax.xlane.f32.xlu1 %v4080_v62  ;;  %v4096_v19 = vld [vmem:[#allocation2 + $0x2e8] sm:$0xff]  ;;  %v4125_v62 = vld [vmem:[#allocation2 + $0x298] sm:$0xff] }
 0x71c   : > { %v12421_v39 = vadd.f32 %v6711_v18, %v6543_v44  ;;  %v4845_v44 = vld [vmem:[%s13620_s8 + $0x58] sm:$0xff]  ;;  %4319 = vmax.xlane.f32.xlu2 %v4096_v19  ;;  %v4094_v19 = vld [vmem:[#allocation2 + $0x120] sm:$0xff] }
 0x71d   : > { %v6547_v4 = vpop.f32.mrf.mxu2 }
 0x71e   : > { %v6714_v10 = vpop.f32.mrf.mxu3 }
 0x71f   : > { %v6376_v7 = vpop.f32.mrf.mxu1 }
 0x720   : > { %v6212_v60 = vpop.f32.mrf.mxu0  ;;  %v6377_v25 = vadd.f32 %v6376_v7, %v6208_v3  ;;  %v10404_v7 = vld [vmem:[#allocation3 + $0x384] sm:$0xf] }
 0x721   : > { %v6213_v6 = vadd.f32 %v6212_v60, %v4844_v40  ;;  %v4078_v60 = vld [vmem:[#allocation2 + $0x40] sm:$0xff] }
 0x722   : > { %v6546_v17 = vadd.f32 %v6545_v35, %v6377_v25  ;;  %6415 = vmatmul.bf16.gmra.mxu1 %v9319_v49  ;;  %6589 = vmatmul.bf16.gmra.mxu2 %v9355_v11  ;;  %v4846_v11 = vld [vmem:[%s13620_s8 + $0x60] sm:$0xff]  ;;  %v4077_v25 = vld [vmem:[#allocation2 + $0x248] sm:$0xff] }
 0x723   : > { %6251 = vmatmul.bf16.gmra.mxu0 %v9347_v61  ;;  %4317 = vmax.xlane.f32.xlu1 %v4095_v63  ;;  %v9412_v63 = vld [vmem:[#allocation3 + $0x3e0] sm:$0xf0] }
 0x724   : > { %v12426_v21 = vadd.f32 %v6714_v10, %v6546_v17  ;;  %v4110_v17 = vld [vmem:[#allocation2 + $0x378] sm:$0xff]  ;;  %4283 = vmax.xlane.f32.xlu0 %v4078_v60  ;;  %4281 = vmax.xlane.f32.xlu2 %v4077_v25 }
 0x725   : > { %v6550_v1 = vpop.f32.mrf.mxu2 }
 0x726   : > { %v6716_v42 = vpop.f32.mrf.mxu3 }
 0x727   : > { %v6378_v41 = vpop.f32.mrf.mxu1 }
 0x728   : > { %v6214_v51 = vpop.f32.mrf.mxu0  ;;  %v6379_v57 = vadd.f32 %v6378_v41, %v6210_v13  ;;  %v9383_v41 = vor.u32 %v10404_v7, %v9380_v56  ;;  %v4076_v56 = vld [vmem:[#allocation2 + $0x2b8] sm:$0xff] }
 0x729   : > { %v6215_v3 = vadd.f32 %v6214_v51, %v4845_v44  ;;  %v9450_v44 = vld [vmem:[#allocation3 + $0x408] sm:$0xf] }
 0x72a   : > { %v6548_v38 = vadd.f32 %v6547_v4, %v6379_v57  ;;  %v9391_v4 = vor.u32 %v10405_v48, %v9388_v50  ;;  %v9411_v57 = vor.u32 %v10416_v46, %v9410_v16  ;;  %v10425_v48 = vld [vmem:[#allocation3 + $0x424] sm:$0xf0]  ;;  %v9452_v16 = vld [vmem:[#allocation3 + $0x428] sm:$0xf0] }
 0x72b   : > { %6758 = vmatmul.bf16.gmra.mxu3 %v9359_v30  ;;  %4347 = vmax.xlane.f32.xlu1 %v4110_v17  ;;  %v9419_v30 = vor.u32 %v10417_v55, %v9418_v23  ;;  %v4123_v17 = vld [vmem:[#allocation2 + $0x68] sm:$0xff]  ;;  %v4075_v23 = vld [vmem:[#allocation2 + $0x3b8] sm:$0xff] }
 0x72c   : > { %v12431_v12 = vadd.f32 %v6716_v42, %v6548_v38  ;;  %4313 = vmax.xlane.f32.xlu0 %v4093_v31  ;;  %4379 = vmax.xlane.f32.xlu2 %v4126_v20  ;;  %v4849_v55 = vld [vmem:[%s13620_s8 + $0x78] sm:$0xff]  ;;  %v4092_v20 = vld [vmem:[#allocation2 + $0x1d0] sm:$0xff] }
 0x72d   : > { %v6552_v15 = vpop.f32.mrf.mxu2 }
 0x72e   : > { %v6719_v52 = vpop.f32.mrf.mxu3 }
 0x72f   : > { %v6381_v35 = vpop.f32.mrf.mxu1 }
 0x730   : > { %v6217_v18 = vpop.f32.mrf.mxu0  ;;  %v6382_v32 = vadd.f32 %v6381_v35, %v6213_v6 }
 0x731   : > { %v6218_v45 = vadd.f32 %v6217_v18, %v4846_v11  ;;  %v10412_v18 = vld [vmem:[#allocation3 + $0x3c4] sm:$0xf] }
 0x732   : > { %v6551_v9 = vadd.f32 %v6550_v1, %v6382_v32  ;;  %6420 = vmatmul.bf16.gmra.mxu1 %v9351_v54  ;;  %6594 = vmatmul.bf16.gmra.mxu2 %v9387_v27  ;;  %v9423_v54 = vor.u32 %v10413_v47, %v9420_v8  ;;  %v9444_v47 = vld [vmem:[#allocation3 + $0x420] sm:$0xf0]  ;;  %v9482_v8 = vld [vmem:[#allocation3 + $0x448] sm:$0xf] }
 0x733   : > { %6256 = vmatmul.bf16.gmra.mxu0 %v9379_v59  ;;  %4377 = vmax.xlane.f32.xlu1 %v4125_v62  ;;  %v4848_v59 = vld [vmem:[%s13620_s8 + $0x70] sm:$0xff] }
 0x734   : > { %v12436_v24 = vadd.f32 %v6719_v52, %v6551_v9  ;;  %v4108_v9 = vld [vmem:[#allocation2 + $0x3d0] sm:$0xff]  ;;  %4341 = vmax.xlane.f32.xlu2 %v4107_v33 }
 0x735   : > { %v6555_v53 = vpop.f32.mrf.mxu2  ;;  %4343 = vmax.xlane.f32.xlu0 %v4108_v9  ;;  %v4091_v62 = vld [vmem:[#allocation2 + $0x2d0] sm:$0xff] }
 0x736   : > { %v6721_v2 = vpop.f32.mrf.mxu3 }
 0x737   : > { %v6383_v36 = vpop.f32.mrf.mxu1 }
 0x738   : > { %v6219_v10 = vpop.f32.mrf.mxu0  ;;  %v6384_v49 = vadd.f32 %v6383_v36, %v6215_v3  ;;  %v10424_v3 = vld [vmem:[#allocation3 + $0x41c] sm:$0xf0] }
 0x739   : > { %v6220_v37 = vadd.f32 %v6219_v10, %v4847_v58  ;;  %v9415_v10 = vor.u32 %v10412_v18, %v9412_v63  ;;  %v4124_v58 = vld [vmem:[#allocation2] sm:$0xff] }
 0x73a   : > { %v6553_v61 = vadd.f32 %v6552_v15, %v6384_v49  ;;  %v9451_v49 = vor.u32 %v10425_v48, %v9450_v44  ;;  %v4073_v44 = vld [vmem:[#allocation2 + $0x328] sm:$0xff]  ;;  %v4106_v48 = vld [vmem:[#allocation2 + $0x180] sm:$0xff] }
 0x73b   : > { %6763 = vmatmul.bf16.gmra.mxu3 %v9391_v4  ;;  %4315 = vmax.xlane.f32.xlu1 %v4094_v19 }
 0x73c   : > { %v12441_v1 = vadd.f32 %v6721_v2, %v6553_v61  ;;  %4279 = vmax.xlane.f32.xlu2 %v4076_v56  ;;  %v10428_v56 = vld [vmem:[#allocation3 + $0x444] sm:$0xf] }
 0x73d   : > { %v6557_v13 = vpop.f32.mrf.mxu2  ;;  %4373 = vmax.xlane.f32.xlu0 %v4123_v17  ;;  %v4852_v17 = vld [vmem:[%s13620_s8 + $0x90] sm:$0xff] }
 0x73e   : > { %v6724_v42 = vpop.f32.mrf.mxu3 }
 0x73f   : > { %v6386_v51 = vpop.f32.mrf.mxu1 }
 0x740   : > { %v6222_v40 = vpop.f32.mrf.mxu0  ;;  %v6387_v5 = vadd.f32 %v6386_v51, %v6218_v45  ;;  %v10421_v45 = vld [vmem:[#allocation3 + $0x40c] sm:$0xf] }
 0x741   : > { %v6223_v50 = vadd.f32 %v6222_v40, %v4848_v59  ;;  %v9455_v51 = vor.u32 %v10421_v45, %v9452_v16  ;;  %v4121_v45 = vld [vmem:[#allocation2 + $0x148] sm:$0xff]  ;;  %v4074_v16 = vld [vmem:[#allocation2 + $0x260] sm:$0xff] }
 0x742   : > { %v6556_v38 = vadd.f32 %v6555_v53, %v6387_v5  ;;  %6425 = vmatmul.bf16.gmra.mxu1 %v9383_v41  ;;  %6599 = vmatmul.bf16.gmra.mxu2 %v9419_v30  ;;  %v9442_v53 = vld [vmem:[#allocation3 + $0x400] sm:$0xf] }
 0x743   : > { %6261 = vmatmul.bf16.gmra.mxu0 %v9411_v57  ;;  %v9443_v7 = vor.u32 %v10424_v3, %v9442_v53  ;;  %4277 = vmax.xlane.f32.xlu1 %v4075_v23  ;;  %v4850_v5 = vld [vmem:[%s13620_s8 + $0x80] sm:$0xff]  ;;  %v4851_v53 = vld [vmem:[%s13620_s8 + $0x88] sm:$0xff] }
 0x744   : > { %v12446_v6 = vadd.f32 %v6724_v42, %v6556_v38  ;;  %v10420_v38 = vld [vmem:[#allocation3 + $0x404] sm:$0xf]  ;;  %4309 = vmax.xlane.f32.xlu2 %v4091_v62  ;;  %v10429_v3 = vld [vmem:[#allocation3 + $0x44c] sm:$0xf] }
 0x745   : > { %v6560_v34 = vpop.f32.mrf.mxu2  ;;  %4311 = vmax.xlane.f32.xlu0 %v4092_v20  ;;  %v9447_v59 = vor.u32 %v10420_v38, %v9444_v47 }
 0x746   : > { %v6726_v15 = vpop.f32.mrf.mxu3 }
 0x747   : > { %v6388_v52 = vpop.f32.mrf.mxu1 }
 0x748   : > { %v6224_v27 = vpop.f32.mrf.mxu0  ;;  %v6389_v35 = vadd.f32 %v6388_v52, %v6220_v37  ;;  %v10432_v52 = vld [vmem:[#allocation3 + $0x45c] sm:$0xf0] }
 0x749   : > { %v6225_v42 = vadd.f32 %v6224_v27, %v4849_v55  ;;  %v4122_v55 = vld [vmem:[#allocation2 + $0xf8] sm:$0xff] }
 0x74a   : > { %v6558_v32 = vadd.f32 %v6557_v13, %v6389_v35 }
 0x74b   : > { %6768 = vmatmul.bf16.gmra.mxu3 %v9423_v54  ;;  %4375 = vmax.xlane.f32.xlu1 %v4124_v58 }
 0x74c   : > { %v12451_v2 = vadd.f32 %v6726_v15, %v6558_v32  ;;  %v9474_v15 = vld [vmem:[#allocation3 + $0x440] sm:$0xf]  ;;  %4339 = vmax.xlane.f32.xlu2 %v4106_v48 }
 0x74d   : > { %v6562_v36 = vpop.f32.mrf.mxu2  ;;  %v9475_v9 = vor.u32 %v10432_v52, %v9474_v15  ;;  %4273 = vmax.xlane.f32.xlu0 %v4073_v44  ;;  %v4090_v15 = vld [vmem:[#allocation2 + $0x1c8] sm:$0xff]  ;;  %v4089_v52 = vld [vmem:[#allocation2 + $0x1b0] sm:$0xff] }
 0x74e   : > { %v6729_v4 = vpop.f32.mrf.mxu3 }
 0x74f   : > { %v6391_v11 = vpop.f32.mrf.mxu1 }
 0x750   : > { %v6227_v61 = vpop.f32.mrf.mxu0  ;;  %v6392_v60 = vadd.f32 %v6391_v11, %v6223_v50  ;;  %v4105_v50 = vld [vmem:[#allocation2 + $0xf0] sm:$0xff] }
 0x751   : > { %v6228_v37 = vadd.f32 %v6227_v61, %v4850_v5 }
 0x752   : > { %v6561_v25 = vadd.f32 %v6560_v34, %v6392_v60  ;;  %6430 = vmatmul.bf16.gmra.mxu1 %v9415_v10  ;;  %6604 = vmatmul.bf16.gmra.mxu2 %v9451_v49  ;;  %v10433_v34 = vld [vmem:[#allocation3 + $0x464] sm:$0xf0] }
 0x753   : > { %6266 = vmatmul.bf16.gmra.mxu0 %v9443_v7  ;;  %v9483_v18 = vor.u32 %v10433_v34, %v9482_v8  ;;  %4337 = vmax.xlane.f32.xlu1 %v4105_v50  ;;  %v4854_v50 = vld [vmem:[%s13620_s8 + $0xa0] sm:$0xff] }
 0x754   : > { %v12456_v46 = vadd.f32 %v6729_v4, %v6561_v25  ;;  %4369 = vmax.xlane.f32.xlu2 %v4121_v45 }
 0x755   : > { %v6565_v13 = vpop.f32.mrf.mxu2  ;;  %4371 = vmax.xlane.f32.xlu0 %v4122_v55 }
 0x756   : > { %v6731_v41 = vpop.f32.mrf.mxu3 }
 0x757   : > { %v6393_v30 = vpop.f32.mrf.mxu1 }
 0x758   : > { %v6229_v57 = vpop.f32.mrf.mxu0  ;;  %v6394_v40 = vadd.f32 %v6393_v30, %v6225_v42  ;;  %v9514_v42 = vld [vmem:[#allocation3 + $0x488] sm:$0xf] }
 0x759   : > { %v6230_v49 = vadd.f32 %v6229_v57, %v4851_v53  ;;  %v10440_v57 = vld [vmem:[#allocation3 + $0x49c] sm:$0xf0]  ;;  %v10436_v53 = vld [vmem:[#allocation3 + $0x484] sm:$0xf] }
 0x75a   : > { %v6563_v31 = vadd.f32 %v6562_v36, %v6394_v40  ;;  %v9484_v36 = vld [vmem:[#allocation3 + $0x468] sm:$0xf0] }
 0x75b   : > { %6773 = vmatmul.bf16.gmra.mxu3 %v9455_v51  ;;  %v9487_v61 = vor.u32 %v10429_v3, %v9484_v36  ;;  %v9506_v51 = vld [vmem:[#allocation3 + $0x480] sm:$0xf]  ;;  %4275 = vmax.xlane.f32.xlu1 %v4074_v16  ;;  %v4072_v36 = vld [vmem:[#allocation2 + $0x178] sm:$0xff] }
 0x75c   : > { %v12461_v54 = vadd.f32 %v6731_v41, %v6563_v31  ;;  %v10441_v41 = vld [vmem:[#allocation3 + $0x4a4] sm:$0xf0]  ;;  %v9507_v58 = vor.u32 %v10440_v57, %v9506_v51  ;;  %4307 = vmax.xlane.f32.xlu2 %v4090_v15  ;;  %v4087_v57 = vld [vmem:[#allocation2 + $0x3d8] sm:$0xff] }
 0x75d   : > { %v6567_v27 = vpop.f32.mrf.mxu2  ;;  %v9515_v20 = vor.u32 %v10441_v41, %v9514_v42 }
 0x75e   : > { %v6734_v35 = vpop.f32.mrf.mxu3 }
 0x75f   : > { %v6396_v32 = vpop.f32.mrf.mxu1 }
 0x760   : > { %v6232_v33 = vpop.f32.mrf.mxu0  ;;  %v6397_v19 = vadd.f32 %v6396_v32, %v6228_v37  ;;  %v4103_v37 = vld [vmem:[#allocation2 + $0x258] sm:$0xff] }
 0x761   : > { %v6233_v30 = vadd.f32 %v6232_v33, %v4852_v17  ;;  %4333 = vmax.xlane.f32.xlu0 %v4103_v37  ;;  %v10448_v17 = vld [vmem:[#allocation3 + $0x4dc] sm:$0xf0] }
 0x762   : > { %v6566_v63 = vadd.f32 %v6565_v13, %v6397_v19  ;;  %6435 = vmatmul.bf16.gmra.mxu1 %v9447_v59  ;;  %6609 = vmatmul.bf16.gmra.mxu2 %v9483_v18  ;;  %v9476_v13 = vld [vmem:[#allocation3 + $0x460] sm:$0xf0]  ;;  %v9516_v59 = vld [vmem:[#allocation3 + $0x4a8] sm:$0xf0] }
 0x763   : > { %6271 = vmatmul.bf16.gmra.mxu0 %v9475_v9  ;;  %v9479_v31 = vor.u32 %v10428_v56, %v9476_v13  ;;  %4305 = vmax.xlane.f32.xlu1 %v4089_v52 }
 0x764   : > { %v12466_v4 = vadd.f32 %v6734_v35, %v6566_v63  ;;  %v10437_v35 = vld [vmem:[#allocation3 + $0x48c] sm:$0xf] }
 0x765   : > { %v6570_v10 = vpop.f32.mrf.mxu2  ;;  %v9519_v63 = vor.u32 %v10437_v35, %v9516_v59  ;;  %v4856_v35 = vld [vmem:[%s13620_s8 + $0xb0] sm:$0xff]  ;;  %v10444_v59 = vld [vmem:[#allocation3 + $0x4c4] sm:$0xf] }
 0x766   : > { %v6736_v11 = vpop.f32.mrf.mxu3 }
 0x767   : > { %v6398_v7 = vpop.f32.mrf.mxu1 }
 0x768   : > { %v6234_v60 = vpop.f32.mrf.mxu0  ;;  %v6399_v25 = vadd.f32 %v6398_v7, %v6230_v49  ;;  %v4104_v49 = vld [vmem:[#allocation2 + $0x2d8] sm:$0xff]  ;;  %v9546_v7 = vld [vmem:[#allocation3 + $0x4c8] sm:$0xf] }
 0x769   : > { %4271 = vmax.xlane.f32.xlu0 %v4072_v36 }
 0x76a   : > { %v6568_v23 = vadd.f32 %v6567_v27, %v6399_v25  ;;  %v4853_v27 = vld [vmem:[%s13620_s8 + $0x98] sm:$0xff]  ;;  %v9538_v25 = vld [vmem:[#allocation3 + $0x4c0] sm:$0xf] }
 0x76b   : > { %6778 = vmatmul.bf16.gmra.mxu3 %v9487_v61  ;;  %v6235_v9 = vadd.f32 %v6234_v60, %v4853_v27  ;;  %v10449_v61 = vld [vmem:[#allocation3 + $0x4e4] sm:$0xf0]  ;;  %4335 = vmax.xlane.f32.xlu1 %v4104_v49  ;;  %v9539_v42 = vor.u32 %v10448_v17, %v9538_v25 }
 0x76c   : > { %v12471_v40 = vadd.f32 %v6736_v11, %v6568_v23  ;;  %v9508_v11 = vld [vmem:[#allocation3 + $0x4a0] sm:$0xf0]  ;;  %v9547_v16 = vor.u32 %v10449_v61, %v9546_v7 }
 0x76d   : > { %v6572_v5 = vpop.f32.mrf.mxu2  ;;  %v9511_v45 = vor.u32 %v10436_v53, %v9508_v11  ;;  %v9570_v53 = vld [vmem:[#allocation3 + $0x500] sm:$0xf] }
 0x76e   : > { %v6739_v38 = vpop.f32.mrf.mxu3 }
 0x76f   : > { %v6401_v62 = vpop.f32.mrf.mxu1 }
 0x770   : > { %v6237_v47 = vpop.f32.mrf.mxu0  ;;  %v6402_v8 = vadd.f32 %v6401_v62, %v6233_v30  ;;  %v9548_v62 = vld [vmem:[#allocation3 + $0x4e8] sm:$0xf0] }
 0x771   : > { %v6238_v60 = vadd.f32 %v6237_v47, %v4854_v50  ;;  %4301 = vmax.xlane.f32.xlu0 %v4087_v57  ;;  %v10457_v50 = vld [vmem:[#allocation3 + $0x524] sm:$0xf0] }
 0x772   : > { %v6571_v34 = vadd.f32 %v6570_v10, %v6402_v8  ;;  %6440 = vmatmul.bf16.gmra.mxu1 %v9479_v31  ;;  %6614 = vmatmul.bf16.gmra.mxu2 %v9515_v20  ;;  %v4071_v10 = vld [vmem:[#allocation2 + $0xe0] sm:$0xff]  ;;  %v4855_v31 = vld [vmem:[%s13620_s8 + $0xa8] sm:$0xff] }
 0x773   : > { %6276 = vmatmul.bf16.gmra.mxu0 %v9507_v58  ;;  %4269 = vmax.xlane.f32.xlu2 %v4071_v10  ;;  %v10445_v20 = vld [vmem:[#allocation3 + $0x4cc] sm:$0xf] }
 0x774   : > { %v12476_v18 = vadd.f32 %v6739_v38, %v6571_v34  ;;  %v4119_v38 = vld [vmem:[#allocation2 + $0x228] sm:$0xff]  ;;  %v9551_v15 = vor.u32 %v10445_v20, %v9548_v62  ;;  %v4352_v62 = vpop.xlane.xlu2 %4351 }
 0x775   : > { %v6575_v32 = vpop.f32.mrf.mxu2  ;;  %4365 = vmax.xlane.f32.xlu1 %v4119_v38  ;;  %v4286_v38 = vpop.xlane.xlu0 %4285  ;;  %4497 = vst.msk [vmem:[%s11007_s20 + $0x378] sm:$0xff] %vm4385_vm1, %v4352_v62 }
 0x776   : > { %v6741_v33 = vpop.f32.mrf.mxu3  ;;  %4464 = vst.msk [vmem:[%s11007_s20 + $0x270] sm:$0xff] %vm4385_vm1, %v4286_v38 }
 0x777   : > { %v6403_v19 = vpop.f32.mrf.mxu1 }
 0x778   : > { %v6239_v44 = vpop.f32.mrf.mxu0  ;;  %v6404_v48 = vadd.f32 %v6403_v19, %v6235_v9  ;;  %v4102_v9 = vld [vmem:[#allocation2 + $0xa8] sm:$0xff] }
 0x779   : > { %v6240_v8 = vadd.f32 %v6239_v44, %v4855_v31  ;;  %v4088_v19 = vld [vmem:[#allocation2 + $0x1e8] sm:$0xff]  ;;  %4331 = vmax.xlane.f32.xlu0 %v4102_v9  ;;  %v9572_v9 = vld [vmem:[#allocation3 + $0x520] sm:$0xf0] }
 0x77a   : > { %v6573_v3 = vadd.f32 %v6572_v5, %v6404_v48  ;;  %v4120_v5 = vld [vmem:[#allocation2 + $0x348] sm:$0xff] }
 0x77b   : > { %6783 = vmatmul.bf16.gmra.mxu3 %v9519_v63  ;;  %4367 = vmax.xlane.f32.xlu2 %v4120_v5  ;;  %v9540_v63 = vld [vmem:[#allocation3 + $0x4e0] sm:$0xf0]  ;;  %v9578_v48 = vld [vmem:[#allocation3 + $0x508] sm:$0xf] }
 0x77c   : > { %v12481_v56 = vadd.f32 %v6741_v33, %v6573_v3  ;;  %v4101_v33 = vld [vmem:[#allocation2 + $0x1a0] sm:$0xff]  ;;  %v9543_v11 = vor.u32 %v10444_v59, %v9540_v63  ;;  %v9579_v7 = vor.u32 %v10457_v50, %v9578_v48  ;;  %v4085_v59 = vld [vmem:[#allocation2 + $0x2c8] sm:$0xff] }
 0x77d   : > { %v6577_v23 = vpop.f32.mrf.mxu2  ;;  %v10456_v3 = vld [vmem:[#allocation3 + $0x51c] sm:$0xf0]  ;;  %4303 = vmax.xlane.f32.xlu1 %v4088_v19  ;;  %v10465_v19 = vld [vmem:[#allocation3 + $0x564] sm:$0xf0] }
 0x77e   : > { %v6744_v55 = vpop.f32.mrf.mxu3  ;;  %v9602_v48 = vld [vmem:[#allocation3 + $0x540] sm:$0xf] }
 0x77f   : > { %v6406_v13 = vpop.f32.mrf.mxu1  ;;  %v10464_v50 = vld [vmem:[#allocation3 + $0x55c] sm:$0xf0] }
 0x780   : > { %v6242_v41 = vpop.f32.mrf.mxu0  ;;  %v6407_v30 = vadd.f32 %v6406_v13, %v6238_v60  ;;  %v9571_v60 = vor.u32 %v10456_v3, %v9570_v53  ;;  %v4857_v13 = vld [vmem:[%s13620_s8 + $0xb8] sm:$0xff] }
 0x781   : > { %v6243_v44 = vadd.f32 %v6242_v41, %v4856_v35  ;;  %v9580_v41 = vld [vmem:[#allocation3 + $0x528] sm:$0xf0]  ;;  %v4086_v35 = vld [vmem:[#allocation2 + $0x210] sm:$0xff] }
 0x782   : > { %v6576_v51 = vadd.f32 %v6575_v32, %v6407_v30  ;;  %6445 = vmatmul.bf16.gmra.mxu1 %v9511_v45  ;;  %6619 = vmatmul.bf16.gmra.mxu2 %v9547_v16  ;;  %v4070_v45 = vld [vmem:[#allocation2 + $0x300] sm:$0xff]  ;;  %v4069_v16 = vld [vmem:[#allocation2 + $0x70] sm:$0xff] }
 0x783   : > { %6281 = vmatmul.bf16.gmra.mxu0 %v9539_v42  ;;  %4329 = vmax.xlane.f32.xlu2 %v4101_v33  ;;  %v10453_v42 = vld [vmem:[#allocation3 + $0x50c] sm:$0xf]  ;;  %v9610_v33 = vld [vmem:[#allocation3 + $0x548] sm:$0xf] }
 0x784   : > { %v12486_v58 = vadd.f32 %v6744_v55, %v6576_v51  ;;  %v4117_v55 = vld [vmem:[#allocation2 + $0x278] sm:$0xff]  ;;  %v9583_v20 = vor.u32 %v10453_v42, %v9580_v41  ;;  %v4859_v41 = vld [vmem:[%s13620_s8 + $0xc8] sm:$0xff] }
 0x785   : > { %v6580_v47 = vpop.f32.mrf.mxu2  ;;  %4361 = vmax.xlane.f32.xlu0 %v4117_v55  ;;  %4265 = vmax.xlane.f32.xlu1 %v4069_v16  ;;  %v4067_v16 = vld [vmem:[#allocation2 + $0x318] sm:$0xff] }
 0x786   : > { %v6746_v34 = vpop.f32.mrf.mxu3  ;;  %v4099_v42 = vld [vmem:[#allocation2 + $0x398] sm:$0xff] }
 0x787   : > { %v6408_v37 = vpop.f32.mrf.mxu1 }
 0x788   : > { %v6244_v52 = vpop.f32.mrf.mxu0  ;;  %v6409_v27 = vadd.f32 %v6408_v37, %v6240_v8  ;;  %v4858_v37 = vld [vmem:[%s13620_s8 + $0xc0] sm:$0xff] }
 0x789   : > { %v6245_v57 = vadd.f32 %v6244_v52, %v4857_v13  ;;  %v4100_v13 = vld [vmem:[#allocation2 + $0x390] sm:$0xff] }
 0x78a   : > { %v6578_v32 = vadd.f32 %v6577_v23, %v6409_v27 }
 0x78b   : > { %6788 = vmatmul.bf16.gmra.mxu3 %v9551_v15  ;;  %4267 = vmax.xlane.f32.xlu2 %v4070_v45  ;;  %v10452_v15 = vld [vmem:[#allocation3 + $0x504] sm:$0xf] }
 0x78c   : > { %v12491_v36 = vadd.f32 %v6746_v34, %v6578_v32  ;;  %v4350_v34 = vpop.xlane.xlu1 %4349  ;;  %v4118_v32 = vld [vmem:[#allocation2 + $0x360] sm:$0xff] }
 0x78d   : > { %v6582_v10 = vpop.f32.mrf.mxu2  ;;  %4496 = vst.msk [vmem:[%s11007_s20 + $0x370] sm:$0xff] %vm4385_vm1, %v4350_v34  ;;  %v4569_v52 = vpack.c.bf16 %v4352_v62, %v4350_v34  ;;  %4299 = vmax.xlane.f32.xlu0 %v4086_v35  ;;  %4363 = vmax.xlane.f32.xlu1 %v4118_v32  ;;  %v10460_v32 = vld [vmem:[#allocation3 + $0x544] sm:$0xf] }
 0x78e   : > { %v6749_v49 = vpop.f32.mrf.mxu3 }
 0x78f   : > { %v6411_v61 = vpop.f32.mrf.mxu1  ;;  %7192 = vmatpush.bf16.msrb.mxu2 %v4569_v52 }
 0x790   : > { %v6247_v25 = vpop.f32.mrf.mxu0  ;;  %v6412_v17 = vadd.f32 %v6411_v61, %v6243_v44  ;;  %v9603_v61 = vor.u32 %v10464_v50, %v9602_v48  ;;  %v9604_v48 = vld [vmem:[#allocation3 + $0x560] sm:$0xf0]  ;;  %v9642_v50 = vld [vmem:[#allocation3 + $0x588] sm:$0xf] }
 0x791   : > { %v6248_v63 = vadd.f32 %v6247_v25, %v4858_v37 }
 0x792   : > { %v6581_v23 = vadd.f32 %v6580_v47, %v6412_v17  ;;  %6450 = vmatmul.bf16.gmra.mxu1 %v9543_v11  ;;  %6624 = vmatmul.bf16.gmra.mxu2 %v9579_v7  ;;  %v4384_v11 = vpop.xlane.xlu0 %4383 }
 0x793   : > { %6286 = vmatmul.bf16.gmra.mxu0 %v9571_v60  ;;  %4297 = vmax.xlane.f32.xlu2 %v4085_v59  ;;  %4513 = vst.msk [vmem:[%s11007_s20 + $0x3f8] sm:$0xff] %vm4385_vm1, %v4384_v11  ;;  %v4382_v60 = vpop.xlane.xlu2 %4381  ;;  %v4860_v59 = vld [vmem:[%s13620_s8 + $0xd0] sm:$0xff] }
 0x794   : > { %v12496_v30 = vadd.f32 %v6749_v49, %v6581_v23  ;;  %v9611_v49 = vor.u32 %v10465_v19, %v9610_v33  ;;  %4512 = vst.msk [vmem:[%s11007_s20 + $0x3f0] sm:$0xff] %vm4385_vm1, %v4382_v60  ;;  %v4288_v23 = vpop.xlane.xlu1 %4287  ;;  %v4116_v33 = vld [vmem:[#allocation2 + $0xc8] sm:$0xff]  ;;  %v4115_v19 = vld [vmem:[#allocation2 + $0x370] sm:$0xff] }
 0x795   : > { %v6585_v51 = vpop.f32.mrf.mxu2  ;;  %4465 = vst.msk [vmem:[%s11007_s20 + $0x278] sm:$0xff] %vm4385_vm1, %v4288_v23  ;;  %v4553_v55 = vpack.c.bf16 %v4288_v23, %v4286_v38  ;;  %4261 = vmax.xlane.f32.xlu0 %v4067_v16  ;;  %4325 = vmax.xlane.f32.xlu1 %v4099_v42 }
 0x796   : > { %v6751_v5 = vpop.f32.mrf.mxu3 }
 0x797   : > { %v6413_v31 = vpop.f32.mrf.mxu1  ;;  %6854 = vmatpush.bf16.msrb.mxu0 %v4553_v55 }
 0x798   : > { %v6249_v47 = vpop.f32.mrf.mxu0  ;;  %v6414_v8 = vadd.f32 %v6413_v31, %v6245_v57  ;;  %v10461_v57 = vld [vmem:[#allocation3 + $0x54c] sm:$0xf] }
 0x79a   : > { %v6583_v27 = vadd.f32 %v6582_v10, %v6414_v8  ;;  %v9575_v10 = vor.u32 %v10452_v15, %v9572_v9  ;;  %v4346_v8 = vpop.xlane.xlu0 %4345 }
 0x79b   : > { %6793 = vmatmul.bf16.gmra.mxu3 %v9583_v20  ;;  %4327 = vmax.xlane.f32.xlu2 %v4100_v13  ;;  %v6250_v20 = vadd.f32 %v6249_v47, %v4859_v41  ;;  %4494 = vst.msk [vmem:[%s11007_s20 + $0x360] sm:$0xff] %vm4385_vm1, %v4346_v8  ;;  %v4320_v15 = vpop.xlane.xlu2 %4319 }
 0x79c   : > { %v12507_v44 = vadd.f32 %v6751_v5, %v6583_v27  ;;  %v9612_v5 = vld [vmem:[#allocation3 + $0x568] sm:$0xf0]  ;;  %4481 = vst.msk [vmem:[%s11007_s20 + $0x2f8] sm:$0xff] %vm4385_vm1, %v4320_v15  ;;  %v4318_v35 = vpop.xlane.xlu1 %4317 }
 0x79d   : > { %v6587_v53 = vpop.f32.mrf.mxu2  ;;  %v9615_v37 = vor.u32 %v10461_v57, %v9612_v5  ;;  %4480 = vst.msk [vmem:[%s11007_s20 + $0x2f0] sm:$0xff] %vm4385_vm1, %v4318_v35  ;;  %v4561_v47 = vpack.c.bf16 %v4320_v15, %v4318_v35  ;;  %4359 = vmax.xlane.f32.xlu0 %v4116_v33  ;;  %v4097_v5 = vld [vmem:[#allocation2 + $0x1f8] sm:$0xff] }
 0x79e   : > { %v6754_v3 = vpop.f32.mrf.mxu3 }
 0x79f   : > { %v6416_v7 = vpop.f32.mrf.mxu1  ;;  %7023 = vmatpush.bf16.msrb.mxu1 %v4561_v47 }
 0x7a0   : > { %v6252_v25 = vpop.f32.mrf.mxu0  ;;  %v6417_v17 = vadd.f32 %v6416_v7, %v6248_v63  ;;  %v4068_v63 = vld [vmem:[#allocation2 + $0x220] sm:$0xff] }
 0x7a1   : > { %4263 = vmax.xlane.f32.xlu1 %v4068_v63 }
 0x7a2   : > { %v6586_v45 = vadd.f32 %v6585_v51, %v6417_v17  ;;  %6455 = vmatmul.bf16.gmra.mxu1 %v9575_v10  ;;  %6629 = vmatmul.bf16.gmra.mxu2 %v9611_v49  ;;  %v4577_v51 = vpack.c.bf16 %v4384_v11, %v4382_v60  ;;  %v6253_v10 = vadd.f32 %v6252_v25, %v4860_v59  ;;  %v9634_v49 = vld [vmem:[#allocation3 + $0x580] sm:$0xf]  ;;  %v4284_v23 = vpop.xlane.xlu0 %4283 }
 0x7a3   : > { %6291 = vmatmul.bf16.gmra.mxu0 %v9603_v61  ;;  %v10472_v11 = vld [vmem:[#allocation3 + $0x59c] sm:$0xf0]  ;;  %4357 = vmax.xlane.f32.xlu2 %v4115_v19  ;;  %v9607_v60 = vor.u32 %v10460_v32, %v9604_v48  ;;  %4463 = vst.msk [vmem:[%s11007_s20 + $0x268] sm:$0xff] %vm4385_vm1, %v4284_v23  ;;  %v4282_v16 = vpop.xlane.xlu2 %4281 }
 0x7a4   : > { %v12518_v31 = vadd.f32 %v6754_v3, %v6586_v45  ;;  %7361 = vmatpush.bf16.msrb.mxu3 %v4577_v51  ;;  %v10473_v3 = vld [vmem:[#allocation3 + $0x5a4] sm:$0xf0]  ;;  %v9635_v45 = vor.u32 %v10472_v11, %v9634_v49  ;;  %4462 = vst.msk [vmem:[%s11007_s20 + $0x260] sm:$0xff] %vm4385_vm1, %v4282_v16  ;;  %v4348_v42 = vpop.xlane.xlu1 %4347  ;;  %v4084_v51 = vld [vmem:[#allocation2 + $0x160] sm:$0xff]  ;;  %v4065_v49 = vld [vmem:[#allocation2 + $0x130] sm:$0xff] }
 0x7a5   : > { %v6590_v38 = vpop.f32.mrf.mxu2  ;;  %v9643_v17 = vor.u32 %v10473_v3, %v9642_v50  ;;  %4495 = vst.msk [vmem:[%s11007_s20 + $0x368] sm:$0xff] %vm4385_vm1, %v4348_v42  ;;  %v4568_v41 = vpack.c.bf16 %v4348_v42, %v4346_v8  ;;  %4321 = vmax.xlane.f32.xlu0 %v4097_v5  ;;  %v4862_v48 = vld [vmem:[%s13620_s8 + $0xe0] sm:$0xff]  ;;  %v4098_v11 = vld [vmem:[#allocation2 + $0x238] sm:$0xff] }
 0x7a6   : > { %v6756_v62 = vpop.f32.mrf.mxu3  ;;  %v10468_v50 = vld [vmem:[#allocation3 + $0x584] sm:$0xf] }
 0x7a7   : > { %v6418_v34 = vpop.f32.mrf.mxu1  ;;  %7193 = vmatpush.bf16.msrb.mxu2 %v4568_v41 }
 0x7a8   : > { %v6254_v52 = vpop.f32.mrf.mxu0  ;;  %v6419_v27 = vadd.f32 %v6418_v34, %v6250_v20  ;;  %v4083_v20 = vld [vmem:[#allocation2 + $0x3c8] sm:$0xff] }
 0x7a9   : > { %v10469_v34 = vld [vmem:[#allocation3 + $0x58c] sm:$0xf]  ;;  %4293 = vmax.xlane.f32.xlu1 %v4083_v20 }
 0x7aa   : > { %v6588_v9 = vadd.f32 %v6587_v53, %v6419_v27  ;;  %v4314_v59 = vpop.xlane.xlu0 %4313 }
 0x7ab   : > { %6798 = vmatmul.bf16.gmra.mxu3 %v9615_v37  ;;  %v9644_v37 = vld [vmem:[#allocation3 + $0x5a8] sm:$0xf0]  ;;  %4295 = vmax.xlane.f32.xlu2 %v4084_v51  ;;  %4478 = vst.msk [vmem:[%s11007_s20 + $0x2e0] sm:$0xff] %vm4385_vm1, %v4314_v59 }
 0x7ac   : > { %v12529_v7 = vadd.f32 %v6756_v62, %v6588_v9  ;;  %v4861_v62 = vld [vmem:[%s13620_s8 + $0xd8] sm:$0xff]  ;;  %v9647_v47 = vor.u32 %v10469_v34, %v9644_v37  ;;  %v4380_v9 = vpop.xlane.xlu2 %4379  ;;  %v4378_v63 = vpop.xlane.xlu1 %4377 }
 0x7ad   : > { %v6592_v61 = vpop.f32.mrf.mxu2  ;;  %v6255_v27 = vadd.f32 %v6254_v52, %v4861_v62  ;;  %4511 = vst.msk [vmem:[%s11007_s20 + $0x3e8] sm:$0xff] %vm4385_vm1, %v4380_v9  ;;  %v4576_v52 = vpack.c.bf16 %v4380_v9, %v4378_v63  ;;  %v9676_v9 = vld [vmem:[#allocation3 + $0x5e8] sm:$0xf0] }
 0x7ae   : > { %v6759_v53 = vpop.f32.mrf.mxu3  ;;  %4510 = vst.msk [vmem:[%s11007_s20 + $0x3e0] sm:$0xff] %vm4385_vm1, %v4378_v63 }
 0x7af   : > { %v6421_v55 = vpop.f32.mrf.mxu1  ;;  %7362 = vmatpush.bf16.msrb.mxu3 %v4576_v52 }
 0x7b0   : > { %v6257_v25 = vpop.f32.mrf.mxu0  ;;  %v6422_v13 = vadd.f32 %v6421_v55, %v6253_v10  ;;  %v4066_v10 = vld [vmem:[#allocation2 + $0x200] sm:$0xff] }
 0x7b1   : > { %v9666_v55 = vld [vmem:[#allocation3 + $0x5c0] sm:$0xf]  ;;  %4259 = vmax.xlane.f32.xlu0 %v4066_v10  ;;  %4323 = vmax.xlane.f32.xlu1 %v4098_v11 }
 0x7b2   : > { %v6591_v57 = vadd.f32 %v6590_v38, %v6422_v13  ;;  %6460 = vmatmul.bf16.gmra.mxu1 %v9607_v60  ;;  %6634 = vmatmul.bf16.gmra.mxu2 %v9643_v17  ;;  %v4552_v38 = vpack.c.bf16 %v4284_v23, %v4282_v16  ;;  %v9674_v60 = vld [vmem:[#allocation3 + $0x5c8] sm:$0xf]  ;;  %v6258_v23 = vadd.f32 %v6257_v25, %v4862_v48 }
 0x7b3   : > { %6296 = vmatmul.bf16.gmra.mxu0 %v9635_v45  ;;  %v10481_v17 = vld [vmem:[#allocation3 + $0x5e4] sm:$0xf0]  ;;  %v10480_v45 = vld [vmem:[#allocation3 + $0x5dc] sm:$0xf0]  ;;  %4257 = vmax.xlane.f32.xlu2 %v4065_v49 }
 0x7b4   : > { %v12540_v15 = vadd.f32 %v6759_v53, %v6591_v57  ;;  %6855 = vmatpush.bf16.msrb.mxu0 %v4552_v38  ;;  %v9636_v53 = vld [vmem:[#allocation3 + $0x5a0] sm:$0xf0]  ;;  %v9675_v41 = vor.u32 %v10481_v17, %v9674_v60  ;;  %v4344_v57 = vpop.xlane.xlu0 %4343  ;;  %v9667_v51 = vor.u32 %v10480_v45, %v9666_v55  ;;  %v4342_v25 = vpop.xlane.xlu2 %4341  ;;  %v4864_v60 = vld [vmem:[%s13620_s8 + $0xf0] sm:$0xff]  ;;  %v4081_v55 = vld [vmem:[#allocation2 + $0x288] sm:$0xff] }
 0x7b5   : > { %v6595_v8 = vpop.f32.mrf.mxu2  ;;  %v9639_v42 = vor.u32 %v10468_v50, %v9636_v53  ;;  %4493 = vst.msk [vmem:[%s11007_s20 + $0x358] sm:$0xff] %vm4385_vm1, %v4344_v57  ;;  %v4316_v34 = vpop.xlane.xlu1 %4315  ;;  %v4082_v45 = vld [vmem:[#allocation2 + $0x3a8] sm:$0xff] }
 0x7b6   : > { %v6761_v35 = vpop.f32.mrf.mxu3  ;;  %4492 = vst.msk [vmem:[%s11007_s20 + $0x350] sm:$0xff] %vm4385_vm1, %v4342_v25  ;;  %v4560_v37 = vpack.c.bf16 %v4316_v34, %v4314_v59 }
 0x7b7   : > { %v6423_v32 = vpop.f32.mrf.mxu1  ;;  %4479 = vst.msk [vmem:[%s11007_s20 + $0x2e8] sm:$0xff] %vm4385_vm1, %v4316_v34 }
 0x7b8   : > { %v6259_v33 = vpop.f32.mrf.mxu0  ;;  %v6424_v19 = vadd.f32 %v6423_v32, %v6255_v27  ;;  %v4114_v27 = vld [vmem:[#allocation2 + $0x308] sm:$0xff]  ;;  %7024 = vmatpush.bf16.msrb.mxu1 %v4560_v37 }
 0x7b9   : > { %v4863_v32 = vld [vmem:[%s13620_s8 + $0xe8] sm:$0xff]  ;;  %4289 = vmax.xlane.f32.xlu0 %v4081_v55 }
 0x7ba   : > { %v6593_v3 = vadd.f32 %v6592_v61, %v6424_v19  ;;  %v6260_v59 = vadd.f32 %v6259_v33, %v4863_v32 }
 0x7bb   : > { %6803 = vmatmul.bf16.gmra.mxu3 %v9647_v47  ;;  %v10477_v47 = vld [vmem:[#allocation3 + $0x5cc] sm:$0xf]  ;;  %4355 = vmax.xlane.f32.xlu2 %v4114_v27 }
 0x7bc   : > { %v12551_v16 = vadd.f32 %v6761_v35, %v6593_v3  ;;  %v4113_v35 = vld [vmem:[#allocation2 + $0x78] sm:$0xff]  ;;  %v4374_v50 = vpop.xlane.xlu0 %4373  ;;  %v9679_v3 = vor.u32 %v10477_v47, %v9676_v9  ;;  %v4280_v10 = vpop.xlane.xlu2 %4279 }
 0x7bd   : > { %v6597_v13 = vpop.f32.mrf.mxu2  ;;  %4353 = vmax.xlane.f32.xlu1 %v4113_v35  ;;  %4508 = vst.msk [vmem:[%s11007_s20 + $0x3d0] sm:$0xff] %vm4385_vm1, %v4374_v50  ;;  %v4278_v53 = vpop.xlane.xlu1 %4277 }
 0x7be   : > { %v6764_v61 = vpop.f32.mrf.mxu3  ;;  %4461 = vst.msk [vmem:[%s11007_s20 + $0x258] sm:$0xff] %vm4385_vm1, %v4280_v10  ;;  %v4551_v33 = vpack.c.bf16 %v4280_v10, %v4278_v53 }
 0x7bf   : > { %v6426_v5 = vpop.f32.mrf.mxu1  ;;  %4460 = vst.msk [vmem:[%s11007_s20 + $0x250] sm:$0xff] %vm4385_vm1, %v4278_v53 }
 0x7c0   : > { %v6262_v20 = vpop.f32.mrf.mxu0  ;;  %v6427_v62 = vadd.f32 %v6426_v5, %v6258_v23  ;;  %v10476_v23 = vld [vmem:[#allocation3 + $0x5c4] sm:$0xf]  ;;  %6856 = vmatpush.bf16.msrb.mxu0 %v4551_v33  ;;  %v9698_v5 = vld [vmem:[#allocation3 + $0x600] sm:$0xf] }
 0x7c2   : > { %v6596_v38 = vadd.f32 %v6595_v8, %v6427_v62  ;;  %6465 = vmatmul.bf16.gmra.mxu1 %v9639_v42  ;;  %6639 = vmatmul.bf16.gmra.mxu2 %v9675_v41  ;;  %v4567_v8 = vpack.c.bf16 %v4344_v57, %v4342_v25  ;;  %v9706_v42 = vld [vmem:[#allocation3 + $0x608] sm:$0xf]  ;;  %v6263_v57 = vadd.f32 %v6262_v20, %v4864_v60 }
 0x7c3   : > { %6301 = vmatmul.bf16.gmra.mxu0 %v9667_v51  ;;  %v10489_v41 = vld [vmem:[#allocation3 + $0x624] sm:$0xf0]  ;;  %v10488_v51 = vld [vmem:[#allocation3 + $0x61c] sm:$0xf0] }
 0x7c4   : > { %v12562_v19 = vadd.f32 %v6764_v61, %v6596_v38  ;;  %7194 = vmatpush.bf16.msrb.mxu2 %v4567_v8  ;;  %v9668_v61 = vld [vmem:[#allocation3 + $0x5e0] sm:$0xf0]  ;;  %v9707_v37 = vor.u32 %v10489_v41, %v9706_v42  ;;  %v4312_v38 = vpop.xlane.xlu0 %4311  ;;  %v9699_v35 = vor.u32 %v10488_v51, %v9698_v5  ;;  %v4310_v32 = vpop.xlane.xlu2 %4309  ;;  %v9738_v51 = vld [vmem:[#allocation3 + $0x648] sm:$0xf] }
 0x7c5   : > { %v6600_v63 = vpop.f32.mrf.mxu2  ;;  %4291 = vmax.xlane.f32.xlu1 %v4082_v45  ;;  %v9671_v34 = vor.u32 %v10476_v23, %v9668_v61  ;;  %4477 = vst.msk [vmem:[%s11007_s20 + $0x2d8] sm:$0xff] %vm4385_vm1, %v4312_v38  ;;  %v4376_v9 = vpop.xlane.xlu1 %4375  ;;  %v4559_v53 = vpack.c.bf16 %v4312_v38, %v4310_v32  ;;  %v4866_v42 = vld [vmem:[%s13620_s8 + $0x100] sm:$0xff] }
 0x7c6   : > { %v6766_v48 = vpop.f32.mrf.mxu3  ;;  %4476 = vst.msk [vmem:[%s11007_s20 + $0x2d0] sm:$0xff] %vm4385_vm1, %v4310_v32  ;;  %v4575_v8 = vpack.c.bf16 %v4376_v9, %v4374_v50  ;;  %v9700_v5 = vld [vmem:[#allocation3 + $0x620] sm:$0xf0]  ;;  %v10496_v38 = vld [vmem:[#allocation3 + $0x65c] sm:$0xf0] }
 0x7c7   : > { %v6428_v52 = vpop.f32.mrf.mxu1  ;;  %4509 = vst.msk [vmem:[%s11007_s20 + $0x3d8] sm:$0xff] %vm4385_vm1, %v4376_v9  ;;  %7025 = vmatpush.bf16.msrb.mxu1 %v4559_v53 }
 0x7c8   : > { %v6264_v49 = vpop.f32.mrf.mxu0  ;;  %v6429_v11 = vadd.f32 %v6428_v52, %v6260_v59  ;;  %7363 = vmatpush.bf16.msrb.mxu3 %v4575_v8  ;;  %v10485_v52 = vld [vmem:[#allocation3 + $0x60c] sm:$0xf] }
 0x7ca   : > { %v6598_v17 = vadd.f32 %v6597_v13, %v6429_v11 }
 0x7cb   : > { %6808 = vmatmul.bf16.gmra.mxu3 %v9679_v3  ;;  %v9708_v3 = vld [vmem:[#allocation3 + $0x628] sm:$0xf0] }
 0x7cc   : > { %v12573_v25 = vadd.f32 %v6766_v48, %v6598_v17  ;;  %v4865_v48 = vld [vmem:[%s13620_s8 + $0xf8] sm:$0xff]  ;;  %v9711_v17 = vor.u32 %v10485_v52, %v9708_v3  ;;  %v4340_v23 = vpop.xlane.xlu2 %4339 }
 0x7cd   : > { %v6602_v62 = vpop.f32.mrf.mxu2  ;;  %v6265_v60 = vadd.f32 %v6264_v49, %v4865_v48  ;;  %4491 = vst.msk [vmem:[%s11007_s20 + $0x348] sm:$0xff] %vm4385_vm1, %v4340_v23  ;;  %v4338_v61 = vpop.xlane.xlu1 %4337 }
 0x7ce   : > { %v6769_v13 = vpop.f32.mrf.mxu3  ;;  %4490 = vst.msk [vmem:[%s11007_s20 + $0x340] sm:$0xff] %vm4385_vm1, %v4338_v61  ;;  %v4566_v49 = vpack.c.bf16 %v4340_v23, %v4338_v61 }
 0x7cf   : > { %v6431_v27 = vpop.f32.mrf.mxu1 }
 0x7d0   : > { %v6267_v47 = vpop.f32.mrf.mxu0  ;;  %v6432_v20 = vadd.f32 %v6431_v27, %v6263_v57  ;;  %v10484_v57 = vld [vmem:[#allocation3 + $0x604] sm:$0xf]  ;;  %7195 = vmatpush.bf16.msrb.mxu2 %v4566_v49 }
 0x7d2   : > { %v6601_v59 = vadd.f32 %v6600_v63, %v6432_v20  ;;  %6470 = vmatmul.bf16.gmra.mxu1 %v9671_v34  ;;  %6644 = vmatmul.bf16.gmra.mxu2 %v9707_v37  ;;  %v4274_v63 = vpop.xlane.xlu0 %4273  ;;  %v6268_v34 = vadd.f32 %v6267_v47, %v4866_v42  ;;  %v9730_v37 = vld [vmem:[#allocation3 + $0x640] sm:$0xf]  ;;  %v9703_v20 = vor.u32 %v10484_v57, %v9700_v5 }
 0x7d3   : > { %6306 = vmatmul.bf16.gmra.mxu0 %v9699_v35  ;;  %4458 = vst.msk [vmem:[%s11007_s20 + $0x240] sm:$0xff] %vm4385_vm1, %v4274_v63 }
 0x7d4   : > { %v12584_v10 = vadd.f32 %v6769_v13, %v6601_v59  ;;  %v10497_v13 = vld [vmem:[#allocation3 + $0x664] sm:$0xf0]  ;;  %v9731_v59 = vor.u32 %v10496_v38, %v9730_v37  ;;  %v4370_v48 = vpop.xlane.xlu2 %4369  ;;  %v10492_v38 = vld [vmem:[#allocation3 + $0x644] sm:$0xf] }
 0x7d5   : > { %v6605_v11 = vpop.f32.mrf.mxu2  ;;  %v9739_v9 = vor.u32 %v10497_v13, %v9738_v51  ;;  %4506 = vst.msk [vmem:[%s11007_s20 + $0x3c0] sm:$0xff] %vm4385_vm1, %v4370_v48  ;;  %v4276_v47 = vpop.xlane.xlu1 %4275 }
 0x7d6   : > { %v6771_v50 = vpop.f32.mrf.mxu3  ;;  %4459 = vst.msk [vmem:[%s11007_s20 + $0x248] sm:$0xff] %vm4385_vm1, %v4276_v47  ;;  %v4550_v53 = vpack.c.bf16 %v4276_v47, %v4274_v63 }
 0x7d7   : > { %v6433_v33 = vpop.f32.mrf.mxu1 }
 0x7d8   : > { %v6269_v55 = vpop.f32.mrf.mxu0  ;;  %v6434_v45 = vadd.f32 %v6433_v33, %v6265_v60  ;;  %v10493_v33 = vld [vmem:[#allocation3 + $0x64c] sm:$0xf]  ;;  %6857 = vmatpush.bf16.msrb.mxu0 %v4550_v53 }
 0x7da   : > { %v6603_v41 = vadd.f32 %v6602_v62, %v6434_v45  ;;  %v4372_v8 = vpop.xlane.xlu0 %4371 }
 0x7db   : > { %6813 = vmatmul.bf16.gmra.mxu3 %v9711_v17  ;;  %4507 = vst.msk [vmem:[%s11007_s20 + $0x3c8] sm:$0xff] %vm4385_vm1, %v4372_v8  ;;  %v9740_v17 = vld [vmem:[#allocation3 + $0x668] sm:$0xf0]  ;;  %v4574_v61 = vpack.c.bf16 %v4372_v8, %v4370_v48 }
 0x7dc   : > { %v12595_v27 = vadd.f32 %v6771_v50, %v6603_v41  ;;  %v4867_v50 = vld [vmem:[%s13620_s8 + $0x108] sm:$0xff]  ;;  %v9743_v41 = vor.u32 %v10493_v33, %v9740_v17  ;;  %v4308_v57 = vpop.xlane.xlu2 %4307 }
 0x7dd   : > { %v6607_v35 = vpop.f32.mrf.mxu2  ;;  %v6270_v42 = vadd.f32 %v6269_v55, %v4867_v50  ;;  %7364 = vmatpush.bf16.msrb.mxu3 %v4574_v61  ;;  %4475 = vst.msk [vmem:[%s11007_s20 + $0x2c8] sm:$0xff] %vm4385_vm1, %v4308_v57  ;;  %v4306_v13 = vpop.xlane.xlu1 %4305 }
 0x7de   : > { %v6774_v32 = vpop.f32.mrf.mxu3  ;;  %4474 = vst.msk [vmem:[%s11007_s20 + $0x2c0] sm:$0xff] %vm4385_vm1, %v4306_v13  ;;  %v4558_v55 = vpack.c.bf16 %v4308_v57, %v4306_v13  ;;  %v10501_v57 = vld [vmem:[#allocation3 + $0x68c] sm:$0xf] }
 0x7df   : > { %v6436_v62 = vpop.f32.mrf.mxu1 }
 0x7e0   : > { %v6272_v52 = vpop.f32.mrf.mxu0  ;;  %v6437_v3 = vadd.f32 %v6436_v62, %v6268_v34  ;;  %v4868_v34 = vld [vmem:[%s13620_s8 + $0x110] sm:$0xff]  ;;  %7026 = vmatpush.bf16.msrb.mxu1 %v4558_v55  ;;  %v9762_v62 = vld [vmem:[#allocation3 + $0x680] sm:$0xf] }
 0x7e1   : > { %v6273_v8 = vadd.f32 %v6272_v52, %v4868_v34 }
 0x7e2   : > { %v6606_v60 = vadd.f32 %v6605_v11, %v6437_v3  ;;  %6475 = vmatmul.bf16.gmra.mxu1 %v9703_v20  ;;  %6649 = vmatmul.bf16.gmra.mxu2 %v9739_v9  ;;  %v4334_v11 = vpop.xlane.xlu0 %4333  ;;  %v9770_v20 = vld [vmem:[#allocation3 + $0x688] sm:$0xf] }
 0x7e3   : > { %6311 = vmatmul.bf16.gmra.mxu0 %v9731_v59  ;;  %4488 = vst.msk [vmem:[%s11007_s20 + $0x330] sm:$0xff] %vm4385_vm1, %v4334_v11  ;;  %v10505_v9 = vld [vmem:[#allocation3 + $0x6a4] sm:$0xf0]  ;;  %v10504_v59 = vld [vmem:[#allocation3 + $0x69c] sm:$0xf0] }
 0x7e4   : > { %v12606_v23 = vadd.f32 %v6774_v32, %v6606_v60  ;;  %v9732_v32 = vld [vmem:[#allocation3 + $0x660] sm:$0xf0]  ;;  %v9771_v60 = vor.u32 %v10505_v9, %v9770_v20  ;;  %v9763_v33 = vor.u32 %v10504_v59, %v9762_v62 }
 0x7e5   : > { %v6610_v45 = vpop.f32.mrf.mxu2  ;;  %v9735_v53 = vor.u32 %v10492_v38, %v9732_v32  ;;  %v4336_v52 = vpop.xlane.xlu1 %4335  ;;  %v4870_v59 = vld [vmem:[%s13620_s8 + $0x120] sm:$0xff] }
 0x7e6   : > { %v6776_v63 = vpop.f32.mrf.mxu3  ;;  %v4270_v17 = vpop.xlane.xlu2 %4269  ;;  %4489 = vst.msk [vmem:[%s11007_s20 + $0x338] sm:$0xff] %vm4385_vm1, %v4336_v52 }
 0x7e7   : > { %v6438_v49 = vpop.f32.mrf.mxu1  ;;  %4456 = vst.msk [vmem:[%s11007_s20 + $0x230] sm:$0xff] %vm4385_vm1, %v4270_v17 }
 0x7e8   : > { %v6274_v5 = vpop.f32.mrf.mxu0  ;;  %v6439_v51 = vadd.f32 %v6438_v49, %v6270_v42  ;;  %v4565_v49 = vpack.c.bf16 %v4336_v52, %v4334_v11 }
 0x7ea   : > { %v6608_v37 = vadd.f32 %v6607_v35, %v6439_v51  ;;  %v4272_v50 = vpop.xlane.xlu0 %4271  ;;  %7196 = vmatpush.bf16.msrb.mxu2 %v4565_v49  ;;  %v9772_v51 = vld [vmem:[#allocation3 + $0x6a8] sm:$0xf0] }
 0x7eb   : > { %6818 = vmatmul.bf16.gmra.mxu3 %v9743_v41  ;;  %4457 = vst.msk [vmem:[%s11007_s20 + $0x238] sm:$0xff] %vm4385_vm1, %v4272_v50  ;;  %v4869_v41 = vld [vmem:[%s13620_s8 + $0x118] sm:$0xff]  ;;  %v4549_v55 = vpack.c.bf16 %v4272_v50, %v4270_v17  ;;  %v9775_v32 = vor.u32 %v10501_v57, %v9772_v51  ;;  %v9802_v50 = vld [vmem:[#allocation3 + $0x6c8] sm:$0xf]  ;;  %v9794_v17 = vld [vmem:[#allocation3 + $0x6c0] sm:$0xf] }
 0x7ec   : > { %v12617_v48 = vadd.f32 %v6776_v63, %v6608_v37  ;;  %v6275_v37 = vadd.f32 %v6274_v5, %v4869_v41 }
 0x7ed   : > { %v6612_v3 = vpop.f32.mrf.mxu2  ;;  %6858 = vmatpush.bf16.msrb.mxu0 %v4549_v55  ;;  %v4366_v62 = vpop.xlane.xlu1 %4365 }
 0x7ee   : > { %v6779_v47 = vpop.f32.mrf.mxu3  ;;  %v4368_v20 = vpop.xlane.xlu2 %4367  ;;  %4504 = vst.msk [vmem:[%s11007_s20 + $0x3b0] sm:$0xff] %vm4385_vm1, %v4366_v62 }
 0x7ef   : > { %v6441_v35 = vpop.f32.mrf.mxu1  ;;  %4505 = vst.msk [vmem:[%s11007_s20 + $0x3b8] sm:$0xff] %vm4385_vm1, %v4368_v20  ;;  %v4573_v5 = vpack.c.bf16 %v4368_v20, %v4366_v62  ;;  %v10509_v62 = vld [vmem:[#allocation3 + $0x6cc] sm:$0xf] }
 0x7f0   : > { %v6277_v61 = vpop.f32.mrf.mxu0  ;;  %v6442_v42 = vadd.f32 %v6441_v35, %v6273_v8  ;;  %v10513_v35 = vld [vmem:[#allocation3 + $0x6e4] sm:$0xf0] }
 0x7f1   : > { %7365 = vmatpush.bf16.msrb.mxu3 %v4573_v5  ;;  %v9803_v57 = vor.u32 %v10513_v35, %v9802_v50 }
 0x7f2   : > { %v6611_v63 = vadd.f32 %v6610_v45, %v6442_v42  ;;  %6480 = vmatmul.bf16.gmra.mxu1 %v9735_v53  ;;  %6654 = vmatmul.bf16.gmra.mxu2 %v9771_v60  ;;  %v4302_v45 = vpop.xlane.xlu0 %4301  ;;  %v10500_v53 = vld [vmem:[#allocation3 + $0x684] sm:$0xf]  ;;  %v10512_v42 = vld [vmem:[#allocation3 + $0x6dc] sm:$0xf0] }
 0x7f3   : > { %6316 = vmatmul.bf16.gmra.mxu0 %v9763_v33  ;;  %4472 = vst.msk [vmem:[%s11007_s20 + $0x2b0] sm:$0xff] %vm4385_vm1, %v4302_v45  ;;  %v9764_v60 = vld [vmem:[#allocation3 + $0x6a0] sm:$0xf0]  ;;  %v6278_v33 = vadd.f32 %v6277_v61, %v4870_v59  ;;  %v9795_v55 = vor.u32 %v10512_v42, %v9794_v17  ;;  %v9804_v59 = vld [vmem:[#allocation3 + $0x6e8] sm:$0xf0] }
 0x7f4   : > { %v12628_v13 = vadd.f32 %v6779_v47, %v6611_v63  ;;  %v9767_v41 = vor.u32 %v10500_v53, %v9764_v60  ;;  %v9807_v35 = vor.u32 %v10509_v62, %v9804_v59 }
 0x7f5   : > { %v6615_v34 = vpop.f32.mrf.mxu2  ;;  %v4304_v61 = vpop.xlane.xlu1 %4303 }
 0x7f6   : > { %v6781_v11 = vpop.f32.mrf.mxu3  ;;  %4473 = vst.msk [vmem:[%s11007_s20 + $0x2b8] sm:$0xff] %vm4385_vm1, %v4304_v61  ;;  %v4557_v20 = vpack.c.bf16 %v4304_v61, %v4302_v45  ;;  %v9826_v61 = vld [vmem:[#allocation3 + $0x700] sm:$0xf] }
 0x7f7   : > { %v6443_v38 = vpop.f32.mrf.mxu1 }
 0x7f8   : > { %v6279_v9 = vpop.f32.mrf.mxu0  ;;  %v6444_v8 = vadd.f32 %v6443_v38, %v6275_v37  ;;  %v4330_v37 = vpop.xlane.xlu2 %4329  ;;  %7027 = vmatpush.bf16.msrb.mxu1 %v4557_v20  ;;  %v10520_v20 = vld [vmem:[#allocation3 + $0x71c] sm:$0xf0] }
 0x7f9   : > { %4486 = vst.msk [vmem:[%s11007_s20 + $0x320] sm:$0xff] %vm4385_vm1, %v4330_v37 }
 0x7fa   : > { %v6613_v47 = vadd.f32 %v6612_v3, %v6444_v8  ;;  %v4332_v51 = vpop.xlane.xlu0 %4331  ;;  %v4871_v8 = vld [vmem:[%s13620_s8 + $0x128] sm:$0xff] }
 0x7fb   : > { %6823 = vmatmul.bf16.gmra.mxu3 %v9775_v32  ;;  %4487 = vst.msk [vmem:[%s11007_s20 + $0x328] sm:$0xff] %vm4385_vm1, %v4332_v51  ;;  %v4564_v53 = vpack.c.bf16 %v4332_v51, %v4330_v37  ;;  %v6280_v60 = vadd.f32 %v6279_v9, %v4871_v8  ;;  %v10508_v51 = vld [vmem:[#allocation3 + $0x6c4] sm:$0xf]  ;;  %v10521_v37 = vld [vmem:[#allocation3 + $0x724] sm:$0xf0] }
 0x7fc   : > { %v12639_v52 = vadd.f32 %v6781_v11, %v6613_v47 }
 0x7fd   : > { %v6617_v49 = vpop.f32.mrf.mxu2  ;;  %7197 = vmatpush.bf16.msrb.mxu2 %v4564_v53 }
 0x7fe   : > { %v6784_v63 = vpop.f32.mrf.mxu3 }
 0x7ff   : > { %v6446_v3 = vpop.f32.mrf.mxu1 }
 0x800   : > { %v6282_v38 = vpop.f32.mrf.mxu0  ;;  %v6447_v32 = vadd.f32 %v6446_v3, %v6278_v33  ;;  %v4268_v33 = vpop.xlane.xlu2 %4267  ;;  %v9796_v3 = vld [vmem:[#allocation3 + $0x6e0] sm:$0xf0] }
 0x801   : > { %4455 = vst.msk [vmem:[%s11007_s20 + $0x228] sm:$0xff] %vm4385_vm1, %v4268_v33  ;;  %v9799_v59 = vor.u32 %v10508_v51, %v9796_v3 }
 0x802   : > { %v6616_v11 = vadd.f32 %v6615_v34, %v6447_v32  ;;  %6485 = vmatmul.bf16.gmra.mxu1 %v9767_v41  ;;  %6659 = vmatmul.bf16.gmra.mxu2 %v9803_v57  ;;  %v4362_v34 = vpop.xlane.xlu0 %4361  ;;  %v4266_v41 = vpop.xlane.xlu1 %4265 }
 0x803   : > { %6321 = vmatmul.bf16.gmra.mxu0 %v9795_v55  ;;  %4502 = vst.msk [vmem:[%s11007_s20 + $0x3a0] sm:$0xff] %vm4385_vm1, %v4362_v34  ;;  %v4548_v9 = vpack.c.bf16 %v4268_v33, %v4266_v41  ;;  %v9834_v55 = vld [vmem:[#allocation3 + $0x708] sm:$0xf] }
 0x804   : > { %v12650_v5 = vadd.f32 %v6784_v63, %v6616_v11  ;;  %v4872_v63 = vld [vmem:[%s13620_s8 + $0x130] sm:$0xff]  ;;  %4454 = vst.msk [vmem:[%s11007_s20 + $0x220] sm:$0xff] %vm4385_vm1, %v4266_v41  ;;  %v9835_v53 = vor.u32 %v10521_v37, %v9834_v55 }
 0x805   : > { %v6620_v47 = vpop.f32.mrf.mxu2  ;;  %6859 = vmatpush.bf16.msrb.mxu0 %v4548_v9  ;;  %v6283_v32 = vadd.f32 %v6282_v38, %v4872_v63  ;;  %v4873_v63 = vld [vmem:[%s13620_s8 + $0x138] sm:$0xff]  ;;  %v10517_v9 = vld [vmem:[#allocation3 + $0x70c] sm:$0xf] }
 0x806   : > { %v6786_v45 = vpop.f32.mrf.mxu3 }
 0x807   : > { %v6448_v50 = vpop.f32.mrf.mxu1 }
 0x808   : > { %v6284_v17 = vpop.f32.mrf.mxu0  ;;  %v6449_v42 = vadd.f32 %v6448_v50, %v6280_v60 }
 0x80a   : > { %v6618_v57 = vadd.f32 %v6617_v49, %v6449_v42  ;;  %v9827_v49 = vor.u32 %v10520_v20, %v9826_v61  ;;  %v4300_v50 = vpop.xlane.xlu0 %4299  ;;  %v4298_v42 = vpop.xlane.xlu2 %4297 }
 0x80b   : > { %6828 = vmatmul.bf16.gmra.mxu3 %v9807_v35  ;;  %4471 = vst.msk [vmem:[%s11007_s20 + $0x2a8] sm:$0xff] %vm4385_vm1, %v4300_v50  ;;  %v4364_v38 = vpop.xlane.xlu1 %4363  ;;  %v4556_v55 = vpack.c.bf16 %v4300_v50, %v4298_v42  ;;  %v10516_v50 = vld [vmem:[#allocation3 + $0x704] sm:$0xf] }
 0x80c   : > { %v12661_v11 = vadd.f32 %v6786_v45, %v6618_v57  ;;  %4470 = vst.msk [vmem:[%s11007_s20 + $0x2a0] sm:$0xff] %vm4385_vm1, %v4298_v42  ;;  %v4572_v45 = vpack.c.bf16 %v4364_v38, %v4362_v34  ;;  %v9836_v57 = vld [vmem:[#allocation3 + $0x728] sm:$0xf0]  ;;  %v9866_v42 = vld [vmem:[#allocation3 + $0x748] sm:$0xf] }
 0x80d   : > { %v6622_v8 = vpop.f32.mrf.mxu2  ;;  %4503 = vst.msk [vmem:[%s11007_s20 + $0x3a8] sm:$0xff] %vm4385_vm1, %v4364_v38  ;;  %v9839_v61 = vor.u32 %v10517_v9, %v9836_v57  ;;  %7028 = vmatpush.bf16.msrb.mxu1 %v4556_v55  ;;  %v10529_v38 = vld [vmem:[#allocation3 + $0x764] sm:$0xf0] }
 0x80e   : > { %v6789_v62 = vpop.f32.mrf.mxu3  ;;  %7366 = vmatpush.bf16.msrb.mxu3 %v4572_v45  ;;  %v9858_v45 = vld [vmem:[#allocation3 + $0x740] sm:$0xf] }
 0x80f   : > { %v6451_v60 = vpop.f32.mrf.mxu1 }
 0x810   : > { %v6287_v35 = vpop.f32.mrf.mxu0  ;;  %v6452_v33 = vadd.f32 %v6451_v60, %v6283_v32  ;;  %v4874_v60 = vld [vmem:[%s13620_s8 + $0x140] sm:$0xff] }
 0x812   : > { %v6621_v41 = vadd.f32 %v6620_v47, %v6452_v33  ;;  %6490 = vmatmul.bf16.gmra.mxu1 %v9799_v59  ;;  %6664 = vmatmul.bf16.gmra.mxu2 %v9835_v53  ;;  %v6285_v47 = vadd.f32 %v6284_v17, %v4873_v63  ;;  %v4262_v34 = vpop.xlane.xlu0 %4261  ;;  %v4328_v53 = vpop.xlane.xlu2 %4327  ;;  %v9828_v33 = vld [vmem:[#allocation3 + $0x720] sm:$0xf0]  ;;  %v10528_v63 = vld [vmem:[#allocation3 + $0x75c] sm:$0xf0] }
 0x813   : > { %6326 = vmatmul.bf16.gmra.mxu0 %v9827_v49  ;;  %4452 = vst.msk [vmem:[%s11007_s20 + $0x210] sm:$0xff] %vm4385_vm1, %v4262_v34 }
 0x814   : > { %v12672_v51 = vadd.f32 %v6789_v62, %v6621_v41  ;;  %4485 = vst.msk [vmem:[%s11007_s20 + $0x318] sm:$0xff] %vm4385_vm1, %v4328_v53  ;;  %v4326_v62 = vpop.xlane.xlu1 %4325  ;;  %v6288_v41 = vadd.f32 %v6287_v35, %v4874_v60 }
 0x815   : > { %v6625_v3 = vpop.f32.mrf.mxu2  ;;  %4484 = vst.msk [vmem:[%s11007_s20 + $0x310] sm:$0xff] %vm4385_vm1, %v4326_v62  ;;  %v4563_v17 = vpack.c.bf16 %v4328_v53, %v4326_v62 }
 0x816   : > { %13672 = vst [vmem:[#allocation22_spill] sm:$0xff] %v12672_v51  ;;  %v6791_v37 = vpop.f32.mrf.mxu3 }
 0x817   : > { %v6453_v32 = vpop.f32.mrf.mxu1  ;;  %7198 = vmatpush.bf16.msrb.mxu2 %v4563_v17  ;;  %v9868_v17 = vld [vmem:[#allocation3 + $0x768] sm:$0xf0] }
 0x818   : > { %v6289_v20 = vpop.f32.mrf.mxu0  ;;  %v6454_v59 = vadd.f32 %v6453_v32, %v6285_v47  ;;  %v9867_v47 = vor.u32 %v10529_v38, %v9866_v42 }
 0x81a   : > { %v6623_v49 = vadd.f32 %v6622_v8, %v6454_v59  ;;  %v9831_v8 = vor.u32 %v10516_v50, %v9828_v33  ;;  %v9859_v59 = vor.u32 %v10528_v63, %v9858_v45  ;;  %v4360_v53 = vpop.xlane.xlu0 %4359  ;;  %v4358_v51 = vpop.xlane.xlu2 %4357  ;;  %v10525_v50 = vld [vmem:[#allocation3 + $0x74c] sm:$0xf] }
 0x81b   : > { %6833 = vmatmul.bf16.gmra.mxu3 %v9839_v61  ;;  %4501 = vst.msk [vmem:[%s11007_s20 + $0x398] sm:$0xff] %vm4385_vm1, %v4360_v53  ;;  %v4571_v38 = vpack.c.bf16 %v4360_v53, %v4358_v51  ;;  %v9871_v63 = vor.u32 %v10525_v50, %v9868_v17  ;;  %v10524_v53 = vld [vmem:[#allocation3 + $0x744] sm:$0xf]  ;;  %v10536_v50 = vld [vmem:[#allocation3 + $0x79c] sm:$0xf0] }
 0x81c   : > { %v12683_v9 = vadd.f32 %v6791_v37, %v6623_v49  ;;  %4500 = vst.msk [vmem:[%s11007_s20 + $0x390] sm:$0xff] %vm4385_vm1, %v4358_v51  ;;  %v4264_v35 = vpop.xlane.xlu1 %4263  ;;  %v4875_v49 = vld [vmem:[%s13620_s8 + $0x148] sm:$0xff] }
 0x81d   : > { %v6627_v57 = vpop.f32.mrf.mxu2  ;;  %4453 = vst.msk [vmem:[%s11007_s20 + $0x218] sm:$0xff] %vm4385_vm1, %v4264_v35  ;;  %v4547_v37 = vpack.c.bf16 %v4264_v35, %v4262_v34  ;;  %7367 = vmatpush.bf16.msrb.mxu3 %v4571_v38  ;;  %v9898_v35 = vld [vmem:[#allocation3 + $0x788] sm:$0xf] }
 0x81e   : > { %13673 = vst [vmem:[#allocation23_spill] sm:$0xff] %v12683_v9  ;;  %v6794_v55 = vpop.f32.mrf.mxu3 }
 0x81f   : > { %v6456_v32 = vpop.f32.mrf.mxu1  ;;  %6860 = vmatpush.bf16.msrb.mxu0 %v4547_v37 }
 0x820   : > { %v6292_v61 = vpop.f32.mrf.mxu0  ;;  %v6457_v62 = vadd.f32 %v6456_v32, %v6288_v41 }
 0x822   : > { %v6626_v60 = vadd.f32 %v6625_v3, %v6457_v62  ;;  %6495 = vmatmul.bf16.gmra.mxu1 %v9831_v8  ;;  %6669 = vmatmul.bf16.gmra.mxu2 %v9867_v47  ;;  %v6290_v3 = vadd.f32 %v6289_v20, %v4875_v49  ;;  %v4322_v34 = vpop.xlane.xlu0 %4321  ;;  %v4296_v32 = vpop.xlane.xlu2 %4295  ;;  %v9860_v62 = vld [vmem:[#allocation3 + $0x760] sm:$0xf0]  ;;  %v9890_v49 = vld [vmem:[#allocation3 + $0x780] sm:$0xf] }
 0x823   : > { %6331 = vmatmul.bf16.gmra.mxu0 %v9859_v59  ;;  %4482 = vst.msk [vmem:[%s11007_s20 + $0x300] sm:$0xff] %vm4385_vm1, %v4322_v34  ;;  %v4876_v59 = vld [vmem:[%s13620_s8 + $0x150] sm:$0xff] }
 0x824   : > { %v12694_v33 = vadd.f32 %v6794_v55, %v6626_v60  ;;  %4469 = vst.msk [vmem:[%s11007_s20 + $0x298] sm:$0xff] %vm4385_vm1, %v4296_v32  ;;  %v4294_v55 = vpop.xlane.xlu1 %4293  ;;  %v10537_v60 = vld [vmem:[#allocation3 + $0x7a4] sm:$0xf0]  ;;  %v6293_v37 = vadd.f32 %v6292_v61, %v4876_v59 }
 0x825   : > { %v6630_v42 = vpop.f32.mrf.mxu2  ;;  %4468 = vst.msk [vmem:[%s11007_s20 + $0x290] sm:$0xff] %vm4385_vm1, %v4294_v55  ;;  %v4555_v20 = vpack.c.bf16 %v4296_v32, %v4294_v55 }
 0x826   : > { %13674 = vst [vmem:[#allocation24_spill] sm:$0xff] %v12694_v33  ;;  %v6796_v41 = vpop.f32.mrf.mxu3  ;;  %v9891_v33 = vor.u32 %v10536_v50, %v9890_v49 }
 0x827   : > { %v6458_v45 = vpop.f32.mrf.mxu1  ;;  %7029 = vmatpush.bf16.msrb.mxu1 %v4555_v20 }
 0x828   : > { %v6294_v8 = vpop.f32.mrf.mxu0  ;;  %v6459_v47 = vadd.f32 %v6458_v45, %v6290_v3  ;;  %v9899_v45 = vor.u32 %v10537_v60, %v9898_v35 }
 0x82a   : > { %v6628_v51 = vadd.f32 %v6627_v57, %v6459_v47  ;;  %v9863_v57 = vor.u32 %v10524_v53, %v9860_v62  ;;  %v4260_v32 = vpop.xlane.xlu0 %4259  ;;  %v4258_v9 = vpop.xlane.xlu2 %4257  ;;  %v10533_v53 = vld [vmem:[#allocation3 + $0x78c] sm:$0xf] }
 0x82b   : > { %6838 = vmatmul.bf16.gmra.mxu3 %v9871_v63  ;;  %4451 = vst.msk [vmem:[%s11007_s20 + $0x208] sm:$0xff] %vm4385_vm1, %v4260_v32  ;;  %v4546_v59 = vpack.c.bf16 %v4260_v32, %v4258_v9  ;;  %v9900_v62 = vld [vmem:[#allocation3 + $0x7a8] sm:$0xf0]  ;;  %v10532_v32 = vld [vmem:[#allocation3 + $0x784] sm:$0xf] }
 0x82c   : > { %v12705_v17 = vadd.f32 %v6796_v41, %v6628_v51  ;;  %4450 = vst.msk [vmem:[%s11007_s20 + $0x200] sm:$0xff] %vm4385_vm1, %v4258_v9  ;;  %v4324_v61 = vpop.xlane.xlu1 %4323  ;;  %v4877_v51 = vld [vmem:[%s13620_s8 + $0x158] sm:$0xff]  ;;  %v9903_v49 = vor.u32 %v10533_v53, %v9900_v62 }
 0x82d   : > { %v6632_v38 = vpop.f32.mrf.mxu2  ;;  %4483 = vst.msk [vmem:[%s11007_s20 + $0x308] sm:$0xff] %vm4385_vm1, %v4324_v61  ;;  %v4562_v41 = vpack.c.bf16 %v4324_v61, %v4322_v34  ;;  %6861 = vmatpush.bf16.msrb.mxu0 %v4546_v59  ;;  %v10545_v61 = vld [vmem:[#allocation3 + $0x7e4] sm:$0xf0] }
 0x82e   : > { %13675 = vst [vmem:[#allocation25_spill] sm:$0xff] %v12705_v17  ;;  %v6799_v3 = vpop.f32.mrf.mxu3 }
 0x82f   : > { %v6461_v47 = vpop.f32.mrf.mxu1  ;;  %7199 = vmatpush.bf16.msrb.mxu2 %v4562_v41  ;;  %v10544_v41 = vld [vmem:[#allocation3 + $0x7dc] sm:$0xf0] }
 0x830   : > { %v6297_v63 = vpop.f32.mrf.mxu0  ;;  %v6462_v55 = vadd.f32 %v6461_v47, %v6293_v37 }
 0x832   : > { %v6631_v20 = vadd.f32 %v6630_v42, %v6462_v55  ;;  %6500 = vmatmul.bf16.gmra.mxu1 %v9863_v57  ;;  %6674 = vmatmul.bf16.gmra.mxu2 %v9899_v45  ;;  %v6295_v42 = vadd.f32 %v6294_v8, %v4877_v51  ;;  %v4356_v57 = vpop.xlane.xlu2 %4355  ;;  %v4878_v45 = vld [vmem:[%s13620_s8 + $0x160] sm:$0xff]  ;;  %v9930_v55 = vld [vmem:[#allocation3 + $0x7c8] sm:$0xf] }
 0x833   : > { %6336 = vmatmul.bf16.gmra.mxu0 %v9891_v33  ;;  %4499 = vst.msk [vmem:[%s11007_s20 + $0x388] sm:$0xff] %vm4385_vm1, %v4356_v57  ;;  %v9892_v8 = vld [vmem:[#allocation3 + $0x7a0] sm:$0xf0]  ;;  %v6298_v59 = vadd.f32 %v6297_v63, %v4878_v45  ;;  %v10541_v45 = vld [vmem:[#allocation3 + $0x7cc] sm:$0xf] }
 0x834   : > { %v12716_v35 = vadd.f32 %v6799_v3, %v6631_v20  ;;  %v4354_v33 = vpop.xlane.xlu1 %4353  ;;  %v9922_v20 = vld [vmem:[#allocation3 + $0x7c0] sm:$0xf] }
 0x835   : > { %v6635_v9 = vpop.f32.mrf.mxu2  ;;  %4498 = vst.msk [vmem:[%s11007_s20 + $0x380] sm:$0xff] %vm4385_vm1, %v4354_v33  ;;  %v4570_v3 = vpack.c.bf16 %v4356_v57, %v4354_v33 }
 0x836   : > { %13676 = vst [vmem:[#allocation26_spill] sm:$0xff] %v12716_v35  ;;  %v6801_v60 = vpop.f32.mrf.mxu3  ;;  %v4290_v35 = vpop.xlane.xlu0 %4289 }
 0x837   : > { %v6463_v37 = vpop.f32.mrf.mxu1  ;;  %7368 = vmatpush.bf16.msrb.mxu3 %v4570_v3  ;;  %4466 = vst.msk [vmem:[%s11007_s20 + $0x280] sm:$0xff] %vm4385_vm1, %v4290_v35 }
 0x838   : > { %v6299_v50 = vpop.f32.mrf.mxu0  ;;  %v6464_v34 = vadd.f32 %v6463_v37, %v6295_v42  ;;  %v9895_v42 = vor.u32 %v10532_v32, %v9892_v8 }
 0x83a   : > { %v6633_v47 = vadd.f32 %v6632_v38, %v6464_v34  ;;  %v9931_v38 = vor.u32 %v10545_v61, %v9930_v55  ;;  %v9923_v34 = vor.u32 %v10544_v41, %v9922_v20 }
 0x83b   : > { %6843 = vmatmul.bf16.gmra.mxu3 %v9903_v49 }
 0x83c   : > { %v12725_v51 = vadd.f32 %v6801_v60, %v6633_v47  ;;  %v4292_v33 = vpop.xlane.xlu1 %4291  ;;  %v4879_v60 = vld [vmem:[%s13620_s8 + $0x168] sm:$0xff] }
 0x83d   : > { %v6637_v53 = vpop.f32.mrf.mxu2  ;;  %4467 = vst.msk [vmem:[%s11007_s20 + $0x288] sm:$0xff] %vm4385_vm1, %v4292_v33  ;;  %v4554_v63 = vpack.c.bf16 %v4292_v33, %v4290_v35  ;;  %v9932_v47 = vld [vmem:[#allocation3 + $0x7e8] sm:$0xf0]  ;;  %v6300_v8 = vadd.f32 %v6299_v50, %v4879_v60  ;;  %v4880_v35 = vld [vmem:[%s13620_s8 + $0x170] sm:$0xff] }
 0x83e   : > { %13677 = vst [vmem:[#allocation27_spill] sm:$0xff] %v12725_v51  ;;  %v6804_v62 = vpop.f32.mrf.mxu3 }
 0x83f   : > { %v6466_v37 = vpop.f32.mrf.mxu1  ;;  %7030 = vmatpush.bf16.msrb.mxu1 %v4554_v63 }
 0x840   : > { %v6302_v57 = vpop.f32.mrf.mxu0  ;;  %v6467_v49 = vadd.f32 %v6466_v37, %v6298_v59  ;;  %v8954_v37 = vld [vmem:[#allocation3 + $0x18] sm:$0xf] }
 0x842   : > { %v6636_v17 = vadd.f32 %v6635_v9, %v6467_v49  ;;  %6505 = vmatmul.bf16.gmra.mxu1 %v9895_v42  ;;  %6679 = vmatmul.bf16.gmra.mxu2 %v9931_v38  ;;  %v9935_v9 = vor.u32 %v10541_v45, %v9932_v47  ;;  %v10540_v42 = vld [vmem:[#allocation3 + $0x7c4] sm:$0xf]  ;;  %v6303_v49 = vadd.f32 %v6302_v57, %v4880_v35  ;;  %v10295_v57 = vld [vmem:[#allocation3 + $0x1c] sm:$0xf] }
 0x843   : > { %6341 = vmatmul.bf16.gmra.mxu0 %v9923_v34  ;;  %v9924_v38 = vld [vmem:[#allocation3 + $0x7e0] sm:$0xf0]  ;;  %v10299_v34 = vld [vmem:[#allocation3 + $0x34] sm:$0xf0] }
 0x844   : > { %v12734_v32 = vadd.f32 %v6804_v62, %v6636_v17  ;;  %v8946_v17 = vld [vmem:[#allocation3 + $0x10] sm:$0xf]  ;;  %v9927_v60 = vor.u32 %v10540_v42, %v9924_v38  ;;  %v8955_v45 = vor.u32 %v10299_v34, %v8954_v37 }
 0x845   : > { %v6640_v3 = vpop.f32.mrf.mxu2  ;;  %v10298_v62 = vld [vmem:[#allocation3 + $0x2c] sm:$0xf0] }
 0x846   : > { %13678 = vst [vmem:[#allocation28_spill] sm:$0xff] %v12734_v32  ;;  %v6806_v55 = vpop.f32.mrf.mxu3 }
 0x847   : > { %v6468_v61 = vpop.f32.mrf.mxu1 }
 0x848   : > { %v6304_v59 = vpop.f32.mrf.mxu0  ;;  %v6469_v20 = vadd.f32 %v6468_v61, %v6300_v8  ;;  %v8947_v8 = vor.u32 %v10298_v62, %v8946_v17  ;;  %v8948_v17 = vld [vmem:[#allocation3 + $0x30] sm:$0xf0]  ;;  %v8986_v62 = vld [vmem:[#allocation3 + $0x58] sm:$0xf] }
 0x84a   : > { %v6638_v41 = vadd.f32 %v6637_v53, %v6469_v20  ;;  %v4881_v53 = vld [vmem:[%s13620_s8 + $0x178] sm:$0xff] }
 0x84b   : > { %6848 = vmatmul.bf16.gmra.mxu3 %v9935_v9  ;;  %v8956_v9 = vld [vmem:[#allocation3 + $0x38] sm:$0xf0]  ;;  %v6305_v35 = vadd.f32 %v6304_v59, %v4881_v53 }
 0x84c   : > { %v12739_v33 = vadd.f32 %v6806_v55, %v6638_v41  ;;  %v8959_v38 = vor.u32 %v10295_v57, %v8956_v9 }
 0x84d   : > { %v6642_v50 = vpop.f32.mrf.mxu2 }
 0x84e   : > { %13679 = vst [vmem:[#allocation29_spill] sm:$0xff] %v12739_v33  ;;  %v6809_v63 = vpop.f32.mrf.mxu3 }
 0x84f   : > { %v6471_v47 = vpop.f32.mrf.mxu1 }
 0x850   : > { %v6307_v61 = vpop.f32.mrf.mxu0  ;;  %v6472_v32 = vadd.f32 %v6471_v47, %v6303_v49  ;;  %v10294_v49 = vld [vmem:[#allocation3 + $0x14] sm:$0xf] }
 0x851   : > { %v8951_v53 = vor.u32 %v10294_v49, %v8948_v17 }
 0x852   : > { %v6641_v51 = vadd.f32 %v6640_v3, %v6472_v32  ;;  %6510 = vmatmul.bf16.gmra.mxu1 %v9927_v60  ;;  %7200 = vmatmul.bf16.vlgmr.msrb.gmra.mxu2 %v8955_v45  ;;  %v4882_v32 = vld [vmem:[%s13620_s8 + $0x180] sm:$0xff]  ;;  %v10307_v60 = vld [vmem:[#allocation3 + $0x74] sm:$0xf0] }
 0x853   : > { %6862 = vmatmul.bf16.vlgmr.msrb.gmra.mxu0 %v8947_v8  ;;  %v6308_v45 = vadd.f32 %v6307_v61, %v4882_v32  ;;  %v8987_v57 = vor.u32 %v10307_v60, %v8986_v62  ;;  %v10303_v61 = vld [vmem:[#allocation3 + $0x5c] sm:$0xf] }
 0x854   : > { %v12744_v55 = vadd.f32 %v6809_v63, %v6641_v51  ;;  %v8978_v51 = vld [vmem:[#allocation3 + $0x50] sm:$0xf] }
 0x855   : > { %v6645_v20 = vpop.f32.mrf.mxu2  ;;  %v10306_v63 = vld [vmem:[#allocation3 + $0x6c] sm:$0xf0] }
 0x856   : > { %13680 = vst [vmem:[#allocation30_spill] sm:$0xff] %v12744_v55  ;;  %v6811_v41 = vpop.f32.mrf.mxu3 }
 0x857   : > { %v6473_v42 = vpop.f32.mrf.mxu1 }
 0x858   : > { %v6309_v37 = vpop.f32.mrf.mxu0  ;;  %v6474_v34 = vadd.f32 %v6473_v42, %v6305_v35  ;;  %v8979_v35 = vor.u32 %v10306_v63, %v8978_v51  ;;  %v8980_v51 = vld [vmem:[#allocation3 + $0x70] sm:$0xf0]  ;;  %v9018_v63 = vld [vmem:[#allocation3 + $0x98] sm:$0xf] }
 0x85a   : > { %v6643_v3 = vadd.f32 %v6642_v50, %v6474_v34  ;;  %v4883_v50 = vld [vmem:[%s13620_s8 + $0x188] sm:$0xff] }
 0x85b   : > { %7369 = vmatmul.bf16.vlgmr.msrb.gmra.mxu3 %v8959_v38  ;;  %v8988_v38 = vld [vmem:[#allocation3 + $0x78] sm:$0xf0]  ;;  %v6310_v32 = vadd.f32 %v6309_v37, %v4883_v50 }
 0x85c   : > { %v12749_v47 = vadd.f32 %v6811_v41, %v6643_v3  ;;  %v8991_v17 = vor.u32 %v10303_v61, %v8988_v38 }
 0x85d   : > { %v6647_v59 = vpop.f32.mrf.mxu2 }
 0x85e   : > { %13681 = vst [vmem:[#allocation31_spill] sm:$0xff] %v12749_v47  ;;  %v6814_v8 = vpop.f32.mrf.mxu3 }
 0x85f   : > { %v6476_v9 = vpop.f32.mrf.mxu1 }
 0x860   : > { %v6312_v42 = vpop.f32.mrf.mxu0  ;;  %v6477_v55 = vadd.f32 %v6476_v9, %v6308_v45  ;;  %v10302_v45 = vld [vmem:[#allocation3 + $0x54] sm:$0xf] }
 0x861   : > { %v8983_v50 = vor.u32 %v10302_v45, %v8980_v51 }
 0x862   : > { %v6646_v33 = vadd.f32 %v6645_v20, %v6477_v55  ;;  %7031 = vmatmul.bf16.vlgmr.msrb.gmra.mxu1 %v8951_v53  ;;  %7205 = vmatmul.bf16.gmra.mxu2 %v8987_v57  ;;  %v4884_v55 = vld [vmem:[%s13620_s8 + $0x190] sm:$0xff]  ;;  %v10315_v53 = vld [vmem:[#allocation3 + $0xb4] sm:$0xf0] }
 0x863   : > { %6867 = vmatmul.bf16.gmra.mxu0 %v8979_v35  ;;  %v6313_v57 = vadd.f32 %v6312_v42, %v4884_v55  ;;  %v9019_v61 = vor.u32 %v10315_v53, %v9018_v63  ;;  %v10311_v42 = vld [vmem:[#allocation3 + $0x9c] sm:$0xf] }
 0x864   : > { %v12754_v41 = vadd.f32 %v6814_v8, %v6646_v33  ;;  %v9010_v33 = vld [vmem:[#allocation3 + $0x90] sm:$0xf] }
 0x865   : > { %v6650_v34 = vpop.f32.mrf.mxu2  ;;  %v10314_v8 = vld [vmem:[#allocation3 + $0xac] sm:$0xf0] }
 0x866   : > { %13682 = vst [vmem:[#allocation32_spill] sm:$0xff] %v12754_v41  ;;  %v6816_v3 = vpop.f32.mrf.mxu3 }
 0x867   : > { %v6478_v49 = vpop.f32.mrf.mxu1 }
 0x868   : > { %v6314_v62 = vpop.f32.mrf.mxu0  ;;  %v6479_v60 = vadd.f32 %v6478_v49, %v6310_v32  ;;  %v9011_v32 = vor.u32 %v10314_v8, %v9010_v33  ;;  %v9012_v33 = vld [vmem:[#allocation3 + $0xb0] sm:$0xf0]  ;;  %v9050_v8 = vld [vmem:[#allocation3 + $0xd8] sm:$0xf] }
 0x86a   : > { %v6648_v20 = vadd.f32 %v6647_v59, %v6479_v60  ;;  %v4885_v59 = vld [vmem:[%s13620_s8 + $0x198] sm:$0xff] }
 0x86b   : > { %7374 = vmatmul.bf16.gmra.mxu3 %v8991_v17  ;;  %v9020_v17 = vld [vmem:[#allocation3 + $0xb8] sm:$0xf0]  ;;  %v6315_v55 = vadd.f32 %v6314_v62, %v4885_v59 }
 0x86c   : > { %v12759_v9 = vadd.f32 %v6816_v3, %v6648_v20  ;;  %v9023_v51 = vor.u32 %v10311_v42, %v9020_v17 }
 0x86d   : > { %v6652_v37 = vpop.f32.mrf.mxu2 }
 0x86e   : > { %13683 = vst [vmem:[#allocation33_spill] sm:$0xff] %v12759_v9  ;;  %v6819_v35 = vpop.f32.mrf.mxu3 }
 0x86f   : > { %v6481_v38 = vpop.f32.mrf.mxu1 }
 0x870   : > { %v6317_v49 = vpop.f32.mrf.mxu0  ;;  %v6482_v47 = vadd.f32 %v6481_v38, %v6313_v57  ;;  %v10310_v57 = vld [vmem:[#allocation3 + $0x94] sm:$0xf] }
 0x871   : > { %v9015_v59 = vor.u32 %v10310_v57, %v9012_v33 }
 0x872   : > { %v6651_v41 = vadd.f32 %v6650_v34, %v6482_v47  ;;  %7036 = vmatmul.bf16.gmra.mxu1 %v8983_v50  ;;  %7210 = vmatmul.bf16.gmra.mxu2 %v9019_v61  ;;  %v4886_v47 = vld [vmem:[%s13620_s8 + $0x1a0] sm:$0xff]  ;;  %v10323_v50 = vld [vmem:[#allocation3 + $0xf4] sm:$0xf0] }
 0x873   : > { %6872 = vmatmul.bf16.gmra.mxu0 %v9011_v32  ;;  %v6318_v61 = vadd.f32 %v6317_v49, %v4886_v47  ;;  %v9051_v42 = vor.u32 %v10323_v50, %v9050_v8  ;;  %v10319_v49 = vld [vmem:[#allocation3 + $0xdc] sm:$0xf] }
 0x874   : > { %v12764_v3 = vadd.f32 %v6819_v35, %v6651_v41  ;;  %v9042_v41 = vld [vmem:[#allocation3 + $0xd0] sm:$0xf] }
 0x875   : > { %v6655_v60 = vpop.f32.mrf.mxu2  ;;  %v10322_v35 = vld [vmem:[#allocation3 + $0xec] sm:$0xf0] }
 0x876   : > { %13684 = vst [vmem:[#allocation34_spill] sm:$0xff] %v12764_v3  ;;  %v6821_v20 = vpop.f32.mrf.mxu3 }
 0x877   : > { %v6483_v45 = vpop.f32.mrf.mxu1 }
 0x878   : > { %v6319_v63 = vpop.f32.mrf.mxu0  ;;  %v6484_v53 = vadd.f32 %v6483_v45, %v6315_v55  ;;  %v9043_v55 = vor.u32 %v10322_v35, %v9042_v41  ;;  %v9044_v41 = vld [vmem:[#allocation3 + $0xf0] sm:$0xf0]  ;;  %v9082_v35 = vld [vmem:[#allocation3 + $0x118] sm:$0xf] }
 0x87a   : > { %v6653_v34 = vadd.f32 %v6652_v37, %v6484_v53  ;;  %v4887_v37 = vld [vmem:[%s13620_s8 + $0x1a8] sm:$0xff] }
 0x87b   : > { %7379 = vmatmul.bf16.gmra.mxu3 %v9023_v51  ;;  %v9052_v51 = vld [vmem:[#allocation3 + $0xf8] sm:$0xf0]  ;;  %v6320_v47 = vadd.f32 %v6319_v63, %v4887_v37 }
 0x87c   : > { %v12769_v38 = vadd.f32 %v6821_v20, %v6653_v34  ;;  %v9055_v33 = vor.u32 %v10319_v49, %v9052_v51 }
 0x87d   : > { %v6657_v62 = vpop.f32.mrf.mxu2 }
 0x87e   : > { %13685 = vst [vmem:[#allocation35_spill] sm:$0xff] %v12769_v38  ;;  %v6824_v32 = vpop.f32.mrf.mxu3 }
 0x87f   : > { %v6486_v17 = vpop.f32.mrf.mxu1 }
 0x880   : > { %v6322_v45 = vpop.f32.mrf.mxu0  ;;  %v6487_v9 = vadd.f32 %v6486_v17, %v6318_v61  ;;  %v10318_v61 = vld [vmem:[#allocation3 + $0xd4] sm:$0xf] }
 0x881   : > { %v9047_v37 = vor.u32 %v10318_v61, %v9044_v41 }
 0x882   : > { %v6656_v3 = vadd.f32 %v6655_v60, %v6487_v9  ;;  %7041 = vmatmul.bf16.gmra.mxu1 %v9015_v59  ;;  %7215 = vmatmul.bf16.gmra.mxu2 %v9051_v42  ;;  %v4888_v9 = vld [vmem:[%s13620_s8 + $0x1b0] sm:$0xff]  ;;  %v10331_v59 = vld [vmem:[#allocation3 + $0x134] sm:$0xf0] }
 0x883   : > { %6877 = vmatmul.bf16.gmra.mxu0 %v9043_v55  ;;  %v6323_v42 = vadd.f32 %v6322_v45, %v4888_v9  ;;  %v9083_v49 = vor.u32 %v10331_v59, %v9082_v35  ;;  %v10327_v45 = vld [vmem:[#allocation3 + $0x11c] sm:$0xf] }
 0x884   : > { %v12774_v20 = vadd.f32 %v6824_v32, %v6656_v3  ;;  %v9074_v3 = vld [vmem:[#allocation3 + $0x110] sm:$0xf] }
 0x885   : > { %v6660_v53 = vpop.f32.mrf.mxu2  ;;  %v10330_v32 = vld [vmem:[#allocation3 + $0x12c] sm:$0xf0] }
 0x886   : > { %13686 = vst [vmem:[#allocation36_spill] sm:$0xff] %v12774_v20  ;;  %v6826_v34 = vpop.f32.mrf.mxu3 }
 0x887   : > { %v6488_v57 = vpop.f32.mrf.mxu1 }
 0x888   : > { %v6324_v8 = vpop.f32.mrf.mxu0  ;;  %v6489_v50 = vadd.f32 %v6488_v57, %v6320_v47  ;;  %v9075_v47 = vor.u32 %v10330_v32, %v9074_v3  ;;  %v9076_v3 = vld [vmem:[#allocation3 + $0x130] sm:$0xf0]  ;;  %v9114_v32 = vld [vmem:[#allocation3 + $0x158] sm:$0xf] }
 0x88a   : > { %v6658_v60 = vadd.f32 %v6657_v62, %v6489_v50  ;;  %v4889_v62 = vld [vmem:[%s13620_s8 + $0x1b8] sm:$0xff] }
 0x88b   : > { %7384 = vmatmul.bf16.gmra.mxu3 %v9055_v33  ;;  %v9084_v33 = vld [vmem:[#allocation3 + $0x138] sm:$0xf0]  ;;  %v6325_v9 = vadd.f32 %v6324_v8, %v4889_v62 }
 0x88c   : > { %v12779_v17 = vadd.f32 %v6826_v34, %v6658_v60  ;;  %v9087_v41 = vor.u32 %v10327_v45, %v9084_v33 }
 0x88d   : > { %v6662_v63 = vpop.f32.mrf.mxu2 }
 0x88e   : > { %13687 = vst [vmem:[#allocation37_spill] sm:$0xff] %v12779_v17  ;;  %v6829_v55 = vpop.f32.mrf.mxu3 }
 0x88f   : > { %v6491_v51 = vpop.f32.mrf.mxu1 }
 0x890   : > { %v6327_v57 = vpop.f32.mrf.mxu0  ;;  %v6492_v38 = vadd.f32 %v6491_v51, %v6323_v42  ;;  %v10326_v42 = vld [vmem:[#allocation3 + $0x114] sm:$0xf] }
 0x891   : > { %v9079_v62 = vor.u32 %v10326_v42, %v9076_v3 }
 0x892   : > { %v6661_v20 = vadd.f32 %v6660_v53, %v6492_v38  ;;  %7046 = vmatmul.bf16.gmra.mxu1 %v9047_v37  ;;  %7220 = vmatmul.bf16.gmra.mxu2 %v9083_v49  ;;  %v4890_v38 = vld [vmem:[%s13620_s8 + $0x1c0] sm:$0xff]  ;;  %v10339_v37 = vld [vmem:[#allocation3 + $0x174] sm:$0xf0] }
 0x893   : > { %6882 = vmatmul.bf16.gmra.mxu0 %v9075_v47  ;;  %v6328_v49 = vadd.f32 %v6327_v57, %v4890_v38  ;;  %v9115_v45 = vor.u32 %v10339_v37, %v9114_v32  ;;  %v10335_v57 = vld [vmem:[#allocation3 + $0x15c] sm:$0xf] }
 0x894   : > { %v12784_v34 = vadd.f32 %v6829_v55, %v6661_v20  ;;  %v9106_v20 = vld [vmem:[#allocation3 + $0x150] sm:$0xf] }
 0x895   : > { %v6665_v50 = vpop.f32.mrf.mxu2  ;;  %v10338_v55 = vld [vmem:[#allocation3 + $0x16c] sm:$0xf0] }
 0x896   : > { %13688 = vst [vmem:[#allocation38_spill] sm:$0xff] %v12784_v34  ;;  %v6831_v60 = vpop.f32.mrf.mxu3 }
 0x897   : > { %v6493_v61 = vpop.f32.mrf.mxu1 }
 0x898   : > { %v6329_v35 = vpop.f32.mrf.mxu0  ;;  %v6494_v59 = vadd.f32 %v6493_v61, %v6325_v9  ;;  %v9107_v9 = vor.u32 %v10338_v55, %v9106_v20  ;;  %v9108_v20 = vld [vmem:[#allocation3 + $0x170] sm:$0xf0]  ;;  %v9146_v55 = vld [vmem:[#allocation3 + $0x198] sm:$0xf] }
 0x89a   : > { %v6663_v53 = vadd.f32 %v6662_v63, %v6494_v59  ;;  %v4891_v63 = vld [vmem:[%s13620_s8 + $0x1c8] sm:$0xff] }
 0x89b   : > { %7389 = vmatmul.bf16.gmra.mxu3 %v9087_v41  ;;  %v9116_v41 = vld [vmem:[#allocation3 + $0x178] sm:$0xf0]  ;;  %v6330_v38 = vadd.f32 %v6329_v35, %v4891_v63 }
 0x89c   : > { %v12789_v51 = vadd.f32 %v6831_v60, %v6663_v53  ;;  %v9119_v3 = vor.u32 %v10335_v57, %v9116_v41 }
 0x89d   : > { %v6667_v8 = vpop.f32.mrf.mxu2 }
 0x89e   : > { %13689 = vst [vmem:[#allocation39_spill] sm:$0xff] %v12789_v51  ;;  %v6834_v47 = vpop.f32.mrf.mxu3 }
 0x89f   : > { %v6496_v33 = vpop.f32.mrf.mxu1 }
 0x8a0   : > { %v6332_v61 = vpop.f32.mrf.mxu0  ;;  %v6497_v17 = vadd.f32 %v6496_v33, %v6328_v49  ;;  %v10334_v49 = vld [vmem:[#allocation3 + $0x154] sm:$0xf] }
 0x8a1   : > { %v9111_v63 = vor.u32 %v10334_v49, %v9108_v20 }
 0x8a2   : > { %v6666_v34 = vadd.f32 %v6665_v50, %v6497_v17  ;;  %7051 = vmatmul.bf16.gmra.mxu1 %v9079_v62  ;;  %7225 = vmatmul.bf16.gmra.mxu2 %v9115_v45  ;;  %v4892_v17 = vld [vmem:[%s13620_s8 + $0x1d0] sm:$0xff]  ;;  %v10347_v62 = vld [vmem:[#allocation3 + $0x1b4] sm:$0xf0] }
 0x8a3   : > { %6887 = vmatmul.bf16.gmra.mxu0 %v9107_v9  ;;  %v6333_v45 = vadd.f32 %v6332_v61, %v4892_v17  ;;  %v9147_v57 = vor.u32 %v10347_v62, %v9146_v55  ;;  %v10343_v61 = vld [vmem:[#allocation3 + $0x19c] sm:$0xf] }
 0x8a4   : > { %v12794_v60 = vadd.f32 %v6834_v47, %v6666_v34  ;;  %v9138_v34 = vld [vmem:[#allocation3 + $0x190] sm:$0xf] }
 0x8a5   : > { %v6670_v59 = vpop.f32.mrf.mxu2  ;;  %v10346_v47 = vld [vmem:[#allocation3 + $0x1ac] sm:$0xf0] }
 0x8a6   : > { %13690 = vst [vmem:[#allocation40_spill] sm:$0xff] %v12794_v60  ;;  %v6836_v53 = vpop.f32.mrf.mxu3 }
 0x8a7   : > { %v6498_v42 = vpop.f32.mrf.mxu1 }
 0x8a8   : > { %v6334_v32 = vpop.f32.mrf.mxu0  ;;  %v6499_v37 = vadd.f32 %v6498_v42, %v6330_v38  ;;  %v9139_v38 = vor.u32 %v10346_v47, %v9138_v34  ;;  %v9140_v34 = vld [vmem:[#allocation3 + $0x1b0] sm:$0xf0]  ;;  %v9178_v47 = vld [vmem:[#allocation3 + $0x1d8] sm:$0xf] }
 0x8aa   : > { %v6668_v50 = vadd.f32 %v6667_v8, %v6499_v37  ;;  %v4893_v8 = vld [vmem:[%s13620_s8 + $0x1d8] sm:$0xff] }
 0x8ab   : > { %7394 = vmatmul.bf16.gmra.mxu3 %v9119_v3  ;;  %v9148_v3 = vld [vmem:[#allocation3 + $0x1b8] sm:$0xf0]  ;;  %v6335_v17 = vadd.f32 %v6334_v32, %v4893_v8 }
 0x8ac   : > { %v12799_v33 = vadd.f32 %v6836_v53, %v6668_v50  ;;  %v9151_v20 = vor.u32 %v10343_v61, %v9148_v3 }
 0x8ad   : > { %v6672_v35 = vpop.f32.mrf.mxu2 }
 0x8ae   : > { %13691 = vst [vmem:[#allocation41_spill] sm:$0xff] %v12799_v33  ;;  %v6839_v9 = vpop.f32.mrf.mxu3 }
 0x8af   : > { %v6501_v41 = vpop.f32.mrf.mxu1 }
 0x8b0   : > { %v6337_v42 = vpop.f32.mrf.mxu0  ;;  %v6502_v51 = vadd.f32 %v6501_v41, %v6333_v45  ;;  %v10342_v45 = vld [vmem:[#allocation3 + $0x194] sm:$0xf] }
 0x8b1   : > { %v9143_v8 = vor.u32 %v10342_v45, %v9140_v34 }
 0x8b2   : > { %v6671_v60 = vadd.f32 %v6670_v59, %v6502_v51  ;;  %7056 = vmatmul.bf16.gmra.mxu1 %v9111_v63  ;;  %7230 = vmatmul.bf16.gmra.mxu2 %v9147_v57  ;;  %v4894_v51 = vld [vmem:[%s13620_s8 + $0x1e0] sm:$0xff]  ;;  %v10355_v63 = vld [vmem:[#allocation3 + $0x1f4] sm:$0xf0] }
 0x8b3   : > { %6892 = vmatmul.bf16.gmra.mxu0 %v9139_v38  ;;  %v6338_v57 = vadd.f32 %v6337_v42, %v4894_v51  ;;  %v9179_v61 = vor.u32 %v10355_v63, %v9178_v47  ;;  %v10351_v42 = vld [vmem:[#allocation3 + $0x1dc] sm:$0xf] }
 0x8b4   : > { %v12804_v53 = vadd.f32 %v6839_v9, %v6671_v60  ;;  %v9170_v60 = vld [vmem:[#allocation3 + $0x1d0] sm:$0xf] }
 0x8b5   : > { %v6675_v37 = vpop.f32.mrf.mxu2  ;;  %v10354_v9 = vld [vmem:[#allocation3 + $0x1ec] sm:$0xf0] }
 0x8b6   : > { %13692 = vst [vmem:[#allocation42_spill] sm:$0xff] %v12804_v53  ;;  %v6841_v50 = vpop.f32.mrf.mxu3 }
 0x8b7   : > { %v6503_v49 = vpop.f32.mrf.mxu1 }
 0x8b8   : > { %v6339_v55 = vpop.f32.mrf.mxu0  ;;  %v6504_v62 = vadd.f32 %v6503_v49, %v6335_v17  ;;  %v9171_v17 = vor.u32 %v10354_v9, %v9170_v60  ;;  %v9172_v60 = vld [vmem:[#allocation3 + $0x1f0] sm:$0xf0]  ;;  %v9210_v9 = vld [vmem:[#allocation3 + $0x218] sm:$0xf] }
 0x8ba   : > { %v6673_v59 = vadd.f32 %v6672_v35, %v6504_v62  ;;  %v4895_v35 = vld [vmem:[%s13620_s8 + $0x1e8] sm:$0xff] }
 0x8bb   : > { %7399 = vmatmul.bf16.gmra.mxu3 %v9151_v20  ;;  %v9180_v20 = vld [vmem:[#allocation3 + $0x1f8] sm:$0xf0]  ;;  %v6340_v51 = vadd.f32 %v6339_v55, %v4895_v35 }
 0x8bc   : > { %v12809_v41 = vadd.f32 %v6841_v50, %v6673_v59  ;;  %v9183_v34 = vor.u32 %v10351_v42, %v9180_v20 }
 0x8bd   : > { %v6677_v32 = vpop.f32.mrf.mxu2 }
 0x8be   : > { %v6844_v38 = vpop.f32.mrf.mxu3 }
 0x8bf   : > { %v6506_v3 = vpop.f32.mrf.mxu1 }
 0x8c0   : > { %v6342_v49 = vpop.f32.mrf.mxu0  ;;  %v6507_v53 = vadd.f32 %v6506_v3, %v6338_v57  ;;  %v10350_v57 = vld [vmem:[#allocation3 + $0x1d4] sm:$0xf] }
 0x8c1   : > { %v9175_v35 = vor.u32 %v10350_v57, %v9172_v60 }
 0x8c2   : > { %v6676_v33 = vadd.f32 %v6675_v37, %v6507_v53  ;;  %7061 = vmatmul.bf16.gmra.mxu1 %v9143_v8  ;;  %7235 = vmatmul.bf16.gmra.mxu2 %v9179_v61  ;;  %v4896_v53 = vld [vmem:[%s13620_s8 + $0x1f0] sm:$0xff]  ;;  %v10363_v8 = vld [vmem:[#allocation3 + $0x234] sm:$0xf0] }
 0x8c3   : > { %6897 = vmatmul.bf16.gmra.mxu0 %v9171_v17  ;;  %v6343_v61 = vadd.f32 %v6342_v49, %v4896_v53  ;;  %v9211_v42 = vor.u32 %v10363_v8, %v9210_v9  ;;  %v4897_v49 = vld [vmem:[%s13620_s8 + $0x1f8] sm:$0xff] }
 0x8c4   : > { %v12814_v50 = vadd.f32 %v6844_v38, %v6676_v33  ;;  %v9202_v33 = vld [vmem:[#allocation3 + $0x210] sm:$0xf] }
 0x8c5   : > { %v6680_v62 = vpop.f32.mrf.mxu2  ;;  %v10362_v38 = vld [vmem:[#allocation3 + $0x22c] sm:$0xf0] }
 0x8c6   : > { %13693 = vst [vmem:[#allocation43_spill] sm:$0xff] %v12814_v50  ;;  %v6846_v59 = vpop.f32.mrf.mxu3 }
 0x8c7   : > { %v6508_v45 = vpop.f32.mrf.mxu1 }
 0x8c8   : > { %v6344_v47 = vpop.f32.mrf.mxu0  ;;  %v6509_v63 = vadd.f32 %v6508_v45, %v6340_v51  ;;  %v9203_v51 = vor.u32 %v10362_v38, %v9202_v33  ;;  %v9204_v38 = vld [vmem:[#allocation3 + $0x230] sm:$0xf0] }
 0x8c9   : > { %v6345_v57 = vadd.f32 %v6344_v47, %v4897_v49 }
 0x8ca   : > { %v6678_v37 = vadd.f32 %v6677_v32, %v6509_v63 }
 0x8cb   : > { %7404 = vmatmul.bf16.gmra.mxu3 %v9183_v34  ;;  %v9212_v34 = vld [vmem:[#allocation3 + $0x238] sm:$0xf0] }
 0x8cc   : > { %v12819_v3 = vadd.f32 %v6846_v59, %v6678_v37  ;;  %v10359_v59 = vld [vmem:[#allocation3 + $0x21c] sm:$0xf] }
 0x8cd   : > { %v6682_v55 = vpop.f32.mrf.mxu2  ;;  %v9215_v8 = vor.u32 %v10359_v59, %v9212_v34 }
 0x8ce   : > { %13694 = vst [vmem:[#allocation44_spill] sm:$0xff] %v12819_v3  ;;  %v6849_v17 = vpop.f32.mrf.mxu3 }
 0x8cf   : > { %v6511_v20 = vpop.f32.mrf.mxu1 }
 0x8d0   : > { %v6512_v45 = vadd.f32 %v6511_v20, %v6343_v61  ;;  %v6863_v50 = vpop.f32.mrf.mxu0  ;;  %v9234_v20 = vld [vmem:[#allocation3 + $0x250] sm:$0xf] }
 0x8d1   : > { %v6864_v32 = vadd.f32 %v6863_v50, %v12386_v0 }
 0x8d2   : > { %v6681_v63 = vadd.f32 %v6680_v62, %v6512_v45  ;;  %7066 = vmatmul.bf16.gmra.mxu1 %v9175_v35  ;;  %7240 = vmatmul.bf16.gmra.mxu2 %v9211_v42  ;;  %v10358_v62 = vld [vmem:[#allocation3 + $0x214] sm:$0xf]  ;;  %v9242_v35 = vld [vmem:[#allocation3 + $0x258] sm:$0xf] }
 0x8d3   : > { %6902 = vmatmul.bf16.gmra.mxu0 %v9203_v51  ;;  %v10371_v42 = vld [vmem:[#allocation3 + $0x274] sm:$0xf0]  ;;  %v10370_v51 = vld [vmem:[#allocation3 + $0x26c] sm:$0xf0]  ;;  %v9207_v47 = vor.u32 %v10358_v62, %v9204_v38 }
 0x8d4   : > { %v12825_v53 = vadd.f32 %v6849_v17, %v6681_v63  ;;  %v9243_v49 = vor.u32 %v10371_v42, %v9242_v35  ;;  %v9235_v59 = vor.u32 %v10370_v51, %v9234_v20  ;;  %v10366_v42 = vld [vmem:[#allocation3 + $0x254] sm:$0xf]  ;;  %v9266_v20 = vld [vmem:[#allocation3 + $0x290] sm:$0xf] }
 0x8d5   : > { %v7201_v37 = vpop.f32.mrf.mxu2  ;;  %v10378_v51 = vld [vmem:[#allocation3 + $0x2ac] sm:$0xf0] }
 0x8d6   : > { %13695 = vst [vmem:[#allocation45_spill] sm:$0xff] %v12825_v53  ;;  %v6851_v60 = vpop.f32.mrf.mxu3 }
 0x8d7   : > { %v6513_v9 = vpop.f32.mrf.mxu1 }
 0x8d8   : > { %v6514_v61 = vadd.f32 %v6513_v9, %v6345_v57  ;;  %v6865_v33 = vpop.f32.mrf.mxu0 }
 0x8d9   : > { %v6866_v0 = vadd.f32 %v6865_v33, %v12391_v14 }
 0x8da   : > { %v6683_v50 = vadd.f32 %v6682_v55, %v6514_v61  ;;  %v9244_v61 = vld [vmem:[#allocation3 + $0x278] sm:$0xf0] }
 0x8db   : > { %7409 = vmatmul.bf16.gmra.mxu3 %v9215_v8  ;;  %v10367_v8 = vld [vmem:[#allocation3 + $0x25c] sm:$0xf] }
 0x8dc   : > { %v12828_v45 = vadd.f32 %v6851_v60, %v6683_v50 }
 0x8dd   : > { %v7203_v17 = vpop.f32.mrf.mxu2 }
 0x8de   : > { %13696 = vst [vmem:[#allocation46_spill] sm:$0xff] %v12828_v45  ;;  %v7370_v63 = vpop.f32.mrf.mxu3  ;;  %v9247_v45 = vor.u32 %v10367_v8, %v9244_v61  ;;  %v9267_v8 = vor.u32 %v10378_v51, %v9266_v20  ;;  %v9268_v20 = vld [vmem:[#allocation3 + $0x2b0] sm:$0xf0] }
 0x8df   : > { %v7032_v53 = vpop.f32.mrf.mxu1 }
 0x8e0   : > { %v6868_v34 = vpop.f32.mrf.mxu0  ;;  %v7033_v57 = vadd.f32 %v7032_v53, %v6864_v32  ;;  %v9236_v32 = vld [vmem:[#allocation3 + $0x270] sm:$0xf0]  ;;  %v10379_v53 = vld [vmem:[#allocation3 + $0x2b4] sm:$0xf0] }
 0x8e1   : > { %v6869_v14 = vadd.f32 %v6868_v34, %v12396_v28  ;;  %v9274_v28 = vld [vmem:[#allocation3 + $0x298] sm:$0xf] }
 0x8e2   : > { %v7202_v55 = vadd.f32 %v7201_v37, %v7033_v57  ;;  %7071 = vmatmul.bf16.gmra.mxu1 %v9207_v47  ;;  %7245 = vmatmul.bf16.gmra.mxu2 %v9243_v49  ;;  %v9275_v34 = vor.u32 %v10379_v53, %v9274_v28 }
 0x8e3   : > { %6907 = vmatmul.bf16.gmra.mxu0 %v9235_v59  ;;  %v9239_v59 = vor.u32 %v10366_v42, %v9236_v32 }
 0x8e4   : > { %v7371_v9 = vadd.f32 %v7370_v63, %v7202_v55 }
 0x8e5   : > { %v7206_v33 = vpop.f32.mrf.mxu2 }
 0x8e6   : > { %v7372_v60 = vpop.f32.mrf.mxu3  ;;  %v7530_v47 = vmax.f32 %v7371_v9, 0.0 }
 0x8e7   : > { %v7034_v50 = vpop.f32.mrf.mxu1 }
 0x8e8   : > { %v6870_v3 = vpop.f32.mrf.mxu0  ;;  %v7035_v62 = vadd.f32 %v7034_v50, %v6866_v0  ;;  %v9276_v50 = vld [vmem:[#allocation3 + $0x2b8] sm:$0xf0] }
 0x8e9   : > { %v6871_v38 = vadd.f32 %v6870_v3, %v12401_v29 }
 0x8ea   : > { %v7204_v35 = vadd.f32 %v7203_v17, %v7035_v62 }
 0x8eb   : > { %7414 = vmatmul.bf16.gmra.mxu3 %v9247_v45 }
 0x8ec   : > { %v7373_v37 = vadd.f32 %v7372_v60, %v7204_v35  ;;  %v10375_v60 = vld [vmem:[#allocation3 + $0x29c] sm:$0xf] }
 0x8ed   : > { %v7208_v63 = vpop.f32.mrf.mxu2  ;;  %v9279_v42 = vor.u32 %v10375_v60, %v9276_v50 }
 0x8ee   : > { %v7375_v49 = vpop.f32.mrf.mxu3  ;;  %v7531_v57 = vmax.f32 %v7373_v37, 0.0  ;;  %v10374_v37 = vld [vmem:[#allocation3 + $0x294] sm:$0xf] }
 0x8ef   : > { %v7037_v55 = vpop.f32.mrf.mxu1 }
 0x8f0   : > { %v6873_v0 = vpop.f32.mrf.mxu0  ;;  %v7038_v61 = vadd.f32 %v7037_v55, %v6869_v14  ;;  %v12832_v29 = vpack.c.bf16 %v7531_v57, %v7530_v47  ;;  %v9298_v47 = vld [vmem:[#allocation3 + $0x2d0] sm:$0xf]  ;;  %v9271_v55 = vor.u32 %v10374_v37, %v9268_v20 }
 0x8f1   : > { %v6874_v3 = vadd.f32 %v6873_v0, %v12406_v22  ;;  %v9306_v22 = vld [vmem:[#allocation3 + $0x2d8] sm:$0xf] }
 0x8f2   : > { %v7207_v45 = vadd.f32 %v7206_v33, %v7038_v61  ;;  %7076 = vmatmul.bf16.gmra.mxu1 %v9239_v59  ;;  %7250 = vmatmul.bf16.gmra.mxu2 %v9275_v34  ;;  %v10387_v33 = vld [vmem:[#allocation3 + $0x2f4] sm:$0xf0]  ;;  %v10386_v59 = vld [vmem:[#allocation3 + $0x2ec] sm:$0xf0] }
 0x8f3   : > { %6912 = vmatmul.bf16.gmra.mxu0 %v9267_v8  ;;  %v9307_v8 = vor.u32 %v10387_v33, %v9306_v22  ;;  %v10382_v33 = vld [vmem:[#allocation3 + $0x2d4] sm:$0xf] }
 0x8f4   : > { %v7376_v17 = vadd.f32 %v7375_v49, %v7207_v45  ;;  %v9299_v45 = vor.u32 %v10386_v59, %v9298_v47  ;;  %v9330_v59 = vld [vmem:[#allocation3 + $0x310] sm:$0xf] }
 0x8f5   : > { %v7211_v9 = vpop.f32.mrf.mxu2 }
 0x8f6   : > { %v7377_v62 = vpop.f32.mrf.mxu3  ;;  %v7532_v34 = vmax.f32 %v7376_v17, 0.0 }
 0x8f7   : > { %v7039_v35 = vpop.f32.mrf.mxu1 }
 0x8f8   : > { %v6875_v32 = vpop.f32.mrf.mxu0  ;;  %v7040_v28 = vadd.f32 %v7039_v35, %v6871_v38  ;;  %v10383_v35 = vld [vmem:[#allocation3 + $0x2dc] sm:$0xf] }
 0x8f9   : > { %v6876_v53 = vadd.f32 %v6875_v32, %v12411_v26 }
 0x8fa   : > { %v7209_v14 = vadd.f32 %v7208_v63, %v7040_v28 }
 0x8fb   : > { %7419 = vmatmul.bf16.gmra.mxu3 %v9279_v42  ;;  %v9308_v42 = vld [vmem:[#allocation3 + $0x2f8] sm:$0xf0] }
 0x8fc   : > { %v7378_v51 = vadd.f32 %v7377_v62, %v7209_v14  ;;  %v9311_v14 = vor.u32 %v10383_v35, %v9308_v42 }
 0x8fd   : > { %v7213_v49 = vpop.f32.mrf.mxu2 }
 0x8fe   : > { %v7380_v57 = vpop.f32.mrf.mxu3  ;;  %v7533_v0 = vmax.f32 %v7378_v51, 0.0  ;;  %v9300_v51 = vld [vmem:[#allocation3 + $0x2f0] sm:$0xf0] }
 0x8ff   : > { %v7042_v61 = vpop.f32.mrf.mxu1 }
 0x900   : > { %v6878_v38 = vpop.f32.mrf.mxu0  ;;  %v7043_v60 = vadd.f32 %v7042_v61, %v6874_v3  ;;  %v12836_v26 = vpack.c.bf16 %v7533_v0, %v7532_v34  ;;  %v10394_v34 = vld [vmem:[#allocation3 + $0x32c] sm:$0xf0]  ;;  %v9303_v0 = vor.u32 %v10382_v33, %v9300_v51 }
 0x901   : > { %v6879_v63 = vadd.f32 %v6878_v38, %v12416_v43  ;;  %v9338_v43 = vld [vmem:[#allocation3 + $0x318] sm:$0xf] }
 0x902   : > { %v7212_v50 = vadd.f32 %v7211_v9, %v7043_v60  ;;  %7081 = vmatmul.bf16.gmra.mxu1 %v9271_v55  ;;  %7255 = vmatmul.bf16.gmra.mxu2 %v9307_v8  ;;  %v10395_v9 = vld [vmem:[#allocation3 + $0x334] sm:$0xf0]  ;;  %v9331_v60 = vor.u32 %v10394_v34, %v9330_v59  ;;  %v10402_v59 = vld [vmem:[#allocation3 + $0x36c] sm:$0xf0] }
 0x903   : > { %6917 = vmatmul.bf16.gmra.mxu0 %v9299_v45  ;;  %v9339_v61 = vor.u32 %v10395_v9, %v9338_v43  ;;  %v10390_v43 = vld [vmem:[#allocation3 + $0x314] sm:$0xf]  ;;  %v9370_v9 = vld [vmem:[#allocation3 + $0x358] sm:$0xf] }
 0x904   : > { %v7381_v62 = vadd.f32 %v7380_v57, %v7212_v50 }
 0x905   : > { %v7216_v17 = vpop.f32.mrf.mxu2 }
 0x906   : > { %v7382_v32 = vpop.f32.mrf.mxu3  ;;  %v7534_v55 = vmax.f32 %v7381_v62, 0.0 }
 0x907   : > { %v7044_v28 = vpop.f32.mrf.mxu1 }
 0x908   : > { %v6880_v37 = vpop.f32.mrf.mxu0  ;;  %v7045_v20 = vadd.f32 %v7044_v28, %v6876_v53  ;;  %v9340_v28 = vld [vmem:[#allocation3 + $0x338] sm:$0xf0] }
 0x909   : > { %v6881_v22 = vadd.f32 %v6880_v37, %v12421_v39 }
 0x90a   : > { %v7214_v3 = vadd.f32 %v7213_v49, %v7045_v20 }
 0x90b   : > { %7424 = vmatmul.bf16.gmra.mxu3 %v9311_v14 }
 0x90c   : > { %v7383_v47 = vadd.f32 %v7382_v32, %v7214_v3  ;;  %v10391_v32 = vld [vmem:[#allocation3 + $0x31c] sm:$0xf] }
 0x90d   : > { %v7218_v57 = vpop.f32.mrf.mxu2  ;;  %v9343_v20 = vor.u32 %v10391_v32, %v9340_v28  ;;  %v10399_v32 = vld [vmem:[#allocation3 + $0x35c] sm:$0xf] }
 0x90e   : > { %v7385_v8 = vpop.f32.mrf.mxu3  ;;  %v7535_v45 = vmax.f32 %v7383_v47, 0.0  ;;  %v10403_v47 = vld [vmem:[#allocation3 + $0x374] sm:$0xf0]  ;;  %v9372_v28 = vld [vmem:[#allocation3 + $0x378] sm:$0xf0] }
 0x90f   : > { %v7047_v38 = vpop.f32.mrf.mxu1 }
 0x910   : > { %v6883_v53 = vpop.f32.mrf.mxu0  ;;  %v7048_v50 = vadd.f32 %v7047_v38, %v6879_v63  ;;  %v12840_v39 = vpack.c.bf16 %v7535_v45, %v7534_v55  ;;  %v9332_v63 = vld [vmem:[#allocation3 + $0x330] sm:$0xf0] }
 0x911   : > { %v6884_v49 = vadd.f32 %v6883_v53, %v12426_v21 }
 0x912   : > { %v7217_v35 = vadd.f32 %v7216_v17, %v7048_v50  ;;  %7086 = vmatmul.bf16.gmra.mxu1 %v9303_v0  ;;  %7260 = vmatmul.bf16.gmra.mxu2 %v9339_v61  ;;  %v9362_v17 = vld [vmem:[#allocation3 + $0x350] sm:$0xf]  ;;  %v9335_v0 = vor.u32 %v10390_v43, %v9332_v63  ;;  %v9371_v61 = vor.u32 %v10403_v47, %v9370_v9  ;;  %v10398_v9 = vld [vmem:[#allocation3 + $0x354] sm:$0xf]  ;;  %v9402_v47 = vld [vmem:[#allocation3 + $0x398] sm:$0xf] }
 0x913   : > { %6922 = vmatmul.bf16.gmra.mxu0 %v9331_v60  ;;  %v9363_v60 = vor.u32 %v10402_v59, %v9362_v17  ;;  %v9394_v17 = vld [vmem:[#allocation3 + $0x390] sm:$0xf] }
 0x914   : > { %v7386_v42 = vadd.f32 %v7385_v8, %v7217_v35  ;;  %v10410_v59 = vld [vmem:[#allocation3 + $0x3ac] sm:$0xf0] }
 0x915   : > { %v7221_v62 = vpop.f32.mrf.mxu2 }
 0x916   : > { %v7387_v14 = vpop.f32.mrf.mxu3  ;;  %v7536_v55 = vmax.f32 %v7386_v42, 0.0 }
 0x917   : > { %v7049_v37 = vpop.f32.mrf.mxu1 }
 0x918   : > { %v6885_v3 = vpop.f32.mrf.mxu0  ;;  %v7050_v33 = vadd.f32 %v7049_v37, %v6881_v22 }
 0x919   : > { %v6886_v42 = vadd.f32 %v6885_v3, %v12431_v12 }
 0x91a   : > { %v7219_v51 = vadd.f32 %v7218_v57, %v7050_v33  ;;  %v9375_v33 = vor.u32 %v10399_v32, %v9372_v28  ;;  %v10407_v32 = vld [vmem:[#allocation3 + $0x39c] sm:$0xf] }
 0x91b   : > { %7429 = vmatmul.bf16.gmra.mxu3 %v9343_v20  ;;  %v9404_v28 = vld [vmem:[#allocation3 + $0x3b8] sm:$0xf0] }
 0x91c   : > { %v7388_v21 = vadd.f32 %v7387_v14, %v7219_v51 }
 0x91d   : > { %v7223_v34 = vpop.f32.mrf.mxu2 }
 0x91e   : > { %v7390_v8 = vpop.f32.mrf.mxu3  ;;  %v7537_v45 = vmax.f32 %v7388_v21, 0.0 }
 0x91f   : > { %v7052_v38 = vpop.f32.mrf.mxu1 }
 0x920   : > { %v6888_v53 = vpop.f32.mrf.mxu0  ;;  %v7053_v50 = vadd.f32 %v7052_v38, %v6884_v49  ;;  %v12843_v22 = vpack.c.bf16 %v7537_v45, %v7536_v55  ;;  %v9364_v49 = vld [vmem:[#allocation3 + $0x370] sm:$0xf0]  ;;  %v9395_v38 = vor.u32 %v10410_v59, %v9394_v17  ;;  %v9426_v59 = vld [vmem:[#allocation3 + $0x3d0] sm:$0xf] }
 0x922   : > { %v7222_v57 = vadd.f32 %v7221_v62, %v7053_v50  ;;  %7091 = vmatmul.bf16.gmra.mxu1 %v9335_v0  ;;  %7265 = vmatmul.bf16.gmra.mxu2 %v9371_v61  ;;  %v10411_v62 = vld [vmem:[#allocation3 + $0x3b4] sm:$0xf0]  ;;  %v9367_v61 = vor.u32 %v10398_v9, %v9364_v49 }
 0x923   : > { %6927 = vmatmul.bf16.gmra.mxu0 %v9363_v60  ;;  %v9403_v45 = vor.u32 %v10411_v62, %v9402_v47  ;;  %v6889_v60 = vadd.f32 %v6888_v53, %v12436_v24  ;;  %v10406_v53 = vld [vmem:[#allocation3 + $0x394] sm:$0xf]  ;;  %v9434_v62 = vld [vmem:[#allocation3 + $0x3d8] sm:$0xf] }
 0x924   : > { %v7391_v35 = vadd.f32 %v7390_v8, %v7222_v57  ;;  %v9396_v47 = vld [vmem:[#allocation3 + $0x3b0] sm:$0xf0] }
 0x925   : > { %v7226_v14 = vpop.f32.mrf.mxu2 }
 0x926   : > { %v7392_v37 = vpop.f32.mrf.mxu3  ;;  %v7538_v8 = vmax.f32 %v7391_v35, 0.0 }
 0x927   : > { %v7054_v20 = vpop.f32.mrf.mxu1 }
 0x928   : > { %v6890_v51 = vpop.f32.mrf.mxu0  ;;  %v7055_v43 = vadd.f32 %v7054_v20, %v6886_v42 }
 0x929   : > { %v6891_v35 = vadd.f32 %v6890_v51, %v12441_v1  ;;  %v9399_v1 = vor.u32 %v10406_v53, %v9396_v47  ;;  %v9428_v47 = vld [vmem:[#allocation3 + $0x3f0] sm:$0xf0] }
 0x92a   : > { %v7224_v63 = vadd.f32 %v7223_v34, %v7055_v43  ;;  %v9407_v43 = vor.u32 %v10407_v32, %v9404_v28  ;;  %v10415_v32 = vld [vmem:[#allocation3 + $0x3dc] sm:$0xf] }
 0x92b   : > { %7434 = vmatmul.bf16.gmra.mxu3 %v9375_v33  ;;  %v9436_v28 = vld [vmem:[#allocation3 + $0x3f8] sm:$0xf0] }
 0x92c   : > { %v7393_v21 = vadd.f32 %v7392_v37, %v7224_v63 }
 0x92d   : > { %v7228_v55 = vpop.f32.mrf.mxu2 }
 0x92e   : > { %v7395_v0 = vpop.f32.mrf.mxu3  ;;  %v7539_v12 = vmax.f32 %v7393_v21, 0.0  ;;  %v10419_v21 = vld [vmem:[#allocation3 + $0x3f4] sm:$0xf0] }
 0x92f   : > { %v7057_v3 = vpop.f32.mrf.mxu1 }
 0x930   : > { %v6893_v50 = vpop.f32.mrf.mxu0  ;;  %v12847_v34 = vpack.c.bf16 %v7539_v12, %v7538_v8  ;;  %v7058_v57 = vadd.f32 %v7057_v3, %v6889_v60  ;;  %v10418_v8 = vld [vmem:[#allocation3 + $0x3ec] sm:$0xf0] }
 0x931   : > { %v6894_v60 = vadd.f32 %v6893_v50, %v12446_v6  ;;  %v10414_v50 = vld [vmem:[#allocation3 + $0x3d4] sm:$0xf] }
 0x932   : > { %7096 = vmatmul.bf16.gmra.mxu1 %v9367_v61  ;;  %7270 = vmatmul.bf16.gmra.mxu2 %v9403_v45  ;;  %v7227_v37 = vadd.f32 %v7226_v14, %v7058_v57  ;;  %v9435_v14 = vor.u32 %v10419_v21, %v9434_v62  ;;  %v9466_v62 = vld [vmem:[#allocation3 + $0x418] sm:$0xf] }
 0x933   : > { %6932 = vmatmul.bf16.gmra.mxu0 %v9395_v38  ;;  %v9427_v38 = vor.u32 %v10418_v8, %v9426_v59  ;;  %v10427_v21 = vld [vmem:[#allocation3 + $0x434] sm:$0xf0]  ;;  %v9458_v59 = vld [vmem:[#allocation3 + $0x410] sm:$0xf] }
 0x934   : > { %v7396_v49 = vadd.f32 %v7395_v0, %v7227_v37  ;;  %v10426_v8 = vld [vmem:[#allocation3 + $0x42c] sm:$0xf0] }
 0x935   : > { %v7231_v42 = vpop.f32.mrf.mxu2 }
 0x936   : > { %v7397_v20 = vpop.f32.mrf.mxu3  ;;  %v7540_v45 = vmax.f32 %v7396_v49, 0.0 }
 0x937   : > { %v7059_v33 = vpop.f32.mrf.mxu1 }
 0x938   : > { %v6895_v63 = vpop.f32.mrf.mxu0  ;;  %v7060_v9 = vadd.f32 %v7059_v33, %v6891_v35 }
 0x939   : > { %v6896_v37 = vadd.f32 %v6895_v63, %v12451_v2  ;;  %v9431_v2 = vor.u32 %v10414_v50, %v9428_v47  ;;  %v10422_v47 = vld [vmem:[#allocation3 + $0x414] sm:$0xf] }
 0x93a   : > { %v7229_v24 = vadd.f32 %v7228_v55, %v7060_v9  ;;  %v9439_v9 = vor.u32 %v10415_v32, %v9436_v28  ;;  %v10423_v32 = vld [vmem:[#allocation3 + $0x41c] sm:$0xf] }
 0x93b   : > { %7439 = vmatmul.bf16.gmra.mxu3 %v9407_v43  ;;  %v9468_v28 = vld [vmem:[#allocation3 + $0x438] sm:$0xf0] }
 0x93c   : > { %v7398_v17 = vadd.f32 %v7397_v20, %v7229_v24 }
 0x93d   : > { %v7233_v61 = vpop.f32.mrf.mxu2 }
 0x93e   : > { %v7400_v12 = vpop.f32.mrf.mxu3  ;;  %v7541_v51 = vmax.f32 %v7398_v17, 0.0 }
 0x93f   : > { %v7062_v3 = vpop.f32.mrf.mxu1 }
 0x940   : > { %v6898_v0 = vpop.f32.mrf.mxu0  ;;  %v12851_v55 = vpack.c.bf16 %v7541_v51, %v7540_v45  ;;  %v7063_v57 = vadd.f32 %v7062_v3, %v6894_v60  ;;  %v9459_v3 = vor.u32 %v10426_v8, %v9458_v59  ;;  %v9498_v59 = vld [vmem:[#allocation3 + $0x458] sm:$0xf] }
 0x941   : > { %v10435_v8 = vld [vmem:[#allocation3 + $0x474] sm:$0xf0] }
 0x942   : > { %7101 = vmatmul.bf16.gmra.mxu1 %v9399_v1  ;;  %7275 = vmatmul.bf16.gmra.mxu2 %v9435_v14  ;;  %v7232_v20 = vadd.f32 %v7231_v42, %v7063_v57  ;;  %v9467_v42 = vor.u32 %v10427_v21, %v9466_v62  ;;  %v9460_v62 = vld [vmem:[#allocation3 + $0x430] sm:$0xf0] }
 0x943   : > { %6937 = vmatmul.bf16.gmra.mxu0 %v9427_v38  ;;  %v6899_v38 = vadd.f32 %v6898_v0, %v12456_v46 }
 0x944   : > { %v7401_v53 = vadd.f32 %v7400_v12, %v7232_v20 }
 0x945   : > { %v7236_v35 = vpop.f32.mrf.mxu2 }
 0x946   : > { %v7402_v33 = vpop.f32.mrf.mxu3  ;;  %v7542_v1 = vmax.f32 %v7401_v53, 0.0 }
 0x947   : > { %v7064_v43 = vpop.f32.mrf.mxu1 }
 0x948   : > { %v6900_v49 = vpop.f32.mrf.mxu0  ;;  %v7065_v24 = vadd.f32 %v7064_v43, %v6896_v37 }
 0x949   : > { %v6901_v20 = vadd.f32 %v6900_v49, %v12461_v54 }
 0x94a   : > { %v7234_v6 = vadd.f32 %v7233_v61, %v7065_v24  ;;  %v9471_v24 = vor.u32 %v10423_v32, %v9468_v28  ;;  %v9500_v32 = vld [vmem:[#allocation3 + $0x478] sm:$0xf0] }
 0x94b   : > { %7444 = vmatmul.bf16.gmra.mxu3 %v9439_v9 }
 0x94c   : > { %v7403_v17 = vadd.f32 %v7402_v33, %v7234_v6 }
 0x94d   : > { %v7238_v45 = vpop.f32.mrf.mxu2 }
 0x94e   : > { %v7405_v14 = vpop.f32.mrf.mxu3  ;;  %v7543_v63 = vmax.f32 %v7403_v17, 0.0  ;;  %v10434_v17 = vld [vmem:[#allocation3 + $0x46c] sm:$0xf0] }
 0x94f   : > { %v7067_v51 = vpop.f32.mrf.mxu1 }
 0x950   : > { %v6903_v12 = vpop.f32.mrf.mxu0  ;;  %v7600_v61 = vpack.c.bf16 %v7543_v63, %v7542_v1  ;;  %v7068_v57 = vadd.f32 %v7067_v51, %v6899_v38  ;;  %v9499_v51 = vor.u32 %v10435_v8, %v9498_v59 }
 0x951   : > { %v6904_v60 = vadd.f32 %v6903_v12, %v12466_v4  ;;  %v9490_v4 = vld [vmem:[#allocation3 + $0x450] sm:$0xf] }
 0x952   : > { %7106 = vmatmul.bf16.gmra.mxu1 %v9431_v2  ;;  %7280 = vmatmul.bf16.gmra.mxu2 %v9467_v42  ;;  %v7237_v33 = vadd.f32 %v7236_v35, %v7068_v57  ;;  %v9463_v2 = vor.u32 %v10422_v47, %v9460_v62  ;;  %v9491_v63 = vor.u32 %v10434_v17, %v9490_v4  ;;  %v10431_v57 = vld [vmem:[#allocation3 + $0x45c] sm:$0xf]  ;;  %v9530_v4 = vld [vmem:[#allocation3 + $0x498] sm:$0xf] }
 0x953   : > { %6942 = vmatmul.bf16.gmra.mxu0 %v9459_v3  ;;  %v10443_v47 = vld [vmem:[#allocation3 + $0x4b4] sm:$0xf0] }
 0x954   : > { %v7406_v0 = vadd.f32 %v7405_v14, %v7237_v33  ;;  %v9531_v8 = vor.u32 %v10443_v47, %v9530_v4  ;;  %v10447_v47 = vld [vmem:[#allocation3 + $0x4dc] sm:$0xf] }
 0x955   : > { %v7241_v37 = vpop.f32.mrf.mxu2 }
 0x956   : > { %v7407_v43 = vpop.f32.mrf.mxu3  ;;  %v7544_v54 = vmax.f32 %v7406_v0, 0.0 }
 0x957   : > { %v7069_v9 = vpop.f32.mrf.mxu1 }
 0x958   : > { %v6905_v53 = vpop.f32.mrf.mxu0  ;;  %v7070_v6 = vadd.f32 %v7069_v9, %v6901_v20 }
 0x959   : > { %v6906_v46 = vadd.f32 %v6905_v53, %v12471_v40 }
 0x95a   : > { %v7239_v50 = vadd.f32 %v7238_v45, %v7070_v6  ;;  %v9492_v6 = vld [vmem:[#allocation3 + $0x470] sm:$0xf0] }
 0x95b   : > { %7449 = vmatmul.bf16.gmra.mxu3 %v9471_v24 }
 0x95c   : > { %v7408_v21 = vadd.f32 %v7407_v43, %v7239_v50  ;;  %v9503_v43 = vor.u32 %v10431_v57, %v9500_v32  ;;  %v10442_v50 = vld [vmem:[#allocation3 + $0x4ac] sm:$0xf0]  ;;  %v9524_v57 = vld [vmem:[#allocation3 + $0x4b0] sm:$0xf0] }
 0x95d   : > { %v7243_v1 = vpop.f32.mrf.mxu2 }
 0x95e   : > { %v7545_v35 = vmax.f32 %v7408_v21, 0.0  ;;  %v7410_v49 = vpop.f32.mrf.mxu3 }
 0x95f   : > { %v7072_v42 = vpop.f32.mrf.mxu1 }
 0x960   : > { %v6908_v3 = vpop.f32.mrf.mxu0  ;;  %v7073_v40 = vadd.f32 %v7072_v42, %v6904_v60  ;;  %v7601_v14 = vpack.c.bf16 %v7545_v35, %v7544_v54  ;;  %v10439_v42 = vld [vmem:[#allocation3 + $0x49c] sm:$0xf] }
 0x961   : > { %v6909_v45 = vadd.f32 %v6908_v3, %v12476_v18  ;;  %v9522_v18 = vld [vmem:[#allocation3 + $0x490] sm:$0xf] }
 0x962   : > { %v7242_v38 = vadd.f32 %v7241_v37, %v7073_v40  ;;  %7111 = vmatmul.bf16.gmra.mxu1 %v9463_v2  ;;  %8042 = vmatpush.bf16.msra.mxu0 %v7601_v14  ;;  %v10430_v37 = vld [vmem:[#allocation3 + $0x454] sm:$0xf] }
 0x963   : > { %6947 = vmatmul.bf16.gmra.mxu0 %v9491_v63  ;;  %7285 = vmatmul.bf16.gmra.mxu2 %v9499_v51  ;;  %v9495_v17 = vor.u32 %v10430_v37, %v9492_v6 }
 0x964   : > { %v7411_v12 = vadd.f32 %v7410_v49, %v7242_v38 }
 0x965   : > { %v7246_v28 = vpop.f32.mrf.mxu2 }
 0x966   : > { %v7412_v20 = vpop.f32.mrf.mxu3  ;;  %8043 = vmatpush.bf16.msra.mxu0 %v7600_v61  ;;  %v7546_v21 = vmax.f32 %v7411_v12, 0.0  ;;  %v10438_v12 = vld [vmem:[#allocation3 + $0x494] sm:$0xf] }
 0x967   : > { %v7074_v33 = vpop.f32.mrf.mxu1 }
 0x968   : > { %v6910_v9 = vpop.f32.mrf.mxu0  ;;  %v7075_v24 = vadd.f32 %v7074_v33, %v6906_v46  ;;  %v10451_v33 = vld [vmem:[#allocation3 + $0x4f4] sm:$0xf0] }
 0x969   : > { %v6911_v60 = vadd.f32 %v6910_v9, %v12481_v56  ;;  %v9523_v56 = vor.u32 %v10442_v50, %v9522_v18 }
 0x96a   : > { %v7244_v53 = vadd.f32 %v7243_v1, %v7075_v24  ;;  %8044 = vmatpush.bf16.msra.mxu0 %v12851_v55  ;;  %v9527_v24 = vor.u32 %v10438_v12, %v9524_v57 }
 0x96b   : > { %7454 = vmatmul.bf16.gmra.mxu3 %v9503_v43 }
 0x96c   : > { %v7413_v0 = vadd.f32 %v7412_v20, %v7244_v53  ;;  %v9562_v20 = vld [vmem:[#allocation3 + $0x4d8] sm:$0xf] }
 0x96d   : > { %v7248_v62 = vpop.f32.mrf.mxu2  ;;  %v9563_v18 = vor.u32 %v10451_v33, %v9562_v20  ;;  %v9596_v20 = vld [vmem:[#allocation3 + $0x538] sm:$0xf0] }
 0x96e   : > { %v7415_v61 = vpop.f32.mrf.mxu3  ;;  %8045 = vmatpush.bf16.msra.mxu0 %v12847_v34  ;;  %v7547_v46 = vmax.f32 %v7413_v0, 0.0  ;;  %v9532_v34 = vld [vmem:[#allocation3 + $0x4b8] sm:$0xf0] }
 0x96f   : > { %v7077_v59 = vpop.f32.mrf.mxu1  ;;  %v9535_v40 = vor.u32 %v10439_v42, %v9532_v34  ;;  %v10459_v42 = vld [vmem:[#allocation3 + $0x534] sm:$0xf0] }
 0x970   : > { %v6913_v1 = vpop.f32.mrf.mxu0  ;;  %v7078_v55 = vadd.f32 %v7077_v59, %v6909_v45  ;;  %v12862_v54 = vpack.c.bf16 %v7547_v46, %v7546_v21 }
 0x971   : > { %v6914_v35 = vadd.f32 %v6913_v1, %v12486_v58  ;;  %v9586_v1 = vld [vmem:[#allocation3 + $0x510] sm:$0xf] }
 0x972   : > { %v7247_v49 = vadd.f32 %v7246_v28, %v7078_v55  ;;  %7116 = vmatmul.bf16.gmra.mxu1 %v9495_v17  ;;  %8046 = vmatpush.bf16.msra.mxu0 %v12843_v22  ;;  %v9554_v22 = vld [vmem:[#allocation3 + $0x4d0] sm:$0xf]  ;;  %v10446_v55 = vld [vmem:[#allocation3 + $0x4d4] sm:$0xf] }
 0x973   : > { %6952 = vmatmul.bf16.gmra.mxu0 %v9523_v56  ;;  %7290 = vmatmul.bf16.gmra.mxu2 %v9531_v8  ;;  %v10450_v28 = vld [vmem:[#allocation3 + $0x4ec] sm:$0xf0] }
 0x974   : > { %v7416_v2 = vadd.f32 %v7415_v61, %v7247_v49  ;;  %v10458_v49 = vld [vmem:[#allocation3 + $0x52c] sm:$0xf0] }
 0x975   : > { %v7251_v63 = vpop.f32.mrf.mxu2 }
 0x976   : > { %v7417_v51 = vpop.f32.mrf.mxu3  ;;  %8047 = vmatpush.bf16.msra.mxu0 %v12840_v39  ;;  %v7548_v9 = vmax.f32 %v7416_v2, 0.0  ;;  %v9594_v2 = vld [vmem:[#allocation3 + $0x518] sm:$0xf] }
 0x977   : > { %v7079_v3 = vpop.f32.mrf.mxu1 }
 0x978   : > { %v6915_v14 = vpop.f32.mrf.mxu0  ;;  %v7080_v45 = vadd.f32 %v7079_v3, %v6911_v60 }
 0x979   : > { %v6916_v38 = vadd.f32 %v6915_v14, %v12491_v36  ;;  %v9555_v36 = vor.u32 %v10450_v28, %v9554_v22  ;;  %v10455_v28 = vld [vmem:[#allocation3 + $0x51c] sm:$0xf] }
 0x97a   : > { %v7249_v58 = vadd.f32 %v7248_v62, %v7080_v45  ;;  %8048 = vmatpush.bf16.msra.mxu0 %v12836_v26  ;;  %v9564_v62 = vld [vmem:[#allocation3 + $0x4f8] sm:$0xf0]  ;;  %v9587_v45 = vor.u32 %v10458_v49, %v9586_v1 }
 0x97b   : > { %7459 = vmatmul.bf16.gmra.mxu3 %v9535_v40  ;;  %v9567_v17 = vor.u32 %v10447_v47, %v9564_v62 }
 0x97c   : > { %v7418_v32 = vadd.f32 %v7417_v51, %v7249_v58  ;;  %v9595_v58 = vor.u32 %v10459_v42, %v9594_v2 }
 0x97d   : > { %v7253_v43 = vpop.f32.mrf.mxu2 }
 0x97e   : > { %v7420_v39 = vpop.f32.mrf.mxu3  ;;  %8049 = vmatpush.bf16.msra.mxu0 %v12832_v29  ;;  %v7549_v60 = vmax.f32 %v7418_v32, 0.0 }
 0x97f   : > { %v7082_v53 = vpop.f32.mrf.mxu1 }
 0x980   : > { %v6918_v37 = vpop.f32.mrf.mxu0  ;;  %v7083_v26 = vadd.f32 %v7082_v53, %v6914_v35  ;;  %v12870_v6 = vpack.c.bf16 %v7549_v60, %v7548_v9 }
 0x981   : > { %v6919_v0 = vadd.f32 %v6918_v37, %v12496_v30  ;;  %v9556_v30 = vld [vmem:[#allocation3 + $0x4f0] sm:$0xf0] }
 0x982   : > { %v7252_v50 = vadd.f32 %v7251_v63, %v7083_v26  ;;  %7121 = vmatmul.bf16.gmra.mxu1 %v9527_v24  ;;  %v9559_v3 = vor.u32 %v10446_v55, %v9556_v30  ;;  %v9588_v37 = vld [vmem:[#allocation3 + $0x530] sm:$0xf0]  ;;  %v10463_v30 = vld [vmem:[#allocation3 + $0x55c] sm:$0xf] }
 0x983   : > { %6957 = vmatmul.bf16.gmra.mxu0 %v9555_v36  ;;  %7295 = vmatmul.bf16.gmra.mxu2 %v9563_v18  ;;  %v9618_v36 = vld [vmem:[#allocation3 + $0x550] sm:$0xf]  ;;  %v10454_v18 = vld [vmem:[#allocation3 + $0x514] sm:$0xf] }
 0x984   : > { %v7421_v4 = vadd.f32 %v7420_v39, %v7252_v50  ;;  %v9599_v39 = vor.u32 %v10455_v28, %v9596_v20  ;;  %v10467_v50 = vld [vmem:[#allocation3 + $0x574] sm:$0xf0] }
 0x985   : > { %v7256_v21 = vpop.f32.mrf.mxu2 }
 0x986   : > { %v7422_v29 = vpop.f32.mrf.mxu3  ;;  %v7550_v63 = vmax.f32 %v7421_v4, 0.0 }
 0x987   : > { %v7084_v61 = vpop.f32.mrf.mxu1 }
 0x988   : > { %v6920_v46 = vpop.f32.mrf.mxu0  ;;  %v7085_v59 = vadd.f32 %v7084_v61, %v6916_v38 }
 0x989   : > { %v6921_v56 = vadd.f32 %v6920_v46, %v12507_v44 }
 0x98a   : > { %v7254_v8 = vadd.f32 %v7253_v43, %v7085_v59 }
 0x98b   : > { %7464 = vmatmul.bf16.gmra.mxu3 %v9567_v17 }
 0x98c   : > { %v7423_v35 = vadd.f32 %v7422_v29, %v7254_v8 }
 0x98d   : > { %v7258_v34 = vpop.f32.mrf.mxu2 }
 0x98e   : > { %v7425_v51 = vpop.f32.mrf.mxu3  ;;  %v7551_v40 = vmax.f32 %v7423_v35, 0.0  ;;  %v9628_v35 = vld [vmem:[#allocation3 + $0x578] sm:$0xf0] }
 0x98f   : > { %v7087_v14 = vpop.f32.mrf.mxu1 }
 0x990   : > { %v6923_v38 = vpop.f32.mrf.mxu0  ;;  %v7088_v22 = vadd.f32 %v7087_v14, %v6919_v0  ;;  %v12874_v44 = vpack.c.bf16 %v7551_v40, %v7550_v63  ;;  %v9626_v0 = vld [vmem:[#allocation3 + $0x558] sm:$0xf]  ;;  %v9631_v63 = vor.u32 %v10463_v30, %v9628_v35  ;;  %v9650_v14 = vld [vmem:[#allocation3 + $0x590] sm:$0xf] }
 0x991   : > { %v6924_v12 = vadd.f32 %v6923_v38, %v12518_v31  ;;  %v10466_v31 = vld [vmem:[#allocation3 + $0x56c] sm:$0xf0]  ;;  %v9627_v46 = vor.u32 %v10467_v50, %v9626_v0 }
 0x992   : > { %v7257_v57 = vadd.f32 %v7256_v21, %v7088_v22  ;;  %7126 = vmatmul.bf16.gmra.mxu1 %v9559_v3  ;;  %v9591_v21 = vor.u32 %v10454_v18, %v9588_v37  ;;  %v9619_v17 = vor.u32 %v10466_v31, %v9618_v36  ;;  %v10474_v22 = vld [vmem:[#allocation3 + $0x5ac] sm:$0xf0]  ;;  %v10471_v18 = vld [vmem:[#allocation3 + $0x59c] sm:$0xf] }
 0x993   : > { %6962 = vmatmul.bf16.gmra.mxu0 %v9587_v45  ;;  %7300 = vmatmul.bf16.gmra.mxu2 %v9595_v58  ;;  %v10462_v45 = vld [vmem:[#allocation3 + $0x554] sm:$0xf]  ;;  %v9660_v37 = vld [vmem:[#allocation3 + $0x5b8] sm:$0xf0] }
 0x994   : > { %v7426_v32 = vadd.f32 %v7425_v51, %v7257_v57  ;;  %v9620_v58 = vld [vmem:[#allocation3 + $0x570] sm:$0xf0]  ;;  %v10475_v57 = vld [vmem:[#allocation3 + $0x5b4] sm:$0xf0] }
 0x995   : > { %v7261_v33 = vpop.f32.mrf.mxu2 }
 0x996   : > { %v7427_v43 = vpop.f32.mrf.mxu3  ;;  %v7552_v47 = vmax.f32 %v7426_v32, 0.0 }
 0x997   : > { %v7089_v9 = vpop.f32.mrf.mxu1 }
 0x998   : > { %v6925_v24 = vpop.f32.mrf.mxu0  ;;  %v7090_v60 = vadd.f32 %v7089_v9, %v6921_v56  ;;  %v9651_v9 = vor.u32 %v10474_v22, %v9650_v14 }
 0x999   : > { %v6926_v2 = vadd.f32 %v6925_v24, %v12529_v7 }
 0x99a   : > { %v7259_v53 = vadd.f32 %v7258_v34, %v7090_v60 }
 0x99b   : > { %7469 = vmatmul.bf16.gmra.mxu3 %v9599_v39 }
 0x99c   : > { %v7428_v26 = vadd.f32 %v7427_v43, %v7259_v53 }
 0x99d   : > { %v7263_v4 = vpop.f32.mrf.mxu2 }
 0x99e   : > { %v7430_v62 = vpop.f32.mrf.mxu3  ;;  %v7553_v29 = vmax.f32 %v7428_v26, 0.0 }
 0x99f   : > { %v7092_v61 = vpop.f32.mrf.mxu1 }
 0x9a0   : > { %v6928_v59 = vpop.f32.mrf.mxu0  ;;  %v7093_v8 = vadd.f32 %v7092_v61, %v6924_v12  ;;  %v12877_v56 = vpack.c.bf16 %v7553_v29, %v7552_v47  ;;  %v9658_v12 = vld [vmem:[#allocation3 + $0x598] sm:$0xf]  ;;  %v9663_v47 = vor.u32 %v10471_v18, %v9660_v37  ;;  %v9682_v61 = vld [vmem:[#allocation3 + $0x5d0] sm:$0xf] }
 0x9a1   : > { %v9659_v39 = vor.u32 %v10475_v57, %v9658_v12  ;;  %v6929_v24 = vadd.f32 %v6928_v59, %v12540_v15  ;;  %v10491_v18 = vld [vmem:[#allocation3 + $0x634] sm:$0xf0] }
 0x9a2   : > { %v7262_v1 = vadd.f32 %v7261_v33, %v7093_v8  ;;  %7131 = vmatmul.bf16.gmra.mxu1 %v9591_v21  ;;  %v9623_v33 = vor.u32 %v10462_v45, %v9620_v58  ;;  %v10482_v8 = vld [vmem:[#allocation3 + $0x5ec] sm:$0xf0]  ;;  %v10479_v45 = vld [vmem:[#allocation3 + $0x5dc] sm:$0xf] }
 0x9a3   : > { %6967 = vmatmul.bf16.gmra.mxu0 %v9619_v17  ;;  %7305 = vmatmul.bf16.gmra.mxu2 %v9627_v46  ;;  %v10470_v17 = vld [vmem:[#allocation3 + $0x594] sm:$0xf]  ;;  %v9692_v58 = vld [vmem:[#allocation3 + $0x5f8] sm:$0xf0] }
 0x9a4   : > { %v7431_v55 = vadd.f32 %v7430_v62, %v7262_v1  ;;  %v9652_v46 = vld [vmem:[#allocation3 + $0x5b0] sm:$0xf0]  ;;  %v9690_v1 = vld [vmem:[#allocation3 + $0x5d8] sm:$0xf] }
 0x9a5   : > { %v7266_v49 = vpop.f32.mrf.mxu2 }
 0x9a6   : > { %v7432_v42 = vpop.f32.mrf.mxu3  ;;  %v7554_v28 = vmax.f32 %v7431_v55, 0.0  ;;  %v10483_v55 = vld [vmem:[#allocation3 + $0x5f4] sm:$0xf0] }
 0x9a7   : > { %v7094_v34 = vpop.f32.mrf.mxu1 }
 0x9a8   : > { %v6930_v51 = vpop.f32.mrf.mxu0  ;;  %v7095_v3 = vadd.f32 %v7094_v34, %v6926_v2  ;;  %v9683_v34 = vor.u32 %v10482_v8, %v9682_v61 }
 0x9a9   : > { %v6931_v31 = vadd.f32 %v6930_v51, %v12551_v16  ;;  %v9655_v16 = vor.u32 %v10470_v17, %v9652_v46  ;;  %v10487_v17 = vld [vmem:[#allocation3 + $0x61c] sm:$0xf] }
 0x9aa   : > { %v7264_v40 = vadd.f32 %v7263_v4, %v7095_v3  ;;  %v9724_v46 = vld [vmem:[#allocation3 + $0x638] sm:$0xf0] }
 0x9ab   : > { %7474 = vmatmul.bf16.gmra.mxu3 %v9631_v63  ;;  %v9691_v63 = vor.u32 %v10483_v55, %v9690_v1 }
 0x9ac   : > { %v7433_v38 = vadd.f32 %v7432_v42, %v7264_v40 }
 0x9ad   : > { %v7268_v32 = vpop.f32.mrf.mxu2 }
 0x9ae   : > { %v7435_v20 = vpop.f32.mrf.mxu3  ;;  %v7555_v43 = vmax.f32 %v7433_v38, 0.0 }
 0x9af   : > { %v7097_v7 = vpop.f32.mrf.mxu1 }
 0x9b0   : > { %v6933_v60 = vpop.f32.mrf.mxu0  ;;  %v12881_v53 = vpack.c.bf16 %v7555_v43, %v7554_v28  ;;  %v7098_v36 = vadd.f32 %v7097_v7, %v6929_v24  ;;  %v9695_v28 = vor.u32 %v10479_v45, %v9692_v58  ;;  %v9714_v7 = vld [vmem:[#allocation3 + $0x610] sm:$0xf]  ;;  %v9754_v45 = vld [vmem:[#allocation3 + $0x658] sm:$0xf] }
 0x9b1   : > { %v6934_v51 = vadd.f32 %v6933_v60, %v12562_v19  ;;  %v10490_v60 = vld [vmem:[#allocation3 + $0x62c] sm:$0xf0]  ;;  %v10499_v58 = vld [vmem:[#allocation3 + $0x674] sm:$0xf0] }
 0x9b2   : > { %7136 = vmatmul.bf16.gmra.mxu1 %v9623_v33  ;;  %v7267_v0 = vadd.f32 %v7266_v49, %v7098_v36  ;;  %v9722_v36 = vld [vmem:[#allocation3 + $0x618] sm:$0xf] }
 0x9b3   : > { %6972 = vmatmul.bf16.gmra.mxu0 %v9651_v9  ;;  %7310 = vmatmul.bf16.gmra.mxu2 %v9659_v39  ;;  %v10478_v9 = vld [vmem:[#allocation3 + $0x5d4] sm:$0xf] }
 0x9b4   : > { %v7436_v29 = vadd.f32 %v7435_v20, %v7267_v0  ;;  %v9684_v39 = vld [vmem:[#allocation3 + $0x5f0] sm:$0xf0] }
 0x9b5   : > { %v7271_v26 = vpop.f32.mrf.mxu2 }
 0x9b6   : > { %v7437_v50 = vpop.f32.mrf.mxu3  ;;  %v7556_v35 = vmax.f32 %v7436_v29, 0.0 }
 0x9b7   : > { %v7099_v4 = vpop.f32.mrf.mxu1 }
 0x9b8   : > { %v6935_v62 = vpop.f32.mrf.mxu0  ;;  %v7100_v21 = vadd.f32 %v7099_v4, %v6931_v31  ;;  %v9715_v4 = vor.u32 %v10490_v60, %v9714_v7 }
 0x9b9   : > { %v6936_v22 = vadd.f32 %v6935_v62, %v12573_v25  ;;  %v9687_v25 = vor.u32 %v10478_v9, %v9684_v39  ;;  %v10495_v9 = vld [vmem:[#allocation3 + $0x65c] sm:$0xf] }
 0x9ba   : > { %v7269_v15 = vadd.f32 %v7268_v32, %v7100_v21  ;;  %v9756_v39 = vld [vmem:[#allocation3 + $0x678] sm:$0xf0] }
 0x9bb   : > { %7479 = vmatmul.bf16.gmra.mxu3 %v9663_v47  ;;  %v9723_v47 = vor.u32 %v10491_v18, %v9722_v36  ;;  %v9759_v18 = vor.u32 %v10495_v9, %v9756_v39  ;;  %v10511_v39 = vld [vmem:[#allocation3 + $0x6dc] sm:$0xf] }
 0x9bc   : > { %v7438_v59 = vadd.f32 %v7437_v50, %v7269_v15 }
 0x9bd   : > { %v7273_v30 = vpop.f32.mrf.mxu2 }
 0x9be   : > { %v7440_v2 = vpop.f32.mrf.mxu3  ;;  %v7557_v49 = vmax.f32 %v7438_v59, 0.0 }
 0x9bf   : > { %v7102_v42 = vpop.f32.mrf.mxu1 }
 0x9c0   : > { %v6938_v3 = vpop.f32.mrf.mxu0  ;;  %v12885_v40 = vpack.c.bf16 %v7557_v49, %v7556_v35  ;;  %v7103_v14 = vadd.f32 %v7102_v42, %v6934_v51  ;;  %v9727_v35 = vor.u32 %v10487_v17, %v9724_v46  ;;  %v9746_v51 = vld [vmem:[#allocation3 + $0x650] sm:$0xf] }
 0x9c1   : > { %v6939_v62 = vadd.f32 %v6938_v3, %v12584_v10  ;;  %v10498_v3 = vld [vmem:[#allocation3 + $0x66c] sm:$0xf0] }
 0x9c2   : > { %7141 = vmatmul.bf16.gmra.mxu1 %v9655_v16  ;;  %v7272_v12 = vadd.f32 %v7271_v26, %v7103_v14 }
 0x9c3   : > { %6977 = vmatmul.bf16.gmra.mxu0 %v9683_v34  ;;  %7315 = vmatmul.bf16.gmra.mxu2 %v9691_v63  ;;  %v9716_v34 = vld [vmem:[#allocation3 + $0x630] sm:$0xf0] }
 0x9c4   : > { %v7441_v43 = vadd.f32 %v7440_v2, %v7272_v12 }
 0x9c5   : > { %v7276_v38 = vpop.f32.mrf.mxu2 }
 0x9c6   : > { %v7442_v57 = vpop.f32.mrf.mxu3  ;;  %v7558_v31 = vmax.f32 %v7441_v43, 0.0 }
 0x9c7   : > { %v7104_v32 = vpop.f32.mrf.mxu1 }
 0x9c8   : > { %v6940_v20 = vpop.f32.mrf.mxu0  ;;  %v7105_v33 = vadd.f32 %v7104_v32, %v6936_v22  ;;  %v9747_v32 = vor.u32 %v10498_v3, %v9746_v51  ;;  %v10502_v3 = vld [vmem:[#allocation3 + $0x694] sm:$0xf] }
 0x9c9   : > { %v6941_v8 = vadd.f32 %v6940_v20, %v12595_v27 }
 0x9ca   : > { %v7274_v19 = vadd.f32 %v7273_v30, %v7105_v33  ;;  %v9755_v33 = vor.u32 %v10499_v58, %v9754_v45  ;;  %v9810_v45 = vld [vmem:[#allocation3 + $0x6d0] sm:$0xf] }
 0x9cb   : > { %7484 = vmatmul.bf16.gmra.mxu3 %v9695_v28  ;;  %v10514_v58 = vld [vmem:[#allocation3 + $0x6ec] sm:$0xf0] }
 0x9cc   : > { %v7443_v24 = vadd.f32 %v7442_v57, %v7274_v19 }
 0x9cd   : > { %v7278_v37 = vpop.f32.mrf.mxu2 }
 0x9ce   : > { %v7445_v0 = vpop.f32.mrf.mxu3  ;;  %v7559_v26 = vmax.f32 %v7443_v24, 0.0 }
 0x9cf   : > { %v7107_v50 = vpop.f32.mrf.mxu1 }
 0x9d0   : > { %v6943_v21 = vpop.f32.mrf.mxu0  ;;  %v7608_v29 = vpack.c.bf16 %v7559_v26, %v7558_v31  ;;  %v7108_v61 = vadd.f32 %v7107_v50, %v6939_v62  ;;  %v9748_v26 = vld [vmem:[#allocation3 + $0x670] sm:$0xf0]  ;;  %v9786_v62 = vld [vmem:[#allocation3 + $0x698] sm:$0xf] }
 0x9d1   : > { %v6944_v15 = vadd.f32 %v6943_v21, %v12606_v23  ;;  %v10486_v23 = vld [vmem:[#allocation3 + $0x614] sm:$0xf]  ;;  %v10507_v21 = vld [vmem:[#allocation3 + $0x6b4] sm:$0xf0] }
 0x9d2   : > { %7146 = vmatmul.bf16.gmra.mxu1 %v9687_v25  ;;  %v7277_v1 = vadd.f32 %v7276_v38, %v7108_v61  ;;  %v9719_v12 = vor.u32 %v10486_v23, %v9716_v34 }
 0x9d3   : > { %6982 = vmatmul.bf16.gmra.mxu0 %v9715_v4  ;;  %7320 = vmatmul.bf16.gmra.mxu2 %v9723_v47  ;;  %v9778_v4 = vld [vmem:[#allocation3 + $0x690] sm:$0xf] }
 0x9d4   : > { %v7446_v49 = vadd.f32 %v7445_v0, %v7277_v1  ;;  %v10506_v47 = vld [vmem:[#allocation3 + $0x6ac] sm:$0xf0] }
 0x9d5   : > { %v7281_v59 = vpop.f32.mrf.mxu2 }
 0x9d6   : > { %v7447_v55 = vpop.f32.mrf.mxu3  ;;  %v7560_v27 = vmax.f32 %v7446_v49, 0.0 }
 0x9d7   : > { %v7109_v30 = vpop.f32.mrf.mxu1 }
 0x9d8   : > { %v6945_v2 = vpop.f32.mrf.mxu0  ;;  %v7110_v16 = vadd.f32 %v7109_v30, %v6941_v8 }
 0x9d9   : > { %v6946_v10 = vadd.f32 %v6945_v2, %v12617_v48 }
 0x9da   : > { %v7279_v42 = vadd.f32 %v7278_v37, %v7110_v16  ;;  %v10503_v16 = vld [vmem:[#allocation3 + $0x69c] sm:$0xf] }
 0x9db   : > { %7489 = vmatmul.bf16.gmra.mxu3 %v9727_v35 }
 0x9dc   : > { %v7448_v63 = vadd.f32 %v7447_v55, %v7279_v42  ;;  %v9787_v55 = vor.u32 %v10507_v21, %v9786_v62  ;;  %v10522_v62 = vld [vmem:[#allocation3 + $0x72c] sm:$0xf0]  ;;  %v9850_v21 = vld [vmem:[#allocation3 + $0x718] sm:$0xf] }
 0x9dd   : > { %v7283_v14 = vpop.f32.mrf.mxu2 }
 0x9de   : > { %v7561_v38 = vmax.f32 %v7448_v63, 0.0  ;;  %v7450_v22 = vpop.f32.mrf.mxu3 }
 0x9df   : > { %v7112_v57 = vpop.f32.mrf.mxu1 }
 0x9e0   : > { %v6948_v28 = vpop.f32.mrf.mxu0  ;;  %v7113_v20 = vadd.f32 %v7112_v57, %v6944_v15  ;;  %v7609_v48 = vpack.c.bf16 %v7561_v38, %v7560_v27  ;;  %v9818_v27 = vld [vmem:[#allocation3 + $0x6d8] sm:$0xf] }
 0x9e1   : > { %v6949_v43 = vadd.f32 %v6948_v28, %v12628_v13  ;;  %v10494_v13 = vld [vmem:[#allocation3 + $0x654] sm:$0xf]  ;;  %v10515_v38 = vld [vmem:[#allocation3 + $0x6f4] sm:$0xf0] }
 0x9e2   : > { %v7282_v19 = vadd.f32 %v7281_v59, %v7113_v20  ;;  %7151 = vmatmul.bf16.gmra.mxu1 %v9719_v12  ;;  %v9751_v17 = vor.u32 %v10494_v13, %v9748_v26  ;;  %v10510_v26 = vld [vmem:[#allocation3 + $0x6d4] sm:$0xf] }
 0x9e3   : > { %6987 = vmatmul.bf16.gmra.mxu0 %v9747_v32  ;;  %8131 = vmatpush.bf16.msra.mxu1 %v7609_v48 }
 0x9e4   : > { %v7451_v7 = vadd.f32 %v7450_v22, %v7282_v19  ;;  %7325 = vmatmul.bf16.gmra.mxu2 %v9755_v33  ;;  %v9819_v33 = vor.u32 %v10515_v38, %v9818_v27  ;;  %v9874_v27 = vld [vmem:[#allocation3 + $0x750] sm:$0xf] }
 0x9e5   : > { %v10530_v38 = vld [vmem:[#allocation3 + $0x76c] sm:$0xf0] }
 0x9e6   : > { %v7452_v24 = vpop.f32.mrf.mxu3  ;;  %v7286_v60 = vpop.f32.mrf.mxu2  ;;  %v7562_v15 = vmax.f32 %v7451_v7, 0.0 }
 0x9e7   : > { %8132 = vmatpush.bf16.msra.mxu1 %v7608_v29  ;;  %v7114_v36 = vpop.f32.mrf.mxu1 }
 0x9e8   : > { %v6950_v37 = vpop.f32.mrf.mxu0  ;;  %v7115_v31 = vadd.f32 %v7114_v36, %v6946_v10  ;;  %v9788_v10 = vld [vmem:[#allocation3 + $0x6b8] sm:$0xf0] }
 0x9e9   : > { %v6951_v0 = vadd.f32 %v6950_v37, %v12639_v52  ;;  %v9779_v52 = vor.u32 %v10506_v47, %v9778_v4  ;;  %v9791_v23 = vor.u32 %v10503_v16, %v9788_v10  ;;  %v9842_v47 = vld [vmem:[#allocation3 + $0x710] sm:$0xf] }
 0x9ea   : > { %v7284_v25 = vadd.f32 %v7283_v14, %v7115_v31 }
 0x9eb   : > { %7494 = vmatmul.bf16.gmra.mxu3 %v9759_v18  ;;  %8133 = vmatpush.bf16.msra.mxu1 %v12885_v40 }
 0x9ec   : > { %v7453_v50 = vadd.f32 %v7452_v24, %v7284_v25  ;;  %v9820_v24 = vld [vmem:[#allocation3 + $0x6f8] sm:$0xf0] }
 0x9ee   : > { %v7455_v61 = vpop.f32.mrf.mxu3  ;;  %v7288_v29 = vpop.f32.mrf.mxu2  ;;  %v7563_v46 = vmax.f32 %v7453_v50, 0.0  ;;  %v9812_v50 = vld [vmem:[#allocation3 + $0x6f0] sm:$0xf0] }
 0x9ef   : > { %8134 = vmatpush.bf16.msra.mxu1 %v12881_v53  ;;  %v7117_v59 = vpop.f32.mrf.mxu1 }
 0x9f0   : > { %v6953_v8 = vpop.f32.mrf.mxu0  ;;  %v7118_v1 = vadd.f32 %v7117_v59, %v6949_v43  ;;  %v12896_v40 = vpack.c.bf16 %v7563_v46, %v7562_v15  ;;  %v13697_v43 = vld [vmem:[#allocation22_spill] sm:$0xff]  ;;  %v9815_v46 = vor.u32 %v10510_v26, %v9812_v50  ;;  %v10526_v50 = vld [vmem:[#allocation3 + $0x754] sm:$0xf] }
 0x9f1   : > { %v6954_v30 = vadd.f32 %v6953_v8, %v12650_v5  ;;  %v10523_v15 = vld [vmem:[#allocation3 + $0x734] sm:$0xf0]  ;;  %v9843_v8 = vor.u32 %v10522_v62, %v9842_v47  ;;  %v9906_v62 = vld [vmem:[#allocation3 + $0x790] sm:$0xf] }
 0x9f2   : > { %v7287_v35 = vadd.f32 %v7286_v60, %v7118_v1  ;;  %7156 = vmatmul.bf16.gmra.mxu1 %v9751_v17 }
 0x9f3   : > { %6992 = vmatmul.bf16.gmra.mxu0 %v9779_v52  ;;  %8135 = vmatpush.bf16.msra.mxu1 %v12877_v56  ;;  %v9780_v56 = vld [vmem:[#allocation3 + $0x6b0] sm:$0xf0] }
 0x9f4   : > { %v7456_v2 = vadd.f32 %v7455_v61, %v7287_v35  ;;  %7330 = vmatmul.bf16.gmra.mxu2 %v9787_v55  ;;  %v9783_v57 = vor.u32 %v10502_v3, %v9780_v56 }
 0x9f6   : > { %v7457_v49 = vpop.f32.mrf.mxu3  ;;  %v7291_v53 = vpop.f32.mrf.mxu2  ;;  %v7564_v22 = vmax.f32 %v7456_v2, 0.0  ;;  %v13699_v2 = vld [vmem:[#allocation24_spill] sm:$0xff] }
 0x9f7   : > { %8136 = vmatpush.bf16.msra.mxu1 %v12874_v44  ;;  %v7119_v42 = vpop.f32.mrf.mxu1 }
 0x9f8   : > { %v6955_v34 = vpop.f32.mrf.mxu0  ;;  %v7120_v63 = vadd.f32 %v7119_v42, %v6951_v0  ;;  %v13698_v0 = vld [vmem:[#allocation23_spill] sm:$0xff]  ;;  %v9852_v42 = vld [vmem:[#allocation3 + $0x738] sm:$0xf0] }
 0x9f9   : > { %v6956_v51 = vadd.f32 %v6955_v34, %v12661_v11  ;;  %v9811_v11 = vor.u32 %v10514_v58, %v9810_v45  ;;  %v9844_v45 = vld [vmem:[#allocation3 + $0x730] sm:$0xf0] }
 0x9fa   : > { %v7289_v5 = vadd.f32 %v7288_v29, %v7120_v63 }
 0x9fb   : > { %7499 = vmatmul.bf16.gmra.mxu3 %v9791_v23  ;;  %8137 = vmatpush.bf16.msra.mxu1 %v12870_v6 }
 0x9fc   : > { %v7458_v14 = vadd.f32 %v7457_v49, %v7289_v5 }
 0x9fe   : > { %v7460_v12 = vpop.f32.mrf.mxu3  ;;  %v7293_v44 = vpop.f32.mrf.mxu2  ;;  %v7565_v32 = vmax.f32 %v7458_v14, 0.0  ;;  %v10518_v14 = vld [vmem:[#allocation3 + $0x714] sm:$0xf] }
 0x9ff   : > { %8138 = vmatpush.bf16.msra.mxu1 %v12862_v54  ;;  %v7122_v28 = vpop.f32.mrf.mxu1  ;;  %v9823_v54 = vor.u32 %v10511_v39, %v9820_v24  ;;  %v10527_v24 = vld [vmem:[#allocation3 + $0x75c] sm:$0xf] }
 0xa00   : > { %v6958_v20 = vpop.f32.mrf.mxu0  ;;  %v7123_v48 = vadd.f32 %v7122_v28, %v6954_v30  ;;  %v12904_v6 = vpack.c.bf16 %v7565_v32, %v7564_v22  ;;  %v9851_v30 = vor.u32 %v10523_v15, %v9850_v21  ;;  %v9882_v22 = vld [vmem:[#allocation3 + $0x758] sm:$0xf]  ;;  %v9847_v28 = vor.u32 %v10518_v14, %v9844_v45  ;;  %v10538_v21 = vld [vmem:[#allocation3 + $0x7ac] sm:$0xf0] }
 0xa01   : > { %v6959_v19 = vadd.f32 %v6958_v20, %v13697_v43  ;;  %v9914_v15 = vld [vmem:[#allocation3 + $0x798] sm:$0xf] }
 0xa02   : > { %v7292_v7 = vadd.f32 %v7291_v53, %v7123_v48  ;;  %7161 = vmatmul.bf16.gmra.mxu1 %v9783_v57  ;;  %v10519_v53 = vld [vmem:[#allocation3 + $0x71c] sm:$0xf]  ;;  %v9875_v48 = vor.u32 %v10530_v38, %v9874_v27  ;;  %v10534_v38 = vld [vmem:[#allocation3 + $0x794] sm:$0xf] }
 0xa03   : > { %6997 = vmatmul.bf16.gmra.mxu0 %v9811_v11 }
 0xa04   : > { %v7461_v9 = vadd.f32 %v7460_v12, %v7292_v7  ;;  %7335 = vmatmul.bf16.gmra.mxu2 %v9819_v33  ;;  %v10531_v12 = vld [vmem:[#allocation3 + $0x774] sm:$0xf0] }
 0xa06   : > { %v7462_v60 = vpop.f32.mrf.mxu3  ;;  %v7296_v36 = vpop.f32.mrf.mxu2  ;;  %v7566_v61 = vmax.f32 %v7461_v9, 0.0 }
 0xa07   : > { %v7124_v18 = vpop.f32.mrf.mxu1 }
 0xa08   : > { %v6960_v37 = vpop.f32.mrf.mxu0  ;;  %v7125_v31 = vadd.f32 %v7124_v18, %v6956_v51  ;;  %v9855_v51 = vor.u32 %v10519_v53, %v9852_v42  ;;  %v10535_v53 = vld [vmem:[#allocation3 + $0x79c] sm:$0xf] }
 0xa09   : > { %v6961_v25 = vadd.f32 %v6960_v37, %v13698_v0  ;;  %v9916_v42 = vld [vmem:[#allocation3 + $0x7b8] sm:$0xf0] }
 0xa0a   : > { %v7294_v13 = vadd.f32 %v7293_v44, %v7125_v31 }
 0xa0b   : > { %7504 = vmatmul.bf16.gmra.mxu3 %v9823_v54 }
 0xa0c   : > { %v7463_v4 = vadd.f32 %v7462_v60, %v7294_v13  ;;  %v9884_v60 = vld [vmem:[#allocation3 + $0x778] sm:$0xf0] }
 0xa0d   : > { %v9887_v0 = vor.u32 %v10527_v24, %v9884_v60 }
 0xa0e   : > { %v7465_v29 = vpop.f32.mrf.mxu3  ;;  %v7298_v17 = vpop.f32.mrf.mxu2  ;;  %v7567_v59 = vmax.f32 %v7463_v4, 0.0  ;;  %v9876_v4 = vld [vmem:[#allocation3 + $0x770] sm:$0xf0] }
 0xa0f   : > { %v7127_v52 = vpop.f32.mrf.mxu1 }
 0xa10   : > { %v6963_v1 = vpop.f32.mrf.mxu0  ;;  %v7128_v55 = vadd.f32 %v7127_v52, %v6959_v19  ;;  %v12908_v35 = vpack.c.bf16 %v7567_v59, %v7566_v61  ;;  %v9883_v19 = vor.u32 %v10531_v12, %v9882_v22  ;;  %v10539_v61 = vld [vmem:[#allocation3 + $0x7b4] sm:$0xf0]  ;;  %v9879_v59 = vor.u32 %v10526_v50, %v9876_v4  ;;  %v9908_v22 = vld [vmem:[#allocation3 + $0x7b0] sm:$0xf0] }
 0xa11   : > { %v6964_v16 = vadd.f32 %v6963_v1, %v13699_v2  ;;  %v9907_v1 = vor.u32 %v10538_v21, %v9906_v62 }
 0xa12   : > { %v7297_v10 = vadd.f32 %v7296_v36, %v7128_v55  ;;  %7166 = vmatmul.bf16.gmra.mxu1 %v9815_v46  ;;  %v13700_v36 = vld [vmem:[#allocation25_spill] sm:$0xff]  ;;  %v13701_v55 = vld [vmem:[#allocation26_spill] sm:$0xff] }
 0xa13   : > { %7002 = vmatmul.bf16.gmra.mxu0 %v9843_v8 }
 0xa14   : > { %v7466_v49 = vadd.f32 %v7465_v29, %v7297_v10  ;;  %7340 = vmatmul.bf16.gmra.mxu2 %v9851_v30 }
 0xa16   : > { %v7467_v23 = vpop.f32.mrf.mxu3  ;;  %v7301_v34 = vpop.f32.mrf.mxu2  ;;  %v7568_v44 = vmax.f32 %v7466_v49, 0.0 }
 0xa17   : > { %v7129_v63 = vpop.f32.mrf.mxu1 }
 0xa18   : > { %v6965_v5 = vpop.f32.mrf.mxu0  ;;  %v7130_v3 = vadd.f32 %v7129_v63, %v6961_v25 }
 0xa19   : > { %v6966_v18 = vadd.f32 %v6965_v5, %v13700_v36 }
 0xa1a   : > { %v7299_v56 = vadd.f32 %v7298_v17, %v7130_v3 }
 0xa1b   : > { %7509 = vmatmul.bf16.gmra.mxu3 %v9855_v51 }
 0xa1c   : > { %v7468_v58 = vadd.f32 %v7467_v23, %v7299_v56  ;;  %v13702_v23 = vld [vmem:[#allocation27_spill] sm:$0xff]  ;;  %v9919_v56 = vor.u32 %v10535_v53, %v9916_v42  ;;  %v13706_v42 = vld [vmem:[#allocation32_spill] sm:$0xff] }
 0xa1e   : > { %v7470_v57 = vpop.f32.mrf.mxu3  ;;  %v7303_v32 = vpop.f32.mrf.mxu2  ;;  %v7569_v11 = vmax.f32 %v7468_v58, 0.0 }
 0xa1f   : > { %v7132_v20 = vpop.f32.mrf.mxu1 }
 0xa20   : > { %v6968_v33 = vpop.f32.mrf.mxu0  ;;  %v7133_v43 = vadd.f32 %v7132_v20, %v6964_v16  ;;  %v12911_v7 = vpack.c.bf16 %v7569_v11, %v7568_v44  ;;  %v9915_v16 = vor.u32 %v10539_v61, %v9914_v15  ;;  %v9938_v44 = vld [vmem:[#allocation3 + $0x7d0] sm:$0xf] }
 0xa21   : > { %v6969_v30 = vadd.f32 %v6968_v33, %v13701_v55  ;;  %v9911_v33 = vor.u32 %v10534_v38, %v9908_v22 }
 0xa22   : > { %v7302_v9 = vadd.f32 %v7301_v34, %v7133_v43  ;;  %7171 = vmatmul.bf16.gmra.mxu1 %v9847_v28  ;;  %v10547_v28 = vld [vmem:[#allocation3 + $0x7f4] sm:$0xf0] }
 0xa23   : > { %7007 = vmatmul.bf16.gmra.mxu0 %v9875_v48 }
 0xa24   : > { %v7471_v39 = vadd.f32 %v7470_v57, %v7302_v9  ;;  %7345 = vmatmul.bf16.gmra.mxu2 %v9883_v19  ;;  %v10546_v57 = vld [vmem:[#allocation3 + $0x7ec] sm:$0xf0] }
 0xa25   : > { %v9939_v9 = vor.u32 %v10546_v57, %v9938_v44 }
 0xa26   : > { %v7472_v54 = vpop.f32.mrf.mxu3  ;;  %v7306_v37 = vpop.f32.mrf.mxu2  ;;  %v7570_v29 = vmax.f32 %v7471_v39, 0.0  ;;  %v13703_v39 = vld [vmem:[#allocation28_spill] sm:$0xff] }
 0xa27   : > { %v7134_v31 = vpop.f32.mrf.mxu1 }
 0xa28   : > { %v6970_v25 = vpop.f32.mrf.mxu0  ;;  %v7135_v13 = vadd.f32 %v7134_v31, %v6966_v18  ;;  %v9948_v31 = vld [vmem:[#allocation3 + $0x7f8] sm:$0xf0] }
 0xa29   : > { %v6971_v34 = vadd.f32 %v6970_v25, %v13702_v23 }
 0xa2a   : > { %v7304_v26 = vadd.f32 %v7303_v32, %v7135_v13  ;;  %v9946_v32 = vld [vmem:[#allocation3 + $0x7d8] sm:$0xf] }
 0xa2b   : > { %7514 = vmatmul.bf16.gmra.mxu3 %v9887_v0  ;;  %v9947_v36 = vor.u32 %v10547_v28, %v9946_v32  ;;  %v13704_v0 = vld [vmem:[#allocation29_spill] sm:$0xff] }
 0xa2c   : > { %v7473_v47 = vadd.f32 %v7472_v54, %v7304_v26 }
 0xa2e   : > { %v7475_v17 = vpop.f32.mrf.mxu3  ;;  %v7308_v46 = vpop.f32.mrf.mxu2  ;;  %v7571_v52 = vmax.f32 %v7473_v47, 0.0 }
 0xa2f   : > { %v7137_v8 = vpop.f32.mrf.mxu1 }
 0xa30   : > { %v6973_v2 = vpop.f32.mrf.mxu0  ;;  %v12915_v10 = vpack.c.bf16 %v7571_v52, %v7570_v29  ;;  %v7138_v49 = vadd.f32 %v7137_v8, %v6969_v30  ;;  %v10542_v29 = vld [vmem:[#allocation3 + $0x7d4] sm:$0xf] }
 0xa31   : > { %v6974_v24 = vadd.f32 %v6973_v2, %v13703_v39  ;;  %v13705_v2 = vld [vmem:[#allocation30_spill] sm:$0xff]  ;;  %v13709_v39 = vld [vmem:[#allocation33_spill] sm:$0xff] }
 0xa32   : > { %7176 = vmatmul.bf16.gmra.mxu1 %v9879_v59  ;;  %v7307_v63 = vadd.f32 %v7306_v37, %v7138_v49  ;;  %v10543_v37 = vld [vmem:[#allocation3 + $0x7dc] sm:$0xf] }
 0xa33   : > { %7012 = vmatmul.bf16.gmra.mxu0 %v9907_v1  ;;  %v9951_v47 = vor.u32 %v10543_v37, %v9948_v31 }
 0xa34   : > { %7350 = vmatmul.bf16.gmra.mxu2 %v9915_v16  ;;  %v7476_v58 = vadd.f32 %v7475_v17, %v7307_v63  ;;  %v9940_v17 = vld [vmem:[#allocation3 + $0x7f0] sm:$0xf0]  ;;  %v13707_v63 = vld [vmem:[#allocation31_spill] sm:$0xff] }
 0xa35   : > { %v9943_v1 = vor.u32 %v10542_v29, %v9940_v17 }
 0xa36   : > { %v7477_v51 = vpop.f32.mrf.mxu3  ;;  %v7311_v5 = vpop.f32.mrf.mxu2  ;;  %v7572_v11 = vmax.f32 %v7476_v58, 0.0 }
 0xa37   : > { %v7139_v3 = vpop.f32.mrf.mxu1 }
 0xa38   : > { %v6975_v14 = vpop.f32.mrf.mxu0  ;;  %v7140_v45 = vadd.f32 %v7139_v3, %v6971_v34 }
 0xa39   : > { %v6976_v25 = vadd.f32 %v6975_v14, %v13704_v0 }
 0xa3a   : > { %v7309_v27 = vadd.f32 %v7308_v46, %v7140_v45 }
 0xa3b   : > { %7519 = vmatmul.bf16.gmra.mxu3 %v9919_v56 }
 0xa3c   : > { %v7478_v12 = vadd.f32 %v7477_v51, %v7309_v27 }
 0xa3e   : > { %v7480_v20 = vpop.f32.mrf.mxu3  ;;  %v7313_v48 = vpop.f32.mrf.mxu2  ;;  %v7573_v43 = vmax.f32 %v7478_v12, 0.0 }
 0xa3f   : > { %v7142_v19 = vpop.f32.mrf.mxu1 }
 0xa40   : > { %v6978_v60 = vpop.f32.mrf.mxu0  ;;  %v12919_v18 = vpack.c.bf16 %v7573_v43, %v7572_v11  ;;  %v7143_v54 = vadd.f32 %v7142_v19, %v6974_v24 }
 0xa41   : > { %v6979_v16 = vadd.f32 %v6978_v60, %v13705_v2 }
 0xa42   : > { %7181 = vmatmul.bf16.gmra.mxu1 %v9911_v33  ;;  %v7312_v13 = vadd.f32 %v7311_v5, %v7143_v54  ;;  %v13708_v33 = vld [vmem:[#allocation34_spill] sm:$0xff] }
 0xa43   : > { %7017 = vmatmul.bf16.gmra.mxu0 %v9939_v9 }
 0xa44   : > { %7355 = vmatmul.bf16.gmra.mxu2 %v9947_v36  ;;  %v7481_v15 = vadd.f32 %v7480_v20, %v7312_v13 }
 0xa46   : > { %v7482_v26 = vpop.f32.mrf.mxu3  ;;  %v7316_v50 = vpop.f32.mrf.mxu2  ;;  %v7574_v59 = vmax.f32 %v7481_v15, 0.0 }
 0xa47   : > { %v7144_v4 = vpop.f32.mrf.mxu1 }
 0xa48   : > { %v6980_v62 = vpop.f32.mrf.mxu0  ;;  %v7145_v21 = vadd.f32 %v7144_v4, %v6976_v25 }
 0xa49   : > { %v6981_v51 = vadd.f32 %v6980_v62, %v13707_v63 }
 0xa4a   : > { %v7314_v61 = vadd.f32 %v7313_v48, %v7145_v21 }
 0xa4b   : > { %7524 = vmatmul.bf16.gmra.mxu3 %v9951_v47 }
 0xa4c   : > { %v7483_v46 = vadd.f32 %v7482_v26, %v7314_v61  ;;  %v13710_v61 = vld [vmem:[#allocation36_spill] sm:$0xff] }
 0xa4e   : > { %v7485_v52 = vpop.f32.mrf.mxu3  ;;  %v7318_v8 = vpop.f32.mrf.mxu2  ;;  %v7575_v55 = vmax.f32 %v7483_v46, 0.0 }
 0xa4f   : > { %v7147_v30 = vpop.f32.mrf.mxu1 }
 0xa50   : > { %v6983_v49 = vpop.f32.mrf.mxu0  ;;  %v7616_v53 = vpack.c.bf16 %v7575_v55, %v7574_v59  ;;  %v7148_v34 = vadd.f32 %v7147_v30, %v6979_v16  ;;  %v13711_v59 = vld [vmem:[#allocation35_spill] sm:$0xff] }
 0xa51   : > { %v6984_v23 = vadd.f32 %v6983_v49, %v13706_v42 }
 0xa52   : > { %7186 = vmatmul.bf16.gmra.mxu1 %v9943_v1  ;;  %v7317_v5 = vadd.f32 %v7316_v50, %v7148_v34 }
 0xa54   : > { %v7486_v27 = vadd.f32 %v7485_v52, %v7317_v5 }
 0xa56   : > { %v7487_v3 = vpop.f32.mrf.mxu3  ;;  %v7321_v56 = vpop.f32.mrf.mxu2  ;;  %v7576_v12 = vmax.f32 %v7486_v27, 0.0 }
 0xa57   : > { %v7149_v14 = vpop.f32.mrf.mxu1 }
 0xa58   : > { %v6985_v45 = vpop.f32.mrf.mxu0  ;;  %v7150_v58 = vadd.f32 %v7149_v14, %v6981_v51 }
 0xa59   : > { %v6986_v24 = vadd.f32 %v6985_v45, %v13709_v39  ;;  %v13715_v39 = vld [vmem:[#allocation39_spill] sm:$0xff] }
 0xa5a   : > { %v7319_v38 = vadd.f32 %v7318_v8, %v7150_v58 }
 0xa5c   : > { %v7488_v22 = vadd.f32 %v7487_v3, %v7319_v38 }
 0xa5e   : > { %v7577_v44 = vmax.f32 %v7488_v22, 0.0  ;;  %v7490_v57 = vpop.f32.mrf.mxu3  ;;  %v7323_v32 = vpop.f32.mrf.mxu2 }
 0xa5f   : > { %v7152_v28 = vpop.f32.mrf.mxu1 }
 0xa60   : > { %v6988_v11 = vpop.f32.mrf.mxu0  ;;  %v7153_v20 = vadd.f32 %v7152_v28, %v6984_v23  ;;  %v7617_v48 = vpack.c.bf16 %v7577_v44, %v7576_v12 }
 0xa61   : > { %v6989_v43 = vadd.f32 %v6988_v11, %v13708_v33  ;;  %v13714_v33 = vld [vmem:[#allocation40_spill] sm:$0xff] }
 0xa62   : > { %v7322_v19 = vadd.f32 %v7321_v56, %v7153_v20  ;;  %8220 = vmatpush.bf16.msra.mxu2 %v7617_v48  ;;  %v13713_v56 = vld [vmem:[#allocation37_spill] sm:$0xff] }
 0xa64   : > { %v7491_v9 = vadd.f32 %v7490_v57, %v7322_v19 }
 0xa66   : > { %v7492_v60 = vpop.f32.mrf.mxu3  ;;  %8221 = vmatpush.bf16.msra.mxu2 %v7616_v53  ;;  %v7578_v13 = vmax.f32 %v7491_v9, 0.0 }
 0xa67   : > { %v7154_v36 = vpop.f32.mrf.mxu1  ;;  %v7326_v54 = vpop.f32.mrf.mxu2 }
 0xa68   : > { %v6990_v37 = vpop.f32.mrf.mxu0  ;;  %v7155_v31 = vadd.f32 %v7154_v36, %v6986_v24 }
 0xa6a   : > { %v7324_v0 = vadd.f32 %v7323_v32, %v7155_v31  ;;  %8222 = vmatpush.bf16.msra.mxu2 %v12919_v18  ;;  %v6991_v18 = vadd.f32 %v6990_v37, %v13711_v59 }
 0xa6c   : > { %v7493_v25 = vadd.f32 %v7492_v60, %v7324_v0 }
 0xa6e   : > { %v7495_v26 = vpop.f32.mrf.mxu3  ;;  %8223 = vmatpush.bf16.msra.mxu2 %v12915_v10  ;;  %v7579_v50 = vmax.f32 %v7493_v25, 0.0 }
 0xa6f   : > { %v7157_v4 = vpop.f32.mrf.mxu1  ;;  %v7328_v47 = vpop.f32.mrf.mxu2 }
 0xa70   : > { %v6993_v62 = vpop.f32.mrf.mxu0  ;;  %v7158_v21 = vadd.f32 %v7157_v4, %v6989_v43  ;;  %v12929_v15 = vpack.c.bf16 %v7579_v50, %v7578_v13 }
 0xa71   : > { %v6994_v29 = vadd.f32 %v6993_v62, %v13710_v61 }
 0xa72   : > { %v7327_v17 = vadd.f32 %v7326_v54, %v7158_v21  ;;  %8224 = vmatpush.bf16.msra.mxu2 %v12911_v7 }
 0xa74   : > { %v7496_v46 = vadd.f32 %v7495_v26, %v7327_v17 }
 0xa76   : > { %v7497_v52 = vpop.f32.mrf.mxu3  ;;  %8225 = vmatpush.bf16.msra.mxu2 %v12908_v35  ;;  %v7580_v16 = vmax.f32 %v7496_v46, 0.0  ;;  %v13712_v35 = vld [vmem:[#allocation38_spill] sm:$0xff]  ;;  %v13716_v46 = vld [vmem:[#allocation41_spill] sm:$0xff] }
 0xa77   : > { %v7159_v8 = vpop.f32.mrf.mxu1  ;;  %v7331_v10 = vpop.f32.mrf.mxu2 }
 0xa78   : > { %v6995_v1 = vpop.f32.mrf.mxu0  ;;  %v7160_v55 = vadd.f32 %v7159_v8, %v6991_v18 }
 0xa79   : > { %v6996_v14 = vadd.f32 %v6995_v1, %v13713_v56 }
 0xa7a   : > { %v7329_v30 = vadd.f32 %v7328_v47, %v7160_v55  ;;  %8226 = vmatpush.bf16.msra.mxu2 %v12904_v6 }
 0xa7c   : > { %v7498_v2 = vadd.f32 %v7497_v52, %v7329_v30 }
 0xa7e   : > { %v7500_v49 = vpop.f32.mrf.mxu3  ;;  %8227 = vmatpush.bf16.msra.mxu2 %v12896_v40  ;;  %v7581_v53 = vmax.f32 %v7498_v2, 0.0 }
 0xa7f   : > { %v7162_v7 = vpop.f32.mrf.mxu1  ;;  %v7333_v42 = vpop.f32.mrf.mxu2 }
 0xa80   : > { %v6998_v23 = vpop.f32.mrf.mxu0  ;;  %v7163_v34 = vadd.f32 %v7162_v7, %v6994_v29  ;;  %v12937_v63 = vpack.c.bf16 %v7581_v53, %v7580_v16  ;;  %v13717_v7 = vld [vmem:[#allocation42_spill] sm:$0xff] }
 0xa81   : > { %v6999_v51 = vadd.f32 %v6998_v23, %v13712_v35 }
 0xa82   : > { %v7332_v5 = vadd.f32 %v7331_v10, %v7163_v34 }
 0xa84   : > { %v7501_v3 = vadd.f32 %v7500_v49, %v7332_v5 }
 0xa86   : > { %v7502_v45 = vpop.f32.mrf.mxu3  ;;  %v7582_v12 = vmax.f32 %v7501_v3, 0.0 }
 0xa87   : > { %v7164_v6 = vpop.f32.mrf.mxu1  ;;  %v7336_v58 = vpop.f32.mrf.mxu2 }
 0xa88   : > { %v7000_v27 = vpop.f32.mrf.mxu0  ;;  %v7165_v38 = vadd.f32 %v7164_v6, %v6996_v14 }
 0xa89   : > { %v7001_v24 = vadd.f32 %v7000_v27, %v13715_v39 }
 0xa8a   : > { %v7334_v22 = vadd.f32 %v7333_v42, %v7165_v38 }
 0xa8c   : > { %v7503_v40 = vadd.f32 %v7502_v45, %v7334_v22 }
 0xa8e   : > { %v7505_v44 = vpop.f32.mrf.mxu3  ;;  %v7583_v57 = vmax.f32 %v7503_v40, 0.0 }
 0xa8f   : > { %v7167_v32 = vpop.f32.mrf.mxu1  ;;  %v7338_v28 = vpop.f32.mrf.mxu2 }
 0xa90   : > { %v7003_v11 = vpop.f32.mrf.mxu0  ;;  %v7168_v20 = vadd.f32 %v7167_v32, %v6999_v51  ;;  %v12941_v48 = vpack.c.bf16 %v7583_v57, %v7582_v12  ;;  %v13718_v32 = vld [vmem:[#allocation43_spill] sm:$0xff] }
 0xa91   : > { %v7004_v43 = vadd.f32 %v7003_v11, %v13714_v33 }
 0xa92   : > { %v7337_v19 = vadd.f32 %v7336_v58, %v7168_v20 }
 0xa94   : > { %v7506_v9 = vadd.f32 %v7505_v44, %v7337_v19 }
 0xa96   : > { %v7507_v60 = vpop.f32.mrf.mxu3  ;;  %v7584_v13 = vmax.f32 %v7506_v9, 0.0 }
 0xa97   : > { %v7169_v36 = vpop.f32.mrf.mxu1  ;;  %v7341_v54 = vpop.f32.mrf.mxu2 }
 0xa98   : > { %v7005_v37 = vpop.f32.mrf.mxu0  ;;  %v7170_v31 = vadd.f32 %v7169_v36, %v7001_v24 }
 0xa99   : > { %v7006_v59 = vadd.f32 %v7005_v37, %v13716_v46 }
 0xa9a   : > { %v7339_v0 = vadd.f32 %v7338_v28, %v7170_v31 }
 0xa9c   : > { %v7508_v25 = vadd.f32 %v7507_v60, %v7339_v0 }
 0xa9e   : > { %v7510_v26 = vpop.f32.mrf.mxu3  ;;  %v7585_v50 = vmax.f32 %v7508_v25, 0.0 }
 0xa9f   : > { %v7172_v4 = vpop.f32.mrf.mxu1  ;;  %v7343_v47 = vpop.f32.mrf.mxu2 }
 0xaa0   : > { %v7173_v62 = vadd.f32 %v7172_v4, %v7004_v43  ;;  %v12945_v21 = vpack.c.bf16 %v7585_v50, %v7584_v13  ;;  %v7008_v61 = vpop.f32.mrf.mxu0  ;;  %v13719_v43 = vld [vmem:[#allocation44_spill] sm:$0xff] }
 0xaa1   : > { %v7009_v42 = vadd.f32 %v7008_v61, %v13717_v7  ;;  %v9956_v7 = vld [vmem:[%s13621_s9 + $0x10] sm:$0xf0] }
 0xaa2   : > { %v7342_v29 = vadd.f32 %v7341_v54, %v7173_v62 }
 0xaa4   : > { %v7511_v17 = vadd.f32 %v7510_v26, %v7342_v29  ;;  %v13720_v26 = vld [vmem:[#allocation45_spill] sm:$0xff]  ;;  %v13721_v29 = vld [vmem:[#allocation46_spill] sm:$0xff] }
 0xaa6   : > { %v7512_v18 = vpop.f32.mrf.mxu3  ;;  %v7586_v2 = vmax.f32 %v7511_v17, 0.0 }
 0xaa7   : > { %v7174_v52 = vpop.f32.mrf.mxu1  ;;  %v7346_v8 = vpop.f32.mrf.mxu2 }
 0xaa8   : > { %v7175_v10 = vadd.f32 %v7174_v52, %v7006_v59  ;;  %v7010_v55 = vpop.f32.mrf.mxu0  ;;  %v9962_v59 = vld [vmem:[%s13621_s9 + $0x8] sm:$0xf] }
 0xaa9   : > { %v7011_v5 = vadd.f32 %v7010_v55, %v12809_v41  ;;  %v10550_v55 = vld [vmem:[%s13621_s9 + $0xc] sm:$0xf0] }
 0xaaa   : > { %v7344_v1 = vadd.f32 %v7343_v47, %v7175_v10 }
 0xaac   : > { %v7513_v30 = vadd.f32 %v7512_v18, %v7344_v1  ;;  %v10551_v18 = vld [vmem:[%s13621_s9 + $0x14] sm:$0xf0]  ;;  %v9954_v1 = vld [vmem:[%s13621_s9] sm:$0xf] }
 0xaae   : > { %v7515_v16 = vpop.f32.mrf.mxu3  ;;  %v7587_v49 = vmax.f32 %v7513_v30, 0.0 }
 0xaaf   : > { %v7177_v53 = vpop.f32.mrf.mxu1  ;;  %v7348_v34 = vpop.f32.mrf.mxu2 }
 0xab0   : > { %v12949_v23 = vpack.c.bf16 %v7587_v49, %v7586_v2  ;;  %v7178_v35 = vadd.f32 %v7177_v53, %v7009_v42  ;;  %v7013_v51 = vpop.f32.mrf.mxu0  ;;  %v9955_v2 = vor.u32 %v10550_v55, %v9954_v1  ;;  %v10548_v53 = vld [vmem:[%s13621_s9 + $0x4] sm:$0xf]  ;;  %v10561_v55 = vld [vmem:[%s13621_s9 + $0x6c] sm:$0xf] }
 0xab1   : > { %v7014_v28 = vadd.f32 %v7013_v51, %v13718_v32  ;;  %v10558_v32 = vld [vmem:[%s13621_s9 + $0x4c] sm:$0xf0] }
 0xab2   : > { %v7347_v3 = vadd.f32 %v7346_v8, %v7178_v35  ;;  %v9963_v8 = vor.u32 %v10551_v18, %v9962_v59  ;;  %8050 = vmatmul.bf16.vlgmr.msra.gmra.mxu0 %v9955_v2  ;;  %v10042_v59 = vld [vmem:[%s13621_s9 + $0xa8] sm:$0xf]  ;;  %v10571_v18 = vld [vmem:[%s13621_s9 + $0xb4] sm:$0xf0]  ;;  %v10568_v2 = vld [vmem:[%s13621_s9 + $0xa4] sm:$0xf] }
 0xab4   : > { %v7516_v6 = vadd.f32 %v7515_v16, %v7347_v3  ;;  %8228 = vmatmul.bf16.vlgmr.msra.gmra.mxu2 %v9963_v8  ;;  %v10570_v8 = vld [vmem:[%s13621_s9 + $0xac] sm:$0xf0] }
 0xab6   : > { %v7517_v56 = vpop.f32.mrf.mxu3  ;;  %v7588_v22 = vmax.f32 %v7516_v6, 0.0  ;;  %v10554_v6 = vld [vmem:[%s13621_s9 + $0x2c] sm:$0xf0] }
 0xab7   : > { %v7179_v14 = vpop.f32.mrf.mxu1  ;;  %v7351_v27 = vpop.f32.mrf.mxu2 }
 0xab8   : > { %v7180_v45 = vadd.f32 %v7179_v14, %v7011_v5  ;;  %v7015_v44 = vpop.f32.mrf.mxu0  ;;  %v10555_v14 = vld [vmem:[%s13621_s9 + $0x34] sm:$0xf0] }
 0xab9   : > { %v7016_v41 = vadd.f32 %v7015_v44, %v13719_v43  ;;  %v10559_v44 = vld [vmem:[%s13621_s9 + $0x54] sm:$0xf0] }
 0xaba   : > { %v7349_v58 = vadd.f32 %v7348_v34, %v7180_v45  ;;  %v9959_v34 = vor.u32 %v10548_v53, %v9956_v7  ;;  %v9970_v45 = vld [vmem:[%s13621_s9 + $0x20] sm:$0xf]  ;;  %v10058_v7 = vld [vmem:[%s13621_s9 + $0xc8] sm:$0xf] }
 0xabc   : > { %v7518_v38 = vadd.f32 %v7517_v56, %v7349_v58  ;;  %8139 = vmatmul.bf16.vlgmr.msra.gmra.mxu1 %v9959_v34  ;;  %v9978_v56 = vld [vmem:[%s13621_s9 + $0x28] sm:$0xf]  ;;  %v10050_v34 = vld [vmem:[%s13621_s9 + $0xc0] sm:$0xf] }
 0xabd   : > { %v9979_v58 = vor.u32 %v10555_v14, %v9978_v56  ;;  %v10028_v56 = vld [vmem:[%s13621_s9 + $0x98] sm:$0xf0]  ;;  %v10572_v14 = vld [vmem:[%s13621_s9 + $0xc4] sm:$0xf] }
 0xabe   : > { %v7520_v40 = vpop.f32.mrf.mxu3  ;;  %v7589_v12 = vmax.f32 %v7518_v38, 0.0  ;;  %v10552_v38 = vld [vmem:[%s13621_s9 + $0x24] sm:$0xf] }
 0xabf   : > { %v7182_v57 = vpop.f32.mrf.mxu1  ;;  %v7353_v33 = vpop.f32.mrf.mxu2 }
 0xac0   : > { %v7623_v11 = vpack.c.bf16 %v7589_v12, %v7588_v22  ;;  %v7183_v20 = vadd.f32 %v7182_v57, %v7014_v28  ;;  %v7018_v60 = vpop.f32.mrf.mxu0  ;;  %v9972_v22 = vld [vmem:[%s13621_s9 + $0x30] sm:$0xf0]  ;;  %v9994_v12 = vld [vmem:[%s13621_s9 + $0x48] sm:$0xf]  ;;  %v9986_v57 = vld [vmem:[%s13621_s9 + $0x40] sm:$0xf] }
 0xac1   : > { %v7019_v50 = vadd.f32 %v7018_v60, %v13720_v26  ;;  %v9995_v28 = vor.u32 %v10559_v44, %v9994_v12  ;;  %v9980_v60 = vld [vmem:[%s13621_s9 + $0x38] sm:$0xf0]  ;;  %v10566_v26 = vld [vmem:[%s13621_s9 + $0x8c] sm:$0xf0] }
 0xac2   : > { %v7352_v19 = vadd.f32 %v7351_v27, %v7183_v20  ;;  %v9971_v27 = vor.u32 %v10554_v6, %v9970_v45  ;;  %v10556_v20 = vld [vmem:[%s13621_s9 + $0x44] sm:$0xf]  ;;  %v10052_v45 = vld [vmem:[%s13621_s9 + $0xd0] sm:$0xf0] }
 0xac3   : > { %v10055_v6 = vor.u32 %v10572_v14, %v10052_v45 }
 0xac4   : > { %v7521_v36 = vadd.f32 %v7520_v40, %v7352_v19  ;;  %8233 = vmatmul.bf16.gmra.mxu2 %v9979_v58  ;;  %8055 = vmatmul.bf16.gmra.mxu0 %v9971_v27  ;;  %v9975_v40 = vor.u32 %v10552_v38, %v9972_v22  ;;  %v10002_v19 = vld [vmem:[%s13621_s9 + $0x60] sm:$0xf]  ;;  %v10074_v27 = vld [vmem:[%s13621_s9 + $0xe8] sm:$0xf]  ;;  %v10579_v38 = vld [vmem:[%s13621_s9 + $0xf4] sm:$0xf0] }
 0xac5   : > { %v10066_v22 = vld [vmem:[%s13621_s9 + $0xe0] sm:$0xf]  ;;  %v10075_v12 = vor.u32 %v10579_v38, %v10074_v27  ;;  %v10122_v27 = vld [vmem:[%s13621_s9 + $0x148] sm:$0xf]  ;;  %v10591_v38 = vld [vmem:[%s13621_s9 + $0x154] sm:$0xf0] }
 0xac6   : > { %v7522_v9 = vpop.f32.mrf.mxu3  ;;  %v7590_v31 = vmax.f32 %v7521_v36, 0.0  ;;  %v10560_v36 = vld [vmem:[%s13621_s9 + $0x64] sm:$0xf] }
 0xac7   : > { %v7184_v39 = vpop.f32.mrf.mxu1  ;;  %v7356_v25 = vpop.f32.mrf.mxu2 }
 0xac8   : > { %v7185_v24 = vadd.f32 %v7184_v39, %v7016_v41  ;;  %v7020_v61 = vpop.f32.mrf.mxu0  ;;  %v10563_v41 = vld [vmem:[%s13621_s9 + $0x74] sm:$0xf0] }
 0xac9   : > { %v7021_v17 = vadd.f32 %v7020_v61, %v13721_v29  ;;  %v10564_v61 = vld [vmem:[%s13621_s9 + $0x84] sm:$0xf]  ;;  %v10020_v29 = vld [vmem:[%s13621_s9 + $0x90] sm:$0xf0] }
 0xaca   : > { %v7354_v54 = vadd.f32 %v7353_v33, %v7185_v24 }
 0xacc   : > { %v7523_v37 = vadd.f32 %v7522_v9, %v7354_v54  ;;  %8144 = vmatmul.bf16.gmra.mxu1 %v9975_v40  ;;  %v10562_v9 = vld [vmem:[%s13621_s9 + $0x6c] sm:$0xf0]  ;;  %v10004_v54 = vld [vmem:[%s13621_s9 + $0x70] sm:$0xf0] }
 0xacd   : > { %v10003_v24 = vor.u32 %v10562_v9, %v10002_v19  ;;  %v10578_v40 = vld [vmem:[%s13621_s9 + $0xec] sm:$0xf0] }
 0xace   : > { %v7591_v0 = vmax.f32 %v7523_v37, 0.0  ;;  %v7525_v47 = vpop.f32.mrf.mxu3  ;;  %v10007_v37 = vor.u32 %v10560_v36, %v10004_v54  ;;  %v10067_v44 = vor.u32 %v10578_v40, %v10066_v22  ;;  %v10580_v36 = vld [vmem:[%s13621_s9 + $0x104] sm:$0xf]  ;;  %v10084_v54 = vld [vmem:[%s13621_s9 + $0x110] sm:$0xf0]  ;;  %v10123_v22 = vor.u32 %v10591_v38, %v10122_v27 }
 0xacf   : > { %v7187_v13 = vpop.f32.mrf.mxu1  ;;  %v7358_v30 = vpop.f32.mrf.mxu2  ;;  %v10599_v27 = vld [vmem:[%s13621_s9 + $0x194] sm:$0xf0] }
 0xad0   : > { %v7624_v4 = vpack.c.bf16 %v7591_v0, %v7590_v31  ;;  %v7188_v62 = vadd.f32 %v7187_v13, %v7019_v50  ;;  %v10026_v0 = vld [vmem:[%s13621_s9 + $0x88] sm:$0xf]  ;;  %v10018_v13 = vld [vmem:[%s13621_s9 + $0x80] sm:$0xf] }
 0xad2   : > { %v7357_v46 = vadd.f32 %v7356_v25, %v7188_v62  ;;  %v10567_v25 = vld [vmem:[%s13621_s9 + $0x94] sm:$0xf0]  ;;  %v9996_v62 = vld [vmem:[%s13621_s9 + $0x58] sm:$0xf0] }
 0xad3   : > { %v10027_v50 = vor.u32 %v10567_v25, %v10026_v0 }
 0xad4   : > { %v7526_v16 = vadd.f32 %v7525_v47, %v7357_v46  ;;  %8238 = vmatmul.bf16.gmra.mxu2 %v9995_v28  ;;  %v10557_v47 = vld [vmem:[%s13621_s9 + $0x4c] sm:$0xf]  ;;  %v10576_v28 = vld [vmem:[%s13621_s9 + $0xe4] sm:$0xf] }
 0xad5   : > { %v9999_v46 = vor.u32 %v10557_v47, %v9996_v62 }
 0xad6   : > { %v7527_v42 = vpop.f32.mrf.mxu3  ;;  %v7592_v51 = vmax.f32 %v7526_v16, 0.0  ;;  %v10036_v16 = vld [vmem:[%s13621_s9 + $0xb0] sm:$0xf0] }
 0xad7   : > { %v7189_v52 = vpop.f32.mrf.mxu1 }
 0xad8   : > { %v7190_v10 = vadd.f32 %v7189_v52, %v7021_v17  ;;  %v10023_v17 = vor.u32 %v10564_v61, %v10020_v29  ;;  %v10034_v52 = vld [vmem:[%s13621_s9 + $0xa0] sm:$0xf] }
 0xad9   : > { %v10035_v1 = vor.u32 %v10570_v8, %v10034_v52  ;;  %v10098_v52 = vld [vmem:[%s13621_s9 + $0x120] sm:$0xf]  ;;  %v10586_v8 = vld [vmem:[%s13621_s9 + $0x12c] sm:$0xf0] }
 0xada   : > { %v7359_v49 = vadd.f32 %v7358_v30, %v7190_v10  ;;  %v10043_v10 = vor.u32 %v10571_v18, %v10042_v59  ;;  %v10012_v30 = vld [vmem:[%s13621_s9 + $0x78] sm:$0xf0] }
 0xadb   : > { %v10015_v53 = vor.u32 %v10561_v55, %v10012_v30  ;;  %v10076_v55 = vld [vmem:[%s13621_s9 + $0xf8] sm:$0xf0] }
 0xadc   : > { %v7528_v35 = vadd.f32 %v7527_v42, %v7359_v49  ;;  %v10039_v49 = vor.u32 %v10568_v2, %v10036_v16  ;;  %v10575_v42 = vld [vmem:[%s13621_s9 + $0xd4] sm:$0xf0]  ;;  %v10584_v2 = vld [vmem:[%s13621_s9 + $0x124] sm:$0xf]  ;;  %v10100_v16 = vld [vmem:[%s13621_s9 + $0x130] sm:$0xf0] }
 0xade   : > { %v7593_v5 = vmax.f32 %v7528_v35, 0.0  ;;  %v10574_v35 = vld [vmem:[%s13621_s9 + $0xcc] sm:$0xf0] }
 0xae0   : > { %v7625_v3 = vpack.c.bf16 %v7593_v5, %v7592_v51  ;;  %v10059_v51 = vor.u32 %v10575_v42, %v10058_v7  ;;  %v10051_v5 = vor.u32 %v10574_v35, %v10050_v34  ;;  %v7692_v42 = vld [vmem:[%s13622_s10 + $0x10] sm:$0xff]  ;;  %v7693_v35 = vld [vmem:[%s13622_s10 + $0x18] sm:$0xff] }
 0xae2   : > { %8309 = vmatpush.bf16.msra.mxu3 %v7625_v3  ;;  %v10565_v3 = vld [vmem:[%s13621_s9 + $0x8c] sm:$0xf] }
 0xae3   : > { %v10031_v58 = vor.u32 %v10565_v3, %v10028_v56 }
 0xae6   : > { %8310 = vmatpush.bf16.msra.mxu3 %v7624_v4  ;;  %v10019_v4 = vor.u32 %v10566_v26, %v10018_v13  ;;  %v7691_v13 = vld [vmem:[%s13622_s10 + $0x8] sm:$0xff] }
 0xaea   : > { %8311 = vmatpush.bf16.msra.mxu3 %v7623_v11  ;;  %v9964_v11 = vld [vmem:[%s13621_s9 + $0x18] sm:$0xf0] }
 0xaee   : > { %8312 = vmatpush.bf16.msra.mxu3 %v12949_v23  ;;  %v10549_v23 = vld [vmem:[%s13621_s9 + $0xc] sm:$0xf] }
 0xaef   : > { %v9967_v43 = vor.u32 %v10549_v23, %v9964_v11 }
 0xaf2   : > { %8313 = vmatpush.bf16.msra.mxu3 %v12945_v21  ;;  %v9987_v21 = vor.u32 %v10558_v32, %v9986_v57  ;;  %v10569_v57 = vld [vmem:[%s13621_s9 + $0xac] sm:$0xf]  ;;  %v10044_v32 = vld [vmem:[%s13621_s9 + $0xb8] sm:$0xf0] }
 0xaf3   : > { %v10047_v11 = vor.u32 %v10569_v57, %v10044_v32  ;;  %v10581_v57 = vld [vmem:[%s13621_s9 + $0x10c] sm:$0xf] }
 0xaf4   : > { %8060 = vmatmul.bf16.gmra.mxu0 %v9987_v21  ;;  %v10068_v21 = vld [vmem:[%s13621_s9 + $0xf0] sm:$0xf0] }
 0xaf5   : > { %v10071_v23 = vor.u32 %v10576_v28, %v10068_v21  ;;  %v10092_v28 = vld [vmem:[%s13621_s9 + $0x118] sm:$0xf0] }
 0xaf6   : > { %8314 = vmatpush.bf16.msra.mxu3 %v12941_v48  ;;  %v9988_v48 = vld [vmem:[%s13621_s9 + $0x50] sm:$0xf0] }
 0xaf7   : > { %v9991_v33 = vor.u32 %v10556_v20, %v9988_v48  ;;  %v10090_v20 = vld [vmem:[%s13621_s9 + $0x108] sm:$0xf]  ;;  %v10583_v48 = vld [vmem:[%s13621_s9 + $0x114] sm:$0xf0] }
 0xaf9   : > { %8149 = vmatmul.bf16.gmra.mxu1 %v9991_v33  ;;  %v10082_v33 = vld [vmem:[%s13621_s9 + $0x100] sm:$0xf] }
 0xafa   : > { %8315 = vmatpush.bf16.msra.mxu3 %v12937_v63  ;;  %v10010_v63 = vld [vmem:[%s13621_s9 + $0x68] sm:$0xf] }
 0xafb   : > { %v10011_v39 = vor.u32 %v10563_v41, %v10010_v63  ;;  %v10091_v63 = vor.u32 %v10583_v48, %v10090_v20  ;;  %v7690_v41 = vld [vmem:[%s13622_s10] sm:$0xff] }
 0xafd   : > { %8243 = vmatmul.bf16.gmra.mxu2 %v10011_v39  ;;  %v10573_v39 = vld [vmem:[%s13621_s9 + $0xcc] sm:$0xf] }
 0xafe   : > { %8316 = vmatpush.bf16.msra.mxu3 %v12929_v15  ;;  %v10553_v15 = vld [vmem:[%s13621_s9 + $0x2c] sm:$0xf] }
 0xaff   : > { %v9983_v31 = vor.u32 %v10553_v15, %v9980_v60  ;;  %v10060_v15 = vld [vmem:[%s13621_s9 + $0xd8] sm:$0xf0] }
 0xb00   : > { %v10063_v25 = vor.u32 %v10573_v39, %v10060_v15 }
 0xb01   : > { %8317 = vmatmul.bf16.vlgmr.msra.gmra.mxu3 %v9967_v43  ;;  %v10582_v43 = vld [vmem:[%s13621_s9 + $0x10c] sm:$0xf0] }
 0xb02   : > { %v10083_v19 = vor.u32 %v10582_v43, %v10082_v33  ;;  %v10095_v33 = vor.u32 %v10581_v57, %v10092_v28  ;;  %v7694_v43 = vld [vmem:[%s13622_s10 + $0x20] sm:$0xff]  ;;  %v10124_v57 = vld [vmem:[%s13621_s9 + $0x158] sm:$0xf0] }
 0xb03   : > { %v10596_v28 = vld [vmem:[%s13621_s9 + $0x184] sm:$0xf] }
 0xb04   : > { %8065 = vmatmul.bf16.gmra.mxu0 %v10003_v24 }
 0xb09   : > { %8154 = vmatmul.bf16.gmra.mxu1 %v10007_v37 }
 0xb0d   : > { %8248 = vmatmul.bf16.gmra.mxu2 %v10027_v50 }
 0xb11   : > { %8322 = vmatmul.bf16.gmra.mxu3 %v9983_v31  ;;  %v10087_v31 = vor.u32 %v10580_v36, %v10084_v54 }
 0xb14   : > { %8070 = vmatmul.bf16.gmra.mxu0 %v10019_v4 }
 0xb19   : > { %8159 = vmatmul.bf16.gmra.mxu1 %v10023_v17  ;;  %v10106_v17 = vld [vmem:[%s13621_s9 + $0x128] sm:$0xf] }
 0xb1d   : > { %8253 = vmatmul.bf16.gmra.mxu2 %v10043_v10  ;;  %v10577_v10 = vld [vmem:[%s13621_s9 + $0xec] sm:$0xf] }
 0xb1e   : > { %v10079_v7 = vor.u32 %v10577_v10, %v10076_v55 }
 0xb21   : > { %8327 = vmatmul.bf16.gmra.mxu3 %v9999_v46  ;;  %v10587_v46 = vld [vmem:[%s13621_s9 + $0x134] sm:$0xf0] }
 0xb22   : > { %v10107_v59 = vor.u32 %v10587_v46, %v10106_v17  ;;  %v10592_v46 = vld [vmem:[%s13621_s9 + $0x164] sm:$0xf] }
 0xb24   : > { %8075 = vmatmul.bf16.gmra.mxu0 %v10035_v1  ;;  %v10099_v1 = vor.u32 %v10586_v8, %v10098_v52 }
 0xb29   : > { %8164 = vmatmul.bf16.gmra.mxu1 %v10039_v49  ;;  %v10103_v49 = vor.u32 %v10584_v2, %v10100_v16  ;;  %v7696_v2 = vld [vmem:[%s13622_s10 + $0x30] sm:$0xff] }
 0xb2d   : > { %8258 = vmatmul.bf16.gmra.mxu2 %v10059_v51 }
 0xb2f   : > { %v8051_v9 = vpop.f32.mrf.mxu0 }
 0xb30   : > { %v8052_v24 = vadd.f32 %v8051_v9, %v7690_v41  ;;  %v7695_v41 = vld [vmem:[%s13622_s10 + $0x28] sm:$0xff] }
 0xb31   : > { %8332 = vmatmul.bf16.gmra.mxu3 %v10015_v53 }
 0xb34   : > { %8080 = vmatmul.bf16.gmra.mxu0 %v10051_v5 }
 0xb37   : > { %v8229_v0 = vpop.f32.mrf.mxu2  ;;  %v8053_v26 = vpop.f32.mrf.mxu0 }
 0xb38   : > { %v8054_v4 = vadd.f32 %v8053_v26, %v7691_v13 }
 0xb39   : > { %8169 = vmatmul.bf16.gmra.mxu1 %v10055_v6  ;;  %v8140_v60 = vpop.f32.mrf.mxu1 }
 0xb3a   : > { %v8141_v37 = vadd.f32 %v8140_v60, %v8052_v24 }
 0xb3c   : > { %v13171_v50 = vadd.f32 %v8229_v0, %v8141_v37  ;;  %v10138_v0 = vld [vmem:[%s13621_s9 + $0x168] sm:$0xf] }
 0xb3d   : > { %8263 = vmatmul.bf16.gmra.mxu2 %v10075_v12  ;;  %v10114_v12 = vld [vmem:[%s13621_s9 + $0x140] sm:$0xf] }
 0xb3f   : > { %v8231_v61 = vpop.f32.mrf.mxu2 }
 0xb41   : > { %8337 = vmatmul.bf16.gmra.mxu3 %v10031_v58  ;;  %v8142_v47 = vpop.f32.mrf.mxu1  ;;  %v8056_v18 = vpop.f32.mrf.mxu0 }
 0xb42   : > { %v8143_v62 = vadd.f32 %v8142_v47, %v8054_v4  ;;  %v8057_v34 = vadd.f32 %v8056_v18, %v7692_v42  ;;  %v10130_v4 = vld [vmem:[%s13621_s9 + $0x160] sm:$0xf]  ;;  %v10585_v47 = vld [vmem:[%s13621_s9 + $0x12c] sm:$0xf] }
 0xb44   : > { %8085 = vmatmul.bf16.gmra.mxu0 %v10067_v44  ;;  %v13173_v29 = vadd.f32 %v8231_v61, %v8143_v62  ;;  %v10590_v44 = vld [vmem:[%s13621_s9 + $0x14c] sm:$0xf0]  ;;  %v10108_v61 = vld [vmem:[%s13621_s9 + $0x138] sm:$0xf0] }
 0xb45   : > { %v10115_v32 = vor.u32 %v10590_v44, %v10114_v12  ;;  %v10589_v12 = vld [vmem:[%s13621_s9 + $0x14c] sm:$0xf] }
 0xb47   : > { %v8234_v53 = vpop.f32.mrf.mxu2 }
 0xb49   : > { %8174 = vmatmul.bf16.gmra.mxu1 %v10071_v23  ;;  %v8145_v30 = vpop.f32.mrf.mxu1  ;;  %v8058_v51 = vpop.f32.mrf.mxu0  ;;  %v10588_v23 = vld [vmem:[%s13621_s9 + $0x144] sm:$0xf] }
 0xb4a   : > { %v8059_v5 = vadd.f32 %v8058_v51, %v7693_v35  ;;  %v8146_v3 = vadd.f32 %v8145_v30, %v8057_v34 }
 0xb4c   : > { %v13205_v45 = vadd.f32 %v8234_v53, %v8146_v3 }
 0xb4d   : > { %8268 = vmatmul.bf16.gmra.mxu2 %v10091_v63 }
 0xb4f   : > { %v8236_v6 = vpop.f32.mrf.mxu2 }
 0xb51   : > { %8342 = vmatmul.bf16.gmra.mxu3 %v10047_v11  ;;  %v8147_v56 = vpop.f32.mrf.mxu1  ;;  %v10116_v11 = vld [vmem:[%s13621_s9 + $0x150] sm:$0xf0] }
 0xb52   : > { %v8148_v14 = vadd.f32 %v8147_v56, %v8059_v5  ;;  %v10119_v20 = vor.u32 %v10588_v23, %v10116_v11 }
 0xb54   : > { %8090 = vmatmul.bf16.gmra.mxu0 %v10083_v19  ;;  %v13207_v58 = vadd.f32 %v8236_v6, %v8148_v14  ;;  %v10154_v6 = vld [vmem:[%s13621_s9 + $0x188] sm:$0xf] }
 0xb55   : > { %v10155_v38 = vor.u32 %v10599_v27, %v10154_v6  ;;  %v10156_v6 = vld [vmem:[%s13621_s9 + $0x198] sm:$0xf0] }
 0xb57   : > { %v8239_v48 = vpop.f32.mrf.mxu2 }
 0xb59   : > { %8179 = vmatmul.bf16.gmra.mxu1 %v10087_v31 }
 0xb5d   : > { %8273 = vmatmul.bf16.gmra.mxu2 %v10107_v59  ;;  %v10132_v59 = vld [vmem:[%s13621_s9 + $0x170] sm:$0xf0] }
 0xb5e   : > { %v10135_v18 = vor.u32 %v10592_v46, %v10132_v59  ;;  %v10164_v46 = vld [vmem:[%s13621_s9 + $0x1b0] sm:$0xf0] }
 0xb5f   : > { %v8241_v54 = vpop.f32.mrf.mxu2 }
 0xb61   : > { %8347 = vmatmul.bf16.gmra.mxu3 %v10063_v25  ;;  %v10595_v25 = vld [vmem:[%s13621_s9 + $0x174] sm:$0xf0] }
 0xb62   : > { %v10139_v13 = vor.u32 %v10595_v25, %v10138_v0  ;;  %v10170_v0 = vld [vmem:[%s13621_s9 + $0x1a8] sm:$0xf]  ;;  %v10603_v25 = vld [vmem:[%s13621_s9 + $0x1b4] sm:$0xf0] }
 0xb64   : > { %8095 = vmatmul.bf16.gmra.mxu0 %v10099_v1  ;;  %v10111_v1 = vor.u32 %v10585_v47, %v10108_v61 }
 0xb69   : > { %8184 = vmatmul.bf16.gmra.mxu1 %v10103_v49  ;;  %v7697_v49 = vld [vmem:[%s13622_s10 + $0x38] sm:$0xff] }
 0xb6d   : > { %8278 = vmatmul.bf16.gmra.mxu2 %v10123_v22 }
 0xb71   : > { %8352 = vmatmul.bf16.gmra.mxu3 %v10079_v7  ;;  %v8061_v40 = vpop.f32.mrf.mxu0 }
 0xb72   : > { %v8062_v63 = vadd.f32 %v8061_v40, %v7694_v43  ;;  %v10146_v40 = vld [vmem:[%s13621_s9 + $0x180] sm:$0xf] }
 0xb74   : > { %8100 = vmatmul.bf16.gmra.mxu0 %v10115_v32 }
 0xb76   : > { %v8150_v21 = vpop.f32.mrf.mxu1 }
 0xb77   : > { %v8151_v39 = vadd.f32 %v8150_v21, %v8062_v63  ;;  %v10148_v21 = vld [vmem:[%s13621_s9 + $0x190] sm:$0xf0] }
 0xb78   : > { %v10151_v23 = vor.u32 %v10596_v28, %v10148_v21 }
 0xb79   : > { %8189 = vmatmul.bf16.gmra.mxu1 %v10119_v20  ;;  %v8063_v19 = vpop.f32.mrf.mxu0  ;;  %v13239_v36 = vadd.f32 %v8239_v48, %v8151_v39 }
 0xb7a   : > { %v8064_v9 = vadd.f32 %v8063_v19, %v7695_v41  ;;  %v7698_v41 = vld [vmem:[%s13622_s10 + $0x40] sm:$0xff] }
 0xb7d   : > { %8283 = vmatmul.bf16.gmra.mxu2 %v10139_v13  ;;  %v10171_v13 = vor.u32 %v10603_v25, %v10170_v0  ;;  %v10608_v25 = vld [vmem:[%s13621_s9 + $0x1e4] sm:$0xf] }
 0xb7e   : > { %v8152_v24 = vpop.f32.mrf.mxu1 }
 0xb7f   : > { %v8153_v15 = vadd.f32 %v8152_v24, %v8064_v9 }
 0xb80   : > { %v8244_v8 = vpop.f32.mrf.mxu2 }
 0xb81   : > { %8357 = vmatmul.bf16.gmra.mxu3 %v10095_v33  ;;  %v13242_v31 = vadd.f32 %v8241_v54, %v8153_v15  ;;  %v8066_v26 = vpop.f32.mrf.mxu0  ;;  %v10127_v33 = vor.u32 %v10589_v12, %v10124_v57 }
 0xb82   : > { %v8067_v16 = vadd.f32 %v8066_v26, %v7696_v2 }
 0xb84   : > { %v8318_v60 = vpop.f32.mrf.mxu3 }
 0xb85   : > { %v8319_v37 = vadd.f32 %v8318_v60, %v13171_v50  ;;  %v10594_v50 = vld [vmem:[%s13621_s9 + $0x16c] sm:$0xf0] }
 0xb86   : > { %v10131_v62 = vor.u32 %v10594_v50, %v10130_v4  ;;  %v8155_v17 = vpop.f32.mrf.mxu1  ;;  %v10162_v4 = vld [vmem:[%s13621_s9 + $0x1a0] sm:$0xf]  ;;  %v10602_v50 = vld [vmem:[%s13621_s9 + $0x1ac] sm:$0xf0] }
 0xb87   : > { %v8398_v55 = vmax.f32 %v8319_v37, 0.0  ;;  %v8156_v34 = vadd.f32 %v8155_v17, %v8067_v16  ;;  %v10163_v47 = vor.u32 %v10602_v50, %v10162_v4  ;;  %v10600_v17 = vld [vmem:[%s13621_s9 + $0x1a4] sm:$0xf] }
 0xb88   : > { %8105 = vmatmul.bf16.gmra.mxu0 %v10131_v62  ;;  %v8246_v3 = vpop.f32.mrf.mxu2  ;;  %v10140_v62 = vld [vmem:[%s13621_s9 + $0x178] sm:$0xf0]  ;;  %v10167_v59 = vor.u32 %v10600_v17, %v10164_v46 }
 0xb89   : > { %8194 = vmatmul.bf16.gmra.mxu1 %v10135_v18  ;;  %v8068_v53 = vpop.f32.mrf.mxu0  ;;  %v13277_v5 = vadd.f32 %v8244_v8, %v8156_v34  ;;  %v10607_v34 = vld [vmem:[%s13621_s9 + $0x1d4] sm:$0xf0] }
 0xb8a   : > { %v8069_v7 = vadd.f32 %v8068_v53, %v7697_v49 }
 0xb8c   : > { %v8320_v52 = vpop.f32.mrf.mxu3 }
 0xb8d   : > { %v8321_v10 = vadd.f32 %v8320_v52, %v13173_v29  ;;  %8288 = vmatmul.bf16.gmra.mxu2 %v10155_v38  ;;  %v10604_v38 = vld [vmem:[%s13621_s9 + $0x1c4] sm:$0xf] }
 0xb8e   : > { %v8157_v29 = vpop.f32.mrf.mxu1 }
 0xb8f   : > { %v8399_v30 = vmax.f32 %v8321_v10, 0.0  ;;  %v8158_v35 = vadd.f32 %v8157_v29, %v8069_v7 }
 0xb90   : > { %v8249_v20 = vpop.f32.mrf.mxu2 }
 0xb91   : > { %8362 = vmatmul.bf16.gmra.mxu3 %v10111_v1  ;;  %v13275_v42 = vpack.c.bf16 %v8399_v30, %v8398_v55  ;;  %v13280_v14 = vadd.f32 %v8246_v3, %v8158_v35  ;;  %v8071_v22 = vpop.f32.mrf.mxu0  ;;  %v10606_v3 = vld [vmem:[%s13621_s9 + $0x1cc] sm:$0xf0] }
 0xb92   : > { %v8072_v19 = vadd.f32 %v8071_v22, %v7698_v41  ;;  %v10180_v22 = vld [vmem:[%s13621_s9 + $0x1d0] sm:$0xf0] }
 0xb94   : > { %v8323_v51 = vpop.f32.mrf.mxu3 }
 0xb95   : > { %v8324_v56 = vadd.f32 %v8323_v51, %v13205_v45  ;;  %v10598_v45 = vld [vmem:[%s13621_s9 + $0x18c] sm:$0xf0]  ;;  %v10178_v51 = vld [vmem:[%s13621_s9 + $0x1c0] sm:$0xf] }
 0xb96   : > { %v10147_v44 = vor.u32 %v10598_v45, %v10146_v40  ;;  %v8160_v32 = vpop.f32.mrf.mxu1  ;;  %v10183_v40 = vor.u32 %v10604_v38, %v10180_v22 }
 0xb97   : > { %v8400_v43 = vmax.f32 %v8324_v56, 0.0  ;;  %v8161_v24 = vadd.f32 %v8160_v32, %v8072_v19  ;;  %v10179_v56 = vor.u32 %v10606_v3, %v10178_v51  ;;  %v10194_v19 = vld [vmem:[%s13621_s9 + $0x1e0] sm:$0xf] }
 0xb98   : > { %8110 = vmatmul.bf16.gmra.mxu0 %v10147_v44 }
 0xb99   : > { %8199 = vmatmul.bf16.gmra.mxu1 %v10151_v23  ;;  %v13310_v9 = vpop.f32.mrf.mxu0  ;;  %v8250_v54 = vadd.f32 %v8249_v20, %v8161_v24  ;;  %v10610_v24 = vld [vmem:[%s13621_s9 + $0x1ec] sm:$0xf0] }
 0xb9c   : > { %v8325_v11 = vpop.f32.mrf.mxu3 }
 0xb9d   : > { %v8326_v48 = vadd.f32 %v8325_v11, %v13207_v58  ;;  %v13316_v58 = vpop.f32.mrf.mxu2  ;;  %8293 = vmatmul.bf16.gmra.mxu2 %v10171_v13  ;;  %v10196_v13 = vld [vmem:[%s13621_s9 + $0x1f0] sm:$0xf0] }
 0xb9e   : > { %v13314_v15 = vpop.f32.mrf.mxu1  ;;  %v10199_v4 = vor.u32 %v10608_v25, %v10196_v13  ;;  %v7709_v25 = vld [vmem:[%s13622_s10 + $0x98] sm:$0xff] }
 0xb9f   : > { %v8401_v63 = vmax.f32 %v8326_v48, 0.0 }
 0xba1   : > { %8367 = vmatmul.bf16.gmra.mxu3 %v10127_v33  ;;  %v13312_v39 = vpack.c.bf16 %v8401_v63, %v8400_v43  ;;  %v13325_v26 = vpop.f32.mrf.mxu0  ;;  %v10611_v43 = vld [vmem:[%s13621_s9 + $0x1f4] sm:$0xf0] }
 0xba4   : > { %v8328_v60 = vpop.f32.mrf.mxu3 }
 0xba5   : > { %v8329_v37 = vadd.f32 %v8328_v60, %v13239_v36  ;;  %v10593_v36 = vld [vmem:[%s13621_s9 + $0x16c] sm:$0xf]  ;;  %v13347_v52 = vpop.f32.mrf.mxu2 }
 0xba6   : > { %v13339_v61 = vpop.f32.mrf.mxu1  ;;  %v10143_v10 = vor.u32 %v10593_v36, %v10140_v62  ;;  %v10601_v60 = vld [vmem:[%s13621_s9 + $0x1ac] sm:$0xf] }
 0xba7   : > { %v8402_v1 = vmax.f32 %v8329_v37, 0.0  ;;  %v10172_v37 = vld [vmem:[%s13621_s9 + $0x1b8] sm:$0xf0] }
 0xba8   : > { %8115 = vmatmul.bf16.gmra.mxu0 %v10163_v47  ;;  %v10175_v47 = vor.u32 %v10601_v60, %v10172_v37  ;;  %v7708_v37 = vld [vmem:[%s13622_s10 + $0x90] sm:$0xff] }
 0xba9   : > { %8204 = vmatmul.bf16.gmra.mxu1 %v10167_v59  ;;  %v13350_v30 = vpop.f32.mrf.mxu0 }
 0xbac   : > { %v8330_v18 = vpop.f32.mrf.mxu3 }
 0xbad   : > { %v8331_v8 = vadd.f32 %v8330_v18, %v13242_v31  ;;  %v13356_v53 = vpop.f32.mrf.mxu2  ;;  %v10186_v31 = vld [vmem:[%s13621_s9 + $0x1c8] sm:$0xf] }
 0xbae   : > { %v13354_v16 = vpop.f32.mrf.mxu1  ;;  %v10187_v29 = vor.u32 %v10607_v34, %v10186_v31  ;;  %v7706_v31 = vld [vmem:[%s13622_s10 + $0x80] sm:$0xff]  ;;  %v7707_v34 = vld [vmem:[%s13622_s10 + $0x88] sm:$0xff] }
 0xbaf   : > { %v8403_v55 = vmax.f32 %v8331_v8, 0.0  ;;  %v10605_v8 = vld [vmem:[%s13621_s9 + $0x1cc] sm:$0xf] }
 0xbb0   : > { %8298 = vmatmul.bf16.gmra.mxu2 %v10187_v29 }
 0xbb1   : > { %8372 = vmatmul.bf16.gmra.mxu3 %v10143_v10  ;;  %v13352_v2 = vpack.c.bf16 %v8403_v55, %v8402_v1  ;;  %v13365_v35 = vpop.f32.mrf.mxu0  ;;  %v10188_v10 = vld [vmem:[%s13621_s9 + $0x1d8] sm:$0xf0] }
 0xbb4   : > { %v8333_v49 = vpop.f32.mrf.mxu3 }
 0xbb5   : > { %v8334_v7 = vadd.f32 %v8333_v49, %v13277_v5  ;;  %v10597_v5 = vld [vmem:[%s13621_s9 + $0x18c] sm:$0xf]  ;;  %v13387_v12 = vpop.f32.mrf.mxu2 }
 0xbb6   : > { %v13379_v27 = vpop.f32.mrf.mxu1  ;;  %v10159_v57 = vor.u32 %v10597_v5, %v10156_v6 }
 0xbb7   : > { %v8404_v32 = vmax.f32 %v8334_v7, 0.0  ;;  %v10191_v7 = vor.u32 %v10605_v8, %v10188_v10  ;;  %v7700_v10 = vld [vmem:[%s13622_s10 + $0x50] sm:$0xff] }
 0xbb8   : > { %8120 = vmatmul.bf16.gmra.mxu0 %v10179_v56 }
 0xbb9   : > { %8209 = vmatmul.bf16.gmra.mxu1 %v10183_v40  ;;  %v13390_v21 = vpop.f32.mrf.mxu0 }
 0xbbc   : > { %v8335_v45 = vpop.f32.mrf.mxu3 }
 0xbbd   : > { %v8336_v44 = vadd.f32 %v8335_v45, %v13280_v14  ;;  %v13396_v48 = vpop.f32.mrf.mxu2  ;;  %v10202_v14 = vld [vmem:[%s13621_s9 + $0x1e8] sm:$0xf] }
 0xbbe   : > { %v13394_v11 = vpop.f32.mrf.mxu1  ;;  %v10203_v63 = vor.u32 %v10611_v43, %v10202_v14  ;;  %v7704_v14 = vld [vmem:[%s13622_s10 + $0x70] sm:$0xff] }
 0xbbf   : > { %v8405_v28 = vmax.f32 %v8336_v44, 0.0 }
 0xbc0   : > { %8303 = vmatmul.bf16.gmra.mxu2 %v10203_v63 }
 0xbc1   : > { %8377 = vmatmul.bf16.gmra.mxu3 %v10159_v57  ;;  %v13392_v23 = vpack.c.bf16 %v8405_v28, %v8404_v32  ;;  %v8086_v41 = vpop.f32.mrf.mxu0  ;;  %v10609_v57 = vld [vmem:[%s13621_s9 + $0x1ec] sm:$0xf]  ;;  %v10204_v32 = vld [vmem:[%s13621_s9 + $0x1f8] sm:$0xf0] }
 0xbc2   : > { %v10207_v63 = vor.u32 %v10609_v57, %v10204_v32  ;;  %v8087_v60 = vadd.f32 %v8086_v41, %v7704_v14 }
 0xbc4   : > { %v8338_v20 = vpop.f32.mrf.mxu3 }
 0xbc5   : > { %v13398_v33 = vadd.f32 %v8338_v20, %v8250_v54  ;;  %v10195_v54 = vor.u32 %v10610_v24, %v10194_v19  ;;  %v13426_v36 = vpop.f32.mrf.mxu2  ;;  %v7702_v19 = vld [vmem:[%s13622_s10 + $0x60] sm:$0xff]  ;;  %v7703_v24 = vld [vmem:[%s13622_s10 + $0x68] sm:$0xff] }
 0xbc6   : > { %v8175_v0 = vpop.f32.mrf.mxu1  ;;  %v8084_v41 = vadd.f32 %v13390_v21, %v7703_v24  ;;  %v8077_v21 = vadd.f32 %v13325_v26, %v7700_v10 }
 0xbc8   : > { %8125 = vmatmul.bf16.gmra.mxu0 %v10195_v54  ;;  %v7705_v54 = vld [vmem:[%s13622_s10 + $0x78] sm:$0xff]  ;;  %v8166_v32 = vadd.f32 %v13339_v61, %v8077_v21 }
 0xbc9   : > { %8214 = vmatmul.bf16.gmra.mxu1 %v10199_v4  ;;  %v8088_v62 = vpop.f32.mrf.mxu0 }
 0xbca   : > { %v8255_v61 = vadd.f32 %v13347_v52, %v8166_v32 }
 0xbcc   : > { %v13424_v50 = vpop.f32.mrf.mxu3 }
 0xbcd   : > { %v13430_v59 = vpop.f32.mrf.mxu2 }
 0xbce   : > { %v8177_v17 = vpop.f32.mrf.mxu1 }
 0xbd1   : > { %8382 = vmatmul.bf16.gmra.mxu3 %v10175_v47  ;;  %v8091_v18 = vpop.f32.mrf.mxu0 }
 0xbd2   : > { %v8092_v51 = vadd.f32 %v8091_v18, %v7706_v31  ;;  %v8082_v18 = vadd.f32 %v13365_v35, %v7702_v19 }
 0xbd4   : > { %v13428_v46 = vpop.f32.mrf.mxu3 }
 0xbd5   : > { %v8269_v49 = vpop.f32.mrf.mxu2 }
 0xbd6   : > { %v8180_v1 = vpop.f32.mrf.mxu1 }
 0xbd7   : > { %v8181_v56 = vadd.f32 %v8180_v1, %v8092_v51  ;;  %v7701_v1 = vld [vmem:[%s13622_s10 + $0x58] sm:$0xff] }
 0xbd9   : > { %v8093_v29 = vpop.f32.mrf.mxu0  ;;  %v13446_v40 = vadd.f32 %v8269_v49, %v8181_v56  ;;  %v8176_v49 = vadd.f32 %v8175_v0, %v8087_v60  ;;  %v7699_v56 = vld [vmem:[%s13622_s10 + $0x48] sm:$0xff]  ;;  %v8173_v0 = vadd.f32 %v13394_v11, %v8084_v41 }
 0xbda   : > { %v8094_v3 = vadd.f32 %v8093_v29, %v7707_v34  ;;  %v8074_v57 = vadd.f32 %v13310_v9, %v7699_v56 }
 0xbdb   : > { %v8262_v14 = vadd.f32 %v13396_v48, %v8173_v0  ;;  %v7710_v48 = vld [vmem:[%s13622_s10 + $0xa0] sm:$0xff] }
 0xbdc   : > { %v13438_v55 = vpop.f32.mrf.mxu3 }
 0xbdd   : > { %v8271_v22 = vpop.f32.mrf.mxu2 }
 0xbde   : > { %v8182_v5 = vpop.f32.mrf.mxu1 }
 0xbdf   : > { %v8183_v6 = vadd.f32 %v8182_v5, %v8094_v3  ;;  %v8079_v5 = vadd.f32 %v13350_v30, %v7701_v1 }
 0xbe1   : > { %8387 = vmatmul.bf16.gmra.mxu3 %v10191_v7  ;;  %v13448_v45 = vadd.f32 %v8271_v22, %v8183_v6  ;;  %v8096_v44 = vpop.f32.mrf.mxu0  ;;  %v8089_v7 = vadd.f32 %v8088_v62, %v7705_v54  ;;  %v8171_v6 = vadd.f32 %v13379_v27, %v8082_v18  ;;  %v8265_v62 = vadd.f32 %v13426_v36, %v8176_v49 }
 0xbe2   : > { %v8097_v4 = vadd.f32 %v8096_v44, %v7708_v37  ;;  %v8168_v26 = vadd.f32 %v13354_v16, %v8079_v5 }
 0xbe3   : > { %v8178_v22 = vadd.f32 %v8177_v17, %v8089_v7  ;;  %v8260_v30 = vadd.f32 %v13387_v12, %v8171_v6  ;;  %v8163_v17 = vadd.f32 %v13314_v15, %v8074_v57 }
 0xbe4   : > { %v8348_v38 = vpop.f32.mrf.mxu3  ;;  %v8257_v9 = vadd.f32 %v13356_v53, %v8168_v26 }
 0xbe5   : > { %v8274_v43 = vpop.f32.mrf.mxu2  ;;  %v8267_v27 = vadd.f32 %v13430_v59, %v8178_v22  ;;  %v8349_v24 = vadd.f32 %v8348_v38, %v8260_v30  ;;  %v7711_v59 = vld [vmem:[%s13622_s10 + $0xa8] sm:$0xff]  ;;  %v8252_v52 = vadd.f32 %v13316_v58, %v8163_v17 }
 0xbe6   : > { %v8185_v28 = vpop.f32.mrf.mxu1  ;;  %v8346_v12 = vadd.f32 %v13438_v55, %v8257_v9 }
 0xbe7   : > { %v8186_v31 = vadd.f32 %v8185_v28, %v8097_v4 }
 0xbe8   : > { %v8409_v18 = vmax.f32 %v8346_v12, 0.0 }
 0xbe9   : > { %v8098_v13 = vpop.f32.mrf.mxu0  ;;  %v13482_v3 = vadd.f32 %v8274_v43, %v8186_v31 }
 0xbea   : > { %v8099_v47 = vadd.f32 %v8098_v13, %v7709_v25  ;;  %v8344_v25 = vadd.f32 %v13428_v46, %v8255_v61  ;;  %v8410_v13 = vmax.f32 %v8349_v24, 0.0 }
 0xbec   : > { %v8350_v20 = vpop.f32.mrf.mxu3  ;;  %v8408_v31 = vmax.f32 %v8344_v25, 0.0 }
 0xbed   : > { %v8276_v51 = vpop.f32.mrf.mxu2  ;;  %v8351_v19 = vadd.f32 %v8350_v20, %v8262_v14 }
 0xbee   : > { %v8187_v8 = vpop.f32.mrf.mxu1 }
 0xbef   : > { %v8188_v34 = vadd.f32 %v8187_v8, %v8099_v47  ;;  %v8411_v54 = vmax.f32 %v8351_v19, 0.0  ;;  %v8341_v47 = vadd.f32 %v13424_v50, %v8252_v52 }
 0xbf1   : > { %8392 = vmatmul.bf16.gmra.mxu3 %v10207_v63  ;;  %v13484_v35 = vadd.f32 %v8276_v51, %v8188_v34  ;;  %v8101_v44 = vpop.f32.mrf.mxu0  ;;  %v8436_v10 = vpack.c.bf16 %v8411_v54, %v8410_v13  ;;  %v8407_v34 = vmax.f32 %v8341_v47, 0.0  ;;  %v8406_v51 = vmax.f32 %v13398_v33, 0.0 }
 0xbf2   : > { %v8102_v37 = vadd.f32 %v8101_v44, %v7710_v48 }
 0xbf3   : > { %v8434_v50 = vpack.c.bf16 %v8407_v34, %v8406_v51 }
 0xbf4   : > { %v8353_v29 = vpop.f32.mrf.mxu3 }
 0xbf5   : > { %v8354_v43 = vadd.f32 %v8353_v29, %v8265_v62  ;;  %v8279_v11 = vpop.f32.mrf.mxu2  ;;  %v8435_v29 = vpack.c.bf16 %v8409_v18, %v8408_v31  ;;  %v7713_v62 = vld [vmem:[%s13622_s10 + $0xb8] sm:$0xff] }
 0xbf6   : > { %v8190_v28 = vpop.f32.mrf.mxu1 }
 0xbf7   : > { %v8412_v16 = vmax.f32 %v8354_v43, 0.0  ;;  %v8191_v55 = vadd.f32 %v8190_v28, %v8102_v37 }
 0xbf9   : > { %v8103_v20 = vpop.f32.mrf.mxu0  ;;  %v8280_v49 = vadd.f32 %v8279_v11, %v8191_v55 }
 0xbfa   : > { %v8104_v53 = vadd.f32 %v8103_v20, %v7711_v59 }
 0xbfc   : > { %v8355_v63 = vpop.f32.mrf.mxu3 }
 0xbfd   : > { %v8356_v36 = vadd.f32 %v8355_v63, %v8267_v27  ;;  %v8281_v8 = vpop.f32.mrf.mxu2 }
 0xbfe   : > { %v8192_v38 = vpop.f32.mrf.mxu1 }
 0xbff   : > { %v8413_v60 = vmax.f32 %v8356_v36, 0.0  ;;  %v8193_v4 = vadd.f32 %v8192_v38, %v8104_v53 }
 0xc01   : > { %v8437_v15 = vpack.c.bf16 %v8413_v60, %v8412_v16  ;;  %v8282_v7 = vadd.f32 %v8281_v8, %v8193_v4 }
 0xc03   : > { %8460 = vmatpush.bf16.msrb.mxu0 %v8437_v15 }
 0xc04   : > { %v8358_v41 = vpop.f32.mrf.mxu3 }
 0xc05   : > { %v8359_v1 = vadd.f32 %v8358_v41, %v13446_v40  ;;  %v8106_v58 = vpop.f32.mrf.mxu0  ;;  %v8284_v5 = vpop.f32.mrf.mxu2  ;;  %v7712_v40 = vld [vmem:[%s13622_s10 + $0xb0] sm:$0xff] }
 0xc06   : > { %v8195_v46 = vpop.f32.mrf.mxu1  ;;  %v8107_v33 = vadd.f32 %v8106_v58, %v7712_v40  ;;  %v7720_v40 = vld [vmem:[%s13622_s10 + $0xf0] sm:$0xff] }
 0xc07   : > { %8461 = vmatpush.bf16.msrb.mxu0 %v8436_v10  ;;  %v8414_v6 = vmax.f32 %v8359_v1, 0.0 }
 0xc0b   : > { %8462 = vmatpush.bf16.msrb.mxu0 %v8435_v29 }
 0xc0c   : > { %v8360_v21 = vpop.f32.mrf.mxu3 }
 0xc0d   : > { %v8361_v56 = vadd.f32 %v8360_v21, %v13448_v45  ;;  %v8108_v22 = vpop.f32.mrf.mxu0  ;;  %v8196_v45 = vadd.f32 %v8195_v46, %v8107_v33  ;;  %v8286_v30 = vpop.f32.mrf.mxu2  ;;  %v7718_v33 = vld [vmem:[%s13622_s10 + $0xe0] sm:$0xff] }
 0xc0e   : > { %v8109_v57 = vadd.f32 %v8108_v22, %v7713_v62  ;;  %v8197_v32 = vpop.f32.mrf.mxu1 }
 0xc0f   : > { %v8415_v0 = vmax.f32 %v8361_v56, 0.0  ;;  %8463 = vmatpush.bf16.msrb.mxu0 %v8434_v50  ;;  %v8285_v43 = vadd.f32 %v8284_v5, %v8196_v45 }
 0xc10   : > { %v8198_v26 = vadd.f32 %v8197_v32, %v8109_v57  ;;  %v7719_v57 = vld [vmem:[%s13622_s10 + $0xe8] sm:$0xff]  ;;  %v7721_v32 = vld [vmem:[%s13622_s10 + $0xf8] sm:$0xff] }
 0xc11   : > { %v13522_v44 = vpack.c.bf16 %v8415_v0, %v8414_v6 }
 0xc12   : > { %v8287_v27 = vadd.f32 %v8286_v30, %v8198_v26  ;;  %v7716_v26 = vld [vmem:[%s13622_s10 + $0xd0] sm:$0xff] }
 0xc13   : > { %8464 = vmatpush.bf16.msrb.mxu0 %v13392_v23  ;;  %v7714_v23 = vld [vmem:[%s13622_s10 + $0xc0] sm:$0xff] }
 0xc14   : > { %v8363_v28 = vpop.f32.mrf.mxu3 }
 0xc15   : > { %v8364_v14 = vadd.f32 %v8363_v28, %v13482_v3  ;;  %v8111_v17 = vpop.f32.mrf.mxu0  ;;  %v8289_v16 = vpop.f32.mrf.mxu2  ;;  %v7717_v28 = vld [vmem:[%s13622_s10 + $0xd8] sm:$0xff] }
 0xc16   : > { %v8112_v3 = vadd.f32 %v8111_v17, %v7714_v23  ;;  %v8200_v61 = vpop.f32.mrf.mxu1  ;;  %v7715_v23 = vld [vmem:[%s13622_s10 + $0xc8] sm:$0xff] }
 0xc17   : > { %8465 = vmatpush.bf16.msrb.mxu0 %v13352_v2  ;;  %v8416_v19 = vmax.f32 %v8364_v14, 0.0 }
 0xc18   : > { %v8201_v24 = vadd.f32 %v8200_v61, %v8112_v3 }
 0xc1a   : > { %v8290_v60 = vadd.f32 %v8289_v16, %v8201_v24  ;;  %v10613_v16 = vld [vmem:[%s13623_s11 + $0x4] sm:$0x10] }
 0xc1b   : > { %8466 = vmatpush.bf16.msrb.mxu0 %v13312_v39 }
 0xc1c   : > { %v8365_v63 = vpop.f32.mrf.mxu3 }
 0xc1d   : > { %v8366_v11 = vadd.f32 %v8365_v63, %v13484_v35  ;;  %v8113_v54 = vpop.f32.mrf.mxu0  ;;  %v13539_v52 = vpop.f32.mrf.mxu2 }
 0xc1e   : > { %v13537_v37 = vpop.f32.mrf.mxu1 }
 0xc1f   : > { %v8417_v36 = vmax.f32 %v8366_v11, 0.0  ;;  %8467 = vmatpush.bf16.msrb.mxu0 %v13275_v42 }
 0xc21   : > { %v13533_v9 = vpack.c.bf16 %v8417_v36, %v8416_v19 }
 0xc24   : > { %v8368_v2 = vpop.f32.mrf.mxu3 }
 0xc25   : > { %v8369_v39 = vadd.f32 %v8368_v2, %v8280_v49  ;;  %v8116_v25 = vpop.f32.mrf.mxu0  ;;  %v8294_v8 = vpop.f32.mrf.mxu2  ;;  %v10210_v2 = vld [vmem:[%s13623_s11] sm:$0xf] }
 0xc26   : > { %v8205_v47 = vpop.f32.mrf.mxu1  ;;  %v8117_v19 = vadd.f32 %v8116_v25, %v7716_v26 }
 0xc27   : > { %v8418_v48 = vmax.f32 %v8369_v39, 0.0 }
 0xc2c   : > { %v8370_v12 = vpop.f32.mrf.mxu3 }
 0xc2d   : > { %v8371_v35 = vadd.f32 %v8370_v12, %v8282_v7  ;;  %v8118_v10 = vpop.f32.mrf.mxu0  ;;  %v8296_v7 = vpop.f32.mrf.mxu2  ;;  %v8114_v12 = vadd.f32 %v8113_v54, %v7715_v23 }
 0xc2e   : > { %v8207_v49 = vpop.f32.mrf.mxu1  ;;  %v8119_v36 = vadd.f32 %v8118_v10, %v7717_v28 }
 0xc2f   : > { %v8419_v59 = vmax.f32 %v8371_v35, 0.0  ;;  %v8206_v35 = vadd.f32 %v8205_v47, %v8117_v19 }
 0xc31   : > { %v13535_v20 = vpack.c.bf16 %v8419_v59, %v8418_v48  ;;  %v8208_v48 = vadd.f32 %v8207_v49, %v8119_v36 }
 0xc33   : > { %v8297_v10 = vadd.f32 %v8296_v7, %v8208_v48 }
 0xc34   : > { %v8373_v42 = vpop.f32.mrf.mxu3 }
 0xc35   : > { %v8374_v15 = vadd.f32 %v8373_v42, %v8285_v43  ;;  %v8121_v31 = vpop.f32.mrf.mxu0  ;;  %v8299_v29 = vpop.f32.mrf.mxu2 }
 0xc36   : > { %v8210_v34 = vpop.f32.mrf.mxu1  ;;  %v8122_v30 = vadd.f32 %v8121_v31, %v7718_v33 }
 0xc37   : > { %v8420_v13 = vmax.f32 %v8374_v15, 0.0 }
 0xc38   : > { %v8211_v17 = vadd.f32 %v8210_v34, %v8122_v30 }
 0xc3a   : > { %v8300_v59 = vadd.f32 %v8299_v29, %v8211_v17 }
 0xc3c   : > { %v8375_v53 = vpop.f32.mrf.mxu3 }
 0xc3d   : > { %v8376_v38 = vadd.f32 %v8375_v53, %v8287_v27  ;;  %v8123_v51 = vpop.f32.mrf.mxu0  ;;  %v8301_v50 = vpop.f32.mrf.mxu2 }
 0xc3e   : > { %v8212_v21 = vpop.f32.mrf.mxu1  ;;  %v8124_v14 = vadd.f32 %v8123_v51, %v7719_v57 }
 0xc3f   : > { %v8421_v55 = vmax.f32 %v8376_v38, 0.0 }
 0xc40   : > { %v8213_v3 = vadd.f32 %v8212_v21, %v8124_v14 }
 0xc41   : > { %v13541_v4 = vpack.c.bf16 %v8421_v55, %v8420_v13  ;;  %v8203_v55 = vadd.f32 %v13537_v37, %v8114_v12 }
 0xc42   : > { %v8302_v42 = vadd.f32 %v8301_v50, %v8213_v3 }
 0xc43   : > { %v8292_v47 = vadd.f32 %v13539_v52, %v8203_v55  ;;  %v10612_v52 = vld [vmem:[%s13623_s11 + $0x4] sm:$0xf] }
 0xc44   : > { %v8378_v18 = vpop.f32.mrf.mxu3 }
 0xc45   : > { %v13543_v41 = vadd.f32 %v8378_v18, %v8290_v60  ;;  %v8126_v56 = vpop.f32.mrf.mxu0  ;;  %v8304_v62 = vpop.f32.mrf.mxu2  ;;  %v10211_v60 = vor.u32 %v10613_v16, %v10210_v2  ;;  %v8295_v18 = vadd.f32 %v8294_v8, %v8206_v35 }
 0xc46   : > { %v8215_v6 = vpop.f32.mrf.mxu1  ;;  %v8127_v22 = vadd.f32 %v8126_v56, %v7720_v40 }
 0xc47   : > { %8468 = vmatmul.bf16.vlgmr.msrb.gmra.mxu0 %v10211_v60  ;;  %v8422_v7 = vmax.f32 %v13543_v41, 0.0 }
 0xc48   : > { %v8216_v43 = vadd.f32 %v8215_v6, %v8127_v22 }
 0xc4a   : > { %v8305_v61 = vadd.f32 %v8304_v62, %v8216_v43  ;;  %v8449_v62 = vld [vmem:[%s13624_s12 + $0x8] sm:$0x1] }
 0xc4c   : > { %v13545_v1 = vpop.f32.mrf.mxu3 }
 0xc4d   : > { %v8128_v45 = vpop.f32.mrf.mxu0  ;;  %v8306_v39 = vpop.f32.mrf.mxu2  ;;  %v8381_v50 = vadd.f32 %v13545_v1, %v8292_v47  ;;  %v10212_v1 = vld [vmem:[%s13623_s11 + $0x8] sm:$0x10] }
 0xc4e   : > { %v8129_v27 = vadd.f32 %v8128_v45, %v7721_v32  ;;  %v8217_v11 = vpop.f32.mrf.mxu1  ;;  %v10215_v41 = vor.u32 %v10612_v52, %v10212_v1 }
 0xc4f   : > { %v8423_v37 = vmax.f32 %v8381_v50, 0.0 }
 0xc50   : > { %v8218_v24 = vadd.f32 %v8217_v11, %v8129_v27 }
 0xc52   : > { %v8307_v53 = vadd.f32 %v8306_v39, %v8218_v24 }
 0xc54   : > { %v8383_v58 = vpop.f32.mrf.mxu3 }
 0xc55   : > { %v8384_v49 = vadd.f32 %v8383_v58, %v8295_v18 }
 0xc57   : > { %v8424_v40 = vmax.f32 %v8384_v49, 0.0 }
 0xc5c   : > { %v8385_v46 = vpop.f32.mrf.mxu3 }
 0xc5d   : > { %v8386_v21 = vadd.f32 %v8385_v46, %v8297_v10  ;;  %v8442_v46 = vpack.c.bf16 %v8423_v37, %v8422_v7 }
 0xc5f   : > { %v8425_v6 = vmax.f32 %v8386_v21, 0.0 }
 0xc61   : > { %v8443_v8 = vpack.c.bf16 %v8425_v6, %v8424_v40 }
 0xc64   : > { %v8388_v5 = vpop.f32.mrf.mxu3 }
 0xc65   : > { %v8389_v31 = vadd.f32 %v8388_v5, %v8300_v59 }
 0xc67   : > { %v8426_v29 = vmax.f32 %v8389_v31, 0.0 }
 0xc6c   : > { %v8390_v0 = vpop.f32.mrf.mxu3 }
 0xc6d   : > { %v8391_v25 = vadd.f32 %v8390_v0, %v8302_v42 }
 0xc6f   : > { %v8427_v56 = vmax.f32 %v8391_v25, 0.0 }
 0xc71   : > { %v8444_v0 = vpack.c.bf16 %v8427_v56, %v8426_v29 }
 0xc74   : > { %v8393_v63 = vpop.f32.mrf.mxu3 }
 0xc75   : > { %v8394_v15 = vadd.f32 %v8393_v63, %v8305_v61 }
 0xc77   : > { %v8428_v34 = vmax.f32 %v8394_v15, 0.0 }
 0xc7c   : > { %v8395_v38 = vpop.f32.mrf.mxu3 }
 0xc7d   : > { %v8396_v13 = vadd.f32 %v8395_v38, %v8307_v53 }
 0xc7f   : > { %v8429_v51 = vmax.f32 %v8396_v13, 0.0 }
 0xc81   : > { %v8445_v54 = vpack.c.bf16 %v8429_v51, %v8428_v34 }
 0xc83   : > { %8474 = vmatpush.bf16.msrb.mxu1 %v8445_v54 }
 0xc87   : > { %8475 = vmatpush.bf16.msrb.mxu1 %v8444_v0 }
 0xc8b   : > { %8476 = vmatpush.bf16.msrb.mxu1 %v8443_v8 }
 0xc8f   : > { %8477 = vmatpush.bf16.msrb.mxu1 %v8442_v46 }
 0xc93   : > { %8478 = vmatpush.bf16.msrb.mxu1 %v13541_v4  ;;  %v8448_v4 = vld [vmem:[%s13624_s12] sm:$0xff] }
 0xc97   : > { %8479 = vmatpush.bf16.msrb.mxu1 %v13535_v20 }
 0xc9b   : > { %8480 = vmatpush.bf16.msrb.mxu1 %v13533_v9 }
 0xc9f   : > { %8481 = vmatpush.bf16.msrb.mxu1 %v13522_v44 }
 0xca2   : > { %8482 = vmatmul.bf16.vlgmr.msrb.gmra.mxu1 %v10215_v41 }
 0xcc4   : > { %v8469_v20 = vpop.f32.mrf.mxu0 }
 0xcc5   : > { %v8470_v58 = vadd.f32 %v8469_v20, %v8448_v4 }
 0xccc   : > { %v8471_v22 = vpop.f32.mrf.mxu0 }
 0xccd   : > { %v8472_v33 = vadd.f32 %v8471_v22, %v8449_v62 }
 0xd1f   : > { %v8483_v9 = vpop.f32.mrf.mxu1 }
 0xd20   : > { %v8484_v5 = vadd.f32 %v8483_v9, %v8470_v58 }
 0xd22   : > { %8488 = vst.msk [vmem:[%s11002_s21] sm:$0xff] %vm4385_vm1, %v8484_v5 }
 0xd27   : > { %v8485_v57 = vpop.f32.mrf.mxu1 }
 0xd28   : > { %v8486_v44 = vadd.f32 %v8485_v57, %v8472_v33 }
 0xd2a   : > { %8490 = vst.msk [vmem:[%s11002_s21 + $0x8] sm:$0x1] %vm8489_vm2, %v8486_v44 }
 0xd2b PF: > { %s13722_s7 = sld [smem:[#allocation8_spill]] }
 0xd2c   : > { %s13723_s29 = sld [smem:[#allocation6_spill]] }
 0xd2d   : > { %s13724_s30 = sld [smem:[#allocation7_spill]] }
 0xd2e   : > { %s13725_s15 = sld [smem:[#allocation9_spill]] }
 0xd2f   : > { %s13726_s16 = sld [smem:[#allocation10_spill]] }
 0xd31   : > { %s26_s17 = sadd.s32 1, %s13722_s7  }
 0xd32   : > { %p23_p12 = scmp.ge.s32.totalorder %s26_s17, 8  }
 0xd34   :  { %25 = sbr.rel (!%p23_p12) target bundleno = 5 (0x5), region = 127 }
 0xd39   :  { %8528 = vsyncpa [#allocation4], 1 }
 0xd3a   :  { %8530 = vsyncpa [#allocation4 + $0x1], 1 }

</bundles_post_ra>
